<compile_context>
chip_gen: v6e
topology: v6e:2x2x1
jax: 0.10.0
libtpu: 0.0.40
codegen_flags: <defaults>
</compile_context>

<pallas_src>
import functools

import jax
import jax.numpy as jnp
from jax import lax
from jax.experimental import pallas as pl
from jax.experimental.pallas import tpu as pltpu


# ----------------------------------------------------------------------------
# Kernel 1: fused Conv2d(3x3) + bias + ReLU + MaxPool2d(2,2)   (one image / step)
# ----------------------------------------------------------------------------
def _conv3x3_relu_pool_kernel(xe_ref, xo_ref, w_ref, b_ref, o_ref, *, hp_n, wp_n):
    """Per-image fused conv+relu+pool.

    xe_ref: (H, Wp+1, Cin)  even input columns (bf16)
    xo_ref: (H, Wp+1, Cin)  odd  input columns (bf16)
    w_ref : (9, Cin, Cout)  conv weights, tap-major (kh*3 + kw)      (bf16)
    b_ref : (1, Cout)       bias                                     (f32)
    o_ref : (Hp, Wp, Cout)  pooled output                            (bf16)
    """
    cout = o_ref.shape[-1]
    bias = b_ref[...]                           # (1, Cout) f32, loop-invariant
    wts = [w_ref[t] for t in range(9)]          # 9 x (Cin, Cout), loop-invariant

    def row_body(hp, carry):
        base = 2 * hp
        # The 2x2 pool window over conv rows {2hp, 2hp+1} needs input rows
        # base .. base+3.  Load each once (even / odd column streams).
        xe_rows = [xe_ref[base + r] for r in range(4)]   # each (Wp+1, Cin)
        xo_rows = [xo_ref[base + r] for r in range(4)]

        # accs[2*ri + parity] = conv row (2hp+ri), output-column parity (0=even, 1=odd)
        accs = [jnp.zeros((wp_n, cout), jnp.float32) for _ in range(4)]
        for ri in range(2):                  # conv row inside the 2x2 window
            for i in range(3):               # kernel row
                e = xe_rows[ri + i]
                o = xo_rows[ri + i]
                e0 = e[0:wp_n, :]            # x[row, 2*wp + 0, :]
                o0 = o[0:wp_n, :]            # x[row, 2*wp + 1, :]
                e1 = e[1:wp_n + 1, :]        # x[row, 2*wp + 2, :]
                o1 = o[1:wp_n + 1, :]        # x[row, 2*wp + 3, :]
                # tap j -> (even-output-column operand, odd-output-column operand)
                pieces = ((e0, o0), (o0, e1), (e1, o1))
                for j in range(3):
                    wt = wts[i * 3 + j]      # (Cin, Cout)
                    pe, po = pieces[j]
                    accs[2 * ri + 0] = accs[2 * ri + 0] + jnp.dot(
                        pe, wt, preferred_element_type=jnp.float32)
                    accs[2 * ri + 1] = accs[2 * ri + 1] + jnp.dot(
                        po, wt, preferred_element_type=jnp.float32)

        # 2x2 max pool, then bias + ReLU (bias constant over the window and ReLU
        # monotone, so relu(max(.) + b) == max(relu(. + b))).
        pooled = jnp.maximum(jnp.maximum(accs[0], accs[1]),
                             jnp.maximum(accs[2], accs[3]))
        pooled = jnp.maximum(pooled + bias, 0.0)
        o_ref[hp, :, :] = pooled.astype(o_ref.dtype)
        return carry

    lax.fori_loop(0, hp_n, row_body, 0)


def conv3x3_relu_pool(x, wtap, b):
    """x: (N, H, W, Cin) bf16 NHWC;  wtap: (9, Cin, Cout) bf16;  b: (1, Cout) f32."""
    n, h, w, cin = x.shape
    cout = wtap.shape[-1]
    hp, wp = (h - 2) // 2, (w - 2) // 2
    we = wp + 1
    # De-interleave columns once in glue (~1x input bytes, vs 9x for HBM im2col)
    # so the in-kernel pooling only needs contiguous loads.
    xe = x[:, :, 0:2 * wp + 1:2, :]      # (N, H, Wp+1, Cin)  even columns
    xo = x[:, :, 1:2 * wp + 2:2, :]      # (N, H, Wp+1, Cin)  odd  columns

    kernel = functools.partial(_conv3x3_relu_pool_kernel, hp_n=hp, wp_n=wp)
    return pl.pallas_call(
        kernel,
        out_shape=jax.ShapeDtypeStruct((n, hp, wp, cout), jnp.bfloat16),
        grid=(n,),
        in_specs=[
            pl.BlockSpec((None, h, we, cin), lambda b_: (b_, 0, 0, 0)),
            pl.BlockSpec((None, h, we, cin), lambda b_: (b_, 0, 0, 0)),
            pl.BlockSpec((9, cin, cout), lambda b_: (0, 0, 0)),
            pl.BlockSpec((1, cout), lambda b_: (0, 0)),
        ],
        out_specs=pl.BlockSpec((None, hp, wp, cout), lambda b_: (b_, 0, 0, 0)),
        compiler_params=pltpu.CompilerParams(dimension_semantics=("parallel",)),
    )(xe, xo, wtap, b)


# ----------------------------------------------------------------------------
# Kernel 2: fused classifier head  Linear(512->128) + ReLU + Linear(128->10)
# ----------------------------------------------------------------------------
def _fc_fused_kernel(x_ref, w1_ref, b1_ref, w2_ref, b2_ref, o_ref):
    # Dropout(0.5) layers are identity in eval mode.
    h = jnp.dot(x_ref[...], w1_ref[...], preferred_element_type=jnp.float32)
    h = jnp.maximum(h + b1_ref[...], 0.0)
    y = jnp.dot(h.astype(w2_ref.dtype), w2_ref[...],
                preferred_element_type=jnp.float32)
    o_ref[...] = (y + b2_ref[...]).astype(o_ref.dtype)


def fc_fused(xf, w1t, b1, w2t, b2):
    m, k1 = xf.shape
    n1 = w1t.shape[1]
    n2 = w2t.shape[1]
    return pl.pallas_call(
        _fc_fused_kernel,
        out_shape=jax.ShapeDtypeStruct((m, n2), jnp.float32),
        grid=(1,),
        in_specs=[
            pl.BlockSpec((m, k1), lambda i: (0, 0)),
            pl.BlockSpec((k1, n1), lambda i: (0, 0)),
            pl.BlockSpec((1, n1), lambda i: (0, 0)),
            pl.BlockSpec((n1, n2), lambda i: (0, 0)),
            pl.BlockSpec((1, n2), lambda i: (0, 0)),
        ],
        out_specs=pl.BlockSpec((m, n2), lambda i: (0, 0)),
    )(xf, w1t, b1, w2t, b2)


# ----------------------------------------------------------------------------
# Parameters (torch-layout) and one-time conversion to kernel layouts
# ----------------------------------------------------------------------------
def init_params(key, *, k=(16, 32, 64, 128), in_ch=3, to_linear=512,
                fc_hidden=128, label_length=10):
    keys = jax.random.split(key, 12)
    params = {"convs": [], "fc": []}
    chans = (in_ch,) + tuple(k)
    for li in range(4):
        cin, cout = chans[li], chans[li + 1]
        fan_in = cin * 9
        w = jax.random.normal(keys[2 * li], (cout, cin, 3, 3), jnp.float32) / jnp.sqrt(fan_in)
        bsc = jax.random.normal(keys[2 * li + 1], (cout,), jnp.float32) * 0.01
        params["convs"].append((w, bsc))
    w1 = jax.random.normal(keys[8], (fc_hidden, to_linear), jnp.float32) / jnp.sqrt(to_linear)
    b1 = jax.random.normal(keys[9], (fc_hidden,), jnp.float32) * 0.01
    w2 = jax.random.normal(keys[10], (label_length, fc_hidden), jnp.float32) / jnp.sqrt(fc_hidden)
    b2 = jax.random.normal(keys[11], (label_length,), jnp.float32) * 0.01
    params["fc"] = [(w1, b1), (w2, b2)]
    return params


def prepare_params(params):
    """One-time layout conversion: conv weights -> (9, Cin, Cout) bf16 tap-major,
    FC weights pre-transposed bf16, biases as (1, N) f32 rows."""
    convs = []
    for (w, bias) in params["convs"]:
        cout, cin, kh, kw = w.shape
        wtap = jnp.transpose(w, (2, 3, 1, 0)).reshape(kh * kw, cin, cout)
        convs.append((wtap.astype(jnp.bfloat16),
                      bias.reshape(1, cout).astype(jnp.float32)))
    (w1, b1), (w2, b2) = params["fc"]
    fc = (jnp.transpose(w1).astype(jnp.bfloat16),
          b1.reshape(1, -1).astype(jnp.float32),
          jnp.transpose(w2).astype(jnp.bfloat16),
          b2.reshape(1, -1).astype(jnp.float32))
    return {"convs": convs, "fc": fc}


# ----------------------------------------------------------------------------
# Model forward
# ----------------------------------------------------------------------------
def mycnn_forward(x_nchw, prepped):
    # NCHW (torch) -> NHWC; bf16 feeds the MXU, f32 accumulation inside kernels.
    x = jnp.transpose(x_nchw, (0, 2, 3, 1)).astype(jnp.bfloat16)
    for (wtap, bias) in prepped["convs"]:
        x = conv3x3_relu_pool(x, wtap, bias)   # fused conv + ReLU + maxpool kernel
    # Flatten exactly like torch's x.view(N, -1) on an NCHW tensor.
    xf = jnp.transpose(x, (0, 3, 1, 2)).reshape(x.shape[0], -1)
    w1t, b1, w2t, b2 = prepped["fc"]
    # Dropout(0.5) -> identity (eval).  # TODO(synk): train-mode dropout RNG not implemented.
    return fc_fused(xf, w1t, b1, w2t, b2)


if __name__ == "__main__":
    key = jax.random.PRNGKey(0)
    kx, kp = jax.random.split(key)

    # Small shapes: batch=2, 3x64x64 -> 4x(conv3x3+relu+pool2) -> (N,128,2,2) -> 512 feats
    x = jax.random.normal(kx, (2, 3, 64, 64), jnp.float32)
    params = init_params(kp, to_linear=512, fc_hidden=128, label_length=10)
    prepped = prepare_params(params)

    fwd = jax.jit(mycnn_forward)
    out = fwd(x, prepped)
    out = jax.block_until_ready(out)
    assert out.shape == (2, 10), out.shape
    print("KERNEL_OK")
</pallas_src>

<mosaic_0001>
module attributes {stable_mosaic.version = 11 : i64} {
  func.func @_conv3x3_relu_pool_kernel(%arg0: i32, %arg1: memref<1x64x32x3xbf16, #tpu.memory_space<vmem>>, %arg2: memref<1x64x32x3xbf16, #tpu.memory_space<vmem>>, %arg3: memref<9x3x16xbf16, #tpu.memory_space<vmem>>, %arg4: memref<1x16xf32, #tpu.memory_space<vmem>>, %arg5: memref<1x31x31x16xbf16, #tpu.memory_space<vmem>>) attributes {dimension_semantics = [#tpu.dimension_semantics<parallel>], iteration_bounds = array<i64: 2>, scalar_prefetch = 0 : i64, scratch_operands = 0 : i64, tpu.core_type = #tpu.core_type<tc>, window_params = [{transform_indices = @transform_0, window_bounds = array<i64: 1, 64, 32, 3>}, {transform_indices = @transform_1, window_bounds = array<i64: 1, 64, 32, 3>}, {pipeline_mode = #tpu.pipeline_mode<synchronous>, transform_indices = @transform_2, window_bounds = array<i64: 9, 3, 16>}, {pipeline_mode = #tpu.pipeline_mode<synchronous>, transform_indices = @transform_3, window_bounds = array<i64: 1, 16>}, {transform_indices = @transform_4, window_bounds = array<i64: 1, 31, 31, 16>}]} {
    %c0 = arith.constant 0 : index
    %c0_0 = arith.constant 0 : index
    %0 = vector.load %arg4[%c0, %c0_0] : memref<1x16xf32, #tpu.memory_space<vmem>>, vector<1x16xf32>
    %c0_1 = arith.constant 0 : index
    %c0_2 = arith.constant 0 : index
    %c0_3 = arith.constant 0 : index
    %1 = vector.load %arg3[%c0_1, %c0_2, %c0_3] : memref<9x3x16xbf16, #tpu.memory_space<vmem>>, vector<1x3x16xbf16>
    %2 = vector.shape_cast %1 : vector<1x3x16xbf16> to vector<3x16xbf16>
    %c1 = arith.constant 1 : index
    %c0_4 = arith.constant 0 : index
    %c0_5 = arith.constant 0 : index
    %3 = vector.load %arg3[%c1, %c0_4, %c0_5] : memref<9x3x16xbf16, #tpu.memory_space<vmem>>, vector<1x3x16xbf16>
    %4 = vector.shape_cast %3 : vector<1x3x16xbf16> to vector<3x16xbf16>
    %c2 = arith.constant 2 : index
    %c0_6 = arith.constant 0 : index
    %c0_7 = arith.constant 0 : index
    %5 = vector.load %arg3[%c2, %c0_6, %c0_7] : memref<9x3x16xbf16, #tpu.memory_space<vmem>>, vector<1x3x16xbf16>
    %6 = vector.shape_cast %5 : vector<1x3x16xbf16> to vector<3x16xbf16>
    %c3 = arith.constant 3 : index
    %c0_8 = arith.constant 0 : index
    %c0_9 = arith.constant 0 : index
    %7 = vector.load %arg3[%c3, %c0_8, %c0_9] : memref<9x3x16xbf16, #tpu.memory_space<vmem>>, vector<1x3x16xbf16>
    %8 = vector.shape_cast %7 : vector<1x3x16xbf16> to vector<3x16xbf16>
    %c4 = arith.constant 4 : index
    %c0_10 = arith.constant 0 : index
    %c0_11 = arith.constant 0 : index
    %9 = vector.load %arg3[%c4, %c0_10, %c0_11] : memref<9x3x16xbf16, #tpu.memory_space<vmem>>, vector<1x3x16xbf16>
    %10 = vector.shape_cast %9 : vector<1x3x16xbf16> to vector<3x16xbf16>
    %c5 = arith.constant 5 : index
    %c0_12 = arith.constant 0 : index
    %c0_13 = arith.constant 0 : index
    %11 = vector.load %arg3[%c5, %c0_12, %c0_13] : memref<9x3x16xbf16, #tpu.memory_space<vmem>>, vector<1x3x16xbf16>
    %12 = vector.shape_cast %11 : vector<1x3x16xbf16> to vector<3x16xbf16>
    %c6 = arith.constant 6 : index
    %c0_14 = arith.constant 0 : index
    %c0_15 = arith.constant 0 : index
    %13 = vector.load %arg3[%c6, %c0_14, %c0_15] : memref<9x3x16xbf16, #tpu.memory_space<vmem>>, vector<1x3x16xbf16>
    %14 = vector.shape_cast %13 : vector<1x3x16xbf16> to vector<3x16xbf16>
    %c7 = arith.constant 7 : index
    %c0_16 = arith.constant 0 : index
    %c0_17 = arith.constant 0 : index
    %15 = vector.load %arg3[%c7, %c0_16, %c0_17] : memref<9x3x16xbf16, #tpu.memory_space<vmem>>, vector<1x3x16xbf16>
    %16 = vector.shape_cast %15 : vector<1x3x16xbf16> to vector<3x16xbf16>
    %c8 = arith.constant 8 : index
    %c0_18 = arith.constant 0 : index
    %c0_19 = arith.constant 0 : index
    %17 = vector.load %arg3[%c8, %c0_18, %c0_19] : memref<9x3x16xbf16, #tpu.memory_space<vmem>>, vector<1x3x16xbf16>
    %18 = vector.shape_cast %17 : vector<1x3x16xbf16> to vector<3x16xbf16>
    %c0_i32 = arith.constant 0 : i32
    %c31_i32 = arith.constant 31 : i32
    %19 = arith.addi %c0_i32, %c31_i32 : i32
    %c1_i32 = arith.constant 1 : i32
    scf.for %arg6 = %c0_i32 to %19 step %c1_i32  : i32 {
      %c2_i32 = arith.constant 2 : i32
      %20 = arith.muli %c2_i32, %arg6 : i32
      %c0_i32_21 = arith.constant 0 : i32
      %21 = arith.addi %20, %c0_i32_21 : i32
      %c0_22 = arith.constant 0 : index
      %22 = arith.index_cast %21 : i32 to index
      %c0_23 = arith.constant 0 : index
      %c0_24 = arith.constant 0 : index
      %23 = vector.load %arg1[%c0_22, %22, %c0_23, %c0_24] : memref<1x64x32x3xbf16, #tpu.memory_space<vmem>>, vector<1x1x32x3xbf16>
      %24 = vector.shape_cast %23 : vector<1x1x32x3xbf16> to vector<32x3xbf16>
      %c1_i32_25 = arith.constant 1 : i32
      %25 = arith.addi %20, %c1_i32_25 : i32
      %c0_26 = arith.constant 0 : index
      %26 = arith.index_cast %25 : i32 to index
      %c0_27 = arith.constant 0 : index
      %c0_28 = arith.constant 0 : index
      %27 = vector.load %arg1[%c0_26, %26, %c0_27, %c0_28] : memref<1x64x32x3xbf16, #tpu.memory_space<vmem>>, vector<1x1x32x3xbf16>
      %28 = vector.shape_cast %27 : vector<1x1x32x3xbf16> to vector<32x3xbf16>
      %c2_i32_29 = arith.constant 2 : i32
      %29 = arith.addi %20, %c2_i32_29 : i32
      %c0_30 = arith.constant 0 : index
      %30 = arith.index_cast %29 : i32 to index
      %c0_31 = arith.constant 0 : index
      %c0_32 = arith.constant 0 : index
      %31 = vector.load %arg1[%c0_30, %30, %c0_31, %c0_32] : memref<1x64x32x3xbf16, #tpu.memory_space<vmem>>, vector<1x1x32x3xbf16>
      %32 = vector.shape_cast %31 : vector<1x1x32x3xbf16> to vector<32x3xbf16>
      %c3_i32 = arith.constant 3 : i32
      %33 = arith.addi %20, %c3_i32 : i32
      %c0_33 = arith.constant 0 : index
      %34 = arith.index_cast %33 : i32 to index
      %c0_34 = arith.constant 0 : index
      %c0_35 = arith.constant 0 : index
      %35 = vector.load %arg1[%c0_33, %34, %c0_34, %c0_35] : memref<1x64x32x3xbf16, #tpu.memory_space<vmem>>, vector<1x1x32x3xbf16>
      %36 = vector.shape_cast %35 : vector<1x1x32x3xbf16> to vector<32x3xbf16>
      %c0_i32_36 = arith.constant 0 : i32
      %37 = arith.addi %20, %c0_i32_36 : i32
      %c0_37 = arith.constant 0 : index
      %38 = arith.index_cast %37 : i32 to index
      %c0_38 = arith.constant 0 : index
      %c0_39 = arith.constant 0 : index
      %39 = vector.load %arg2[%c0_37, %38, %c0_38, %c0_39] : memref<1x64x32x3xbf16, #tpu.memory_space<vmem>>, vector<1x1x32x3xbf16>
      %40 = vector.shape_cast %39 : vector<1x1x32x3xbf16> to vector<32x3xbf16>
      %c1_i32_40 = arith.constant 1 : i32
      %41 = arith.addi %20, %c1_i32_40 : i32
      %c0_41 = arith.constant 0 : index
      %42 = arith.index_cast %41 : i32 to index
      %c0_42 = arith.constant 0 : index
      %c0_43 = arith.constant 0 : index
      %43 = vector.load %arg2[%c0_41, %42, %c0_42, %c0_43] : memref<1x64x32x3xbf16, #tpu.memory_space<vmem>>, vector<1x1x32x3xbf16>
      %44 = vector.shape_cast %43 : vector<1x1x32x3xbf16> to vector<32x3xbf16>
      %c2_i32_44 = arith.constant 2 : i32
      %45 = arith.addi %20, %c2_i32_44 : i32
      %c0_45 = arith.constant 0 : index
      %46 = arith.index_cast %45 : i32 to index
      %c0_46 = arith.constant 0 : index
      %c0_47 = arith.constant 0 : index
      %47 = vector.load %arg2[%c0_45, %46, %c0_46, %c0_47] : memref<1x64x32x3xbf16, #tpu.memory_space<vmem>>, vector<1x1x32x3xbf16>
      %48 = vector.shape_cast %47 : vector<1x1x32x3xbf16> to vector<32x3xbf16>
      %c3_i32_48 = arith.constant 3 : i32
      %49 = arith.addi %20, %c3_i32_48 : i32
      %c0_49 = arith.constant 0 : index
      %50 = arith.index_cast %49 : i32 to index
      %c0_50 = arith.constant 0 : index
      %c0_51 = arith.constant 0 : index
      %51 = vector.load %arg2[%c0_49, %50, %c0_50, %c0_51] : memref<1x64x32x3xbf16, #tpu.memory_space<vmem>>, vector<1x1x32x3xbf16>
      %52 = vector.shape_cast %51 : vector<1x1x32x3xbf16> to vector<32x3xbf16>
      %cst = arith.constant 0.000000e+00 : f32
      %53 = vector.broadcast %cst : f32 to vector<31x16xf32>
      %cst_52 = arith.constant 0.000000e+00 : f32
      %54 = vector.broadcast %cst_52 : f32 to vector<31x16xf32>
      %cst_53 = arith.constant 0.000000e+00 : f32
      %55 = vector.broadcast %cst_53 : f32 to vector<31x16xf32>
      %cst_54 = arith.constant 0.000000e+00 : f32
      %56 = vector.broadcast %cst_54 : f32 to vector<31x16xf32>
      %57 = vector.extract_strided_slice %24 {offsets = [0, 0], sizes = [31, 3], strides = [1, 1]} : vector<32x3xbf16> to vector<31x3xbf16>
      %58 = vector.extract_strided_slice %40 {offsets = [0, 0], sizes = [31, 3], strides = [1, 1]} : vector<32x3xbf16> to vector<31x3xbf16>
      %59 = vector.extract_strided_slice %24 {offsets = [1, 0], sizes = [31, 3], strides = [1, 1]} : vector<32x3xbf16> to vector<31x3xbf16>
      %60 = vector.extract_strided_slice %40 {offsets = [1, 0], sizes = [31, 3], strides = [1, 1]} : vector<32x3xbf16> to vector<31x3xbf16>
      %cst_55 = arith.constant dense<0.000000e+00> : vector<31x16xf32>
      %61 = tpu.matmul %57, %2, %cst_55 {dimension_numbers = #tpu.dot_dimension_numbers<[1], [0], [0], [1], [0, 0, 1, 1], [], []>} : vector<31x3xbf16>, vector<3x16xbf16>, vector<31x16xf32> -> vector<31x16xf32>
      %62 = arith.addf %53, %61 : vector<31x16xf32>
      %cst_56 = arith.constant dense<0.000000e+00> : vector<31x16xf32>
      %63 = tpu.matmul %58, %2, %cst_56 {dimension_numbers = #tpu.dot_dimension_numbers<[1], [0], [0], [1], [0, 0, 1, 1], [], []>} : vector<31x3xbf16>, vector<3x16xbf16>, vector<31x16xf32> -> vector<31x16xf32>
      %64 = arith.addf %54, %63 : vector<31x16xf32>
      %cst_57 = arith.constant dense<0.000000e+00> : vector<31x16xf32>
      %65 = tpu.matmul %58, %4, %cst_57 {dimension_numbers = #tpu.dot_dimension_numbers<[1], [0], [0], [1], [0, 0, 1, 1], [], []>} : vector<31x3xbf16>, vector<3x16xbf16>, vector<31x16xf32> -> vector<31x16xf32>
      %66 = arith.addf %62, %65 : vector<31x16xf32>
      %cst_58 = arith.constant dense<0.000000e+00> : vector<31x16xf32>
      %67 = tpu.matmul %59, %4, %cst_58 {dimension_numbers = #tpu.dot_dimension_numbers<[1], [0], [0], [1], [0, 0, 1, 1], [], []>} : vector<31x3xbf16>, vector<3x16xbf16>, vector<31x16xf32> -> vector<31x16xf32>
      %68 = arith.addf %64, %67 : vector<31x16xf32>
      %cst_59 = arith.constant dense<0.000000e+00> : vector<31x16xf32>
      %69 = tpu.matmul %59, %6, %cst_59 {dimension_numbers = #tpu.dot_dimension_numbers<[1], [0], [0], [1], [0, 0, 1, 1], [], []>} : vector<31x3xbf16>, vector<3x16xbf16>, vector<31x16xf32> -> vector<31x16xf32>
      %70 = arith.addf %66, %69 : vector<31x16xf32>
      %cst_60 = arith.constant dense<0.000000e+00> : vector<31x16xf32>
      %71 = tpu.matmul %60, %6, %cst_60 {dimension_numbers = #tpu.dot_dimension_numbers<[1], [0], [0], [1], [0, 0, 1, 1], [], []>} : vector<31x3xbf16>, vector<3x16xbf16>, vector<31x16xf32> -> vector<31x16xf32>
      %72 = arith.addf %68, %71 : vector<31x16xf32>
      %73 = vector.extract_strided_slice %28 {offsets = [0, 0], sizes = [31, 3], strides = [1, 1]} : vector<32x3xbf16> to vector<31x3xbf16>
      %74 = vector.extract_strided_slice %44 {offsets = [0, 0], sizes = [31, 3], strides = [1, 1]} : vector<32x3xbf16> to vector<31x3xbf16>
      %75 = vector.extract_strided_slice %28 {offsets = [1, 0], sizes = [31, 3], strides = [1, 1]} : vector<32x3xbf16> to vector<31x3xbf16>
      %76 = vector.extract_strided_slice %44 {offsets = [1, 0], sizes = [31, 3], strides = [1, 1]} : vector<32x3xbf16> to vector<31x3xbf16>
      %cst_61 = arith.constant dense<0.000000e+00> : vector<31x16xf32>
      %77 = tpu.matmul %73, %8, %cst_61 {dimension_numbers = #tpu.dot_dimension_numbers<[1], [0], [0], [1], [0, 0, 1, 1], [], []>} : vector<31x3xbf16>, vector<3x16xbf16>, vector<31x16xf32> -> vector<31x16xf32>
      %78 = arith.addf %70, %77 : vector<31x16xf32>
      %cst_62 = arith.constant dense<0.000000e+00> : vector<31x16xf32>
      %79 = tpu.matmul %74, %8, %cst_62 {dimension_numbers = #tpu.dot_dimension_numbers<[1], [0], [0], [1], [0, 0, 1, 1], [], []>} : vector<31x3xbf16>, vector<3x16xbf16>, vector<31x16xf32> -> vector<31x16xf32>
      %80 = arith.addf %72, %79 : vector<31x16xf32>
      %cst_63 = arith.constant dense<0.000000e+00> : vector<31x16xf32>
      %81 = tpu.matmul %74, %10, %cst_63 {dimension_numbers = #tpu.dot_dimension_numbers<[1], [0], [0], [1], [0, 0, 1, 1], [], []>} : vector<31x3xbf16>, vector<3x16xbf16>, vector<31x16xf32> -> vector<31x16xf32>
      %82 = arith.addf %78, %81 : vector<31x16xf32>
      %cst_64 = arith.constant dense<0.000000e+00> : vector<31x16xf32>
      %83 = tpu.matmul %75, %10, %cst_64 {dimension_numbers = #tpu.dot_dimension_numbers<[1], [0], [0], [1], [0, 0, 1, 1], [], []>} : vector<31x3xbf16>, vector<3x16xbf16>, vector<31x16xf32> -> vector<31x16xf32>
      %84 = arith.addf %80, %83 : vector<31x16xf32>
      %cst_65 = arith.constant dense<0.000000e+00> : vector<31x16xf32>
      %85 = tpu.matmul %75, %12, %cst_65 {dimension_numbers = #tpu.dot_dimension_numbers<[1], [0], [0], [1], [0, 0, 1, 1], [], []>} : vector<31x3xbf16>, vector<3x16xbf16>, vector<31x16xf32> -> vector<31x16xf32>
      %86 = arith.addf %82, %85 : vector<31x16xf32>
      %cst_66 = arith.constant dense<0.000000e+00> : vector<31x16xf32>
      %87 = tpu.matmul %76, %12, %cst_66 {dimension_numbers = #tpu.dot_dimension_numbers<[1], [0], [0], [1], [0, 0, 1, 1], [], []>} : vector<31x3xbf16>, vector<3x16xbf16>, vector<31x16xf32> -> vector<31x16xf32>
      %88 = arith.addf %84, %87 : vector<31x16xf32>
      %89 = vector.extract_strided_slice %32 {offsets = [0, 0], sizes = [31, 3], strides = [1, 1]} : vector<32x3xbf16> to vector<31x3xbf16>
      %90 = vector.extract_strided_slice %48 {offsets = [0, 0], sizes = [31, 3], strides = [1, 1]} : vector<32x3xbf16> to vector<31x3xbf16>
      %91 = vector.extract_strided_slice %32 {offsets = [1, 0], sizes = [31, 3], strides = [1, 1]} : vector<32x3xbf16> to vector<31x3xbf16>
      %92 = vector.extract_strided_slice %48 {offsets = [1, 0], sizes = [31, 3], strides = [1, 1]} : vector<32x3xbf16> to vector<31x3xbf16>
      %cst_67 = arith.constant dense<0.000000e+00> : vector<31x16xf32>
      %93 = tpu.matmul %89, %14, %cst_67 {dimension_numbers = #tpu.dot_dimension_numbers<[1], [0], [0], [1], [0, 0, 1, 1], [], []>} : vector<31x3xbf16>, vector<3x16xbf16>, vector<31x16xf32> -> vector<31x16xf32>
      %94 = arith.addf %86, %93 : vector<31x16xf32>
      %cst_68 = arith.constant dense<0.000000e+00> : vector<31x16xf32>
      %95 = tpu.matmul %90, %14, %cst_68 {dimension_numbers = #tpu.dot_dimension_numbers<[1], [0], [0], [1], [0, 0, 1, 1], [], []>} : vector<31x3xbf16>, vector<3x16xbf16>, vector<31x16xf32> -> vector<31x16xf32>
      %96 = arith.addf %88, %95 : vector<31x16xf32>
      %cst_69 = arith.constant dense<0.000000e+00> : vector<31x16xf32>
      %97 = tpu.matmul %90, %16, %cst_69 {dimension_numbers = #tpu.dot_dimension_numbers<[1], [0], [0], [1], [0, 0, 1, 1], [], []>} : vector<31x3xbf16>, vector<3x16xbf16>, vector<31x16xf32> -> vector<31x16xf32>
      %98 = arith.addf %94, %97 : vector<31x16xf32>
      %cst_70 = arith.constant dense<0.000000e+00> : vector<31x16xf32>
      %99 = tpu.matmul %91, %16, %cst_70 {dimension_numbers = #tpu.dot_dimension_numbers<[1], [0], [0], [1], [0, 0, 1, 1], [], []>} : vector<31x3xbf16>, vector<3x16xbf16>, vector<31x16xf32> -> vector<31x16xf32>
      %100 = arith.addf %96, %99 : vector<31x16xf32>
      %cst_71 = arith.constant dense<0.000000e+00> : vector<31x16xf32>
      %101 = tpu.matmul %91, %18, %cst_71 {dimension_numbers = #tpu.dot_dimension_numbers<[1], [0], [0], [1], [0, 0, 1, 1], [], []>} : vector<31x3xbf16>, vector<3x16xbf16>, vector<31x16xf32> -> vector<31x16xf32>
      %102 = arith.addf %98, %101 : vector<31x16xf32>
      %cst_72 = arith.constant dense<0.000000e+00> : vector<31x16xf32>
      %103 = tpu.matmul %92, %18, %cst_72 {dimension_numbers = #tpu.dot_dimension_numbers<[1], [0], [0], [1], [0, 0, 1, 1], [], []>} : vector<31x3xbf16>, vector<3x16xbf16>, vector<31x16xf32> -> vector<31x16xf32>
      %104 = arith.addf %100, %103 : vector<31x16xf32>
      %105 = vector.extract_strided_slice %28 {offsets = [0, 0], sizes = [31, 3], strides = [1, 1]} : vector<32x3xbf16> to vector<31x3xbf16>
      %106 = vector.extract_strided_slice %44 {offsets = [0, 0], sizes = [31, 3], strides = [1, 1]} : vector<32x3xbf16> to vector<31x3xbf16>
      %107 = vector.extract_strided_slice %28 {offsets = [1, 0], sizes = [31, 3], strides = [1, 1]} : vector<32x3xbf16> to vector<31x3xbf16>
      %108 = vector.extract_strided_slice %44 {offsets = [1, 0], sizes = [31, 3], strides = [1, 1]} : vector<32x3xbf16> to vector<31x3xbf16>
      %cst_73 = arith.constant dense<0.000000e+00> : vector<31x16xf32>
      %109 = tpu.matmul %105, %2, %cst_73 {dimension_numbers = #tpu.dot_dimension_numbers<[1], [0], [0], [1], [0, 0, 1, 1], [], []>} : vector<31x3xbf16>, vector<3x16xbf16>, vector<31x16xf32> -> vector<31x16xf32>
      %110 = arith.addf %55, %109 : vector<31x16xf32>
      %cst_74 = arith.constant dense<0.000000e+00> : vector<31x16xf32>
      %111 = tpu.matmul %106, %2, %cst_74 {dimension_numbers = #tpu.dot_dimension_numbers<[1], [0], [0], [1], [0, 0, 1, 1], [], []>} : vector<31x3xbf16>, vector<3x16xbf16>, vector<31x16xf32> -> vector<31x16xf32>
      %112 = arith.addf %56, %111 : vector<31x16xf32>
      %cst_75 = arith.constant dense<0.000000e+00> : vector<31x16xf32>
      %113 = tpu.matmul %106, %4, %cst_75 {dimension_numbers = #tpu.dot_dimension_numbers<[1], [0], [0], [1], [0, 0, 1, 1], [], []>} : vector<31x3xbf16>, vector<3x16xbf16>, vector<31x16xf32> -> vector<31x16xf32>
      %114 = arith.addf %110, %113 : vector<31x16xf32>
      %cst_76 = arith.constant dense<0.000000e+00> : vector<31x16xf32>
      %115 = tpu.matmul %107, %4, %cst_76 {dimension_numbers = #tpu.dot_dimension_numbers<[1], [0], [0], [1], [0, 0, 1, 1], [], []>} : vector<31x3xbf16>, vector<3x16xbf16>, vector<31x16xf32> -> vector<31x16xf32>
      %116 = arith.addf %112, %115 : vector<31x16xf32>
      %cst_77 = arith.constant dense<0.000000e+00> : vector<31x16xf32>
      %117 = tpu.matmul %107, %6, %cst_77 {dimension_numbers = #tpu.dot_dimension_numbers<[1], [0], [0], [1], [0, 0, 1, 1], [], []>} : vector<31x3xbf16>, vector<3x16xbf16>, vector<31x16xf32> -> vector<31x16xf32>
      %118 = arith.addf %114, %117 : vector<31x16xf32>
      %cst_78 = arith.constant dense<0.000000e+00> : vector<31x16xf32>
      %119 = tpu.matmul %108, %6, %cst_78 {dimension_numbers = #tpu.dot_dimension_numbers<[1], [0], [0], [1], [0, 0, 1, 1], [], []>} : vector<31x3xbf16>, vector<3x16xbf16>, vector<31x16xf32> -> vector<31x16xf32>
      %120 = arith.addf %116, %119 : vector<31x16xf32>
      %121 = vector.extract_strided_slice %32 {offsets = [0, 0], sizes = [31, 3], strides = [1, 1]} : vector<32x3xbf16> to vector<31x3xbf16>
      %122 = vector.extract_strided_slice %48 {offsets = [0, 0], sizes = [31, 3], strides = [1, 1]} : vector<32x3xbf16> to vector<31x3xbf16>
      %123 = vector.extract_strided_slice %32 {offsets = [1, 0], sizes = [31, 3], strides = [1, 1]} : vector<32x3xbf16> to vector<31x3xbf16>
      %124 = vector.extract_strided_slice %48 {offsets = [1, 0], sizes = [31, 3], strides = [1, 1]} : vector<32x3xbf16> to vector<31x3xbf16>
      %cst_79 = arith.constant dense<0.000000e+00> : vector<31x16xf32>
      %125 = tpu.matmul %121, %8, %cst_79 {dimension_numbers = #tpu.dot_dimension_numbers<[1], [0], [0], [1], [0, 0, 1, 1], [], []>} : vector<31x3xbf16>, vector<3x16xbf16>, vector<31x16xf32> -> vector<31x16xf32>
      %126 = arith.addf %118, %125 : vector<31x16xf32>
      %cst_80 = arith.constant dense<0.000000e+00> : vector<31x16xf32>
      %127 = tpu.matmul %122, %8, %cst_80 {dimension_numbers = #tpu.dot_dimension_numbers<[1], [0], [0], [1], [0, 0, 1, 1], [], []>} : vector<31x3xbf16>, vector<3x16xbf16>, vector<31x16xf32> -> vector<31x16xf32>
      %128 = arith.addf %120, %127 : vector<31x16xf32>
      %cst_81 = arith.constant dense<0.000000e+00> : vector<31x16xf32>
      %129 = tpu.matmul %122, %10, %cst_81 {dimension_numbers = #tpu.dot_dimension_numbers<[1], [0], [0], [1], [0, 0, 1, 1], [], []>} : vector<31x3xbf16>, vector<3x16xbf16>, vector<31x16xf32> -> vector<31x16xf32>
      %130 = arith.addf %126, %129 : vector<31x16xf32>
      %cst_82 = arith.constant dense<0.000000e+00> : vector<31x16xf32>
      %131 = tpu.matmul %123, %10, %cst_82 {dimension_numbers = #tpu.dot_dimension_numbers<[1], [0], [0], [1], [0, 0, 1, 1], [], []>} : vector<31x3xbf16>, vector<3x16xbf16>, vector<31x16xf32> -> vector<31x16xf32>
      %132 = arith.addf %128, %131 : vector<31x16xf32>
      %cst_83 = arith.constant dense<0.000000e+00> : vector<31x16xf32>
      %133 = tpu.matmul %123, %12, %cst_83 {dimension_numbers = #tpu.dot_dimension_numbers<[1], [0], [0], [1], [0, 0, 1, 1], [], []>} : vector<31x3xbf16>, vector<3x16xbf16>, vector<31x16xf32> -> vector<31x16xf32>
      %134 = arith.addf %130, %133 : vector<31x16xf32>
      %cst_84 = arith.constant dense<0.000000e+00> : vector<31x16xf32>
      %135 = tpu.matmul %124, %12, %cst_84 {dimension_numbers = #tpu.dot_dimension_numbers<[1], [0], [0], [1], [0, 0, 1, 1], [], []>} : vector<31x3xbf16>, vector<3x16xbf16>, vector<31x16xf32> -> vector<31x16xf32>
      %136 = arith.addf %132, %135 : vector<31x16xf32>
      %137 = vector.extract_strided_slice %36 {offsets = [0, 0], sizes = [31, 3], strides = [1, 1]} : vector<32x3xbf16> to vector<31x3xbf16>
      %138 = vector.extract_strided_slice %52 {offsets = [0, 0], sizes = [31, 3], strides = [1, 1]} : vector<32x3xbf16> to vector<31x3xbf16>
      %139 = vector.extract_strided_slice %36 {offsets = [1, 0], sizes = [31, 3], strides = [1, 1]} : vector<32x3xbf16> to vector<31x3xbf16>
      %140 = vector.extract_strided_slice %52 {offsets = [1, 0], sizes = [31, 3], strides = [1, 1]} : vector<32x3xbf16> to vector<31x3xbf16>
      %cst_85 = arith.constant dense<0.000000e+00> : vector<31x16xf32>
      %141 = tpu.matmul %137, %14, %cst_85 {dimension_numbers = #tpu.dot_dimension_numbers<[1], [0], [0], [1], [0, 0, 1, 1], [], []>} : vector<31x3xbf16>, vector<3x16xbf16>, vector<31x16xf32> -> vector<31x16xf32>
      %142 = arith.addf %134, %141 : vector<31x16xf32>
      %cst_86 = arith.constant dense<0.000000e+00> : vector<31x16xf32>
      %143 = tpu.matmul %138, %14, %cst_86 {dimension_numbers = #tpu.dot_dimension_numbers<[1], [0], [0], [1], [0, 0, 1, 1], [], []>} : vector<31x3xbf16>, vector<3x16xbf16>, vector<31x16xf32> -> vector<31x16xf32>
      %144 = arith.addf %136, %143 : vector<31x16xf32>
      %cst_87 = arith.constant dense<0.000000e+00> : vector<31x16xf32>
      %145 = tpu.matmul %138, %16, %cst_87 {dimension_numbers = #tpu.dot_dimension_numbers<[1], [0], [0], [1], [0, 0, 1, 1], [], []>} : vector<31x3xbf16>, vector<3x16xbf16>, vector<31x16xf32> -> vector<31x16xf32>
      %146 = arith.addf %142, %145 : vector<31x16xf32>
      %cst_88 = arith.constant dense<0.000000e+00> : vector<31x16xf32>
      %147 = tpu.matmul %139, %16, %cst_88 {dimension_numbers = #tpu.dot_dimension_numbers<[1], [0], [0], [1], [0, 0, 1, 1], [], []>} : vector<31x3xbf16>, vector<3x16xbf16>, vector<31x16xf32> -> vector<31x16xf32>
      %148 = arith.addf %144, %147 : vector<31x16xf32>
      %cst_89 = arith.constant dense<0.000000e+00> : vector<31x16xf32>
      %149 = tpu.matmul %139, %18, %cst_89 {dimension_numbers = #tpu.dot_dimension_numbers<[1], [0], [0], [1], [0, 0, 1, 1], [], []>} : vector<31x3xbf16>, vector<3x16xbf16>, vector<31x16xf32> -> vector<31x16xf32>
      %150 = arith.addf %146, %149 : vector<31x16xf32>
      %cst_90 = arith.constant dense<0.000000e+00> : vector<31x16xf32>
      %151 = tpu.matmul %140, %18, %cst_90 {dimension_numbers = #tpu.dot_dimension_numbers<[1], [0], [0], [1], [0, 0, 1, 1], [], []>} : vector<31x3xbf16>, vector<3x16xbf16>, vector<31x16xf32> -> vector<31x16xf32>
      %152 = arith.addf %148, %151 : vector<31x16xf32>
      %153 = arith.maximumf %102, %104 : vector<31x16xf32>
      %154 = arith.maximumf %150, %152 : vector<31x16xf32>
      %155 = arith.maximumf %153, %154 : vector<31x16xf32>
      %156 = vector.broadcast %0 : vector<1x16xf32> to vector<31x16xf32>
      %157 = arith.addf %155, %156 : vector<31x16xf32>
      %cst_91 = arith.constant 0.000000e+00 : f32
      %158 = vector.broadcast %cst_91 : f32 to vector<31x16xf32>
      %159 = arith.maximumf %157, %158 : vector<31x16xf32>
      %160 = arith.truncf %159 : vector<31x16xf32> to vector<31x16xbf16>
      %c0_92 = arith.constant 0 : index
      %161 = arith.index_cast %arg6 : i32 to index
      %c0_93 = arith.constant 0 : index
      %c0_94 = arith.constant 0 : index
      %162 = vector.load %arg5[%c0_92, %161, %c0_93, %c0_94] : memref<1x31x31x16xbf16, #tpu.memory_space<vmem>>, vector<1x1x31x16xbf16>
      %163 = vector.shape_cast %162 : vector<1x1x31x16xbf16> to vector<31x16xbf16>
      %164 = vector.shape_cast %160 : vector<31x16xbf16> to vector<1x1x31x16xbf16>
      tpu.vector_store %arg5[%c0_92, %161, %c0_93, %c0_94], %164 {strides = array<i32>} : memref<1x31x31x16xbf16, #tpu.memory_space<vmem>>, vector<1x1x31x16xbf16>,
    }
    %c31_i32_20 = arith.constant 31 : i32
    return
  }
  func.func @transform_0(%arg0: i32) -> (i32, i32, i32, i32) {
    %c0_i32 = arith.constant 0 : i32
    %c0_i32_0 = arith.constant 0 : i32
    %c0_i32_1 = arith.constant 0 : i32
    %c0_i32_2 = arith.constant 0 : i32
    return %arg0, %c0_i32, %c0_i32_0, %c0_i32_1 : i32, i32, i32, i32
  }
  func.func @transform_1(%arg0: i32) -> (i32, i32, i32, i32) {
    %c0_i32 = arith.constant 0 : i32
    %c0_i32_0 = arith.constant 0 : i32
    %c0_i32_1 = arith.constant 0 : i32
    %c0_i32_2 = arith.constant 0 : i32
    return %arg0, %c0_i32, %c0_i32_0, %c0_i32_1 : i32, i32, i32, i32
  }
  func.func @transform_2(%arg0: i32) -> (i32, i32, i32) {
    %c0_i32 = arith.constant 0 : i32
    %c0_i32_0 = arith.constant 0 : i32
    %c0_i32_1 = arith.constant 0 : i32
    %c0_i32_2 = arith.constant 0 : i32
    return %c0_i32, %c0_i32_0, %c0_i32_1 : i32, i32, i32
  }
  func.func @transform_3(%arg0: i32) -> (i32, i32) {
    %c0_i32 = arith.constant 0 : i32
    %c0_i32_0 = arith.constant 0 : i32
    %c0_i32_1 = arith.constant 0 : i32
    return %c0_i32, %c0_i32_0 : i32, i32
  }
  func.func @transform_4(%arg0: i32) -> (i32, i32, i32, i32) {
    %c0_i32 = arith.constant 0 : i32
    %c0_i32_0 = arith.constant 0 : i32
    %c0_i32_1 = arith.constant 0 : i32
    %c0_i32_2 = arith.constant 0 : i32
    return %arg0, %c0_i32, %c0_i32_0, %c0_i32_1 : i32, i32, i32, i32
  }
}

module attributes {stable_mosaic.version = 11 : i64} {
  func.func @_conv3x3_relu_pool_kernel(%arg0: i32, %arg1: memref<1x31x15x16xbf16, #tpu.memory_space<vmem>>, %arg2: memref<1x31x15x16xbf16, #tpu.memory_space<vmem>>, %arg3: memref<9x16x32xbf16, #tpu.memory_space<vmem>>, %arg4: memref<1x32xf32, #tpu.memory_space<vmem>>, %arg5: memref<1x14x14x32xbf16, #tpu.memory_space<vmem>>) attributes {dimension_semantics = [#tpu.dimension_semantics<parallel>], iteration_bounds = array<i64: 2>, scalar_prefetch = 0 : i64, scratch_operands = 0 : i64, tpu.core_type = #tpu.core_type<tc>, window_params = [{transform_indices = @transform_0, window_bounds = array<i64: 1, 31, 15, 16>}, {transform_indices = @transform_1, window_bounds = array<i64: 1, 31, 15, 16>}, {pipeline_mode = #tpu.pipeline_mode<synchronous>, transform_indices = @transform_2, window_bounds = array<i64: 9, 16, 32>}, {pipeline_mode = #tpu.pipeline_mode<synchronous>, transform_indices = @transform_3, window_bounds = array<i64: 1, 32>}, {transform_indices = @transform_4, window_bounds = array<i64: 1, 14, 14, 32>}]} {
    %c0 = arith.constant 0 : index
    %c0_0 = arith.constant 0 : index
    %0 = vector.load %arg4[%c0, %c0_0] : memref<1x32xf32, #tpu.memory_space<vmem>>, vector<1x32xf32>
    %c0_1 = arith.constant 0 : index
    %c0_2 = arith.constant 0 : index
    %c0_3 = arith.constant 0 : index
    %1 = vector.load %arg3[%c0_1, %c0_2, %c0_3] : memref<9x16x32xbf16, #tpu.memory_space<vmem>>, vector<1x16x32xbf16>
    %2 = vector.shape_cast %1 : vector<1x16x32xbf16> to vector<16x32xbf16>
    %c1 = arith.constant 1 : index
    %c0_4 = arith.constant 0 : index
    %c0_5 = arith.constant 0 : index
    %3 = vector.load %arg3[%c1, %c0_4, %c0_5] : memref<9x16x32xbf16, #tpu.memory_space<vmem>>, vector<1x16x32xbf16>
    %4 = vector.shape_cast %3 : vector<1x16x32xbf16> to vector<16x32xbf16>
    %c2 = arith.constant 2 : index
    %c0_6 = arith.constant 0 : index
    %c0_7 = arith.constant 0 : index
    %5 = vector.load %arg3[%c2, %c0_6, %c0_7] : memref<9x16x32xbf16, #tpu.memory_space<vmem>>, vector<1x16x32xbf16>
    %6 = vector.shape_cast %5 : vector<1x16x32xbf16> to vector<16x32xbf16>
    %c3 = arith.constant 3 : index
    %c0_8 = arith.constant 0 : index
    %c0_9 = arith.constant 0 : index
    %7 = vector.load %arg3[%c3, %c0_8, %c0_9] : memref<9x16x32xbf16, #tpu.memory_space<vmem>>, vector<1x16x32xbf16>
    %8 = vector.shape_cast %7 : vector<1x16x32xbf16> to vector<16x32xbf16>
    %c4 = arith.constant 4 : index
    %c0_10 = arith.constant 0 : index
    %c0_11 = arith.constant 0 : index
    %9 = vector.load %arg3[%c4, %c0_10, %c0_11] : memref<9x16x32xbf16, #tpu.memory_space<vmem>>, vector<1x16x32xbf16>
    %10 = vector.shape_cast %9 : vector<1x16x32xbf16> to vector<16x32xbf16>
    %c5 = arith.constant 5 : index
    %c0_12 = arith.constant 0 : index
    %c0_13 = arith.constant 0 : index
    %11 = vector.load %arg3[%c5, %c0_12, %c0_13] : memref<9x16x32xbf16, #tpu.memory_space<vmem>>, vector<1x16x32xbf16>
    %12 = vector.shape_cast %11 : vector<1x16x32xbf16> to vector<16x32xbf16>
    %c6 = arith.constant 6 : index
    %c0_14 = arith.constant 0 : index
    %c0_15 = arith.constant 0 : index
    %13 = vector.load %arg3[%c6, %c0_14, %c0_15] : memref<9x16x32xbf16, #tpu.memory_space<vmem>>, vector<1x16x32xbf16>
    %14 = vector.shape_cast %13 : vector<1x16x32xbf16> to vector<16x32xbf16>
    %c7 = arith.constant 7 : index
    %c0_16 = arith.constant 0 : index
    %c0_17 = arith.constant 0 : index
    %15 = vector.load %arg3[%c7, %c0_16, %c0_17] : memref<9x16x32xbf16, #tpu.memory_space<vmem>>, vector<1x16x32xbf16>
    %16 = vector.shape_cast %15 : vector<1x16x32xbf16> to vector<16x32xbf16>
    %c8 = arith.constant 8 : index
    %c0_18 = arith.constant 0 : index
    %c0_19 = arith.constant 0 : index
    %17 = vector.load %arg3[%c8, %c0_18, %c0_19] : memref<9x16x32xbf16, #tpu.memory_space<vmem>>, vector<1x16x32xbf16>
    %18 = vector.shape_cast %17 : vector<1x16x32xbf16> to vector<16x32xbf16>
    %c0_i32 = arith.constant 0 : i32
    %c14_i32 = arith.constant 14 : i32
    %19 = arith.addi %c0_i32, %c14_i32 : i32
    %c1_i32 = arith.constant 1 : i32
    scf.for %arg6 = %c0_i32 to %19 step %c1_i32  : i32 {
      %c2_i32 = arith.constant 2 : i32
      %20 = arith.muli %c2_i32, %arg6 : i32
      %c0_i32_21 = arith.constant 0 : i32
      %21 = arith.addi %20, %c0_i32_21 : i32
      %c0_22 = arith.constant 0 : index
      %22 = arith.index_cast %21 : i32 to index
      %c0_23 = arith.constant 0 : index
      %c0_24 = arith.constant 0 : index
      %23 = vector.load %arg1[%c0_22, %22, %c0_23, %c0_24] : memref<1x31x15x16xbf16, #tpu.memory_space<vmem>>, vector<1x1x15x16xbf16>
      %24 = vector.shape_cast %23 : vector<1x1x15x16xbf16> to vector<15x16xbf16>
      %c1_i32_25 = arith.constant 1 : i32
      %25 = arith.addi %20, %c1_i32_25 : i32
      %c0_26 = arith.constant 0 : index
      %26 = arith.index_cast %25 : i32 to index
      %c0_27 = arith.constant 0 : index
      %c0_28 = arith.constant 0 : index
      %27 = vector.load %arg1[%c0_26, %26, %c0_27, %c0_28] : memref<1x31x15x16xbf16, #tpu.memory_space<vmem>>, vector<1x1x15x16xbf16>
      %28 = vector.shape_cast %27 : vector<1x1x15x16xbf16> to vector<15x16xbf16>
      %c2_i32_29 = arith.constant 2 : i32
      %29 = arith.addi %20, %c2_i32_29 : i32
      %c0_30 = arith.constant 0 : index
      %30 = arith.index_cast %29 : i32 to index
      %c0_31 = arith.constant 0 : index
      %c0_32 = arith.constant 0 : index
      %31 = vector.load %arg1[%c0_30, %30, %c0_31, %c0_32] : memref<1x31x15x16xbf16, #tpu.memory_space<vmem>>, vector<1x1x15x16xbf16>
      %32 = vector.shape_cast %31 : vector<1x1x15x16xbf16> to vector<15x16xbf16>
      %c3_i32 = arith.constant 3 : i32
      %33 = arith.addi %20, %c3_i32 : i32
      %c0_33 = arith.constant 0 : index
      %34 = arith.index_cast %33 : i32 to index
      %c0_34 = arith.constant 0 : index
      %c0_35 = arith.constant 0 : index
      %35 = vector.load %arg1[%c0_33, %34, %c0_34, %c0_35] : memref<1x31x15x16xbf16, #tpu.memory_space<vmem>>, vector<1x1x15x16xbf16>
      %36 = vector.shape_cast %35 : vector<1x1x15x16xbf16> to vector<15x16xbf16>
      %c0_i32_36 = arith.constant 0 : i32
      %37 = arith.addi %20, %c0_i32_36 : i32
      %c0_37 = arith.constant 0 : index
      %38 = arith.index_cast %37 : i32 to index
      %c0_38 = arith.constant 0 : index
      %c0_39 = arith.constant 0 : index
      %39 = vector.load %arg2[%c0_37, %38, %c0_38, %c0_39] : memref<1x31x15x16xbf16, #tpu.memory_space<vmem>>, vector<1x1x15x16xbf16>
      %40 = vector.shape_cast %39 : vector<1x1x15x16xbf16> to vector<15x16xbf16>
      %c1_i32_40 = arith.constant 1 : i32
      %41 = arith.addi %20, %c1_i32_40 : i32
      %c0_41 = arith.constant 0 : index
      %42 = arith.index_cast %41 : i32 to index
      %c0_42 = arith.constant 0 : index
      %c0_43 = arith.constant 0 : index
      %43 = vector.load %arg2[%c0_41, %42, %c0_42, %c0_43] : memref<1x31x15x16xbf16, #tpu.memory_space<vmem>>, vector<1x1x15x16xbf16>
      %44 = vector.shape_cast %43 : vector<1x1x15x16xbf16> to vector<15x16xbf16>
      %c2_i32_44 = arith.constant 2 : i32
      %45 = arith.addi %20, %c2_i32_44 : i32
      %c0_45 = arith.constant 0 : index
      %46 = arith.index_cast %45 : i32 to index
      %c0_46 = arith.constant 0 : index
      %c0_47 = arith.constant 0 : index
      %47 = vector.load %arg2[%c0_45, %46, %c0_46, %c0_47] : memref<1x31x15x16xbf16, #tpu.memory_space<vmem>>, vector<1x1x15x16xbf16>
      %48 = vector.shape_cast %47 : vector<1x1x15x16xbf16> to vector<15x16xbf16>
      %c3_i32_48 = arith.constant 3 : i32
      %49 = arith.addi %20, %c3_i32_48 : i32
      %c0_49 = arith.constant 0 : index
      %50 = arith.index_cast %49 : i32 to index
      %c0_50 = arith.constant 0 : index
      %c0_51 = arith.constant 0 : index
      %51 = vector.load %arg2[%c0_49, %50, %c0_50, %c0_51] : memref<1x31x15x16xbf16, #tpu.memory_space<vmem>>, vector<1x1x15x16xbf16>
      %52 = vector.shape_cast %51 : vector<1x1x15x16xbf16> to vector<15x16xbf16>
      %cst = arith.constant 0.000000e+00 : f32
      %53 = vector.broadcast %cst : f32 to vector<14x32xf32>
      %cst_52 = arith.constant 0.000000e+00 : f32
      %54 = vector.broadcast %cst_52 : f32 to vector<14x32xf32>
      %cst_53 = arith.constant 0.000000e+00 : f32
      %55 = vector.broadcast %cst_53 : f32 to vector<14x32xf32>
      %cst_54 = arith.constant 0.000000e+00 : f32
      %56 = vector.broadcast %cst_54 : f32 to vector<14x32xf32>
      %57 = vector.extract_strided_slice %24 {offsets = [0, 0], sizes = [14, 16], strides = [1, 1]} : vector<15x16xbf16> to vector<14x16xbf16>
      %58 = vector.extract_strided_slice %40 {offsets = [0, 0], sizes = [14, 16], strides = [1, 1]} : vector<15x16xbf16> to vector<14x16xbf16>
      %59 = vector.extract_strided_slice %24 {offsets = [1, 0], sizes = [14, 16], strides = [1, 1]} : vector<15x16xbf16> to vector<14x16xbf16>
      %60 = vector.extract_strided_slice %40 {offsets = [1, 0], sizes = [14, 16], strides = [1, 1]} : vector<15x16xbf16> to vector<14x16xbf16>
      %cst_55 = arith.constant dense<0.000000e+00> : vector<14x32xf32>
      %61 = tpu.matmul %57, %2, %cst_55 {dimension_numbers = #tpu.dot_dimension_numbers<[1], [0], [0], [1], [0, 0, 1, 1], [], []>} : vector<14x16xbf16>, vector<16x32xbf16>, vector<14x32xf32> -> vector<14x32xf32>
      %62 = arith.addf %53, %61 : vector<14x32xf32>
      %cst_56 = arith.constant dense<0.000000e+00> : vector<14x32xf32>
      %63 = tpu.matmul %58, %2, %cst_56 {dimension_numbers = #tpu.dot_dimension_numbers<[1], [0], [0], [1], [0, 0, 1, 1], [], []>} : vector<14x16xbf16>, vector<16x32xbf16>, vector<14x32xf32> -> vector<14x32xf32>
      %64 = arith.addf %54, %63 : vector<14x32xf32>
      %cst_57 = arith.constant dense<0.000000e+00> : vector<14x32xf32>
      %65 = tpu.matmul %58, %4, %cst_57 {dimension_numbers = #tpu.dot_dimension_numbers<[1], [0], [0], [1], [0, 0, 1, 1], [], []>} : vector<14x16xbf16>, vector<16x32xbf16>, vector<14x32xf32> -> vector<14x32xf32>
      %66 = arith.addf %62, %65 : vector<14x32xf32>
      %cst_58 = arith.constant dense<0.000000e+00> : vector<14x32xf32>
      %67 = tpu.matmul %59, %4, %cst_58 {dimension_numbers = #tpu.dot_dimension_numbers<[1], [0], [0], [1], [0, 0, 1, 1], [], []>} : vector<14x16xbf16>, vector<16x32xbf16>, vector<14x32xf32> -> vector<14x32xf32>
      %68 = arith.addf %64, %67 : vector<14x32xf32>
      %cst_59 = arith.constant dense<0.000000e+00> : vector<14x32xf32>
      %69 = tpu.matmul %59, %6, %cst_59 {dimension_numbers = #tpu.dot_dimension_numbers<[1], [0], [0], [1], [0, 0, 1, 1], [], []>} : vector<14x16xbf16>, vector<16x32xbf16>, vector<14x32xf32> -> vector<14x32xf32>
      %70 = arith.addf %66, %69 : vector<14x32xf32>
      %cst_60 = arith.constant dense<0.000000e+00> : vector<14x32xf32>
      %71 = tpu.matmul %60, %6, %cst_60 {dimension_numbers = #tpu.dot_dimension_numbers<[1], [0], [0], [1], [0, 0, 1, 1], [], []>} : vector<14x16xbf16>, vector<16x32xbf16>, vector<14x32xf32> -> vector<14x32xf32>
      %72 = arith.addf %68, %71 : vector<14x32xf32>
      %73 = vector.extract_strided_slice %28 {offsets = [0, 0], sizes = [14, 16], strides = [1, 1]} : vector<15x16xbf16> to vector<14x16xbf16>
      %74 = vector.extract_strided_slice %44 {offsets = [0, 0], sizes = [14, 16], strides = [1, 1]} : vector<15x16xbf16> to vector<14x16xbf16>
      %75 = vector.extract_strided_slice %28 {offsets = [1, 0], sizes = [14, 16], strides = [1, 1]} : vector<15x16xbf16> to vector<14x16xbf16>
      %76 = vector.extract_strided_slice %44 {offsets = [1, 0], sizes = [14, 16], strides = [1, 1]} : vector<15x16xbf16> to vector<14x16xbf16>
      %cst_61 = arith.constant dense<0.000000e+00> : vector<14x32xf32>
      %77 = tpu.matmul %73, %8, %cst_61 {dimension_numbers = #tpu.dot_dimension_numbers<[1], [0], [0], [1], [0, 0, 1, 1], [], []>} : vector<14x16xbf16>, vector<16x32xbf16>, vector<14x32xf32> -> vector<14x32xf32>
      %78 = arith.addf %70, %77 : vector<14x32xf32>
      %cst_62 = arith.constant dense<0.000000e+00> : vector<14x32xf32>
      %79 = tpu.matmul %74, %8, %cst_62 {dimension_numbers = #tpu.dot_dimension_numbers<[1], [0], [0], [1], [0, 0, 1, 1], [], []>} : vector<14x16xbf16>, vector<16x32xbf16>, vector<14x32xf32> -> vector<14x32xf32>
      %80 = arith.addf %72, %79 : vector<14x32xf32>
      %cst_63 = arith.constant dense<0.000000e+00> : vector<14x32xf32>
      %81 = tpu.matmul %74, %10, %cst_63 {dimension_numbers = #tpu.dot_dimension_numbers<[1], [0], [0], [1], [0, 0, 1, 1], [], []>} : vector<14x16xbf16>, vector<16x32xbf16>, vector<14x32xf32> -> vector<14x32xf32>
      %82 = arith.addf %78, %81 : vector<14x32xf32>
      %cst_64 = arith.constant dense<0.000000e+00> : vector<14x32xf32>
      %83 = tpu.matmul %75, %10, %cst_64 {dimension_numbers = #tpu.dot_dimension_numbers<[1], [0], [0], [1], [0, 0, 1, 1], [], []>} : vector<14x16xbf16>, vector<16x32xbf16>, vector<14x32xf32> -> vector<14x32xf32>
      %84 = arith.addf %80, %83 : vector<14x32xf32>
      %cst_65 = arith.constant dense<0.000000e+00> : vector<14x32xf32>
      %85 = tpu.matmul %75, %12, %cst_65 {dimension_numbers = #tpu.dot_dimension_numbers<[1], [0], [0], [1], [0, 0, 1, 1], [], []>} : vector<14x16xbf16>, vector<16x32xbf16>, vector<14x32xf32> -> vector<14x32xf32>
      %86 = arith.addf %82, %85 : vector<14x32xf32>
      %cst_66 = arith.constant dense<0.000000e+00> : vector<14x32xf32>
      %87 = tpu.matmul %76, %12, %cst_66 {dimension_numbers = #tpu.dot_dimension_numbers<[1], [0], [0], [1], [0, 0, 1, 1], [], []>} : vector<14x16xbf16>, vector<16x32xbf16>, vector<14x32xf32> -> vector<14x32xf32>
      %88 = arith.addf %84, %87 : vector<14x32xf32>
      %89 = vector.extract_strided_slice %32 {offsets = [0, 0], sizes = [14, 16], strides = [1, 1]} : vector<15x16xbf16> to vector<14x16xbf16>
      %90 = vector.extract_strided_slice %48 {offsets = [0, 0], sizes = [14, 16], strides = [1, 1]} : vector<15x16xbf16> to vector<14x16xbf16>
      %91 = vector.extract_strided_slice %32 {offsets = [1, 0], sizes = [14, 16], strides = [1, 1]} : vector<15x16xbf16> to vector<14x16xbf16>
      %92 = vector.extract_strided_slice %48 {offsets = [1, 0], sizes = [14, 16], strides = [1, 1]} : vector<15x16xbf16> to vector<14x16xbf16>
      %cst_67 = arith.constant dense<0.000000e+00> : vector<14x32xf32>
      %93 = tpu.matmul %89, %14, %cst_67 {dimension_numbers = #tpu.dot_dimension_numbers<[1], [0], [0], [1], [0, 0, 1, 1], [], []>} : vector<14x16xbf16>, vector<16x32xbf16>, vector<14x32xf32> -> vector<14x32xf32>
      %94 = arith.addf %86, %93 : vector<14x32xf32>
      %cst_68 = arith.constant dense<0.000000e+00> : vector<14x32xf32>
      %95 = tpu.matmul %90, %14, %cst_68 {dimension_numbers = #tpu.dot_dimension_numbers<[1], [0], [0], [1], [0, 0, 1, 1], [], []>} : vector<14x16xbf16>, vector<16x32xbf16>, vector<14x32xf32> -> vector<14x32xf32>
      %96 = arith.addf %88, %95 : vector<14x32xf32>
      %cst_69 = arith.constant dense<0.000000e+00> : vector<14x32xf32>
      %97 = tpu.matmul %90, %16, %cst_69 {dimension_numbers = #tpu.dot_dimension_numbers<[1], [0], [0], [1], [0, 0, 1, 1], [], []>} : vector<14x16xbf16>, vector<16x32xbf16>, vector<14x32xf32> -> vector<14x32xf32>
      %98 = arith.addf %94, %97 : vector<14x32xf32>
      %cst_70 = arith.constant dense<0.000000e+00> : vector<14x32xf32>
      %99 = tpu.matmul %91, %16, %cst_70 {dimension_numbers = #tpu.dot_dimension_numbers<[1], [0], [0], [1], [0, 0, 1, 1], [], []>} : vector<14x16xbf16>, vector<16x32xbf16>, vector<14x32xf32> -> vector<14x32xf32>
      %100 = arith.addf %96, %99 : vector<14x32xf32>
      %cst_71 = arith.constant dense<0.000000e+00> : vector<14x32xf32>
      %101 = tpu.matmul %91, %18, %cst_71 {dimension_numbers = #tpu.dot_dimension_numbers<[1], [0], [0], [1], [0, 0, 1, 1], [], []>} : vector<14x16xbf16>, vector<16x32xbf16>, vector<14x32xf32> -> vector<14x32xf32>
      %102 = arith.addf %98, %101 : vector<14x32xf32>
      %cst_72 = arith.constant dense<0.000000e+00> : vector<14x32xf32>
      %103 = tpu.matmul %92, %18, %cst_72 {dimension_numbers = #tpu.dot_dimension_numbers<[1], [0], [0], [1], [0, 0, 1, 1], [], []>} : vector<14x16xbf16>, vector<16x32xbf16>, vector<14x32xf32> -> vector<14x32xf32>
      %104 = arith.addf %100, %103 : vector<14x32xf32>
      %105 = vector.extract_strided_slice %28 {offsets = [0, 0], sizes = [14, 16], strides = [1, 1]} : vector<15x16xbf16> to vector<14x16xbf16>
      %106 = vector.extract_strided_slice %44 {offsets = [0, 0], sizes = [14, 16], strides = [1, 1]} : vector<15x16xbf16> to vector<14x16xbf16>
      %107 = vector.extract_strided_slice %28 {offsets = [1, 0], sizes = [14, 16], strides = [1, 1]} : vector<15x16xbf16> to vector<14x16xbf16>
      %108 = vector.extract_strided_slice %44 {offsets = [1, 0], sizes = [14, 16], strides = [1, 1]} : vector<15x16xbf16> to vector<14x16xbf16>
      %cst_73 = arith.constant dense<0.000000e+00> : vector<14x32xf32>
      %109 = tpu.matmul %105, %2, %cst_73 {dimension_numbers = #tpu.dot_dimension_numbers<[1], [0], [0], [1], [0, 0, 1, 1], [], []>} : vector<14x16xbf16>, vector<16x32xbf16>, vector<14x32xf32> -> vector<14x32xf32>
      %110 = arith.addf %55, %109 : vector<14x32xf32>
      %cst_74 = arith.constant dense<0.000000e+00> : vector<14x32xf32>
      %111 = tpu.matmul %106, %2, %cst_74 {dimension_numbers = #tpu.dot_dimension_numbers<[1], [0], [0], [1], [0, 0, 1, 1], [], []>} : vector<14x16xbf16>, vector<16x32xbf16>, vector<14x32xf32> -> vector<14x32xf32>
      %112 = arith.addf %56, %111 : vector<14x32xf32>
      %cst_75 = arith.constant dense<0.000000e+00> : vector<14x32xf32>
      %113 = tpu.matmul %106, %4, %cst_75 {dimension_numbers = #tpu.dot_dimension_numbers<[1], [0], [0], [1], [0, 0, 1, 1], [], []>} : vector<14x16xbf16>, vector<16x32xbf16>, vector<14x32xf32> -> vector<14x32xf32>
      %114 = arith.addf %110, %113 : vector<14x32xf32>
      %cst_76 = arith.constant dense<0.000000e+00> : vector<14x32xf32>
      %115 = tpu.matmul %107, %4, %cst_76 {dimension_numbers = #tpu.dot_dimension_numbers<[1], [0], [0], [1], [0, 0, 1, 1], [], []>} : vector<14x16xbf16>, vector<16x32xbf16>, vector<14x32xf32> -> vector<14x32xf32>
      %116 = arith.addf %112, %115 : vector<14x32xf32>
      %cst_77 = arith.constant dense<0.000000e+00> : vector<14x32xf32>
      %117 = tpu.matmul %107, %6, %cst_77 {dimension_numbers = #tpu.dot_dimension_numbers<[1], [0], [0], [1], [0, 0, 1, 1], [], []>} : vector<14x16xbf16>, vector<16x32xbf16>, vector<14x32xf32> -> vector<14x32xf32>
      %118 = arith.addf %114, %117 : vector<14x32xf32>
      %cst_78 = arith.constant dense<0.000000e+00> : vector<14x32xf32>
      %119 = tpu.matmul %108, %6, %cst_78 {dimension_numbers = #tpu.dot_dimension_numbers<[1], [0], [0], [1], [0, 0, 1, 1], [], []>} : vector<14x16xbf16>, vector<16x32xbf16>, vector<14x32xf32> -> vector<14x32xf32>
      %120 = arith.addf %116, %119 : vector<14x32xf32>
      %121 = vector.extract_strided_slice %32 {offsets = [0, 0], sizes = [14, 16], strides = [1, 1]} : vector<15x16xbf16> to vector<14x16xbf16>
      %122 = vector.extract_strided_slice %48 {offsets = [0, 0], sizes = [14, 16], strides = [1, 1]} : vector<15x16xbf16> to vector<14x16xbf16>
      %123 = vector.extract_strided_slice %32 {offsets = [1, 0], sizes = [14, 16], strides = [1, 1]} : vector<15x16xbf16> to vector<14x16xbf16>
      %124 = vector.extract_strided_slice %48 {offsets = [1, 0], sizes = [14, 16], strides = [1, 1]} : vector<15x16xbf16> to vector<14x16xbf16>
      %cst_79 = arith.constant dense<0.000000e+00> : vector<14x32xf32>
      %125 = tpu.matmul %121, %8, %cst_79 {dimension_numbers = #tpu.dot_dimension_numbers<[1], [0], [0], [1], [0, 0, 1, 1], [], []>} : vector<14x16xbf16>, vector<16x32xbf16>, vector<14x32xf32> -> vector<14x32xf32>
      %126 = arith.addf %118, %125 : vector<14x32xf32>
      %cst_80 = arith.constant dense<0.000000e+00> : vector<14x32xf32>
      %127 = tpu.matmul %122, %8, %cst_80 {dimension_numbers = #tpu.dot_dimension_numbers<[1], [0], [0], [1], [0, 0, 1, 1], [], []>} : vector<14x16xbf16>, vector<16x32xbf16>, vector<14x32xf32> -> vector<14x32xf32>
      %128 = arith.addf %120, %127 : vector<14x32xf32>
      %cst_81 = arith.constant dense<0.000000e+00> : vector<14x32xf32>
      %129 = tpu.matmul %122, %10, %cst_81 {dimension_numbers = #tpu.dot_dimension_numbers<[1], [0], [0], [1], [0, 0, 1, 1], [], []>} : vector<14x16xbf16>, vector<16x32xbf16>, vector<14x32xf32> -> vector<14x32xf32>
      %130 = arith.addf %126, %129 : vector<14x32xf32>
      %cst_82 = arith.constant dense<0.000000e+00> : vector<14x32xf32>
      %131 = tpu.matmul %123, %10, %cst_82 {dimension_numbers = #tpu.dot_dimension_numbers<[1], [0], [0], [1], [0, 0, 1, 1], [], []>} : vector<14x16xbf16>, vector<16x32xbf16>, vector<14x32xf32> -> vector<14x32xf32>
      %132 = arith.addf %128, %131 : vector<14x32xf32>
      %cst_83 = arith.constant dense<0.000000e+00> : vector<14x32xf32>
      %133 = tpu.matmul %123, %12, %cst_83 {dimension_numbers = #tpu.dot_dimension_numbers<[1], [0], [0], [1], [0, 0, 1, 1], [], []>} : vector<14x16xbf16>, vector<16x32xbf16>, vector<14x32xf32> -> vector<14x32xf32>
      %134 = arith.addf %130, %133 : vector<14x32xf32>
      %cst_84 = arith.constant dense<0.000000e+00> : vector<14x32xf32>
      %135 = tpu.matmul %124, %12, %cst_84 {dimension_numbers = #tpu.dot_dimension_numbers<[1], [0], [0], [1], [0, 0, 1, 1], [], []>} : vector<14x16xbf16>, vector<16x32xbf16>, vector<14x32xf32> -> vector<14x32xf32>
      %136 = arith.addf %132, %135 : vector<14x32xf32>
      %137 = vector.extract_strided_slice %36 {offsets = [0, 0], sizes = [14, 16], strides = [1, 1]} : vector<15x16xbf16> to vector<14x16xbf16>
      %138 = vector.extract_strided_slice %52 {offsets = [0, 0], sizes = [14, 16], strides = [1, 1]} : vector<15x16xbf16> to vector<14x16xbf16>
      %139 = vector.extract_strided_slice %36 {offsets = [1, 0], sizes = [14, 16], strides = [1, 1]} : vector<15x16xbf16> to vector<14x16xbf16>
      %140 = vector.extract_strided_slice %52 {offsets = [1, 0], sizes = [14, 16], strides = [1, 1]} : vector<15x16xbf16> to vector<14x16xbf16>
      %cst_85 = arith.constant dense<0.000000e+00> : vector<14x32xf32>
      %141 = tpu.matmul %137, %14, %cst_85 {dimension_numbers = #tpu.dot_dimension_numbers<[1], [0], [0], [1], [0, 0, 1, 1], [], []>} : vector<14x16xbf16>, vector<16x32xbf16>, vector<14x32xf32> -> vector<14x32xf32>
      %142 = arith.addf %134, %141 : vector<14x32xf32>
      %cst_86 = arith.constant dense<0.000000e+00> : vector<14x32xf32>
      %143 = tpu.matmul %138, %14, %cst_86 {dimension_numbers = #tpu.dot_dimension_numbers<[1], [0], [0], [1], [0, 0, 1, 1], [], []>} : vector<14x16xbf16>, vector<16x32xbf16>, vector<14x32xf32> -> vector<14x32xf32>
      %144 = arith.addf %136, %143 : vector<14x32xf32>
      %cst_87 = arith.constant dense<0.000000e+00> : vector<14x32xf32>
      %145 = tpu.matmul %138, %16, %cst_87 {dimension_numbers = #tpu.dot_dimension_numbers<[1], [0], [0], [1], [0, 0, 1, 1], [], []>} : vector<14x16xbf16>, vector<16x32xbf16>, vector<14x32xf32> -> vector<14x32xf32>
      %146 = arith.addf %142, %145 : vector<14x32xf32>
      %cst_88 = arith.constant dense<0.000000e+00> : vector<14x32xf32>
      %147 = tpu.matmul %139, %16, %cst_88 {dimension_numbers = #tpu.dot_dimension_numbers<[1], [0], [0], [1], [0, 0, 1, 1], [], []>} : vector<14x16xbf16>, vector<16x32xbf16>, vector<14x32xf32> -> vector<14x32xf32>
      %148 = arith.addf %144, %147 : vector<14x32xf32>
      %cst_89 = arith.constant dense<0.000000e+00> : vector<14x32xf32>
      %149 = tpu.matmul %139, %18, %cst_89 {dimension_numbers = #tpu.dot_dimension_numbers<[1], [0], [0], [1], [0, 0, 1, 1], [], []>} : vector<14x16xbf16>, vector<16x32xbf16>, vector<14x32xf32> -> vector<14x32xf32>
      %150 = arith.addf %146, %149 : vector<14x32xf32>
      %cst_90 = arith.constant dense<0.000000e+00> : vector<14x32xf32>
      %151 = tpu.matmul %140, %18, %cst_90 {dimension_numbers = #tpu.dot_dimension_numbers<[1], [0], [0], [1], [0, 0, 1, 1], [], []>} : vector<14x16xbf16>, vector<16x32xbf16>, vector<14x32xf32> -> vector<14x32xf32>
      %152 = arith.addf %148, %151 : vector<14x32xf32>
      %153 = arith.maximumf %102, %104 : vector<14x32xf32>
      %154 = arith.maximumf %150, %152 : vector<14x32xf32>
      %155 = arith.maximumf %153, %154 : vector<14x32xf32>
      %156 = vector.broadcast %0 : vector<1x32xf32> to vector<14x32xf32>
      %157 = arith.addf %155, %156 : vector<14x32xf32>
      %cst_91 = arith.constant 0.000000e+00 : f32
      %158 = vector.broadcast %cst_91 : f32 to vector<14x32xf32>
      %159 = arith.maximumf %157, %158 : vector<14x32xf32>
      %160 = arith.truncf %159 : vector<14x32xf32> to vector<14x32xbf16>
      %c0_92 = arith.constant 0 : index
      %161 = arith.index_cast %arg6 : i32 to index
      %c0_93 = arith.constant 0 : index
      %c0_94 = arith.constant 0 : index
      %162 = vector.load %arg5[%c0_92, %161, %c0_93, %c0_94] : memref<1x14x14x32xbf16, #tpu.memory_space<vmem>>, vector<1x1x14x32xbf16>
      %163 = vector.shape_cast %162 : vector<1x1x14x32xbf16> to vector<14x32xbf16>
      %164 = vector.shape_cast %160 : vector<14x32xbf16> to vector<1x1x14x32xbf16>
      tpu.vector_store %arg5[%c0_92, %161, %c0_93, %c0_94], %164 {strides = array<i32>} : memref<1x14x14x32xbf16, #tpu.memory_space<vmem>>, vector<1x1x14x32xbf16>,
    }
    %c14_i32_20 = arith.constant 14 : i32
    return
  }
  func.func @transform_0(%arg0: i32) -> (i32, i32, i32, i32) {
    %c0_i32 = arith.constant 0 : i32
    %c0_i32_0 = arith.constant 0 : i32
    %c0_i32_1 = arith.constant 0 : i32
    %c0_i32_2 = arith.constant 0 : i32
    return %arg0, %c0_i32, %c0_i32_0, %c0_i32_1 : i32, i32, i32, i32
  }
  func.func @transform_1(%arg0: i32) -> (i32, i32, i32, i32) {
    %c0_i32 = arith.constant 0 : i32
    %c0_i32_0 = arith.constant 0 : i32
    %c0_i32_1 = arith.constant 0 : i32
    %c0_i32_2 = arith.constant 0 : i32
    return %arg0, %c0_i32, %c0_i32_0, %c0_i32_1 : i32, i32, i32, i32
  }
  func.func @transform_2(%arg0: i32) -> (i32, i32, i32) {
    %c0_i32 = arith.constant 0 : i32
    %c0_i32_0 = arith.constant 0 : i32
    %c0_i32_1 = arith.constant 0 : i32
    %c0_i32_2 = arith.constant 0 : i32
    return %c0_i32, %c0_i32_0, %c0_i32_1 : i32, i32, i32
  }
  func.func @transform_3(%arg0: i32) -> (i32, i32) {
    %c0_i32 = arith.constant 0 : i32
    %c0_i32_0 = arith.constant 0 : i32
    %c0_i32_1 = arith.constant 0 : i32
    return %c0_i32, %c0_i32_0 : i32, i32
  }
  func.func @transform_4(%arg0: i32) -> (i32, i32, i32, i32) {
    %c0_i32 = arith.constant 0 : i32
    %c0_i32_0 = arith.constant 0 : i32
    %c0_i32_1 = arith.constant 0 : i32
    %c0_i32_2 = arith.constant 0 : i32
    return %arg0, %c0_i32, %c0_i32_0, %c0_i32_1 : i32, i32, i32, i32
  }
}

module attributes {stable_mosaic.version = 11 : i64} {
  func.func @_conv3x3_relu_pool_kernel(%arg0: i32, %arg1: memref<1x14x7x32xbf16, #tpu.memory_space<vmem>>, %arg2: memref<1x14x7x32xbf16, #tpu.memory_space<vmem>>, %arg3: memref<9x32x64xbf16, #tpu.memory_space<vmem>>, %arg4: memref<1x64xf32, #tpu.memory_space<vmem>>, %arg5: memref<1x6x6x64xbf16, #tpu.memory_space<vmem>>) attributes {dimension_semantics = [#tpu.dimension_semantics<parallel>], iteration_bounds = array<i64: 2>, scalar_prefetch = 0 : i64, scratch_operands = 0 : i64, tpu.core_type = #tpu.core_type<tc>, window_params = [{transform_indices = @transform_0, window_bounds = array<i64: 1, 14, 7, 32>}, {transform_indices = @transform_1, window_bounds = array<i64: 1, 14, 7, 32>}, {pipeline_mode = #tpu.pipeline_mode<synchronous>, transform_indices = @transform_2, window_bounds = array<i64: 9, 32, 64>}, {pipeline_mode = #tpu.pipeline_mode<synchronous>, transform_indices = @transform_3, window_bounds = array<i64: 1, 64>}, {transform_indices = @transform_4, window_bounds = array<i64: 1, 6, 6, 64>}]} {
    %c0 = arith.constant 0 : index
    %c0_0 = arith.constant 0 : index
    %0 = vector.load %arg4[%c0, %c0_0] : memref<1x64xf32, #tpu.memory_space<vmem>>, vector<1x64xf32>
    %c0_1 = arith.constant 0 : index
    %c0_2 = arith.constant 0 : index
    %c0_3 = arith.constant 0 : index
    %1 = vector.load %arg3[%c0_1, %c0_2, %c0_3] : memref<9x32x64xbf16, #tpu.memory_space<vmem>>, vector<1x32x64xbf16>
    %2 = vector.shape_cast %1 : vector<1x32x64xbf16> to vector<32x64xbf16>
    %c1 = arith.constant 1 : index
    %c0_4 = arith.constant 0 : index
    %c0_5 = arith.constant 0 : index
    %3 = vector.load %arg3[%c1, %c0_4, %c0_5] : memref<9x32x64xbf16, #tpu.memory_space<vmem>>, vector<1x32x64xbf16>
    %4 = vector.shape_cast %3 : vector<1x32x64xbf16> to vector<32x64xbf16>
    %c2 = arith.constant 2 : index
    %c0_6 = arith.constant 0 : index
    %c0_7 = arith.constant 0 : index
    %5 = vector.load %arg3[%c2, %c0_6, %c0_7] : memref<9x32x64xbf16, #tpu.memory_space<vmem>>, vector<1x32x64xbf16>
    %6 = vector.shape_cast %5 : vector<1x32x64xbf16> to vector<32x64xbf16>
    %c3 = arith.constant 3 : index
    %c0_8 = arith.constant 0 : index
    %c0_9 = arith.constant 0 : index
    %7 = vector.load %arg3[%c3, %c0_8, %c0_9] : memref<9x32x64xbf16, #tpu.memory_space<vmem>>, vector<1x32x64xbf16>
    %8 = vector.shape_cast %7 : vector<1x32x64xbf16> to vector<32x64xbf16>
    %c4 = arith.constant 4 : index
    %c0_10 = arith.constant 0 : index
    %c0_11 = arith.constant 0 : index
    %9 = vector.load %arg3[%c4, %c0_10, %c0_11] : memref<9x32x64xbf16, #tpu.memory_space<vmem>>, vector<1x32x64xbf16>
    %10 = vector.shape_cast %9 : vector<1x32x64xbf16> to vector<32x64xbf16>
    %c5 = arith.constant 5 : index
    %c0_12 = arith.constant 0 : index
    %c0_13 = arith.constant 0 : index
    %11 = vector.load %arg3[%c5, %c0_12, %c0_13] : memref<9x32x64xbf16, #tpu.memory_space<vmem>>, vector<1x32x64xbf16>
    %12 = vector.shape_cast %11 : vector<1x32x64xbf16> to vector<32x64xbf16>
    %c6 = arith.constant 6 : index
    %c0_14 = arith.constant 0 : index
    %c0_15 = arith.constant 0 : index
    %13 = vector.load %arg3[%c6, %c0_14, %c0_15] : memref<9x32x64xbf16, #tpu.memory_space<vmem>>, vector<1x32x64xbf16>
    %14 = vector.shape_cast %13 : vector<1x32x64xbf16> to vector<32x64xbf16>
    %c7 = arith.constant 7 : index
    %c0_16 = arith.constant 0 : index
    %c0_17 = arith.constant 0 : index
    %15 = vector.load %arg3[%c7, %c0_16, %c0_17] : memref<9x32x64xbf16, #tpu.memory_space<vmem>>, vector<1x32x64xbf16>
    %16 = vector.shape_cast %15 : vector<1x32x64xbf16> to vector<32x64xbf16>
    %c8 = arith.constant 8 : index
    %c0_18 = arith.constant 0 : index
    %c0_19 = arith.constant 0 : index
    %17 = vector.load %arg3[%c8, %c0_18, %c0_19] : memref<9x32x64xbf16, #tpu.memory_space<vmem>>, vector<1x32x64xbf16>
    %18 = vector.shape_cast %17 : vector<1x32x64xbf16> to vector<32x64xbf16>
    %c0_i32 = arith.constant 0 : i32
    %c6_i32 = arith.constant 6 : i32
    %19 = arith.addi %c0_i32, %c6_i32 : i32
    %c1_i32 = arith.constant 1 : i32
    scf.for %arg6 = %c0_i32 to %19 step %c1_i32  : i32 {
      %c2_i32 = arith.constant 2 : i32
      %20 = arith.muli %c2_i32, %arg6 : i32
      %c0_i32_21 = arith.constant 0 : i32
      %21 = arith.addi %20, %c0_i32_21 : i32
      %c0_22 = arith.constant 0 : index
      %22 = arith.index_cast %21 : i32 to index
      %c0_23 = arith.constant 0 : index
      %c0_24 = arith.constant 0 : index
      %23 = vector.load %arg1[%c0_22, %22, %c0_23, %c0_24] : memref<1x14x7x32xbf16, #tpu.memory_space<vmem>>, vector<1x1x7x32xbf16>
      %24 = vector.shape_cast %23 : vector<1x1x7x32xbf16> to vector<7x32xbf16>
      %c1_i32_25 = arith.constant 1 : i32
      %25 = arith.addi %20, %c1_i32_25 : i32
      %c0_26 = arith.constant 0 : index
      %26 = arith.index_cast %25 : i32 to index
      %c0_27 = arith.constant 0 : index
      %c0_28 = arith.constant 0 : index
      %27 = vector.load %arg1[%c0_26, %26, %c0_27, %c0_28] : memref<1x14x7x32xbf16, #tpu.memory_space<vmem>>, vector<1x1x7x32xbf16>
      %28 = vector.shape_cast %27 : vector<1x1x7x32xbf16> to vector<7x32xbf16>
      %c2_i32_29 = arith.constant 2 : i32
      %29 = arith.addi %20, %c2_i32_29 : i32
      %c0_30 = arith.constant 0 : index
      %30 = arith.index_cast %29 : i32 to index
      %c0_31 = arith.constant 0 : index
      %c0_32 = arith.constant 0 : index
      %31 = vector.load %arg1[%c0_30, %30, %c0_31, %c0_32] : memref<1x14x7x32xbf16, #tpu.memory_space<vmem>>, vector<1x1x7x32xbf16>
      %32 = vector.shape_cast %31 : vector<1x1x7x32xbf16> to vector<7x32xbf16>
      %c3_i32 = arith.constant 3 : i32
      %33 = arith.addi %20, %c3_i32 : i32
      %c0_33 = arith.constant 0 : index
      %34 = arith.index_cast %33 : i32 to index
      %c0_34 = arith.constant 0 : index
      %c0_35 = arith.constant 0 : index
      %35 = vector.load %arg1[%c0_33, %34, %c0_34, %c0_35] : memref<1x14x7x32xbf16, #tpu.memory_space<vmem>>, vector<1x1x7x32xbf16>
      %36 = vector.shape_cast %35 : vector<1x1x7x32xbf16> to vector<7x32xbf16>
      %c0_i32_36 = arith.constant 0 : i32
      %37 = arith.addi %20, %c0_i32_36 : i32
      %c0_37 = arith.constant 0 : index
      %38 = arith.index_cast %37 : i32 to index
      %c0_38 = arith.constant 0 : index
      %c0_39 = arith.constant 0 : index
      %39 = vector.load %arg2[%c0_37, %38, %c0_38, %c0_39] : memref<1x14x7x32xbf16, #tpu.memory_space<vmem>>, vector<1x1x7x32xbf16>
      %40 = vector.shape_cast %39 : vector<1x1x7x32xbf16> to vector<7x32xbf16>
      %c1_i32_40 = arith.constant 1 : i32
      %41 = arith.addi %20, %c1_i32_40 : i32
      %c0_41 = arith.constant 0 : index
      %42 = arith.index_cast %41 : i32 to index
      %c0_42 = arith.constant 0 : index
      %c0_43 = arith.constant 0 : index
      %43 = vector.load %arg2[%c0_41, %42, %c0_42, %c0_43] : memref<1x14x7x32xbf16, #tpu.memory_space<vmem>>, vector<1x1x7x32xbf16>
      %44 = vector.shape_cast %43 : vector<1x1x7x32xbf16> to vector<7x32xbf16>
      %c2_i32_44 = arith.constant 2 : i32
      %45 = arith.addi %20, %c2_i32_44 : i32
      %c0_45 = arith.constant 0 : index
      %46 = arith.index_cast %45 : i32 to index
      %c0_46 = arith.constant 0 : index
      %c0_47 = arith.constant 0 : index
      %47 = vector.load %arg2[%c0_45, %46, %c0_46, %c0_47] : memref<1x14x7x32xbf16, #tpu.memory_space<vmem>>, vector<1x1x7x32xbf16>
      %48 = vector.shape_cast %47 : vector<1x1x7x32xbf16> to vector<7x32xbf16>
      %c3_i32_48 = arith.constant 3 : i32
      %49 = arith.addi %20, %c3_i32_48 : i32
      %c0_49 = arith.constant 0 : index
      %50 = arith.index_cast %49 : i32 to index
      %c0_50 = arith.constant 0 : index
      %c0_51 = arith.constant 0 : index
      %51 = vector.load %arg2[%c0_49, %50, %c0_50, %c0_51] : memref<1x14x7x32xbf16, #tpu.memory_space<vmem>>, vector<1x1x7x32xbf16>
      %52 = vector.shape_cast %51 : vector<1x1x7x32xbf16> to vector<7x32xbf16>
      %cst = arith.constant 0.000000e+00 : f32
      %53 = vector.broadcast %cst : f32 to vector<6x64xf32>
      %cst_52 = arith.constant 0.000000e+00 : f32
      %54 = vector.broadcast %cst_52 : f32 to vector<6x64xf32>
      %cst_53 = arith.constant 0.000000e+00 : f32
      %55 = vector.broadcast %cst_53 : f32 to vector<6x64xf32>
      %cst_54 = arith.constant 0.000000e+00 : f32
      %56 = vector.broadcast %cst_54 : f32 to vector<6x64xf32>
      %57 = vector.extract_strided_slice %24 {offsets = [0, 0], sizes = [6, 32], strides = [1, 1]} : vector<7x32xbf16> to vector<6x32xbf16>
      %58 = vector.extract_strided_slice %40 {offsets = [0, 0], sizes = [6, 32], strides = [1, 1]} : vector<7x32xbf16> to vector<6x32xbf16>
      %59 = vector.extract_strided_slice %24 {offsets = [1, 0], sizes = [6, 32], strides = [1, 1]} : vector<7x32xbf16> to vector<6x32xbf16>
      %60 = vector.extract_strided_slice %40 {offsets = [1, 0], sizes = [6, 32], strides = [1, 1]} : vector<7x32xbf16> to vector<6x32xbf16>
      %cst_55 = arith.constant dense<0.000000e+00> : vector<6x64xf32>
      %61 = tpu.matmul %57, %2, %cst_55 {dimension_numbers = #tpu.dot_dimension_numbers<[1], [0], [0], [1], [0, 0, 1, 1], [], []>} : vector<6x32xbf16>, vector<32x64xbf16>, vector<6x64xf32> -> vector<6x64xf32>
      %62 = arith.addf %53, %61 : vector<6x64xf32>
      %cst_56 = arith.constant dense<0.000000e+00> : vector<6x64xf32>
      %63 = tpu.matmul %58, %2, %cst_56 {dimension_numbers = #tpu.dot_dimension_numbers<[1], [0], [0], [1], [0, 0, 1, 1], [], []>} : vector<6x32xbf16>, vector<32x64xbf16>, vector<6x64xf32> -> vector<6x64xf32>
      %64 = arith.addf %54, %63 : vector<6x64xf32>
      %cst_57 = arith.constant dense<0.000000e+00> : vector<6x64xf32>
      %65 = tpu.matmul %58, %4, %cst_57 {dimension_numbers = #tpu.dot_dimension_numbers<[1], [0], [0], [1], [0, 0, 1, 1], [], []>} : vector<6x32xbf16>, vector<32x64xbf16>, vector<6x64xf32> -> vector<6x64xf32>
      %66 = arith.addf %62, %65 : vector<6x64xf32>
      %cst_58 = arith.constant dense<0.000000e+00> : vector<6x64xf32>
      %67 = tpu.matmul %59, %4, %cst_58 {dimension_numbers = #tpu.dot_dimension_numbers<[1], [0], [0], [1], [0, 0, 1, 1], [], []>} : vector<6x32xbf16>, vector<32x64xbf16>, vector<6x64xf32> -> vector<6x64xf32>
      %68 = arith.addf %64, %67 : vector<6x64xf32>
      %cst_59 = arith.constant dense<0.000000e+00> : vector<6x64xf32>
      %69 = tpu.matmul %59, %6, %cst_59 {dimension_numbers = #tpu.dot_dimension_numbers<[1], [0], [0], [1], [0, 0, 1, 1], [], []>} : vector<6x32xbf16>, vector<32x64xbf16>, vector<6x64xf32> -> vector<6x64xf32>
      %70 = arith.addf %66, %69 : vector<6x64xf32>
      %cst_60 = arith.constant dense<0.000000e+00> : vector<6x64xf32>
      %71 = tpu.matmul %60, %6, %cst_60 {dimension_numbers = #tpu.dot_dimension_numbers<[1], [0], [0], [1], [0, 0, 1, 1], [], []>} : vector<6x32xbf16>, vector<32x64xbf16>, vector<6x64xf32> -> vector<6x64xf32>
      %72 = arith.addf %68, %71 : vector<6x64xf32>
      %73 = vector.extract_strided_slice %28 {offsets = [0, 0], sizes = [6, 32], strides = [1, 1]} : vector<7x32xbf16> to vector<6x32xbf16>
      %74 = vector.extract_strided_slice %44 {offsets = [0, 0], sizes = [6, 32], strides = [1, 1]} : vector<7x32xbf16> to vector<6x32xbf16>
      %75 = vector.extract_strided_slice %28 {offsets = [1, 0], sizes = [6, 32], strides = [1, 1]} : vector<7x32xbf16> to vector<6x32xbf16>
      %76 = vector.extract_strided_slice %44 {offsets = [1, 0], sizes = [6, 32], strides = [1, 1]} : vector<7x32xbf16> to vector<6x32xbf16>
      %cst_61 = arith.constant dense<0.000000e+00> : vector<6x64xf32>
      %77 = tpu.matmul %73, %8, %cst_61 {dimension_numbers = #tpu.dot_dimension_numbers<[1], [0], [0], [1], [0, 0, 1, 1], [], []>} : vector<6x32xbf16>, vector<32x64xbf16>, vector<6x64xf32> -> vector<6x64xf32>
      %78 = arith.addf %70, %77 : vector<6x64xf32>
      %cst_62 = arith.constant dense<0.000000e+00> : vector<6x64xf32>
      %79 = tpu.matmul %74, %8, %cst_62 {dimension_numbers = #tpu.dot_dimension_numbers<[1], [0], [0], [1], [0, 0, 1, 1], [], []>} : vector<6x32xbf16>, vector<32x64xbf16>, vector<6x64xf32> -> vector<6x64xf32>
      %80 = arith.addf %72, %79 : vector<6x64xf32>
      %cst_63 = arith.constant dense<0.000000e+00> : vector<6x64xf32>
      %81 = tpu.matmul %74, %10, %cst_63 {dimension_numbers = #tpu.dot_dimension_numbers<[1], [0], [0], [1], [0, 0, 1, 1], [], []>} : vector<6x32xbf16>, vector<32x64xbf16>, vector<6x64xf32> -> vector<6x64xf32>
      %82 = arith.addf %78, %81 : vector<6x64xf32>
      %cst_64 = arith.constant dense<0.000000e+00> : vector<6x64xf32>
      %83 = tpu.matmul %75, %10, %cst_64 {dimension_numbers = #tpu.dot_dimension_numbers<[1], [0], [0], [1], [0, 0, 1, 1], [], []>} : vector<6x32xbf16>, vector<32x64xbf16>, vector<6x64xf32> -> vector<6x64xf32>
      %84 = arith.addf %80, %83 : vector<6x64xf32>
      %cst_65 = arith.constant dense<0.000000e+00> : vector<6x64xf32>
      %85 = tpu.matmul %75, %12, %cst_65 {dimension_numbers = #tpu.dot_dimension_numbers<[1], [0], [0], [1], [0, 0, 1, 1], [], []>} : vector<6x32xbf16>, vector<32x64xbf16>, vector<6x64xf32> -> vector<6x64xf32>
      %86 = arith.addf %82, %85 : vector<6x64xf32>
      %cst_66 = arith.constant dense<0.000000e+00> : vector<6x64xf32>
      %87 = tpu.matmul %76, %12, %cst_66 {dimension_numbers = #tpu.dot_dimension_numbers<[1], [0], [0], [1], [0, 0, 1, 1], [], []>} : vector<6x32xbf16>, vector<32x64xbf16>, vector<6x64xf32> -> vector<6x64xf32>
      %88 = arith.addf %84, %87 : vector<6x64xf32>
      %89 = vector.extract_strided_slice %32 {offsets = [0, 0], sizes = [6, 32], strides = [1, 1]} : vector<7x32xbf16> to vector<6x32xbf16>
      %90 = vector.extract_strided_slice %48 {offsets = [0, 0], sizes = [6, 32], strides = [1, 1]} : vector<7x32xbf16> to vector<6x32xbf16>
      %91 = vector.extract_strided_slice %32 {offsets = [1, 0], sizes = [6, 32], strides = [1, 1]} : vector<7x32xbf16> to vector<6x32xbf16>
      %92 = vector.extract_strided_slice %48 {offsets = [1, 0], sizes = [6, 32], strides = [1, 1]} : vector<7x32xbf16> to vector<6x32xbf16>
      %cst_67 = arith.constant dense<0.000000e+00> : vector<6x64xf32>
      %93 = tpu.matmul %89, %14, %cst_67 {dimension_numbers = #tpu.dot_dimension_numbers<[1], [0], [0], [1], [0, 0, 1, 1], [], []>} : vector<6x32xbf16>, vector<32x64xbf16>, vector<6x64xf32> -> vector<6x64xf32>
      %94 = arith.addf %86, %93 : vector<6x64xf32>
      %cst_68 = arith.constant dense<0.000000e+00> : vector<6x64xf32>
      %95 = tpu.matmul %90, %14, %cst_68 {dimension_numbers = #tpu.dot_dimension_numbers<[1], [0], [0], [1], [0, 0, 1, 1], [], []>} : vector<6x32xbf16>, vector<32x64xbf16>, vector<6x64xf32> -> vector<6x64xf32>
      %96 = arith.addf %88, %95 : vector<6x64xf32>
      %cst_69 = arith.constant dense<0.000000e+00> : vector<6x64xf32>
      %97 = tpu.matmul %90, %16, %cst_69 {dimension_numbers = #tpu.dot_dimension_numbers<[1], [0], [0], [1], [0, 0, 1, 1], [], []>} : vector<6x32xbf16>, vector<32x64xbf16>, vector<6x64xf32> -> vector<6x64xf32>
      %98 = arith.addf %94, %97 : vector<6x64xf32>
      %cst_70 = arith.constant dense<0.000000e+00> : vector<6x64xf32>
      %99 = tpu.matmul %91, %16, %cst_70 {dimension_numbers = #tpu.dot_dimension_numbers<[1], [0], [0], [1], [0, 0, 1, 1], [], []>} : vector<6x32xbf16>, vector<32x64xbf16>, vector<6x64xf32> -> vector<6x64xf32>
      %100 = arith.addf %96, %99 : vector<6x64xf32>
      %cst_71 = arith.constant dense<0.000000e+00> : vector<6x64xf32>
      %101 = tpu.matmul %91, %18, %cst_71 {dimension_numbers = #tpu.dot_dimension_numbers<[1], [0], [0], [1], [0, 0, 1, 1], [], []>} : vector<6x32xbf16>, vector<32x64xbf16>, vector<6x64xf32> -> vector<6x64xf32>
      %102 = arith.addf %98, %101 : vector<6x64xf32>
      %cst_72 = arith.constant dense<0.000000e+00> : vector<6x64xf32>
      %103 = tpu.matmul %92, %18, %cst_72 {dimension_numbers = #tpu.dot_dimension_numbers<[1], [0], [0], [1], [0, 0, 1, 1], [], []>} : vector<6x32xbf16>, vector<32x64xbf16>, vector<6x64xf32> -> vector<6x64xf32>
      %104 = arith.addf %100, %103 : vector<6x64xf32>
      %105 = vector.extract_strided_slice %28 {offsets = [0, 0], sizes = [6, 32], strides = [1, 1]} : vector<7x32xbf16> to vector<6x32xbf16>
      %106 = vector.extract_strided_slice %44 {offsets = [0, 0], sizes = [6, 32], strides = [1, 1]} : vector<7x32xbf16> to vector<6x32xbf16>
      %107 = vector.extract_strided_slice %28 {offsets = [1, 0], sizes = [6, 32], strides = [1, 1]} : vector<7x32xbf16> to vector<6x32xbf16>
      %108 = vector.extract_strided_slice %44 {offsets = [1, 0], sizes = [6, 32], strides = [1, 1]} : vector<7x32xbf16> to vector<6x32xbf16>
      %cst_73 = arith.constant dense<0.000000e+00> : vector<6x64xf32>
      %109 = tpu.matmul %105, %2, %cst_73 {dimension_numbers = #tpu.dot_dimension_numbers<[1], [0], [0], [1], [0, 0, 1, 1], [], []>} : vector<6x32xbf16>, vector<32x64xbf16>, vector<6x64xf32> -> vector<6x64xf32>
      %110 = arith.addf %55, %109 : vector<6x64xf32>
      %cst_74 = arith.constant dense<0.000000e+00> : vector<6x64xf32>
      %111 = tpu.matmul %106, %2, %cst_74 {dimension_numbers = #tpu.dot_dimension_numbers<[1], [0], [0], [1], [0, 0, 1, 1], [], []>} : vector<6x32xbf16>, vector<32x64xbf16>, vector<6x64xf32> -> vector<6x64xf32>
      %112 = arith.addf %56, %111 : vector<6x64xf32>
      %cst_75 = arith.constant dense<0.000000e+00> : vector<6x64xf32>
      %113 = tpu.matmul %106, %4, %cst_75 {dimension_numbers = #tpu.dot_dimension_numbers<[1], [0], [0], [1], [0, 0, 1, 1], [], []>} : vector<6x32xbf16>, vector<32x64xbf16>, vector<6x64xf32> -> vector<6x64xf32>
      %114 = arith.addf %110, %113 : vector<6x64xf32>
      %cst_76 = arith.constant dense<0.000000e+00> : vector<6x64xf32>
      %115 = tpu.matmul %107, %4, %cst_76 {dimension_numbers = #tpu.dot_dimension_numbers<[1], [0], [0], [1], [0, 0, 1, 1], [], []>} : vector<6x32xbf16>, vector<32x64xbf16>, vector<6x64xf32> -> vector<6x64xf32>
      %116 = arith.addf %112, %115 : vector<6x64xf32>
      %cst_77 = arith.constant dense<0.000000e+00> : vector<6x64xf32>
      %117 = tpu.matmul %107, %6, %cst_77 {dimension_numbers = #tpu.dot_dimension_numbers<[1], [0], [0], [1], [0, 0, 1, 1], [], []>} : vector<6x32xbf16>, vector<32x64xbf16>, vector<6x64xf32> -> vector<6x64xf32>
      %118 = arith.addf %114, %117 : vector<6x64xf32>
      %cst_78 = arith.constant dense<0.000000e+00> : vector<6x64xf32>
      %119 = tpu.matmul %108, %6, %cst_78 {dimension_numbers = #tpu.dot_dimension_numbers<[1], [0], [0], [1], [0, 0, 1, 1], [], []>} : vector<6x32xbf16>, vector<32x64xbf16>, vector<6x64xf32> -> vector<6x64xf32>
      %120 = arith.addf %116, %119 : vector<6x64xf32>
      %121 = vector.extract_strided_slice %32 {offsets = [0, 0], sizes = [6, 32], strides = [1, 1]} : vector<7x32xbf16> to vector<6x32xbf16>
      %122 = vector.extract_strided_slice %48 {offsets = [0, 0], sizes = [6, 32], strides = [1, 1]} : vector<7x32xbf16> to vector<6x32xbf16>
      %123 = vector.extract_strided_slice %32 {offsets = [1, 0], sizes = [6, 32], strides = [1, 1]} : vector<7x32xbf16> to vector<6x32xbf16>
      %124 = vector.extract_strided_slice %48 {offsets = [1, 0], sizes = [6, 32], strides = [1, 1]} : vector<7x32xbf16> to vector<6x32xbf16>
      %cst_79 = arith.constant dense<0.000000e+00> : vector<6x64xf32>
      %125 = tpu.matmul %121, %8, %cst_79 {dimension_numbers = #tpu.dot_dimension_numbers<[1], [0], [0], [1], [0, 0, 1, 1], [], []>} : vector<6x32xbf16>, vector<32x64xbf16>, vector<6x64xf32> -> vector<6x64xf32>
      %126 = arith.addf %118, %125 : vector<6x64xf32>
      %cst_80 = arith.constant dense<0.000000e+00> : vector<6x64xf32>
      %127 = tpu.matmul %122, %8, %cst_80 {dimension_numbers = #tpu.dot_dimension_numbers<[1], [0], [0], [1], [0, 0, 1, 1], [], []>} : vector<6x32xbf16>, vector<32x64xbf16>, vector<6x64xf32> -> vector<6x64xf32>
      %128 = arith.addf %120, %127 : vector<6x64xf32>
      %cst_81 = arith.constant dense<0.000000e+00> : vector<6x64xf32>
      %129 = tpu.matmul %122, %10, %cst_81 {dimension_numbers = #tpu.dot_dimension_numbers<[1], [0], [0], [1], [0, 0, 1, 1], [], []>} : vector<6x32xbf16>, vector<32x64xbf16>, vector<6x64xf32> -> vector<6x64xf32>
      %130 = arith.addf %126, %129 : vector<6x64xf32>
      %cst_82 = arith.constant dense<0.000000e+00> : vector<6x64xf32>
      %131 = tpu.matmul %123, %10, %cst_82 {dimension_numbers = #tpu.dot_dimension_numbers<[1], [0], [0], [1], [0, 0, 1, 1], [], []>} : vector<6x32xbf16>, vector<32x64xbf16>, vector<6x64xf32> -> vector<6x64xf32>
      %132 = arith.addf %128, %131 : vector<6x64xf32>
      %cst_83 = arith.constant dense<0.000000e+00> : vector<6x64xf32>
      %133 = tpu.matmul %123, %12, %cst_83 {dimension_numbers = #tpu.dot_dimension_numbers<[1], [0], [0], [1], [0, 0, 1, 1], [], []>} : vector<6x32xbf16>, vector<32x64xbf16>, vector<6x64xf32> -> vector<6x64xf32>
      %134 = arith.addf %130, %133 : vector<6x64xf32>
      %cst_84 = arith.constant dense<0.000000e+00> : vector<6x64xf32>
      %135 = tpu.matmul %124, %12, %cst_84 {dimension_numbers = #tpu.dot_dimension_numbers<[1], [0], [0], [1], [0, 0, 1, 1], [], []>} : vector<6x32xbf16>, vector<32x64xbf16>, vector<6x64xf32> -> vector<6x64xf32>
      %136 = arith.addf %132, %135 : vector<6x64xf32>
      %137 = vector.extract_strided_slice %36 {offsets = [0, 0], sizes = [6, 32], strides = [1, 1]} : vector<7x32xbf16> to vector<6x32xbf16>
      %138 = vector.extract_strided_slice %52 {offsets = [0, 0], sizes = [6, 32], strides = [1, 1]} : vector<7x32xbf16> to vector<6x32xbf16>
      %139 = vector.extract_strided_slice %36 {offsets = [1, 0], sizes = [6, 32], strides = [1, 1]} : vector<7x32xbf16> to vector<6x32xbf16>
      %140 = vector.extract_strided_slice %52 {offsets = [1, 0], sizes = [6, 32], strides = [1, 1]} : vector<7x32xbf16> to vector<6x32xbf16>
      %cst_85 = arith.constant dense<0.000000e+00> : vector<6x64xf32>
      %141 = tpu.matmul %137, %14, %cst_85 {dimension_numbers = #tpu.dot_dimension_numbers<[1], [0], [0], [1], [0, 0, 1, 1], [], []>} : vector<6x32xbf16>, vector<32x64xbf16>, vector<6x64xf32> -> vector<6x64xf32>
      %142 = arith.addf %134, %141 : vector<6x64xf32>
      %cst_86 = arith.constant dense<0.000000e+00> : vector<6x64xf32>
      %143 = tpu.matmul %138, %14, %cst_86 {dimension_numbers = #tpu.dot_dimension_numbers<[1], [0], [0], [1], [0, 0, 1, 1], [], []>} : vector<6x32xbf16>, vector<32x64xbf16>, vector<6x64xf32> -> vector<6x64xf32>
      %144 = arith.addf %136, %143 : vector<6x64xf32>
      %cst_87 = arith.constant dense<0.000000e+00> : vector<6x64xf32>
      %145 = tpu.matmul %138, %16, %cst_87 {dimension_numbers = #tpu.dot_dimension_numbers<[1], [0], [0], [1], [0, 0, 1, 1], [], []>} : vector<6x32xbf16>, vector<32x64xbf16>, vector<6x64xf32> -> vector<6x64xf32>
      %146 = arith.addf %142, %145 : vector<6x64xf32>
      %cst_88 = arith.constant dense<0.000000e+00> : vector<6x64xf32>
      %147 = tpu.matmul %139, %16, %cst_88 {dimension_numbers = #tpu.dot_dimension_numbers<[1], [0], [0], [1], [0, 0, 1, 1], [], []>} : vector<6x32xbf16>, vector<32x64xbf16>, vector<6x64xf32> -> vector<6x64xf32>
      %148 = arith.addf %144, %147 : vector<6x64xf32>
      %cst_89 = arith.constant dense<0.000000e+00> : vector<6x64xf32>
      %149 = tpu.matmul %139, %18, %cst_89 {dimension_numbers = #tpu.dot_dimension_numbers<[1], [0], [0], [1], [0, 0, 1, 1], [], []>} : vector<6x32xbf16>, vector<32x64xbf16>, vector<6x64xf32> -> vector<6x64xf32>
      %150 = arith.addf %146, %149 : vector<6x64xf32>
      %cst_90 = arith.constant dense<0.000000e+00> : vector<6x64xf32>
      %151 = tpu.matmul %140, %18, %cst_90 {dimension_numbers = #tpu.dot_dimension_numbers<[1], [0], [0], [1], [0, 0, 1, 1], [], []>} : vector<6x32xbf16>, vector<32x64xbf16>, vector<6x64xf32> -> vector<6x64xf32>
      %152 = arith.addf %148, %151 : vector<6x64xf32>
      %153 = arith.maximumf %102, %104 : vector<6x64xf32>
      %154 = arith.maximumf %150, %152 : vector<6x64xf32>
      %155 = arith.maximumf %153, %154 : vector<6x64xf32>
      %156 = vector.broadcast %0 : vector<1x64xf32> to vector<6x64xf32>
      %157 = arith.addf %155, %156 : vector<6x64xf32>
      %cst_91 = arith.constant 0.000000e+00 : f32
      %158 = vector.broadcast %cst_91 : f32 to vector<6x64xf32>
      %159 = arith.maximumf %157, %158 : vector<6x64xf32>
      %160 = arith.truncf %159 : vector<6x64xf32> to vector<6x64xbf16>
      %c0_92 = arith.constant 0 : index
      %161 = arith.index_cast %arg6 : i32 to index
      %c0_93 = arith.constant 0 : index
      %c0_94 = arith.constant 0 : index
      %162 = vector.load %arg5[%c0_92, %161, %c0_93, %c0_94] : memref<1x6x6x64xbf16, #tpu.memory_space<vmem>>, vector<1x1x6x64xbf16>
      %163 = vector.shape_cast %162 : vector<1x1x6x64xbf16> to vector<6x64xbf16>
      %164 = vector.shape_cast %160 : vector<6x64xbf16> to vector<1x1x6x64xbf16>
      tpu.vector_store %arg5[%c0_92, %161, %c0_93, %c0_94], %164 {strides = array<i32>} : memref<1x6x6x64xbf16, #tpu.memory_space<vmem>>, vector<1x1x6x64xbf16>,
    }
    %c6_i32_20 = arith.constant 6 : i32
    return
  }
  func.func @transform_0(%arg0: i32) -> (i32, i32, i32, i32) {
    %c0_i32 = arith.constant 0 : i32
    %c0_i32_0 = arith.constant 0 : i32
    %c0_i32_1 = arith.constant 0 : i32
    %c0_i32_2 = arith.constant 0 : i32
    return %arg0, %c0_i32, %c0_i32_0, %c0_i32_1 : i32, i32, i32, i32
  }
  func.func @transform_1(%arg0: i32) -> (i32, i32, i32, i32) {
    %c0_i32 = arith.constant 0 : i32
    %c0_i32_0 = arith.constant 0 : i32
    %c0_i32_1 = arith.constant 0 : i32
    %c0_i32_2 = arith.constant 0 : i32
    return %arg0, %c0_i32, %c0_i32_0, %c0_i32_1 : i32, i32, i32, i32
  }
  func.func @transform_2(%arg0: i32) -> (i32, i32, i32) {
    %c0_i32 = arith.constant 0 : i32
    %c0_i32_0 = arith.constant 0 : i32
    %c0_i32_1 = arith.constant 0 : i32
    %c0_i32_2 = arith.constant 0 : i32
    return %c0_i32, %c0_i32_0, %c0_i32_1 : i32, i32, i32
  }
  func.func @transform_3(%arg0: i32) -> (i32, i32) {
    %c0_i32 = arith.constant 0 : i32
    %c0_i32_0 = arith.constant 0 : i32
    %c0_i32_1 = arith.constant 0 : i32
    return %c0_i32, %c0_i32_0 : i32, i32
  }
  func.func @transform_4(%arg0: i32) -> (i32, i32, i32, i32) {
    %c0_i32 = arith.constant 0 : i32
    %c0_i32_0 = arith.constant 0 : i32
    %c0_i32_1 = arith.constant 0 : i32
    %c0_i32_2 = arith.constant 0 : i32
    return %arg0, %c0_i32, %c0_i32_0, %c0_i32_1 : i32, i32, i32, i32
  }
}

module attributes {stable_mosaic.version = 11 : i64} {
  func.func @_conv3x3_relu_pool_kernel(%arg0: i32, %arg1: memref<1x6x3x64xbf16, #tpu.memory_space<vmem>>, %arg2: memref<1x6x3x64xbf16, #tpu.memory_space<vmem>>, %arg3: memref<9x64x128xbf16, #tpu.memory_space<vmem>>, %arg4: memref<1x128xf32, #tpu.memory_space<vmem>>, %arg5: memref<1x2x2x128xbf16, #tpu.memory_space<vmem>>) attributes {dimension_semantics = [#tpu.dimension_semantics<parallel>], iteration_bounds = array<i64: 2>, scalar_prefetch = 0 : i64, scratch_operands = 0 : i64, tpu.core_type = #tpu.core_type<tc>, window_params = [{transform_indices = @transform_0, window_bounds = array<i64: 1, 6, 3, 64>}, {transform_indices = @transform_1, window_bounds = array<i64: 1, 6, 3, 64>}, {pipeline_mode = #tpu.pipeline_mode<synchronous>, transform_indices = @transform_2, window_bounds = array<i64: 9, 64, 128>}, {pipeline_mode = #tpu.pipeline_mode<synchronous>, transform_indices = @transform_3, window_bounds = array<i64: 1, 128>}, {transform_indices = @transform_4, window_bounds = array<i64: 1, 2, 2, 128>}]} {
    %c0 = arith.constant 0 : index
    %c0_0 = arith.constant 0 : index
    %0 = vector.load %arg4[%c0, %c0_0] : memref<1x128xf32, #tpu.memory_space<vmem>>, vector<1x128xf32>
    %c0_1 = arith.constant 0 : index
    %c0_2 = arith.constant 0 : index
    %c0_3 = arith.constant 0 : index
    %1 = vector.load %arg3[%c0_1, %c0_2, %c0_3] : memref<9x64x128xbf16, #tpu.memory_space<vmem>>, vector<1x64x128xbf16>
    %2 = vector.shape_cast %1 : vector<1x64x128xbf16> to vector<64x128xbf16>
    %c1 = arith.constant 1 : index
    %c0_4 = arith.constant 0 : index
    %c0_5 = arith.constant 0 : index
    %3 = vector.load %arg3[%c1, %c0_4, %c0_5] : memref<9x64x128xbf16, #tpu.memory_space<vmem>>, vector<1x64x128xbf16>
    %4 = vector.shape_cast %3 : vector<1x64x128xbf16> to vector<64x128xbf16>
    %c2 = arith.constant 2 : index
    %c0_6 = arith.constant 0 : index
    %c0_7 = arith.constant 0 : index
    %5 = vector.load %arg3[%c2, %c0_6, %c0_7] : memref<9x64x128xbf16, #tpu.memory_space<vmem>>, vector<1x64x128xbf16>
    %6 = vector.shape_cast %5 : vector<1x64x128xbf16> to vector<64x128xbf16>
    %c3 = arith.constant 3 : index
    %c0_8 = arith.constant 0 : index
    %c0_9 = arith.constant 0 : index
    %7 = vector.load %arg3[%c3, %c0_8, %c0_9] : memref<9x64x128xbf16, #tpu.memory_space<vmem>>, vector<1x64x128xbf16>
    %8 = vector.shape_cast %7 : vector<1x64x128xbf16> to vector<64x128xbf16>
    %c4 = arith.constant 4 : index
    %c0_10 = arith.constant 0 : index
    %c0_11 = arith.constant 0 : index
    %9 = vector.load %arg3[%c4, %c0_10, %c0_11] : memref<9x64x128xbf16, #tpu.memory_space<vmem>>, vector<1x64x128xbf16>
    %10 = vector.shape_cast %9 : vector<1x64x128xbf16> to vector<64x128xbf16>
    %c5 = arith.constant 5 : index
    %c0_12 = arith.constant 0 : index
    %c0_13 = arith.constant 0 : index
    %11 = vector.load %arg3[%c5, %c0_12, %c0_13] : memref<9x64x128xbf16, #tpu.memory_space<vmem>>, vector<1x64x128xbf16>
    %12 = vector.shape_cast %11 : vector<1x64x128xbf16> to vector<64x128xbf16>
    %c6 = arith.constant 6 : index
    %c0_14 = arith.constant 0 : index
    %c0_15 = arith.constant 0 : index
    %13 = vector.load %arg3[%c6, %c0_14, %c0_15] : memref<9x64x128xbf16, #tpu.memory_space<vmem>>, vector<1x64x128xbf16>
    %14 = vector.shape_cast %13 : vector<1x64x128xbf16> to vector<64x128xbf16>
    %c7 = arith.constant 7 : index
    %c0_16 = arith.constant 0 : index
    %c0_17 = arith.constant 0 : index
    %15 = vector.load %arg3[%c7, %c0_16, %c0_17] : memref<9x64x128xbf16, #tpu.memory_space<vmem>>, vector<1x64x128xbf16>
    %16 = vector.shape_cast %15 : vector<1x64x128xbf16> to vector<64x128xbf16>
    %c8 = arith.constant 8 : index
    %c0_18 = arith.constant 0 : index
    %c0_19 = arith.constant 0 : index
    %17 = vector.load %arg3[%c8, %c0_18, %c0_19] : memref<9x64x128xbf16, #tpu.memory_space<vmem>>, vector<1x64x128xbf16>
    %18 = vector.shape_cast %17 : vector<1x64x128xbf16> to vector<64x128xbf16>
    %c0_i32 = arith.constant 0 : i32
    %c2_i32 = arith.constant 2 : i32
    %19 = arith.addi %c0_i32, %c2_i32 : i32
    %c1_i32 = arith.constant 1 : i32
    scf.for %arg6 = %c0_i32 to %19 step %c1_i32  : i32 {
      %c2_i32_21 = arith.constant 2 : i32
      %20 = arith.muli %c2_i32_21, %arg6 : i32
      %c0_i32_22 = arith.constant 0 : i32
      %21 = arith.addi %20, %c0_i32_22 : i32
      %c0_23 = arith.constant 0 : index
      %22 = arith.index_cast %21 : i32 to index
      %c0_24 = arith.constant 0 : index
      %c0_25 = arith.constant 0 : index
      %23 = vector.load %arg1[%c0_23, %22, %c0_24, %c0_25] : memref<1x6x3x64xbf16, #tpu.memory_space<vmem>>, vector<1x1x3x64xbf16>
      %24 = vector.shape_cast %23 : vector<1x1x3x64xbf16> to vector<3x64xbf16>
      %c1_i32_26 = arith.constant 1 : i32
      %25 = arith.addi %20, %c1_i32_26 : i32
      %c0_27 = arith.constant 0 : index
      %26 = arith.index_cast %25 : i32 to index
      %c0_28 = arith.constant 0 : index
      %c0_29 = arith.constant 0 : index
      %27 = vector.load %arg1[%c0_27, %26, %c0_28, %c0_29] : memref<1x6x3x64xbf16, #tpu.memory_space<vmem>>, vector<1x1x3x64xbf16>
      %28 = vector.shape_cast %27 : vector<1x1x3x64xbf16> to vector<3x64xbf16>
      %c2_i32_30 = arith.constant 2 : i32
      %29 = arith.addi %20, %c2_i32_30 : i32
      %c0_31 = arith.constant 0 : index
      %30 = arith.index_cast %29 : i32 to index
      %c0_32 = arith.constant 0 : index
      %c0_33 = arith.constant 0 : index
      %31 = vector.load %arg1[%c0_31, %30, %c0_32, %c0_33] : memref<1x6x3x64xbf16, #tpu.memory_space<vmem>>, vector<1x1x3x64xbf16>
      %32 = vector.shape_cast %31 : vector<1x1x3x64xbf16> to vector<3x64xbf16>
      %c3_i32 = arith.constant 3 : i32
      %33 = arith.addi %20, %c3_i32 : i32
      %c0_34 = arith.constant 0 : index
      %34 = arith.index_cast %33 : i32 to index
      %c0_35 = arith.constant 0 : index
      %c0_36 = arith.constant 0 : index
      %35 = vector.load %arg1[%c0_34, %34, %c0_35, %c0_36] : memref<1x6x3x64xbf16, #tpu.memory_space<vmem>>, vector<1x1x3x64xbf16>
      %36 = vector.shape_cast %35 : vector<1x1x3x64xbf16> to vector<3x64xbf16>
      %c0_i32_37 = arith.constant 0 : i32
      %37 = arith.addi %20, %c0_i32_37 : i32
      %c0_38 = arith.constant 0 : index
      %38 = arith.index_cast %37 : i32 to index
      %c0_39 = arith.constant 0 : index
      %c0_40 = arith.constant 0 : index
      %39 = vector.load %arg2[%c0_38, %38, %c0_39, %c0_40] : memref<1x6x3x64xbf16, #tpu.memory_space<vmem>>, vector<1x1x3x64xbf16>
      %40 = vector.shape_cast %39 : vector<1x1x3x64xbf16> to vector<3x64xbf16>
      %c1_i32_41 = arith.constant 1 : i32
      %41 = arith.addi %20, %c1_i32_41 : i32
      %c0_42 = arith.constant 0 : index
      %42 = arith.index_cast %41 : i32 to index
      %c0_43 = arith.constant 0 : index
      %c0_44 = arith.constant 0 : index
      %43 = vector.load %arg2[%c0_42, %42, %c0_43, %c0_44] : memref<1x6x3x64xbf16, #tpu.memory_space<vmem>>, vector<1x1x3x64xbf16>
      %44 = vector.shape_cast %43 : vector<1x1x3x64xbf16> to vector<3x64xbf16>
      %c2_i32_45 = arith.constant 2 : i32
      %45 = arith.addi %20, %c2_i32_45 : i32
      %c0_46 = arith.constant 0 : index
      %46 = arith.index_cast %45 : i32 to index
      %c0_47 = arith.constant 0 : index
      %c0_48 = arith.constant 0 : index
      %47 = vector.load %arg2[%c0_46, %46, %c0_47, %c0_48] : memref<1x6x3x64xbf16, #tpu.memory_space<vmem>>, vector<1x1x3x64xbf16>
      %48 = vector.shape_cast %47 : vector<1x1x3x64xbf16> to vector<3x64xbf16>
      %c3_i32_49 = arith.constant 3 : i32
      %49 = arith.addi %20, %c3_i32_49 : i32
      %c0_50 = arith.constant 0 : index
      %50 = arith.index_cast %49 : i32 to index
      %c0_51 = arith.constant 0 : index
      %c0_52 = arith.constant 0 : index
      %51 = vector.load %arg2[%c0_50, %50, %c0_51, %c0_52] : memref<1x6x3x64xbf16, #tpu.memory_space<vmem>>, vector<1x1x3x64xbf16>
      %52 = vector.shape_cast %51 : vector<1x1x3x64xbf16> to vector<3x64xbf16>
      %cst = arith.constant 0.000000e+00 : f32
      %53 = vector.broadcast %cst : f32 to vector<2x128xf32>
      %cst_53 = arith.constant 0.000000e+00 : f32
      %54 = vector.broadcast %cst_53 : f32 to vector<2x128xf32>
      %cst_54 = arith.constant 0.000000e+00 : f32
      %55 = vector.broadcast %cst_54 : f32 to vector<2x128xf32>
      %cst_55 = arith.constant 0.000000e+00 : f32
      %56 = vector.broadcast %cst_55 : f32 to vector<2x128xf32>
      %57 = vector.extract_strided_slice %24 {offsets = [0, 0], sizes = [2, 64], strides = [1, 1]} : vector<3x64xbf16> to vector<2x64xbf16>
      %58 = vector.extract_strided_slice %40 {offsets = [0, 0], sizes = [2, 64], strides = [1, 1]} : vector<3x64xbf16> to vector<2x64xbf16>
      %59 = vector.extract_strided_slice %24 {offsets = [1, 0], sizes = [2, 64], strides = [1, 1]} : vector<3x64xbf16> to vector<2x64xbf16>
      %60 = vector.extract_strided_slice %40 {offsets = [1, 0], sizes = [2, 64], strides = [1, 1]} : vector<3x64xbf16> to vector<2x64xbf16>
      %cst_56 = arith.constant dense<0.000000e+00> : vector<2x128xf32>
      %61 = tpu.matmul %57, %2, %cst_56 {dimension_numbers = #tpu.dot_dimension_numbers<[1], [0], [0], [1], [0, 0, 1, 1], [], []>} : vector<2x64xbf16>, vector<64x128xbf16>, vector<2x128xf32> -> vector<2x128xf32>
      %62 = arith.addf %53, %61 : vector<2x128xf32>
      %cst_57 = arith.constant dense<0.000000e+00> : vector<2x128xf32>
      %63 = tpu.matmul %58, %2, %cst_57 {dimension_numbers = #tpu.dot_dimension_numbers<[1], [0], [0], [1], [0, 0, 1, 1], [], []>} : vector<2x64xbf16>, vector<64x128xbf16>, vector<2x128xf32> -> vector<2x128xf32>
      %64 = arith.addf %54, %63 : vector<2x128xf32>
      %cst_58 = arith.constant dense<0.000000e+00> : vector<2x128xf32>
      %65 = tpu.matmul %58, %4, %cst_58 {dimension_numbers = #tpu.dot_dimension_numbers<[1], [0], [0], [1], [0, 0, 1, 1], [], []>} : vector<2x64xbf16>, vector<64x128xbf16>, vector<2x128xf32> -> vector<2x128xf32>
      %66 = arith.addf %62, %65 : vector<2x128xf32>
      %cst_59 = arith.constant dense<0.000000e+00> : vector<2x128xf32>
      %67 = tpu.matmul %59, %4, %cst_59 {dimension_numbers = #tpu.dot_dimension_numbers<[1], [0], [0], [1], [0, 0, 1, 1], [], []>} : vector<2x64xbf16>, vector<64x128xbf16>, vector<2x128xf32> -> vector<2x128xf32>
      %68 = arith.addf %64, %67 : vector<2x128xf32>
      %cst_60 = arith.constant dense<0.000000e+00> : vector<2x128xf32>
      %69 = tpu.matmul %59, %6, %cst_60 {dimension_numbers = #tpu.dot_dimension_numbers<[1], [0], [0], [1], [0, 0, 1, 1], [], []>} : vector<2x64xbf16>, vector<64x128xbf16>, vector<2x128xf32> -> vector<2x128xf32>
      %70 = arith.addf %66, %69 : vector<2x128xf32>
      %cst_61 = arith.constant dense<0.000000e+00> : vector<2x128xf32>
      %71 = tpu.matmul %60, %6, %cst_61 {dimension_numbers = #tpu.dot_dimension_numbers<[1], [0], [0], [1], [0, 0, 1, 1], [], []>} : vector<2x64xbf16>, vector<64x128xbf16>, vector<2x128xf32> -> vector<2x128xf32>
      %72 = arith.addf %68, %71 : vector<2x128xf32>
      %73 = vector.extract_strided_slice %28 {offsets = [0, 0], sizes = [2, 64], strides = [1, 1]} : vector<3x64xbf16> to vector<2x64xbf16>
      %74 = vector.extract_strided_slice %44 {offsets = [0, 0], sizes = [2, 64], strides = [1, 1]} : vector<3x64xbf16> to vector<2x64xbf16>
      %75 = vector.extract_strided_slice %28 {offsets = [1, 0], sizes = [2, 64], strides = [1, 1]} : vector<3x64xbf16> to vector<2x64xbf16>
      %76 = vector.extract_strided_slice %44 {offsets = [1, 0], sizes = [2, 64], strides = [1, 1]} : vector<3x64xbf16> to vector<2x64xbf16>
      %cst_62 = arith.constant dense<0.000000e+00> : vector<2x128xf32>
      %77 = tpu.matmul %73, %8, %cst_62 {dimension_numbers = #tpu.dot_dimension_numbers<[1], [0], [0], [1], [0, 0, 1, 1], [], []>} : vector<2x64xbf16>, vector<64x128xbf16>, vector<2x128xf32> -> vector<2x128xf32>
      %78 = arith.addf %70, %77 : vector<2x128xf32>
      %cst_63 = arith.constant dense<0.000000e+00> : vector<2x128xf32>
      %79 = tpu.matmul %74, %8, %cst_63 {dimension_numbers = #tpu.dot_dimension_numbers<[1], [0], [0], [1], [0, 0, 1, 1], [], []>} : vector<2x64xbf16>, vector<64x128xbf16>, vector<2x128xf32> -> vector<2x128xf32>
      %80 = arith.addf %72, %79 : vector<2x128xf32>
      %cst_64 = arith.constant dense<0.000000e+00> : vector<2x128xf32>
      %81 = tpu.matmul %74, %10, %cst_64 {dimension_numbers = #tpu.dot_dimension_numbers<[1], [0], [0], [1], [0, 0, 1, 1], [], []>} : vector<2x64xbf16>, vector<64x128xbf16>, vector<2x128xf32> -> vector<2x128xf32>
      %82 = arith.addf %78, %81 : vector<2x128xf32>
      %cst_65 = arith.constant dense<0.000000e+00> : vector<2x128xf32>
      %83 = tpu.matmul %75, %10, %cst_65 {dimension_numbers = #tpu.dot_dimension_numbers<[1], [0], [0], [1], [0, 0, 1, 1], [], []>} : vector<2x64xbf16>, vector<64x128xbf16>, vector<2x128xf32> -> vector<2x128xf32>
      %84 = arith.addf %80, %83 : vector<2x128xf32>
      %cst_66 = arith.constant dense<0.000000e+00> : vector<2x128xf32>
      %85 = tpu.matmul %75, %12, %cst_66 {dimension_numbers = #tpu.dot_dimension_numbers<[1], [0], [0], [1], [0, 0, 1, 1], [], []>} : vector<2x64xbf16>, vector<64x128xbf16>, vector<2x128xf32> -> vector<2x128xf32>
      %86 = arith.addf %82, %85 : vector<2x128xf32>
      %cst_67 = arith.constant dense<0.000000e+00> : vector<2x128xf32>
      %87 = tpu.matmul %76, %12, %cst_67 {dimension_numbers = #tpu.dot_dimension_numbers<[1], [0], [0], [1], [0, 0, 1, 1], [], []>} : vector<2x64xbf16>, vector<64x128xbf16>, vector<2x128xf32> -> vector<2x128xf32>
      %88 = arith.addf %84, %87 : vector<2x128xf32>
      %89 = vector.extract_strided_slice %32 {offsets = [0, 0], sizes = [2, 64], strides = [1, 1]} : vector<3x64xbf16> to vector<2x64xbf16>
      %90 = vector.extract_strided_slice %48 {offsets = [0, 0], sizes = [2, 64], strides = [1, 1]} : vector<3x64xbf16> to vector<2x64xbf16>
      %91 = vector.extract_strided_slice %32 {offsets = [1, 0], sizes = [2, 64], strides = [1, 1]} : vector<3x64xbf16> to vector<2x64xbf16>
      %92 = vector.extract_strided_slice %48 {offsets = [1, 0], sizes = [2, 64], strides = [1, 1]} : vector<3x64xbf16> to vector<2x64xbf16>
      %cst_68 = arith.constant dense<0.000000e+00> : vector<2x128xf32>
      %93 = tpu.matmul %89, %14, %cst_68 {dimension_numbers = #tpu.dot_dimension_numbers<[1], [0], [0], [1], [0, 0, 1, 1], [], []>} : vector<2x64xbf16>, vector<64x128xbf16>, vector<2x128xf32> -> vector<2x128xf32>
      %94 = arith.addf %86, %93 : vector<2x128xf32>
      %cst_69 = arith.constant dense<0.000000e+00> : vector<2x128xf32>
      %95 = tpu.matmul %90, %14, %cst_69 {dimension_numbers = #tpu.dot_dimension_numbers<[1], [0], [0], [1], [0, 0, 1, 1], [], []>} : vector<2x64xbf16>, vector<64x128xbf16>, vector<2x128xf32> -> vector<2x128xf32>
      %96 = arith.addf %88, %95 : vector<2x128xf32>
      %cst_70 = arith.constant dense<0.000000e+00> : vector<2x128xf32>
      %97 = tpu.matmul %90, %16, %cst_70 {dimension_numbers = #tpu.dot_dimension_numbers<[1], [0], [0], [1], [0, 0, 1, 1], [], []>} : vector<2x64xbf16>, vector<64x128xbf16>, vector<2x128xf32> -> vector<2x128xf32>
      %98 = arith.addf %94, %97 : vector<2x128xf32>
      %cst_71 = arith.constant dense<0.000000e+00> : vector<2x128xf32>
      %99 = tpu.matmul %91, %16, %cst_71 {dimension_numbers = #tpu.dot_dimension_numbers<[1], [0], [0], [1], [0, 0, 1, 1], [], []>} : vector<2x64xbf16>, vector<64x128xbf16>, vector<2x128xf32> -> vector<2x128xf32>
      %100 = arith.addf %96, %99 : vector<2x128xf32>
      %cst_72 = arith.constant dense<0.000000e+00> : vector<2x128xf32>
      %101 = tpu.matmul %91, %18, %cst_72 {dimension_numbers = #tpu.dot_dimension_numbers<[1], [0], [0], [1], [0, 0, 1, 1], [], []>} : vector<2x64xbf16>, vector<64x128xbf16>, vector<2x128xf32> -> vector<2x128xf32>
      %102 = arith.addf %98, %101 : vector<2x128xf32>
      %cst_73 = arith.constant dense<0.000000e+00> : vector<2x128xf32>
      %103 = tpu.matmul %92, %18, %cst_73 {dimension_numbers = #tpu.dot_dimension_numbers<[1], [0], [0], [1], [0, 0, 1, 1], [], []>} : vector<2x64xbf16>, vector<64x128xbf16>, vector<2x128xf32> -> vector<2x128xf32>
      %104 = arith.addf %100, %103 : vector<2x128xf32>
      %105 = vector.extract_strided_slice %28 {offsets = [0, 0], sizes = [2, 64], strides = [1, 1]} : vector<3x64xbf16> to vector<2x64xbf16>
      %106 = vector.extract_strided_slice %44 {offsets = [0, 0], sizes = [2, 64], strides = [1, 1]} : vector<3x64xbf16> to vector<2x64xbf16>
      %107 = vector.extract_strided_slice %28 {offsets = [1, 0], sizes = [2, 64], strides = [1, 1]} : vector<3x64xbf16> to vector<2x64xbf16>
      %108 = vector.extract_strided_slice %44 {offsets = [1, 0], sizes = [2, 64], strides = [1, 1]} : vector<3x64xbf16> to vector<2x64xbf16>
      %cst_74 = arith.constant dense<0.000000e+00> : vector<2x128xf32>
      %109 = tpu.matmul %105, %2, %cst_74 {dimension_numbers = #tpu.dot_dimension_numbers<[1], [0], [0], [1], [0, 0, 1, 1], [], []>} : vector<2x64xbf16>, vector<64x128xbf16>, vector<2x128xf32> -> vector<2x128xf32>
      %110 = arith.addf %55, %109 : vector<2x128xf32>
      %cst_75 = arith.constant dense<0.000000e+00> : vector<2x128xf32>
      %111 = tpu.matmul %106, %2, %cst_75 {dimension_numbers = #tpu.dot_dimension_numbers<[1], [0], [0], [1], [0, 0, 1, 1], [], []>} : vector<2x64xbf16>, vector<64x128xbf16>, vector<2x128xf32> -> vector<2x128xf32>
      %112 = arith.addf %56, %111 : vector<2x128xf32>
      %cst_76 = arith.constant dense<0.000000e+00> : vector<2x128xf32>
      %113 = tpu.matmul %106, %4, %cst_76 {dimension_numbers = #tpu.dot_dimension_numbers<[1], [0], [0], [1], [0, 0, 1, 1], [], []>} : vector<2x64xbf16>, vector<64x128xbf16>, vector<2x128xf32> -> vector<2x128xf32>
      %114 = arith.addf %110, %113 : vector<2x128xf32>
      %cst_77 = arith.constant dense<0.000000e+00> : vector<2x128xf32>
      %115 = tpu.matmul %107, %4, %cst_77 {dimension_numbers = #tpu.dot_dimension_numbers<[1], [0], [0], [1], [0, 0, 1, 1], [], []>} : vector<2x64xbf16>, vector<64x128xbf16>, vector<2x128xf32> -> vector<2x128xf32>
      %116 = arith.addf %112, %115 : vector<2x128xf32>
      %cst_78 = arith.constant dense<0.000000e+00> : vector<2x128xf32>
      %117 = tpu.matmul %107, %6, %cst_78 {dimension_numbers = #tpu.dot_dimension_numbers<[1], [0], [0], [1], [0, 0, 1, 1], [], []>} : vector<2x64xbf16>, vector<64x128xbf16>, vector<2x128xf32> -> vector<2x128xf32>
      %118 = arith.addf %114, %117 : vector<2x128xf32>
      %cst_79 = arith.constant dense<0.000000e+00> : vector<2x128xf32>
      %119 = tpu.matmul %108, %6, %cst_79 {dimension_numbers = #tpu.dot_dimension_numbers<[1], [0], [0], [1], [0, 0, 1, 1], [], []>} : vector<2x64xbf16>, vector<64x128xbf16>, vector<2x128xf32> -> vector<2x128xf32>
      %120 = arith.addf %116, %119 : vector<2x128xf32>
      %121 = vector.extract_strided_slice %32 {offsets = [0, 0], sizes = [2, 64], strides = [1, 1]} : vector<3x64xbf16> to vector<2x64xbf16>
      %122 = vector.extract_strided_slice %48 {offsets = [0, 0], sizes = [2, 64], strides = [1, 1]} : vector<3x64xbf16> to vector<2x64xbf16>
      %123 = vector.extract_strided_slice %32 {offsets = [1, 0], sizes = [2, 64], strides = [1, 1]} : vector<3x64xbf16> to vector<2x64xbf16>
      %124 = vector.extract_strided_slice %48 {offsets = [1, 0], sizes = [2, 64], strides = [1, 1]} : vector<3x64xbf16> to vector<2x64xbf16>
      %cst_80 = arith.constant dense<0.000000e+00> : vector<2x128xf32>
      %125 = tpu.matmul %121, %8, %cst_80 {dimension_numbers = #tpu.dot_dimension_numbers<[1], [0], [0], [1], [0, 0, 1, 1], [], []>} : vector<2x64xbf16>, vector<64x128xbf16>, vector<2x128xf32> -> vector<2x128xf32>
      %126 = arith.addf %118, %125 : vector<2x128xf32>
      %cst_81 = arith.constant dense<0.000000e+00> : vector<2x128xf32>
      %127 = tpu.matmul %122, %8, %cst_81 {dimension_numbers = #tpu.dot_dimension_numbers<[1], [0], [0], [1], [0, 0, 1, 1], [], []>} : vector<2x64xbf16>, vector<64x128xbf16>, vector<2x128xf32> -> vector<2x128xf32>
      %128 = arith.addf %120, %127 : vector<2x128xf32>
      %cst_82 = arith.constant dense<0.000000e+00> : vector<2x128xf32>
      %129 = tpu.matmul %122, %10, %cst_82 {dimension_numbers = #tpu.dot_dimension_numbers<[1], [0], [0], [1], [0, 0, 1, 1], [], []>} : vector<2x64xbf16>, vector<64x128xbf16>, vector<2x128xf32> -> vector<2x128xf32>
      %130 = arith.addf %126, %129 : vector<2x128xf32>
      %cst_83 = arith.constant dense<0.000000e+00> : vector<2x128xf32>
      %131 = tpu.matmul %123, %10, %cst_83 {dimension_numbers = #tpu.dot_dimension_numbers<[1], [0], [0], [1], [0, 0, 1, 1], [], []>} : vector<2x64xbf16>, vector<64x128xbf16>, vector<2x128xf32> -> vector<2x128xf32>
      %132 = arith.addf %128, %131 : vector<2x128xf32>
      %cst_84 = arith.constant dense<0.000000e+00> : vector<2x128xf32>
      %133 = tpu.matmul %123, %12, %cst_84 {dimension_numbers = #tpu.dot_dimension_numbers<[1], [0], [0], [1], [0, 0, 1, 1], [], []>} : vector<2x64xbf16>, vector<64x128xbf16>, vector<2x128xf32> -> vector<2x128xf32>
      %134 = arith.addf %130, %133 : vector<2x128xf32>
      %cst_85 = arith.constant dense<0.000000e+00> : vector<2x128xf32>
      %135 = tpu.matmul %124, %12, %cst_85 {dimension_numbers = #tpu.dot_dimension_numbers<[1], [0], [0], [1], [0, 0, 1, 1], [], []>} : vector<2x64xbf16>, vector<64x128xbf16>, vector<2x128xf32> -> vector<2x128xf32>
      %136 = arith.addf %132, %135 : vector<2x128xf32>
      %137 = vector.extract_strided_slice %36 {offsets = [0, 0], sizes = [2, 64], strides = [1, 1]} : vector<3x64xbf16> to vector<2x64xbf16>
      %138 = vector.extract_strided_slice %52 {offsets = [0, 0], sizes = [2, 64], strides = [1, 1]} : vector<3x64xbf16> to vector<2x64xbf16>
      %139 = vector.extract_strided_slice %36 {offsets = [1, 0], sizes = [2, 64], strides = [1, 1]} : vector<3x64xbf16> to vector<2x64xbf16>
      %140 = vector.extract_strided_slice %52 {offsets = [1, 0], sizes = [2, 64], strides = [1, 1]} : vector<3x64xbf16> to vector<2x64xbf16>
      %cst_86 = arith.constant dense<0.000000e+00> : vector<2x128xf32>
      %141 = tpu.matmul %137, %14, %cst_86 {dimension_numbers = #tpu.dot_dimension_numbers<[1], [0], [0], [1], [0, 0, 1, 1], [], []>} : vector<2x64xbf16>, vector<64x128xbf16>, vector<2x128xf32> -> vector<2x128xf32>
      %142 = arith.addf %134, %141 : vector<2x128xf32>
      %cst_87 = arith.constant dense<0.000000e+00> : vector<2x128xf32>
      %143 = tpu.matmul %138, %14, %cst_87 {dimension_numbers = #tpu.dot_dimension_numbers<[1], [0], [0], [1], [0, 0, 1, 1], [], []>} : vector<2x64xbf16>, vector<64x128xbf16>, vector<2x128xf32> -> vector<2x128xf32>
      %144 = arith.addf %136, %143 : vector<2x128xf32>
      %cst_88 = arith.constant dense<0.000000e+00> : vector<2x128xf32>
      %145 = tpu.matmul %138, %16, %cst_88 {dimension_numbers = #tpu.dot_dimension_numbers<[1], [0], [0], [1], [0, 0, 1, 1], [], []>} : vector<2x64xbf16>, vector<64x128xbf16>, vector<2x128xf32> -> vector<2x128xf32>
      %146 = arith.addf %142, %145 : vector<2x128xf32>
      %cst_89 = arith.constant dense<0.000000e+00> : vector<2x128xf32>
      %147 = tpu.matmul %139, %16, %cst_89 {dimension_numbers = #tpu.dot_dimension_numbers<[1], [0], [0], [1], [0, 0, 1, 1], [], []>} : vector<2x64xbf16>, vector<64x128xbf16>, vector<2x128xf32> -> vector<2x128xf32>
      %148 = arith.addf %144, %147 : vector<2x128xf32>
      %cst_90 = arith.constant dense<0.000000e+00> : vector<2x128xf32>
      %149 = tpu.matmul %139, %18, %cst_90 {dimension_numbers = #tpu.dot_dimension_numbers<[1], [0], [0], [1], [0, 0, 1, 1], [], []>} : vector<2x64xbf16>, vector<64x128xbf16>, vector<2x128xf32> -> vector<2x128xf32>
      %150 = arith.addf %146, %149 : vector<2x128xf32>
      %cst_91 = arith.constant dense<0.000000e+00> : vector<2x128xf32>
      %151 = tpu.matmul %140, %18, %cst_91 {dimension_numbers = #tpu.dot_dimension_numbers<[1], [0], [0], [1], [0, 0, 1, 1], [], []>} : vector<2x64xbf16>, vector<64x128xbf16>, vector<2x128xf32> -> vector<2x128xf32>
      %152 = arith.addf %148, %151 : vector<2x128xf32>
      %153 = arith.maximumf %102, %104 : vector<2x128xf32>
      %154 = arith.maximumf %150, %152 : vector<2x128xf32>
      %155 = arith.maximumf %153, %154 : vector<2x128xf32>
      %156 = vector.broadcast %0 : vector<1x128xf32> to vector<2x128xf32>
      %157 = arith.addf %155, %156 : vector<2x128xf32>
      %cst_92 = arith.constant 0.000000e+00 : f32
      %158 = vector.broadcast %cst_92 : f32 to vector<2x128xf32>
      %159 = arith.maximumf %157, %158 : vector<2x128xf32>
      %160 = arith.truncf %159 : vector<2x128xf32> to vector<2x128xbf16>
      %c0_93 = arith.constant 0 : index
      %161 = arith.index_cast %arg6 : i32 to index
      %c0_94 = arith.constant 0 : index
      %c0_95 = arith.constant 0 : index
      %162 = vector.load %arg5[%c0_93, %161, %c0_94, %c0_95] : memref<1x2x2x128xbf16, #tpu.memory_space<vmem>>, vector<1x1x2x128xbf16>
      %163 = vector.shape_cast %162 : vector<1x1x2x128xbf16> to vector<2x128xbf16>
      %164 = vector.shape_cast %160 : vector<2x128xbf16> to vector<1x1x2x128xbf16>
      tpu.vector_store %arg5[%c0_93, %161, %c0_94, %c0_95], %164 {strides = array<i32>} : memref<1x2x2x128xbf16, #tpu.memory_space<vmem>>, vector<1x1x2x128xbf16>,
    }
    %c2_i32_20 = arith.constant 2 : i32
    return
  }
  func.func @transform_0(%arg0: i32) -> (i32, i32, i32, i32) {
    %c0_i32 = arith.constant 0 : i32
    %c0_i32_0 = arith.constant 0 : i32
    %c0_i32_1 = arith.constant 0 : i32
    %c0_i32_2 = arith.constant 0 : i32
    return %arg0, %c0_i32, %c0_i32_0, %c0_i32_1 : i32, i32, i32, i32
  }
  func.func @transform_1(%arg0: i32) -> (i32, i32, i32, i32) {
    %c0_i32 = arith.constant 0 : i32
    %c0_i32_0 = arith.constant 0 : i32
    %c0_i32_1 = arith.constant 0 : i32
    %c0_i32_2 = arith.constant 0 : i32
    return %arg0, %c0_i32, %c0_i32_0, %c0_i32_1 : i32, i32, i32, i32
  }
  func.func @transform_2(%arg0: i32) -> (i32, i32, i32) {
    %c0_i32 = arith.constant 0 : i32
    %c0_i32_0 = arith.constant 0 : i32
    %c0_i32_1 = arith.constant 0 : i32
    %c0_i32_2 = arith.constant 0 : i32
    return %c0_i32, %c0_i32_0, %c0_i32_1 : i32, i32, i32
  }
  func.func @transform_3(%arg0: i32) -> (i32, i32) {
    %c0_i32 = arith.constant 0 : i32
    %c0_i32_0 = arith.constant 0 : i32
    %c0_i32_1 = arith.constant 0 : i32
    return %c0_i32, %c0_i32_0 : i32, i32
  }
  func.func @transform_4(%arg0: i32) -> (i32, i32, i32, i32) {
    %c0_i32 = arith.constant 0 : i32
    %c0_i32_0 = arith.constant 0 : i32
    %c0_i32_1 = arith.constant 0 : i32
    %c0_i32_2 = arith.constant 0 : i32
    return %arg0, %c0_i32, %c0_i32_0, %c0_i32_1 : i32, i32, i32, i32
  }
}

module attributes {stable_mosaic.version = 11 : i64} {
  func.func @_fc_fused_kernel(%arg0: i32, %arg1: memref<2x512xbf16, #tpu.memory_space<vmem>>, %arg2: memref<512x128xbf16, #tpu.memory_space<vmem>>, %arg3: memref<1x128xf32, #tpu.memory_space<vmem>>, %arg4: memref<128x10xbf16, #tpu.memory_space<vmem>>, %arg5: memref<1x10xf32, #tpu.memory_space<vmem>>, %arg6: memref<2x10xf32, #tpu.memory_space<vmem>>) attributes {dimension_semantics = [#tpu.dimension_semantics<arbitrary>], iteration_bounds = array<i64: 1>, scalar_prefetch = 0 : i64, scratch_operands = 0 : i64, tpu.core_type = #tpu.core_type<tc>, window_params = [{pipeline_mode = #tpu.pipeline_mode<synchronous>, transform_indices = @transform_0, window_bounds = array<i64: 2, 512>}, {pipeline_mode = #tpu.pipeline_mode<synchronous>, transform_indices = @transform_1, window_bounds = array<i64: 512, 128>}, {pipeline_mode = #tpu.pipeline_mode<synchronous>, transform_indices = @transform_2, window_bounds = array<i64: 1, 128>}, {pipeline_mode = #tpu.pipeline_mode<synchronous>, transform_indices = @transform_3, window_bounds = array<i64: 128, 10>}, {pipeline_mode = #tpu.pipeline_mode<synchronous>, transform_indices = @transform_4, window_bounds = array<i64: 1, 10>}, {pipeline_mode = #tpu.pipeline_mode<synchronous>, transform_indices = @transform_5, window_bounds = array<i64: 2, 10>}]} {
    %c0 = arith.constant 0 : index
    %c0_0 = arith.constant 0 : index
    %0 = vector.load %arg1[%c0, %c0_0] : memref<2x512xbf16, #tpu.memory_space<vmem>>, vector<2x512xbf16>
    %c0_1 = arith.constant 0 : index
    %c0_2 = arith.constant 0 : index
    %1 = vector.load %arg2[%c0_1, %c0_2] : memref<512x128xbf16, #tpu.memory_space<vmem>>, vector<512x128xbf16>
    %cst = arith.constant dense<0.000000e+00> : vector<2x128xf32>
    %2 = tpu.matmul %0, %1, %cst {dimension_numbers = #tpu.dot_dimension_numbers<[1], [0], [0], [1], [0, 0, 1, 1], [], []>} : vector<2x512xbf16>, vector<512x128xbf16>, vector<2x128xf32> -> vector<2x128xf32>
    %c0_3 = arith.constant 0 : index
    %c0_4 = arith.constant 0 : index
    %3 = vector.load %arg3[%c0_3, %c0_4] : memref<1x128xf32, #tpu.memory_space<vmem>>, vector<1x128xf32>
    %4 = vector.broadcast %3 : vector<1x128xf32> to vector<2x128xf32>
    %5 = arith.addf %2, %4 : vector<2x128xf32>
    %cst_5 = arith.constant 0.000000e+00 : f32
    %6 = vector.broadcast %cst_5 : f32 to vector<2x128xf32>
    %7 = arith.maximumf %5, %6 : vector<2x128xf32>
    %8 = arith.truncf %7 : vector<2x128xf32> to vector<2x128xbf16>
    %c0_6 = arith.constant 0 : index
    %c0_7 = arith.constant 0 : index
    %9 = vector.load %arg4[%c0_6, %c0_7] : memref<128x10xbf16, #tpu.memory_space<vmem>>, vector<128x10xbf16>
    %cst_8 = arith.constant dense<0.000000e+00> : vector<2x10xf32>
    %10 = tpu.matmul %8, %9, %cst_8 {dimension_numbers = #tpu.dot_dimension_numbers<[1], [0], [0], [1], [0, 0, 1, 1], [], []>} : vector<2x128xbf16>, vector<128x10xbf16>, vector<2x10xf32> -> vector<2x10xf32>
    %c0_9 = arith.constant 0 : index
    %c0_10 = arith.constant 0 : index
    %11 = vector.load %arg5[%c0_9, %c0_10] : memref<1x10xf32, #tpu.memory_space<vmem>>, vector<1x10xf32>
    %12 = vector.broadcast %11 : vector<1x10xf32> to vector<2x10xf32>
    %13 = arith.addf %10, %12 : vector<2x10xf32>
    %c0_11 = arith.constant 0 : index
    %c0_12 = arith.constant 0 : index
    %14 = vector.load %arg6[%c0_11, %c0_12] : memref<2x10xf32, #tpu.memory_space<vmem>>, vector<2x10xf32>
    tpu.vector_store %arg6[%c0_11, %c0_12], %13 {strides = array<i32>} : memref<2x10xf32, #tpu.memory_space<vmem>>, vector<2x10xf32>,
    return
  }
  func.func @transform_0(%arg0: i32) -> (i32, i32) {
    %c0_i32 = arith.constant 0 : i32
    %c0_i32_0 = arith.constant 0 : i32
    %c0_i32_1 = arith.constant 0 : i32
    return %c0_i32, %c0_i32_0 : i32, i32
  }
  func.func @transform_1(%arg0: i32) -> (i32, i32) {
    %c0_i32 = arith.constant 0 : i32
    %c0_i32_0 = arith.constant 0 : i32
    %c0_i32_1 = arith.constant 0 : i32
    return %c0_i32, %c0_i32_0 : i32, i32
  }
  func.func @transform_2(%arg0: i32) -> (i32, i32) {
    %c0_i32 = arith.constant 0 : i32
    %c0_i32_0 = arith.constant 0 : i32
    %c0_i32_1 = arith.constant 0 : i32
    return %c0_i32, %c0_i32_0 : i32, i32
  }
  func.func @transform_3(%arg0: i32) -> (i32, i32) {
    %c0_i32 = arith.constant 0 : i32
    %c0_i32_0 = arith.constant 0 : i32
    %c0_i32_1 = arith.constant 0 : i32
    return %c0_i32, %c0_i32_0 : i32, i32
  }
  func.func @transform_4(%arg0: i32) -> (i32, i32) {
    %c0_i32 = arith.constant 0 : i32
    %c0_i32_0 = arith.constant 0 : i32
    %c0_i32_1 = arith.constant 0 : i32
    return %c0_i32, %c0_i32_0 : i32, i32
  }
  func.func @transform_5(%arg0: i32) -> (i32, i32) {
    %c0_i32 = arith.constant 0 : i32
    %c0_i32_0 = arith.constant 0 : i32
    %c0_i32_1 = arith.constant 0 : i32
    return %c0_i32, %c0_i32_0 : i32, i32
  }
}

</mosaic_0001>

<bundles_post_ra>
// kernel: mycnn_forward.6
= control target key start
LH: loop header
LB: loop body
LE: loop exit
PB: predicated region body
PF: predicated region fallthrough
CT: control target
= control target key end

     0   :  { %s2629_s15 = smov 0   ;;  %s3043_s0 = inlined_call_operand.vmem [shape: bf16[2,31,15,16], index: 0, kind: input, shape index: {}]   ;;  %s3044_s1 = inlined_call_operand.vmem [shape: bf16[2,31,15,16], index: 1, kind: input, shape index: {}]   ;;  %s3045_s2 = inlined_call_operand.vmem [shape: bf16[9,16,32], index: 2, kind: input, shape index: {}]   ;;  %s3046_s3 = inlined_call_operand.vmem [shape: f32[1,32], index: 3, kind: input, shape index: {}]   ;;  %s3047_s4 = inlined_call_operand.vmem [shape: bf16[2,14,14,32], index: 4, kind: output, shape index: {}]  }
   0x1 LB: > { %s2147_s16 = sadd.s32 4294967295, %s2596_s15   ;;  %p2151_p0 = scmp.ge.s32.totalorder %s2596_s15, 1  ;;  %s2596_s15 = sphi %s2629_s15, %s14_s15  }
   0x2   : > { %p172_p1 = scmp.lt.s32.totalorder %s2596_s15, 3 }
   0x4   : > { %p173_p2 = pnand %p2151_p0, %p172_p1 }
   0x5   : > { %p203_p3 = scmp.lt.s32.totalorder (!%p173_p2), %s2147_s16, 1  ;;  %s2747_s17 = smov (!%p173_p2), 0  }
   0x6   : > { %176 = sbr.rel (%p173_p2) target bundleno = 372 (0x174), region = 36 }
   0xb   : > { %v2640_v0 = vld [vmem:[%s3046_s3] ss:$0 sm:$0xff]  ;;  %v2650_v2 = vld [vmem:[%s3045_s2 + $0x4] sm:$0xf]  ;;  %v2655_v3 = vld [vmem:[%s3045_s2 + $0x8] sm:$0xf] }
   0xc   : > { %v2645_v1 = vld [vmem:[%s3045_s2] sm:$0xf]  ;;  %3049 = vst [vmem:[#allocation3_spill] sm:$0xff] %v2650_v2  ;;  %3050 = vst [vmem:[#allocation4_spill] sm:$0xff] %v2655_v3  ;;  %v2660_v4 = vld [vmem:[%s3045_s2 + $0xc] sm:$0xf] }
   0xd   : > { %3048 = vst [vmem:[#allocation2_spill] sm:$0xff] %v2645_v1  ;;  %3051 = vst [vmem:[#allocation5_spill] sm:$0xff] %v2660_v4  ;;  %s3061_s16 = smov (!%p203_p3, %s2147_s16), 1  ;;  %v2665_v5 = vld [vmem:[%s3045_s2 + $0x10] sm:$0xf] }
   0xe   : > { %3052 = vst [vmem:[#allocation6_spill] sm:$0xff] %v2665_v5  ;;  %v2670_v6 = vld [vmem:[%s3045_s2 + $0x14] sm:$0xf]  ;;  %v2675_v7 = vld [vmem:[%s3045_s2 + $0x18] sm:$0xf]  ;;  %s2558_s11 = smul.u32 248, %s3061_s16 }
   0xf   : > { %v2680_v8 = vld [vmem:[%s3045_s2 + $0x1c] sm:$0xf]  ;;  %v2685_v9 = vld [vmem:[%s3045_s2 + $0x20] sm:$0xf]  ;;  %v2690_v10 = vld [vmem:[%s3045_s2 + $0x24] sm:$0xf] }
  0x10   : > { %v2695_v11 = vld [vmem:[%s3045_s2 + $0x28] sm:$0xf]  ;;  %s2559_s18 = smul.u32 112, %s3061_s16  ;;  %v2700_v12 = vld [vmem:[%s3045_s2 + $0x2c] sm:$0xf]  ;;  %s2710_s25 = scalar_lea.vmem %s3043_s0, %s2558_s11 }
  0x11   : > { %v2705_v13 = vld [vmem:[%s3045_s2 + $0x30] sm:$0xf]  ;;  %s2715_s28 = scalar_lea.vmem %s3044_s1, %s2558_s11  ;;  %v2720_v14 = vld [vmem:[%s3045_s2 + $0x34] sm:$0xf]  ;;  %v2725_v15 = vld [vmem:[%s3045_s2 + $0x38] sm:$0xf] }
  0x12   : > { %v2730_v16 = vld [vmem:[%s3045_s2 + $0x3c] sm:$0xf]  ;;  %s2735_s10 = scalar_lea.vmem %s3047_s4, %s2559_s18  ;;  %v2740_v17 = vld [vmem:[%s3045_s2 + $0x40] sm:$0xf]  ;;  %v2745_v18 = vld [vmem:[%s3045_s2 + $0x44] sm:$0xf] }
  0x13 LB: >> { %v3054_v3 = vld [vmem:[#allocation4_spill] sm:$0xff]  ;;  %v3055_v2 = vld [vmem:[#allocation3_spill] sm:$0xff]  ;;  %v2602_v21 = vmov 0.0   ;;  %s2259_s18 = sshll.u32 %s2600_s17, 4  ;;  %vm2603_vm0 = vmmov 0   ;;  %vm303_vm1 = vcmask 130048   ;;  %v2805_v33 = vcombine.low %v2675_v7, %v2680_v8  ;;  %s2600_s17 = sphi %s2747_s17, %s251_s17  }
  0x14   : >> { %v3053_v4 = vld [vmem:[#allocation5_spill] sm:$0xff]  ;;  %v3056_v1 = vld [vmem:[#allocation2_spill] sm:$0xff]  ;;  %2342 = vmatprep.subr.bf16.mxu0 %v2602_v21  ;;  %2348 = vmatprep.subr.bf16.mxu1 %v2602_v21  ;;  %s2770_s19 = scalar_lea.vmem %s2715_s28, %s2259_s18  ;;  %s2773_s20 = scalar_lea.vmem %s2710_s25, %s2259_s18  ;;  %v2825_v36 = vcombine.low %v2685_v9, %v2690_v10  ;;  %v2845_v41 = vcombine.low %v2695_v11, %v2700_v12  ;;  %v2865_v46 = vcombine.low %v2705_v13, %v2720_v14  ;;  %vm2041_vm2 = vcmask 257024  }
  0x15   : >> { %v2754_v19 = vcombine.low %v3054_v3, %v3053_v4  ;;  %v2758_v20 = vcombine.low %v3056_v1, %v3055_v2  ;;  %2344 = vmatprep.mubr.msk.bf16.mxu0 %vm2603_vm0, %v2602_v21  ;;  %2350 = vmatprep.mubr.msk.bf16.mxu1 %vm2603_vm0, %v2602_v21  ;;  %v2578_v22 = vld [vmem:[%s2770_s19] sm:$0xff]   ;;  %v2817_v34 = vld [vmem:[%s2773_s20 + $0x8] sm:$0xff]   ;;  %v2582_v47 = vld [vmem:[%s2773_s20 + $0x10] sm:$0xff]   ;;  %v2885_v49 = vcombine.low %v2725_v15, %v2730_v16  ;;  %s2269_s21 = sshll.u32 %s2600_s17, 3  ;;  %vm2043_vm3 = vcmask 256000   ;;  %s251_s17 = sadd.s32 1, %s2600_s17  }
  0x16   : >> { %v2579_v23 = vld [vmem:[%s2773_s20] sm:$0xff]   ;;  %v545_v29 = vshll.u32 %v2578_v22, 16  ;;  %v543_v30 = vshrl.u32 %v2578_v22, 16  ;;  %v2821_v35 = vld [vmem:[%s2770_s19 + $0x8] sm:$0xff]   ;;  %v754_v37 = vshll.u32 %v2817_v34, 16  ;;  %v752_v38 = vshrl.u32 %v2817_v34, 16  ;;  %s2040_s22 = scalar_lea.vmem %s2735_s10, %s2269_s21 }
  0x17   : >> { %2343 = vmatpush3.bf16.msra.mxu0 %v2754_v19  ;;  %2349 = vmatpush3.bf16.msra.mxu1 %v2758_v20  ;;  %v403_v24 = vshrl.u32 %v2579_v23, 16  ;;  %v405_v25 = vshll.u32 %v2579_v23, 16  ;;  %v3057_v5 = vld [vmem:[#allocation6_spill] sm:$0xff]  ;;  %v855_v42 = vshll.u32 %v2821_v35, 16  ;;  %v853_v43 = vshrl.u32 %v2821_v35, 16  ;;  %v2881_v48 = vld [vmem:[%s2770_s19 + $0x10] sm:$0xff]  }
  0x18   : >> { %2354 = vmatprep.subr.bf16.mxu0 %v2602_v21  ;;  %2360 = vmatprep.subr.bf16.mxu1 %v2602_v21  ;;  %v2791_v28 = vcombine.low %v3057_v5, %v2670_v6  ;;  %v547_v31 = vrot.slane %v545_v29, 1  ;;  %v756_v39 = vrot.slane %v754_v37, 1  ;;  %v1064_v50 = vshll.u32 %v2582_v47, 16  ;;  %v2584_v59 = vld [vmem:[%s2773_s20 + $0x18] sm:$0xff]   ;;  %p248_p4 = scmp.ge.s32.totalorder %s251_s17, 14  }
  0x19   : >> { %v407_v26 = vrot.slane %v405_v25, 1  ;;  %v857_v44 = vrot.slane %v855_v42, 1  ;;  %v1062_v51 = vshrl.u32 %v2582_v47, 16  ;;  %v2900_v54 = vcombine.low %v2740_v17, %v2745_v18  ;;  %v2585_v60 = vld [vmem:[%s2770_s19 + $0x18] sm:$0xff]  }
  0x1a   : >> { %2345 = vmatmul.mubr.msk.bf16.vlgmr.msra.gmra.mxu0 %vm303_vm1, %v2578_v22  ;;  %2351 = vmatmul.mubr.msk.bf16.vlgmr.msra.gmra.mxu1 %vm303_vm1, %v2579_v23  ;;  %v548_v32 = vor.u32 %v547_v31, %v543_v30  ;;  %v2841_v40 = vor.u32 %v756_v39, %v752_v38  ;;  %v1066_v52 = vrot.slane %v1064_v50, 1  ;;  %v1165_v55 = vshll.u32 %v2881_v48, 16 }
  0x1b   : >> { %2355 = vmatpush3.bf16.msra.mxu0 %v2754_v19  ;;  %2361 = vmatpush3.bf16.msra.mxu1 %v2758_v20  ;;  %v408_v27 = vor.u32 %v407_v26, %v403_v24  ;;  %v2861_v45 = vor.u32 %v857_v44, %v853_v43  ;;  %v1163_v56 = vshrl.u32 %v2881_v48, 16  ;;  %v1870_v61 = vshll.u32 %v2584_v59, 16 }
  0x1c   : >> { %2356 = vmatprep.mubr.msk.bf16.mxu0 %vm2603_vm0, %v2602_v21  ;;  %2362 = vmatprep.mubr.msk.bf16.mxu1 %vm2603_vm0, %v2602_v21  ;;  %v1067_v53 = vor.u32 %v1066_v52, %v1062_v51  ;;  %v1167_v57 = vrot.slane %v1165_v55, 1  ;;  %v1868_v62 = vshrl.u32 %v2584_v59, 16 }
  0x1d   : >> { %2366 = vmatprep.subr.bf16.mxu0 %v2602_v21  ;;  %2372 = vmatprep.subr.bf16.mxu1 %v2602_v21  ;;  %v1872_v63 = vrot.slane %v1870_v61, 1 }
  0x1e   : >> { %v1168_v58 = vor.u32 %v1167_v57, %v1163_v56 }
  0x22   : >> { %2357 = vmatmul.mubr.msk.bf16.vlgmr.msra.gmra.mxu0 %vm303_vm1, %v408_v27  ;;  %2363 = vmatmul.mubr.msk.bf16.vlgmr.msra.gmra.mxu1 %vm303_vm1, %v2578_v22  ;;  %v1963_v22 = vshrl.u32 %v2585_v60, 16 }
  0x23   : >> { %2367 = vmatpush3.bf16.msra.mxu0 %v2791_v28  ;;  %2373 = vmatpush3.bf16.msra.mxu1 %v2791_v28 }
  0x24   : >> { %2368 = vmatprep.mubr.msk.bf16.mxu0 %vm2603_vm0, %v2602_v21  ;;  %2374 = vmatprep.mubr.msk.bf16.mxu1 %vm2603_vm0, %v2602_v21 }
  0x25   : >> { %2378 = vmatprep.subr.bf16.mxu0 %v2602_v21  ;;  %2384 = vmatprep.subr.bf16.mxu1 %v2602_v21 }
  0x2a   : >> { %2369 = vmatmul.mubr.msk.bf16.vlgmr.msra.gmra.mxu0 %vm303_vm1, %v408_v27  ;;  %2375 = vmatmul.mubr.msk.bf16.vlgmr.msra.gmra.mxu1 %vm303_vm1, %v548_v32 }
  0x2b   : >> { %2379 = vmatpush3.bf16.msra.mxu0 %v2805_v33  ;;  %2385 = vmatpush3.bf16.msra.mxu1 %v2805_v33 }
  0x2c   : >> { %2380 = vmatprep.mubr.msk.bf16.mxu0 %vm2603_vm0, %v2602_v21  ;;  %2386 = vmatprep.mubr.msk.bf16.mxu1 %vm2603_vm0, %v2602_v21 }
  0x2d   : >> { %2390 = vmatprep.subr.bf16.mxu0 %v2602_v21  ;;  %2396 = vmatprep.subr.bf16.mxu1 %v2602_v21 }
  0x32   : >> { %2381 = vmatmul.mubr.msk.bf16.vlgmr.msra.gmra.mxu0 %vm303_vm1, %v2817_v34  ;;  %2387 = vmatmul.mubr.msk.bf16.vlgmr.msra.gmra.mxu1 %vm303_vm1, %v2821_v35 }
  0x33   : >> { %2391 = vmatpush3.bf16.msra.mxu0 %v2825_v36  ;;  %2397 = vmatpush3.bf16.msra.mxu1 %v2825_v36 }
  0x34   : >> { %2392 = vmatprep.mubr.msk.bf16.mxu0 %vm2603_vm0, %v2602_v21  ;;  %2398 = vmatprep.mubr.msk.bf16.mxu1 %vm2603_vm0, %v2602_v21 }
  0x35   : >> { %2402 = vmatprep.subr.bf16.mxu0 %v2602_v21  ;;  %2408 = vmatprep.subr.bf16.mxu1 %v2602_v21 }
  0x3a   : >> { %2393 = vmatmul.mubr.msk.bf16.vlgmr.msra.gmra.mxu0 %vm303_vm1, %v2821_v35  ;;  %2399 = vmatmul.mubr.msk.bf16.vlgmr.msra.gmra.mxu1 %vm303_vm1, %v2841_v40 }
  0x3b   : >> { %2403 = vmatpush3.bf16.msra.mxu0 %v2845_v41  ;;  %2409 = vmatpush3.bf16.msra.mxu1 %v2845_v41 }
  0x3c   : >> { %2404 = vmatprep.mubr.msk.bf16.mxu0 %vm2603_vm0, %v2602_v21  ;;  %2410 = vmatprep.mubr.msk.bf16.mxu1 %vm2603_vm0, %v2602_v21 }
  0x3d   : >> { %2414 = vmatprep.subr.bf16.mxu0 %v2602_v21  ;;  %2420 = vmatprep.subr.bf16.mxu1 %v2602_v21 }
  0x42   : >> { %2405 = vmatmul.mubr.msk.bf16.vlgmr.msra.gmra.mxu0 %vm303_vm1, %v2841_v40  ;;  %2411 = vmatmul.mubr.msk.bf16.vlgmr.msra.gmra.mxu1 %vm303_vm1, %v2861_v45 }
  0x43   : >> { %2415 = vmatpush3.bf16.msra.mxu0 %v2865_v46  ;;  %2421 = vmatpush3.bf16.msra.mxu1 %v2865_v46 }
  0x44   : >> { %2416 = vmatprep.mubr.msk.bf16.mxu0 %vm2603_vm0, %v2602_v21  ;;  %2422 = vmatprep.mubr.msk.bf16.mxu1 %vm2603_vm0, %v2602_v21 }
  0x45   : >> { %2426 = vmatprep.subr.bf16.mxu0 %v2602_v21  ;;  %2432 = vmatprep.subr.bf16.mxu1 %v2602_v21 }
  0x4a   : >> { %2417 = vmatmul.mubr.msk.bf16.vlgmr.msra.gmra.mxu0 %vm303_vm1, %v2582_v47  ;;  %2423 = vmatmul.mubr.msk.bf16.vlgmr.msra.gmra.mxu1 %vm303_vm1, %v2881_v48 }
  0x4b   : >> { %2427 = vmatpush3.bf16.msra.mxu0 %v2885_v49  ;;  %2433 = vmatpush3.bf16.msra.mxu1 %v2885_v49 }
  0x4c   : >> { %2428 = vmatprep.mubr.msk.bf16.mxu0 %vm2603_vm0, %v2602_v21  ;;  %2434 = vmatprep.mubr.msk.bf16.mxu1 %vm2603_vm0, %v2602_v21 }
  0x4d   : >> { %2438 = vmatprep.subr.bf16.mxu0 %v2602_v21  ;;  %2444 = vmatprep.subr.bf16.mxu1 %v2602_v21 }
  0x52   : >> { %2429 = vmatmul.mubr.msk.bf16.vlgmr.msra.gmra.mxu0 %vm303_vm1, %v2881_v48  ;;  %2435 = vmatmul.mubr.msk.bf16.vlgmr.msra.gmra.mxu1 %vm303_vm1, %v1067_v53 }
  0x53   : >> { %2439 = vmatpush3.bf16.msra.mxu0 %v2900_v54  ;;  %2445 = vmatpush3.bf16.msra.mxu1 %v2900_v54 }
  0x54   : >> { %2440 = vmatprep.mubr.msk.bf16.mxu0 %vm2603_vm0, %v2602_v21  ;;  %2446 = vmatprep.mubr.msk.bf16.mxu1 %vm2603_vm0, %v2602_v21 }
  0x55   : >> { %2450 = vmatprep.subr.bf16.mxu0 %v2602_v21  ;;  %2456 = vmatprep.subr.bf16.mxu1 %v2602_v21 }
  0x5a   : >> { %2441 = vmatmul.mubr.msk.bf16.vlgmr.msra.gmra.mxu0 %vm303_vm1, %v1067_v53  ;;  %2447 = vmatmul.mubr.msk.bf16.vlgmr.msra.gmra.mxu1 %vm303_vm1, %v1168_v58 }
  0x5b   : >> { %2451 = vmatpush3.bf16.msra.mxu0 %v2754_v19  ;;  %2457 = vmatpush3.bf16.msra.mxu1 %v2758_v20 }
  0x5c   : >> { %2452 = vmatprep.mubr.msk.bf16.mxu0 %vm2603_vm0, %v2602_v21  ;;  %2458 = vmatprep.mubr.msk.bf16.mxu1 %vm2603_vm0, %v2602_v21 }
  0x5d   : >> { %2462 = vmatprep.subr.bf16.mxu0 %v2602_v21  ;;  %2468 = vmatprep.subr.bf16.mxu1 %v2602_v21 }
  0x62   : >> { %2453 = vmatmul.mubr.msk.bf16.vlgmr.msra.gmra.mxu0 %vm303_vm1, %v2821_v35  ;;  %2459 = vmatmul.mubr.msk.bf16.vlgmr.msra.gmra.mxu1 %vm303_vm1, %v2817_v34 }
  0x63   : >> { %2463 = vmatpush3.bf16.msra.mxu0 %v2754_v19  ;;  %2469 = vmatpush3.bf16.msra.mxu1 %v2758_v20  ;;  %v1873_v19 = vor.u32 %v1872_v63, %v1868_v62  ;;  %v1965_v20 = vshll.u32 %v2585_v60, 16 }
  0x64   : >> { %2464 = vmatprep.mubr.msk.bf16.mxu0 %vm2603_vm0, %v2602_v21  ;;  %2470 = vmatprep.mubr.msk.bf16.mxu1 %vm2603_vm0, %v2602_v21 }
  0x65   : >> { %2474 = vmatprep.subr.bf16.mxu0 %v2602_v21  ;;  %2480 = vmatprep.subr.bf16.mxu1 %v2602_v21  ;;  %v1967_v23 = vrot.slane %v1965_v20, 1 }
  0x67   : >> { %v1968_v24 = vor.u32 %v1967_v23, %v1963_v22 }
  0x6a   : >> { %2465 = vmatmul.mubr.msk.bf16.vlgmr.msra.gmra.mxu0 %vm303_vm1, %v2841_v40  ;;  %2471 = vmatmul.mubr.msk.bf16.vlgmr.msra.gmra.mxu1 %vm303_vm1, %v2821_v35 }
  0x6b   : >> { %2475 = vmatpush3.bf16.msra.mxu0 %v2791_v28  ;;  %2481 = vmatpush3.bf16.msra.mxu1 %v2791_v28 }
  0x6c   : >> { %2476 = vmatprep.mubr.msk.bf16.mxu0 %vm2603_vm0, %v2602_v21  ;;  %2482 = vmatprep.mubr.msk.bf16.mxu1 %vm2603_vm0, %v2602_v21 }
  0x6d   : >> { %2486 = vmatprep.subr.bf16.mxu0 %v2602_v21  ;;  %2492 = vmatprep.subr.bf16.mxu1 %v2602_v21 }
  0x72   : >> { %2477 = vmatmul.mubr.msk.bf16.vlgmr.msra.gmra.mxu0 %vm303_vm1, %v2841_v40  ;;  %2483 = vmatmul.mubr.msk.bf16.vlgmr.msra.gmra.mxu1 %vm303_vm1, %v2861_v45 }
  0x73   : >> { %2487 = vmatpush3.bf16.msra.mxu0 %v2805_v33  ;;  %2493 = vmatpush3.bf16.msra.mxu1 %v2805_v33 }
  0x74   : >> { %2488 = vmatprep.mubr.msk.bf16.mxu0 %vm2603_vm0, %v2602_v21  ;;  %2494 = vmatprep.mubr.msk.bf16.mxu1 %vm2603_vm0, %v2602_v21 }
  0x75   : >> { %2498 = vmatprep.subr.bf16.mxu0 %v2602_v21  ;;  %2504 = vmatprep.subr.bf16.mxu1 %v2602_v21 }
  0x7a   : >> { %2489 = vmatmul.mubr.msk.bf16.vlgmr.msra.gmra.mxu0 %vm303_vm1, %v2582_v47  ;;  %2495 = vmatmul.mubr.msk.bf16.vlgmr.msra.gmra.mxu1 %vm303_vm1, %v2881_v48 }
  0x7b   : >> { %2499 = vmatpush3.bf16.msra.mxu0 %v2825_v36  ;;  %2505 = vmatpush3.bf16.msra.mxu1 %v2825_v36 }
  0x7c   : >> { %2500 = vmatprep.mubr.msk.bf16.mxu0 %vm2603_vm0, %v2602_v21  ;;  %2506 = vmatprep.mubr.msk.bf16.mxu1 %vm2603_vm0, %v2602_v21 }
  0x7d   : >> { %2510 = vmatprep.subr.bf16.mxu0 %v2602_v21  ;;  %2516 = vmatprep.subr.bf16.mxu1 %v2602_v21 }
  0x82   : >> { %2501 = vmatmul.mubr.msk.bf16.vlgmr.msra.gmra.mxu0 %vm303_vm1, %v2881_v48  ;;  %2507 = vmatmul.mubr.msk.bf16.vlgmr.msra.gmra.mxu1 %vm303_vm1, %v1067_v53 }
  0x83   : >> { %2511 = vmatpush3.bf16.msra.mxu0 %v2845_v41  ;;  %2517 = vmatpush3.bf16.msra.mxu1 %v2845_v41 }
  0x84   : >> { %2512 = vmatprep.mubr.msk.bf16.mxu0 %vm2603_vm0, %v2602_v21  ;;  %2518 = vmatprep.mubr.msk.bf16.mxu1 %vm2603_vm0, %v2602_v21 }
  0x85   : >> { %2522 = vmatprep.subr.bf16.mxu0 %v2602_v21  ;;  %2528 = vmatprep.subr.bf16.mxu1 %v2602_v21 }
  0x8a   : >> { %2513 = vmatmul.mubr.msk.bf16.vlgmr.msra.gmra.mxu0 %vm303_vm1, %v1067_v53  ;;  %2519 = vmatmul.mubr.msk.bf16.vlgmr.msra.gmra.mxu1 %vm303_vm1, %v1168_v58 }
  0x8b   : >> { %2523 = vmatpush3.bf16.msra.mxu0 %v2865_v46  ;;  %2529 = vmatpush3.bf16.msra.mxu1 %v2865_v46 }
  0x8c   : >> { %2524 = vmatprep.mubr.msk.bf16.mxu0 %vm2603_vm0, %v2602_v21  ;;  %2530 = vmatprep.mubr.msk.bf16.mxu1 %vm2603_vm0, %v2602_v21 }
  0x8d   : >> { %2534 = vmatprep.subr.bf16.mxu0 %v2602_v21  ;;  %2540 = vmatprep.subr.bf16.mxu1 %v2602_v21 }
  0x92   : >> { %2525 = vmatmul.mubr.msk.bf16.vlgmr.msra.gmra.mxu0 %vm303_vm1, %v2584_v59  ;;  %2531 = vmatmul.mubr.msk.bf16.vlgmr.msra.gmra.mxu1 %vm303_vm1, %v2585_v60 }
  0x93   : >> { %2535 = vmatpush3.bf16.msra.mxu0 %v2885_v49  ;;  %2541 = vmatpush3.bf16.msra.mxu1 %v2885_v49 }
  0x94   : >> { %2536 = vmatprep.mubr.msk.bf16.mxu0 %vm2603_vm0, %v2602_v21  ;;  %2542 = vmatprep.mubr.msk.bf16.mxu1 %vm2603_vm0, %v2602_v21 }
  0x95   : >> { %2546 = vmatprep.subr.bf16.mxu0 %v2602_v21  ;;  %2552 = vmatprep.subr.bf16.mxu1 %v2602_v21 }
  0x9a   : >> { %2537 = vmatmul.mubr.msk.bf16.vlgmr.msra.gmra.mxu0 %vm303_vm1, %v2585_v60  ;;  %2543 = vmatmul.mubr.msk.bf16.vlgmr.msra.gmra.mxu1 %vm303_vm1, %v1873_v19 }
  0x9b   : >> { %2547 = vmatpush3.bf16.msra.mxu0 %v2900_v54  ;;  %2553 = vmatpush3.bf16.msra.mxu1 %v2900_v54 }
  0x9c   : >> { %2548 = vmatprep.mubr.msk.bf16.mxu0 %vm2603_vm0, %v2602_v21  ;;  %2554 = vmatprep.mubr.msk.bf16.mxu1 %vm2603_vm0, %v2602_v21 }
  0xa2   : >> { %2549 = vmatmul.mubr.msk.bf16.vlgmr.msra.gmra.mxu0 %vm303_vm1, %v1873_v19  ;;  %2555 = vmatmul.mubr.msk.bf16.vlgmr.msra.gmra.mxu1 %vm303_vm1, %v1968_v24 }
  0xda   : >> { %v341_v25 = vpop.f32.mrf.mxu0  ;;  %v396_v26 = vpop.f32.mrf.mxu1 }
  0xdb   : >> { %v397_v27 = vadd.f32 %v396_v26, %v341_v25 }
  0xdc   : >> { %v2346_v28 = vpop.f32.mrf.mxu0  ;;  %v2352_v29 = vpop.f32.mrf.mxu1 }
  0xde   : >> { %v344_v30 = vpop.f32.mrf.mxu0  ;;  %v399_v31 = vpop.f32.mrf.mxu1 }
  0xdf   : >> { %v400_v32 = vadd.f32 %v399_v31, %v344_v30 }
  0xe0   : >> { %v2347_v33 = vpop.f32.mrf.mxu0  ;;  %v2353_v34 = vpop.f32.mrf.mxu1 }
  0xe2   : >> { %v446_v35 = vpop.f32.mrf.mxu0  ;;  %v487_v36 = vpop.f32.mrf.mxu1 }
  0xe3   : >> { %v488_v37 = vadd.f32 %v487_v36, %v446_v35 }
  0xe4   : >> { %v2358_v38 = vpop.f32.mrf.mxu0  ;;  %v2364_v21 = vpop.f32.mrf.mxu1 }
  0xe6   : >> { %v449_v39 = vpop.f32.mrf.mxu0  ;;  %v490_v40 = vpop.f32.mrf.mxu1 }
  0xe7   : >> { %v491_v41 = vadd.f32 %v490_v40, %v449_v39 }
  0xe8   : >> { %v2359_v42 = vpop.f32.mrf.mxu0  ;;  %v2365_v43 = vpop.f32.mrf.mxu1 }
  0xea   : >> { %v534_v44 = vpop.f32.mrf.mxu0  ;;  %v586_v46 = vpop.f32.mrf.mxu1 }
  0xeb   : >> { %v541_v45 = vadd.f32 %v534_v44, %v397_v27  ;;  %v593_v47 = vadd.f32 %v586_v46, %v488_v37 }
  0xec   : >> { %v2370_v48 = vpop.f32.mrf.mxu0  ;;  %v2376_v49 = vpop.f32.mrf.mxu1 }
  0xee   : >> { %v537_v50 = vpop.f32.mrf.mxu0  ;;  %v589_v52 = vpop.f32.mrf.mxu1 }
  0xef   : >> { %v542_v51 = vadd.f32 %v537_v50, %v400_v32  ;;  %v594_v53 = vadd.f32 %v589_v52, %v491_v41 }
  0xf0   : >> { %v2371_v54 = vpop.f32.mrf.mxu0  ;;  %v2377_v55 = vpop.f32.mrf.mxu1 }
  0xf2   : >> { %v643_v56 = vpop.f32.mrf.mxu0  ;;  %v694_v58 = vpop.f32.mrf.mxu1 }
  0xf3   : >> { %v650_v57 = vadd.f32 %v643_v56, %v541_v45  ;;  %v701_v59 = vadd.f32 %v694_v58, %v593_v47 }
  0xf4   : >> { %v2382_v60 = vpop.f32.mrf.mxu0  ;;  %v2388_v61 = vpop.f32.mrf.mxu1 }
  0xf6   : >> { %v646_v62 = vpop.f32.mrf.mxu0  ;;  %v697_v19 = vpop.f32.mrf.mxu1 }
  0xf7   : >> { %v651_v63 = vadd.f32 %v646_v62, %v542_v51  ;;  %v702_v20 = vadd.f32 %v697_v19, %v594_v53 }
  0xf8   : >> { %v2383_v22 = vpop.f32.mrf.mxu0  ;;  %v2389_v23 = vpop.f32.mrf.mxu1 }
  0xfa   : >> { %v743_v24 = vpop.f32.mrf.mxu0  ;;  %v795_v26 = vpop.f32.mrf.mxu1 }
  0xfb   : >> { %v750_v25 = vadd.f32 %v743_v24, %v650_v57  ;;  %v802_v27 = vadd.f32 %v795_v26, %v701_v59 }
  0xfc   : >> { %v2394_v28 = vpop.f32.mrf.mxu0  ;;  %v2400_v29 = vpop.f32.mrf.mxu1 }
  0xfe   : >> { %v746_v30 = vpop.f32.mrf.mxu0  ;;  %v798_v32 = vpop.f32.mrf.mxu1 }
  0xff   : >> { %v751_v31 = vadd.f32 %v746_v30, %v651_v63  ;;  %v803_v33 = vadd.f32 %v798_v32, %v702_v20 }
 0x100   : >> { %v2395_v34 = vpop.f32.mrf.mxu0  ;;  %v2401_v35 = vpop.f32.mrf.mxu1 }
 0x102   : >> { %v844_v36 = vpop.f32.mrf.mxu0  ;;  %v896_v38 = vpop.f32.mrf.mxu1 }
 0x103   : >> { %v851_v37 = vadd.f32 %v844_v36, %v750_v25  ;;  %v903_v21 = vadd.f32 %v896_v38, %v802_v27 }
 0x104   : >> { %v2406_v39 = vpop.f32.mrf.mxu0  ;;  %v2412_v40 = vpop.f32.mrf.mxu1 }
 0x106   : >> { %v847_v41 = vpop.f32.mrf.mxu0  ;;  %v899_v43 = vpop.f32.mrf.mxu1 }
 0x107   : >> { %v852_v42 = vadd.f32 %v847_v41, %v751_v31  ;;  %v904_v44 = vadd.f32 %v899_v43, %v803_v33 }
 0x108   : >> { %v2407_v45 = vpop.f32.mrf.mxu0  ;;  %v2413_v46 = vpop.f32.mrf.mxu1 }
 0x10a   : >> { %v953_v47 = vpop.f32.mrf.mxu0  ;;  %v1004_v49 = vpop.f32.mrf.mxu1 }
 0x10b   : >> { %v960_v48 = vadd.f32 %v953_v47, %v851_v37  ;;  %v1011_v50 = vadd.f32 %v1004_v49, %v903_v21 }
 0x10c   : >> { %v2418_v51 = vpop.f32.mrf.mxu0  ;;  %v2424_v52 = vpop.f32.mrf.mxu1 }
 0x10e   : >> { %v956_v53 = vpop.f32.mrf.mxu0  ;;  %v1007_v55 = vpop.f32.mrf.mxu1 }
 0x10f   : >> { %v961_v54 = vadd.f32 %v956_v53, %v852_v42  ;;  %v1012_v56 = vadd.f32 %v1007_v55, %v904_v44 }
 0x110   : >> { %v2419_v57 = vpop.f32.mrf.mxu0  ;;  %v2425_v58 = vpop.f32.mrf.mxu1 }
 0x112   : >> { %v1053_v59 = vpop.f32.mrf.mxu0  ;;  %v1105_v61 = vpop.f32.mrf.mxu1 }
 0x113   : >> { %v1060_v60 = vadd.f32 %v1053_v59, %v960_v48  ;;  %v1112_v62 = vadd.f32 %v1105_v61, %v1011_v50 }
 0x114   : >> { %v2430_v63 = vpop.f32.mrf.mxu0  ;;  %v2436_v19 = vpop.f32.mrf.mxu1 }
 0x116   : >> { %v1056_v20 = vpop.f32.mrf.mxu0  ;;  %v1108_v23 = vpop.f32.mrf.mxu1 }
 0x117   : >> { %v1061_v22 = vadd.f32 %v1056_v20, %v961_v54  ;;  %v1113_v24 = vadd.f32 %v1108_v23, %v1012_v56 }
 0x118   : >> { %v2431_v25 = vpop.f32.mrf.mxu0  ;;  %v2437_v26 = vpop.f32.mrf.mxu1 }
 0x11a   : >> { %v1154_v27 = vpop.f32.mrf.mxu0  ;;  %v1206_v29 = vpop.f32.mrf.mxu1 }
 0x11b   : >> { %v3015_v28 = vadd.f32 %v1154_v27, %v1060_v60  ;;  %v3017_v30 = vadd.f32 %v1206_v29, %v1112_v62 }
 0x11c   : >> { %v2442_v31 = vpop.f32.mrf.mxu0  ;;  %v2448_v32 = vpop.f32.mrf.mxu1 }
 0x11e   : >> { %v1157_v34 = vpop.f32.mrf.mxu0  ;;  %v1209_v36 = vpop.f32.mrf.mxu1 }
 0x11f   : >> { %v3021_v35 = vadd.f32 %v1157_v34, %v1061_v22  ;;  %v3023_v37 = vadd.f32 %v1209_v36, %v1113_v24 }
 0x120   : >> { %v2443_v38 = vpop.f32.mrf.mxu0  ;;  %v2449_v21 = vpop.f32.mrf.mxu1 }
 0x122   : >> { %v1249_v40 = vpop.f32.mrf.mxu0  ;;  %v1290_v41 = vpop.f32.mrf.mxu1 }
 0x124   : >> { %v2454_v42 = vpop.f32.mrf.mxu0  ;;  %v2460_v43 = vpop.f32.mrf.mxu1 }
 0x126   : >> { %v1252_v44 = vpop.f32.mrf.mxu0  ;;  %v1293_v45 = vpop.f32.mrf.mxu1 }
 0x128   : >> { %v2455_v46 = vpop.f32.mrf.mxu0  ;;  %v2461_v47 = vpop.f32.mrf.mxu1 }
 0x12a   : >> { %v1331_v48 = vpop.f32.mrf.mxu0  ;;  %v1372_v49 = vpop.f32.mrf.mxu1 }
 0x12c   : >> { %v2466_v50 = vpop.f32.mrf.mxu0  ;;  %v2472_v51 = vpop.f32.mrf.mxu1 }
 0x12e   : >> { %v1334_v52 = vpop.f32.mrf.mxu0  ;;  %v1375_v53 = vpop.f32.mrf.mxu1 }
 0x130   : >> { %v2467_v54 = vpop.f32.mrf.mxu0  ;;  %v2473_v55 = vpop.f32.mrf.mxu1 }
 0x132   : >> { %v1413_v56 = vpop.f32.mrf.mxu0  ;;  %v1456_v57 = vpop.f32.mrf.mxu1 }
 0x134   : >> { %v2478_v58 = vpop.f32.mrf.mxu0  ;;  %v2484_v59 = vpop.f32.mrf.mxu1 }
 0x136   : >> { %v1416_v60 = vpop.f32.mrf.mxu0  ;;  %v1459_v61 = vpop.f32.mrf.mxu1 }
 0x138   : >> { %v2479_v62 = vpop.f32.mrf.mxu0  ;;  %v2485_v63 = vpop.f32.mrf.mxu1 }
 0x13a   : >> { %v1499_v19 = vpop.f32.mrf.mxu0  ;;  %v1542_v20 = vpop.f32.mrf.mxu1 }
 0x13c   : >> { %v2490_v22 = vpop.f32.mrf.mxu0  ;;  %v2496_v23 = vpop.f32.mrf.mxu1 }
 0x13d   : >> { %v1291_v22 = vadd.f32 %v1290_v41, %v1249_v40 }
 0x13e   : >> { %v1502_v24 = vpop.f32.mrf.mxu0  ;;  %v1545_v25 = vpop.f32.mrf.mxu1 }
 0x140   : >> { %v2491_v26 = vpop.f32.mrf.mxu0  ;;  %v2497_v27 = vpop.f32.mrf.mxu1 }
 0x141   : >> { %v1373_v26 = vadd.f32 %v1372_v49, %v1331_v48 }
 0x142   : >> { %v1585_v29 = vpop.f32.mrf.mxu0  ;;  %v1628_v31 = vpop.f32.mrf.mxu1 }
 0x143   : >> { %v1463_v39 = vadd.f32 %v1456_v57, %v1373_v26 }
 0x144   : >> { %v2502_v32 = vpop.f32.mrf.mxu0  ;;  %v2508_v34 = vpop.f32.mrf.mxu1 }
 0x145   : >> { %v1420_v32 = vadd.f32 %v1413_v56, %v1291_v22 }
 0x146   : >> { %v1588_v36 = vpop.f32.mrf.mxu0  ;;  %v1631_v38 = vpop.f32.mrf.mxu1 }
 0x147   : >> { %v1506_v33 = vadd.f32 %v1499_v19, %v1420_v32 }
 0x148   : >> { %v2503_v21 = vpop.f32.mrf.mxu0  ;;  %v2509_v42 = vpop.f32.mrf.mxu1 }
 0x149   : >> { %v1294_v42 = vadd.f32 %v1293_v45, %v1252_v44 }
 0x14a   : >> { %v1671_v43 = vpop.f32.mrf.mxu0  ;;  %v1714_v46 = vpop.f32.mrf.mxu1 }
 0x14b   : >> { %v1421_v3 = vadd.f32 %v1416_v60, %v1294_v42 }
 0x14c   : >> { %v2514_v47 = vpop.f32.mrf.mxu0  ;;  %v2520_v50 = vpop.f32.mrf.mxu1 }
 0x14d   : >> { %v1376_v47 = vadd.f32 %v1375_v53, %v1334_v52  ;;  %v1549_v50 = vadd.f32 %v1542_v20, %v1463_v39  ;;  %v1507_v40 = vadd.f32 %v1502_v24, %v1421_v3 }
 0x14e   : >> { %v1674_v51 = vpop.f32.mrf.mxu0  ;;  %v1717_v54 = vpop.f32.mrf.mxu1 }
 0x14f   : >> { %v1464_v4 = vadd.f32 %v1459_v61, %v1376_v47  ;;  %v1635_v5 = vadd.f32 %v1628_v31, %v1549_v50  ;;  %v1593_v57 = vadd.f32 %v1588_v36, %v1507_v40 }
 0x150   : >> { %v2515_v55 = vpop.f32.mrf.mxu0  ;;  %v2521_v58 = vpop.f32.mrf.mxu1 }
 0x151   : >> { %v1592_v55 = vadd.f32 %v1585_v29, %v1506_v33  ;;  %v1550_v49 = vadd.f32 %v1545_v25, %v1464_v4  ;;  %v1721_v56 = vadd.f32 %v1714_v46, %v1635_v5  ;;  %v1679_v39 = vadd.f32 %v1674_v51, %v1593_v57 }
 0x152   : >> { %v1765_v59 = vpop.f32.mrf.mxu0  ;;  %v1816_v62 = vpop.f32.mrf.mxu1 }
 0x153   : >> { %v1678_v41 = vadd.f32 %v1671_v43, %v1592_v55  ;;  %v1636_v45 = vadd.f32 %v1631_v38, %v1550_v49 }
 0x154   : >> { %v2526_v63 = vpop.f32.mrf.mxu0  ;;  %v2532_v23 = vpop.f32.mrf.mxu1 }
 0x155   : >> { %v1772_v23 = vadd.f32 %v1765_v59, %v1678_v41  ;;  %v1722_v33 = vadd.f32 %v1717_v54, %v1636_v45 }
 0x156   : >> { %v1768_v27 = vpop.f32.mrf.mxu0  ;;  %v1819_v34 = vpop.f32.mrf.mxu1 }
 0x157   : >> { %v1773_v20 = vadd.f32 %v1768_v27, %v1679_v39  ;;  %v1824_v24 = vadd.f32 %v1819_v34, %v1722_v33 }
 0x158   : >> { %v2527_v21 = vpop.f32.mrf.mxu0  ;;  %v2533_v1 = vpop.f32.mrf.mxu1 }
 0x159   : >> { %v1823_v1 = vadd.f32 %v1816_v62, %v1721_v56  ;;  %v3059_v21 = vmax.f32 %v3021_v35, %v3023_v37 }
 0x15a   : >> { %v1859_v2 = vpop.f32.mrf.mxu0  ;;  %v1911_v58 = vpop.f32.mrf.mxu1 }
 0x15b   : >> { %v1866_v53 = vadd.f32 %v1859_v2, %v1772_v23  ;;  %v1918_v19 = vadd.f32 %v1911_v58, %v1823_v1  ;;  %v3058_v2 = vmax.f32 %v3015_v28, %v3017_v30 }
 0x15c   : >> { %v2538_v63 = vpop.f32.mrf.mxu0  ;;  %v2544_v48 = vpop.f32.mrf.mxu1 }
 0x15e   : >> { %v1862_v22 = vpop.f32.mrf.mxu0  ;;  %v1914_v44 = vpop.f32.mrf.mxu1 }
 0x15f   : >> { %v1867_v25 = vadd.f32 %v1862_v22, %v1773_v20  ;;  %v1919_v36 = vadd.f32 %v1914_v44, %v1824_v24 }
 0x160   : >> { %v2539_v52 = vpop.f32.mrf.mxu0  ;;  %v2545_v60 = vpop.f32.mrf.mxu1 }
 0x162   : >> { %v1954_v61 = vpop.f32.mrf.mxu0  ;;  %v2006_v3 = vpop.f32.mrf.mxu1 }
 0x163   : >> { %v1961_v29 = vadd.f32 %v1954_v61, %v1866_v53  ;;  %v2013_v4 = vadd.f32 %v2006_v3, %v1918_v19 }
 0x164   : >> { %v2550_v5 = vpop.f32.mrf.mxu0  ;;  %v2556_v31 = vpop.f32.mrf.mxu1 }
 0x165   : >> { %v2017_v38 = vmax.f32 %v1961_v29, %v2013_v4 }
 0x166   : >> { %v1957_v43 = vpop.f32.mrf.mxu0  ;;  %v2009_v51 = vpop.f32.mrf.mxu1 }
 0x167   : >> { %v1962_v46 = vadd.f32 %v1957_v43, %v1867_v25  ;;  %v2019_v54 = vmax.f32 %v3058_v2, %v2017_v38  ;;  %v2014_v59 = vadd.f32 %v2009_v51, %v1919_v36 }
 0x168   : >> { %v2551_v62 = vpop.f32.mrf.mxu0  ;;  %v2557_v26 = vpop.f32.mrf.mxu1 }
 0x169   : >> { %v2027_v27 = vadd.f32 %v2640_v0, %v2019_v54  ;;  %v2018_v32 = vmax.f32 %v1962_v46, %v2014_v59 }
 0x16b   : >> { %v2029_v34 = vmax.f32 %v2027_v27, 0.0  ;;  %v2020_v42 = vmax.f32 %v3059_v21, %v2018_v32 }
 0x16d   : >> { %v2267_v47 = vpack.c.bf16 %v2029_v34, %v2029_v34  ;;  %v2028_v50 = vadd.f32 %v2640_v0, %v2020_v42 }
 0x16f   : >> { %2042 = vst.msk [vmem:[%s2040_s22] sm:$0xf] %vm2041_vm2, %v2267_v47  ;;  %v2030_v28 = vmax.f32 %v2028_v50, 0.0  ;;  %250 = sbr.rel (!%p248_p4) target bundleno = 19 (0x13), region = 93 }
 0x171   : >> { %v2268_v30 = vpack.c.bf16 %v2030_v28, %v2030_v28 }
 0x173   : >> { %2044 = vst.msk [vmem:[%s2040_s22 + $0x4] sm:$0x7] %vm2043_vm3, %v2268_v30 }
 0x174 PF: > { %s14_s15 = sadd.s32 1, %s2596_s15  }
 0x175   : > { %p11_p5 = scmp.ge.s32.totalorder %s14_s15, 4  }
 0x177   :  { %13 = sbr.rel (!%p11_p5) target bundleno = 1 (0x1), region = 104 }

// kernel: mycnn_forward.5
= control target key start
LH: loop header
LB: loop body
LE: loop exit
PB: predicated region body
PF: predicated region fallthrough
CT: control target
= control target key end

     0   :  { %s3216_s15 = smov 0   ;;  %s3693_s0 = inlined_call_operand.vmem [shape: bf16[2,64,32,3], index: 0, kind: input, shape index: {}]   ;;  %s3694_s1 = inlined_call_operand.vmem [shape: bf16[2,64,32,3], index: 1, kind: input, shape index: {}]   ;;  %s3695_s2 = inlined_call_operand.vmem [shape: bf16[9,3,16], index: 2, kind: input, shape index: {}]   ;;  %s3696_s3 = inlined_call_operand.vmem [shape: f32[1,16], index: 3, kind: input, shape index: {}]   ;;  %s3697_s4 = inlined_call_operand.vmem [shape: bf16[2,31,31,16], index: 4, kind: output, shape index: {}]  }
   0x1 LB: > { %s2645_s16 = sadd.s32 4294967295, %s3184_s15   ;;  %p2649_p0 = scmp.ge.s32.totalorder %s3184_s15, 1  ;;  %s3184_s15 = sphi %s3216_s15, %s14_s15  }
   0x2   : > { %p172_p1 = scmp.lt.s32.totalorder %s3184_s15, 3 }
   0x4   : > { %p173_p2 = pnand %p2649_p0, %p172_p1 }
   0x5   : > { %p203_p3 = scmp.lt.s32.totalorder (!%p173_p2), %s2645_s16, 1  ;;  %s3289_s24 = smov (!%p173_p2), 0  }
   0x6   : > { %176 = sbr.rel (%p173_p2) target bundleno = 377 (0x179), region = 36 }
   0xb   : > { %v3227_v0 = vld [vmem:[%s3696_s3] ss:$0 sm:$0xff]  ;;  %v3237_v2 = vld [vmem:[%s3695_s2 + $0x2] sm:$0x3]  ;;  %v3242_v3 = vld [vmem:[%s3695_s2 + $0x4] sm:$0x3] }
   0xc   : > { %3707 = vst [vmem:[#allocation2_spill] sm:$0xff] %v3227_v0  ;;  %v3232_v1 = vld [vmem:[%s3695_s2] sm:$0x3]  ;;  %3709 = vst [vmem:[#allocation4_spill] sm:$0xff] %v3237_v2  ;;  %v3247_v4 = vld [vmem:[%s3695_s2 + $0x6] sm:$0x3] }
   0xd   : > { %3708 = vst [vmem:[#allocation3_spill] sm:$0xff] %v3232_v1  ;;  %3710 = vst [vmem:[#allocation5_spill] sm:$0xff] %v3242_v3  ;;  %s3758_s16 = smov (!%p203_p3, %s2645_s16), 1  ;;  %v3252_v5 = vld [vmem:[%s3695_s2 + $0x8] sm:$0x3] }
   0xe   : > { %3711 = vst [vmem:[#allocation6_spill] sm:$0xff] %v3247_v4  ;;  %3712 = vst [vmem:[#allocation7_spill] sm:$0xff] %v3252_v5  ;;  %v3257_v6 = vld [vmem:[%s3695_s2 + $0xa] sm:$0x3]  ;;  %v3262_v7 = vld [vmem:[%s3695_s2 + $0xc] sm:$0x3] }
   0xf   : > { %3713 = vst [vmem:[#allocation8_spill] sm:$0xff] %v3257_v6  ;;  %3714 = vst [vmem:[#allocation9_spill] sm:$0xff] %v3262_v7  ;;  %v3267_v8 = vld [vmem:[%s3695_s2 + $0xe] sm:$0x3]  ;;  %v3272_v9 = vld [vmem:[%s3695_s2 + $0x10] sm:$0x3] }
  0x10   : > { %3715 = vst [vmem:[#allocation10_spill] sm:$0xff] %v3267_v8  ;;  %3716 = vst [vmem:[#allocation11_spill] sm:$0xff] %v3272_v9  ;;  %s2800_s11 = sshll.u32 %s3758_s16, 10  ;;  %s3140_s12 = smul.u32 496, %s3758_s16 }
  0x11   : > { %s3277_s17 = scalar_lea.vmem %s3693_s0, %s2800_s11  ;;  %s3282_s20 = scalar_lea.vmem %s3694_s1, %s2800_s11 }
  0x12   : > { %s3287_s23 = scalar_lea.vmem %s3697_s4, %s3140_s12 }
  0x13 LB: >> { %vm316_vm0 = vcmask 1040384   ;;  %vm317_vm1 = vcmask 1041408   ;;  %v3190_v10 = vmov 65535   ;;  %s2803_s16 = sshll.u32 %s3188_s24, 5  ;;  %v3717_v2 = vld [vmem:[#allocation4_spill] sm:$0xff]  ;;  %vm309_vm2 = vcmask 23552   ;;  %s3188_s24 = sphi %s3289_s24, %s242_s24  }
  0x14   : >> { %v318_v11 = vsel %vm316_vm0, 4294967295, %v3190_v10  ;;  %v3718_v1 = vld [vmem:[#allocation3_spill] sm:$0xff]  ;;  %s3306_s25 = scalar_lea.vmem %s3282_s20, %s2803_s16  ;;  %s3309_s26 = scalar_lea.vmem %s3277_s17, %s2803_s16  ;;  %v3719_v3 = vld [vmem:[#allocation5_spill] sm:$0xff]  ;;  %vm440_vm3 = vsmask.f32 7424  ;;  %vm2533_vm4 = vcmask 125952  }
  0x15   : >> { %v3294_v12 = vsel %vm317_vm1, %v318_v11, 0  ;;  %v3158_v15 = vld [vmem:[%s3306_s25] sm:$0xff]   ;;  %v3160_v17 = vld [vmem:[%s3306_s25 + $0x8] sm:$0xff]   ;;  %v3343_v37 = vld [vmem:[%s3309_s26 + $0x10] sm:$0xff]   ;;  %s2815_s27 = sshll.u32 %s3188_s24, 4  ;;  %s242_s24 = sadd.s32 1, %s3188_s24  }
  0x16   : >> { %v3299_v13 = vand.u32 %v3717_v2, %v3294_v12  ;;  %v3303_v14 = vand.u32 %v3294_v12, %v3718_v1  ;;  %v3159_v16 = vld [vmem:[%s3309_s26] sm:$0xff]   ;;  %2926 = vmatprep.mubr.msk.bf16.mxu0 %vm309_vm2, %v3158_v15  ;;  %v3161_v20 = vld [vmem:[%s3309_s26 + $0x8] sm:$0xff]   ;;  %v3325_v21 = vand.u32 %v3719_v3, %v3294_v12  ;;  %v614_v22 = vshrl.u32 %v3158_v15, 16  ;;  %v3350_v39 = vld [vmem:[%s3309_s26 + $0x30] sm:$0xff]   ;;  %s2532_s28 = scalar_lea.vmem %s3287_s23, %s2815_s27  ;;  %p239_p4 = scmp.ge.s32.totalorder %s242_s24, 31  }
  0x17   : >> { %2932 = vmatprep.mubr.msk.bf16.mxu1 %vm309_vm2, %v3159_v16  ;;  %v441_v18 = vshrl.u32 %v3159_v16, 16  ;;  %v443_v19 = vshll.u32 %v3159_v16, 16  ;;  %v616_v23 = vshll.u32 %v3158_v15, 16  ;;  %v620_v25 = vshll.u32 %v3160_v17, 16  ;;  %v3720_v4 = vld [vmem:[#allocation6_spill] sm:$0xff]  ;;  %v3356_v40 = vld [vmem:[%s3309_s26 + $0x18] sm:$0xff]  }
  0x18   : >> { %2924 = vmatprep.subr.bf16.mxu0 %v3299_v13  ;;  %2930 = vmatprep.subr.bf16.mxu1 %v3303_v14  ;;  %v447_v26 = vshll.u32 %v3161_v20, 16  ;;  %v451_v27 = vshrl.u32 %v3161_v20, 16  ;;  %v3338_v35 = vand.u32 %v3720_v4, %v3294_v12  ;;  %v624_v38 = vshrl.u32 %v3160_v17, 16  ;;  %v3360_v43 = vld [vmem:[%s3309_s26 + $0x38] sm:$0xff]   ;;  %v3363_v44 = vld [vmem:[%s3306_s25 + $0x30] sm:$0xff]   ;;  %v3721_v5 = vld [vmem:[#allocation7_spill] sm:$0xff] }
  0x19   : >> { %2925 = vmatpush3.bf16.msra.mxu0 %v3299_v13  ;;  %2931 = vmatpush3.bf16.msra.mxu1 %v3303_v14  ;;  %v445_v24 = vrot.slane %v443_v19, 1  ;;  %v618_v28 = vrot.slane %v616_v23, 1  ;;  %v622_v32 = vrot.slane %v620_v25, 1  ;;  %v885_v41 = vshll.u32 %v3343_v37, 16  ;;  %v3368_v47 = vld [vmem:[%s3306_s25 + $0x10] sm:$0xff]   ;;  %v3377_v51 = vld [vmem:[%s3306_s25 + $0x38] sm:$0xff]  }
  0x1a   : >> { %2936 = vmatprep.subr.bf16.mxu0 %v3299_v13  ;;  %2942 = vmatprep.subr.bf16.mxu1 %v3303_v14  ;;  %v449_v30 = vrot.slane %v447_v26, 1  ;;  %v2291_v45 = vshrl.u32 %v3350_v39, 16  ;;  %v2293_v46 = vshll.u32 %v3350_v39, 16  ;;  %v3372_v48 = vand.u32 %v3721_v5, %v3294_v12  ;;  %v3403_v16 = vld [vmem:[%s3306_s25 + $0x18] sm:$0xff]   ;;  %v3722_v6 = vld [vmem:[#allocation8_spill] sm:$0xff]  ;;  %v3724_v8 = vld [vmem:[#allocation10_spill] sm:$0xff] }
  0x1b   : >> { %v446_v29 = vor.u32 %v445_v24, %v441_v18  ;;  %v619_v31 = vor.u32 %v618_v28, %v614_v22  ;;  %v626_v42 = vor.u32 %v624_v38, %v622_v32  ;;  %v883_v49 = vshrl.u32 %v3343_v37, 16  ;;  %v3723_v7 = vld [vmem:[#allocation9_spill] sm:$0xff]  ;;  %v3725_v9 = vld [vmem:[#allocation11_spill] sm:$0xff] }
  0x1c   : >> { %2927 = vmatmul.mubr.msk.bf16.vlgmr.msra.gmra.mxu0 %vm309_vm2, %v3160_v17  ;;  %2933 = vmatmul.mubr.msk.bf16.vlgmr.msra.gmra.mxu1 %vm309_vm2, %v3161_v20  ;;  %v453_v34 = vor.u32 %v451_v27, %v449_v30  ;;  %v889_v50 = vshll.u32 %v3356_v40, 16  ;;  %v2297_v52 = vshll.u32 %v3360_v43, 16  ;;  %v887_v53 = vrot.slane %v885_v41, 1 }
  0x1d   : >> { %2937 = vmatpush3.bf16.msra.mxu0 %v3299_v13  ;;  %2943 = vmatpush3.bf16.msra.mxu1 %v3303_v14  ;;  %v450_v33 = vsel %vm440_vm3, %v446_v29, %v449_v30  ;;  %v623_v36 = vsel %vm440_vm3, %v619_v31, %v622_v32  ;;  %v2295_v54 = vrot.slane %v2293_v46, 1  ;;  %v2416_v55 = vshrl.u32 %v3363_v44, 16  ;;  %v3443_v30 = vld [vmem:[%s3309_s26 + $0x20] sm:$0xff]  }
  0x1e   : >> { %2944 = vmatprep.mubr.msk.bf16.mxu1 %vm309_vm2, %v3158_v15  ;;  %2948 = vmatprep.subr.bf16.mxu0 %v3325_v21  ;;  %v2418_v56 = vshll.u32 %v3363_v44, 16  ;;  %v3385_v57 = vrot.slane %v2297_v52, 1  ;;  %v2422_v58 = vshll.u32 %v3377_v51, 16  ;;  %v1013_v61 = vshll.u32 %v3368_v47, 16  ;;  %v3485_v52 = vld [vmem:[%s3306_s25 + $0x28] sm:$0xff]  }
  0x1f   : >> { %2954 = vmatprep.subr.bf16.mxu1 %v3325_v21  ;;  %2938 = vmatprep.mubr.msk.bf16.mxu0 %vm309_vm2, %v450_v33  ;;  %v2296_v59 = vor.u32 %v2295_v54, %v2291_v45  ;;  %v888_v63 = vor.u32 %v887_v53, %v883_v49  ;;  %v891_v10 = vrot.slane %v889_v50, 1  ;;  %v3411_v18 = vand.u32 %v3722_v6, %v3294_v12 }
  0x20   : >> { %v2420_v60 = vrot.slane %v2418_v56, 1  ;;  %v3395_v62 = vrot.slane %v2422_v58, 1  ;;  %v1011_v20 = vshrl.u32 %v3368_v47, 16  ;;  %v1015_v22 = vrot.slane %v1013_v61, 1 }
  0x21   : >> { %v3400_v11 = vsel %vm440_vm3, %v2296_v59, %v3385_v57  ;;  %v3416_v19 = vsel %vm440_vm3, %v888_v63, %v891_v10  ;;  %v1017_v23 = vshll.u32 %v3403_v16, 16  ;;  %v893_v24 = vshrl.u32 %v3356_v40, 16 }
  0x22   : >> { %v2421_v15 = vor.u32 %v2420_v60, %v2416_v55  ;;  %v1016_v25 = vor.u32 %v1015_v22, %v1011_v20  ;;  %v3435_v28 = vand.u32 %v3723_v7, %v3294_v12  ;;  %v1021_v31 = vshrl.u32 %v3403_v16, 16 }
  0x23   : >> { %v1019_v26 = vrot.slane %v1017_v23, 1  ;;  %v3431_v27 = vor.u32 %v893_v24, %v891_v10  ;;  %v1282_v32 = vshll.u32 %v3443_v30, 16  ;;  %v3467_v38 = vand.u32 %v3724_v8, %v3294_v12 }
  0x24   : >> { %2939 = vmatmul.mubr.msk.bf16.vlgmr.msra.gmra.mxu0 %vm309_vm2, %v453_v34  ;;  %2945 = vmatmul.mubr.msk.bf16.vlgmr.msra.gmra.mxu1 %vm309_vm2, %v3160_v17  ;;  %v3407_v17 = vsel %vm440_vm3, %v2421_v15, %v3395_v62  ;;  %v1280_v41 = vshrl.u32 %v3443_v30, 16  ;;  %v3489_v53 = vand.u32 %v3725_v9, %v3294_v12  ;;  %v1414_v58 = vshll.u32 %v3485_v52, 16 }
  0x25   : >> { %2949 = vmatpush3.bf16.msra.mxu0 %v3325_v21  ;;  %2955 = vmatpush3.bf16.msra.mxu1 %v3325_v21  ;;  %v3440_v29 = vsel %vm440_vm3, %v1016_v25, %v1019_v26  ;;  %v1418_v10 = vshrl.u32 %v3485_v52, 16  ;;  %vm2538_vm5 = vsmask.f32 3328 }
  0x26   : >> { %2950 = vmatprep.mubr.msk.bf16.mxu0 %vm309_vm2, %v450_v33  ;;  %2956 = vmatprep.mubr.msk.bf16.mxu1 %vm309_vm2, %v623_v36  ;;  %v3457_v33 = vor.u32 %v1021_v31, %v1019_v26  ;;  %v3463_v36 = vld [vmem:[%s3306_s25 + $0x20] sm:$0xff]   ;;  %v1416_v60 = vrot.slane %v1414_v58, 1  ;;  %vm2539_vm6 = vmand %vm2533_vm4, %vm2538_vm5 }
  0x27   : >> { %2960 = vmatprep.subr.bf16.mxu0 %v3338_v35  ;;  %2966 = vmatprep.subr.bf16.mxu1 %v3338_v35  ;;  %v1410_v50 = vshll.u32 %v3463_v36, 16  ;;  %v1408_v55 = vshrl.u32 %v3463_v36, 16 }
  0x28   : >> { %v1420_v15 = vor.u32 %v1418_v10, %v1416_v60 }
  0x29   : >> { %v1412_v56 = vrot.slane %v1410_v50, 1 }
  0x2b   : >> { %v1413_v12 = vor.u32 %v1412_v56, %v1408_v55 }
  0x2c   : >> { %2951 = vmatmul.mubr.msk.bf16.vlgmr.msra.gmra.mxu0 %vm309_vm2, %v453_v34  ;;  %2957 = vmatmul.mubr.msk.bf16.vlgmr.msra.gmra.mxu1 %vm309_vm2, %v626_v42  ;;  %v3460_v34 = vld [vmem:[%s3309_s26 + $0x28] sm:$0xff]   ;;  %v1284_v42 = vrot.slane %v1282_v32, 1 }
  0x2d   : >> { %2961 = vmatpush3.bf16.msra.mxu0 %v3338_v35  ;;  %2967 = vmatpush3.bf16.msra.mxu1 %v3338_v35  ;;  %v1286_v45 = vshll.u32 %v3460_v34, 16  ;;  %v1290_v59 = vshrl.u32 %v3460_v34, 16  ;;  %v1417_v63 = vsel %vm440_vm3, %v1413_v12, %v1416_v60 }
  0x2e   : >> { %2962 = vmatprep.mubr.msk.bf16.mxu0 %vm309_vm2, %v3343_v37  ;;  %2968 = vmatprep.mubr.msk.bf16.mxu1 %vm309_vm2, %v3368_v47  ;;  %v1285_v46 = vor.u32 %v1284_v42, %v1280_v41 }
  0x2f   : >> { %2972 = vmatprep.subr.bf16.mxu0 %v3372_v48  ;;  %2978 = vmatprep.subr.bf16.mxu1 %v3372_v48  ;;  %v1288_v49 = vrot.slane %v1286_v45, 1 }
  0x31   : >> { %v3494_v54 = vsel %vm440_vm3, %v1285_v46, %v1288_v49  ;;  %v1292_v61 = vor.u32 %v1290_v59, %v1288_v49 }
  0x34   : >> { %2963 = vmatmul.mubr.msk.bf16.vlgmr.msra.gmra.mxu0 %vm309_vm2, %v3356_v40  ;;  %2969 = vmatmul.mubr.msk.bf16.vlgmr.msra.gmra.mxu1 %vm309_vm2, %v3403_v16 }
  0x35   : >> { %2973 = vmatpush3.bf16.msra.mxu0 %v3372_v48  ;;  %2979 = vmatpush3.bf16.msra.mxu1 %v3372_v48 }
  0x36   : >> { %2974 = vmatprep.mubr.msk.bf16.mxu0 %vm309_vm2, %v3368_v47  ;;  %2980 = vmatprep.mubr.msk.bf16.mxu1 %vm309_vm2, %v3416_v19 }
  0x37   : >> { %2984 = vmatprep.subr.bf16.mxu0 %v3411_v18  ;;  %2990 = vmatprep.subr.bf16.mxu1 %v3411_v18 }
  0x3c   : >> { %2975 = vmatmul.mubr.msk.bf16.vlgmr.msra.gmra.mxu0 %vm309_vm2, %v3403_v16  ;;  %2981 = vmatmul.mubr.msk.bf16.vlgmr.msra.gmra.mxu1 %vm309_vm2, %v3431_v27 }
  0x3d   : >> { %2985 = vmatpush3.bf16.msra.mxu0 %v3411_v18  ;;  %2991 = vmatpush3.bf16.msra.mxu1 %v3411_v18 }
  0x3e   : >> { %2986 = vmatprep.mubr.msk.bf16.mxu0 %vm309_vm2, %v3416_v19  ;;  %2992 = vmatprep.mubr.msk.bf16.mxu1 %vm309_vm2, %v3440_v29 }
  0x3f   : >> { %2996 = vmatprep.subr.bf16.mxu0 %v3435_v28  ;;  %3002 = vmatprep.subr.bf16.mxu1 %v3435_v28 }
  0x44   : >> { %2987 = vmatmul.mubr.msk.bf16.vlgmr.msra.gmra.mxu0 %vm309_vm2, %v3431_v27  ;;  %2993 = vmatmul.mubr.msk.bf16.vlgmr.msra.gmra.mxu1 %vm309_vm2, %v3457_v33 }
  0x45   : >> { %2997 = vmatpush3.bf16.msra.mxu0 %v3435_v28  ;;  %3003 = vmatpush3.bf16.msra.mxu1 %v3435_v28 }
  0x46   : >> { %2998 = vmatprep.mubr.msk.bf16.mxu0 %vm309_vm2, %v3443_v30  ;;  %3004 = vmatprep.mubr.msk.bf16.mxu1 %vm309_vm2, %v3463_v36 }
  0x47   : >> { %3008 = vmatprep.subr.bf16.mxu0 %v3467_v38  ;;  %3014 = vmatprep.subr.bf16.mxu1 %v3467_v38 }
  0x4c   : >> { %2999 = vmatmul.mubr.msk.bf16.vlgmr.msra.gmra.mxu0 %vm309_vm2, %v3460_v34  ;;  %3005 = vmatmul.mubr.msk.bf16.vlgmr.msra.gmra.mxu1 %vm309_vm2, %v3485_v52 }
  0x4d   : >> { %3009 = vmatpush3.bf16.msra.mxu0 %v3467_v38  ;;  %3015 = vmatpush3.bf16.msra.mxu1 %v3467_v38 }
  0x4e   : >> { %3010 = vmatprep.mubr.msk.bf16.mxu0 %vm309_vm2, %v3463_v36  ;;  %3016 = vmatprep.mubr.msk.bf16.mxu1 %vm309_vm2, %v3494_v54 }
  0x4f   : >> { %3020 = vmatprep.subr.bf16.mxu0 %v3489_v53  ;;  %3026 = vmatprep.subr.bf16.mxu1 %v3489_v53 }
  0x54   : >> { %3011 = vmatmul.mubr.msk.bf16.vlgmr.msra.gmra.mxu0 %vm309_vm2, %v3485_v52  ;;  %3017 = vmatmul.mubr.msk.bf16.vlgmr.msra.gmra.mxu1 %vm309_vm2, %v1292_v61 }
  0x55   : >> { %3021 = vmatpush3.bf16.msra.mxu0 %v3489_v53  ;;  %3027 = vmatpush3.bf16.msra.mxu1 %v3489_v53 }
  0x56   : >> { %3022 = vmatprep.mubr.msk.bf16.mxu0 %vm309_vm2, %v3494_v54  ;;  %3028 = vmatprep.mubr.msk.bf16.mxu1 %vm309_vm2, %v1417_v63 }
  0x57   : >> { %3032 = vmatprep.subr.bf16.mxu0 %v3299_v13  ;;  %3038 = vmatprep.subr.bf16.mxu1 %v3303_v14 }
  0x5c   : >> { %3023 = vmatmul.mubr.msk.bf16.vlgmr.msra.gmra.mxu0 %vm309_vm2, %v1292_v61  ;;  %3029 = vmatmul.mubr.msk.bf16.vlgmr.msra.gmra.mxu1 %vm309_vm2, %v1420_v15 }
  0x5d   : >> { %3033 = vmatpush3.bf16.msra.mxu0 %v3299_v13  ;;  %3039 = vmatpush3.bf16.msra.mxu1 %v3303_v14 }
  0x5e   : >> { %3034 = vmatprep.mubr.msk.bf16.mxu0 %vm309_vm2, %v3368_v47  ;;  %3040 = vmatprep.mubr.msk.bf16.mxu1 %vm309_vm2, %v3343_v37 }
  0x5f   : >> { %3044 = vmatprep.subr.bf16.mxu0 %v3299_v13  ;;  %3050 = vmatprep.subr.bf16.mxu1 %v3303_v14 }
  0x64   : >> { %3035 = vmatmul.mubr.msk.bf16.vlgmr.msra.gmra.mxu0 %vm309_vm2, %v3403_v16  ;;  %3041 = vmatmul.mubr.msk.bf16.vlgmr.msra.gmra.mxu1 %vm309_vm2, %v3356_v40 }
  0x65   : >> { %3045 = vmatpush3.bf16.msra.mxu0 %v3299_v13  ;;  %3051 = vmatpush3.bf16.msra.mxu1 %v3303_v14  ;;  %v2301_v13 = vshrl.u32 %v3360_v43, 16 }
  0x66   : >> { %3046 = vmatprep.mubr.msk.bf16.mxu0 %vm309_vm2, %v3416_v19  ;;  %3052 = vmatprep.mubr.msk.bf16.mxu1 %vm309_vm2, %v3368_v47 }
  0x67   : >> { %3056 = vmatprep.subr.bf16.mxu0 %v3325_v21  ;;  %3062 = vmatprep.subr.bf16.mxu1 %v3325_v21  ;;  %v2303_v14 = vor.u32 %v2301_v13, %v3385_v57 }
  0x6c   : >> { %3047 = vmatmul.mubr.msk.bf16.vlgmr.msra.gmra.mxu0 %vm309_vm2, %v3431_v27  ;;  %3053 = vmatmul.mubr.msk.bf16.vlgmr.msra.gmra.mxu1 %vm309_vm2, %v3403_v16 }
  0x6d   : >> { %3057 = vmatpush3.bf16.msra.mxu0 %v3325_v21  ;;  %3063 = vmatpush3.bf16.msra.mxu1 %v3325_v21  ;;  %v2426_v21 = vshrl.u32 %v3377_v51, 16 }
  0x6e   : >> { %3058 = vmatprep.mubr.msk.bf16.mxu0 %vm309_vm2, %v3416_v19  ;;  %3064 = vmatprep.mubr.msk.bf16.mxu1 %vm309_vm2, %v3440_v29 }
  0x6f   : >> { %3068 = vmatprep.subr.bf16.mxu0 %v3338_v35  ;;  %3074 = vmatprep.subr.bf16.mxu1 %v3338_v35 }
  0x74   : >> { %3059 = vmatmul.mubr.msk.bf16.vlgmr.msra.gmra.mxu0 %vm309_vm2, %v3431_v27  ;;  %3065 = vmatmul.mubr.msk.bf16.vlgmr.msra.gmra.mxu1 %vm309_vm2, %v3457_v33 }
  0x75   : >> { %3069 = vmatpush3.bf16.msra.mxu0 %v3338_v35  ;;  %3075 = vmatpush3.bf16.msra.mxu1 %v3338_v35  ;;  %v2428_v35 = vor.u32 %v2426_v21, %v3395_v62 }
  0x76   : >> { %3070 = vmatprep.mubr.msk.bf16.mxu0 %vm309_vm2, %v3443_v30  ;;  %3076 = vmatprep.mubr.msk.bf16.mxu1 %vm309_vm2, %v3463_v36 }
  0x77   : >> { %3080 = vmatprep.subr.bf16.mxu0 %v3372_v48  ;;  %3086 = vmatprep.subr.bf16.mxu1 %v3372_v48 }
  0x7c   : >> { %3071 = vmatmul.mubr.msk.bf16.vlgmr.msra.gmra.mxu0 %vm309_vm2, %v3460_v34  ;;  %3077 = vmatmul.mubr.msk.bf16.vlgmr.msra.gmra.mxu1 %vm309_vm2, %v3485_v52 }
  0x7d   : >> { %3081 = vmatpush3.bf16.msra.mxu0 %v3372_v48  ;;  %3087 = vmatpush3.bf16.msra.mxu1 %v3372_v48 }
  0x7e   : >> { %3082 = vmatprep.mubr.msk.bf16.mxu0 %vm309_vm2, %v3463_v36  ;;  %3088 = vmatprep.mubr.msk.bf16.mxu1 %vm309_vm2, %v3494_v54 }
  0x7f   : >> { %3092 = vmatprep.subr.bf16.mxu0 %v3411_v18  ;;  %3098 = vmatprep.subr.bf16.mxu1 %v3411_v18 }
  0x84   : >> { %3083 = vmatmul.mubr.msk.bf16.vlgmr.msra.gmra.mxu0 %vm309_vm2, %v3485_v52  ;;  %3089 = vmatmul.mubr.msk.bf16.vlgmr.msra.gmra.mxu1 %vm309_vm2, %v1292_v61 }
  0x85   : >> { %3093 = vmatpush3.bf16.msra.mxu0 %v3411_v18  ;;  %3099 = vmatpush3.bf16.msra.mxu1 %v3411_v18 }
  0x86   : >> { %3094 = vmatprep.mubr.msk.bf16.mxu0 %vm309_vm2, %v3494_v54  ;;  %3100 = vmatprep.mubr.msk.bf16.mxu1 %vm309_vm2, %v1417_v63 }
  0x87   : >> { %3104 = vmatprep.subr.bf16.mxu0 %v3435_v28  ;;  %3110 = vmatprep.subr.bf16.mxu1 %v3435_v28 }
  0x8c   : >> { %3095 = vmatmul.mubr.msk.bf16.vlgmr.msra.gmra.mxu0 %vm309_vm2, %v1292_v61  ;;  %3101 = vmatmul.mubr.msk.bf16.vlgmr.msra.gmra.mxu1 %vm309_vm2, %v1420_v15 }
  0x8d   : >> { %3105 = vmatpush3.bf16.msra.mxu0 %v3435_v28  ;;  %3111 = vmatpush3.bf16.msra.mxu1 %v3435_v28 }
  0x8e   : >> { %3106 = vmatprep.mubr.msk.bf16.mxu0 %vm309_vm2, %v3350_v39  ;;  %3112 = vmatprep.mubr.msk.bf16.mxu1 %vm309_vm2, %v3363_v44 }
  0x8f   : >> { %3116 = vmatprep.subr.bf16.mxu0 %v3467_v38  ;;  %3122 = vmatprep.subr.bf16.mxu1 %v3467_v38 }
  0x94   : >> { %3107 = vmatmul.mubr.msk.bf16.vlgmr.msra.gmra.mxu0 %vm309_vm2, %v3360_v43  ;;  %3113 = vmatmul.mubr.msk.bf16.vlgmr.msra.gmra.mxu1 %vm309_vm2, %v3377_v51 }
  0x95   : >> { %3117 = vmatpush3.bf16.msra.mxu0 %v3467_v38  ;;  %3123 = vmatpush3.bf16.msra.mxu1 %v3467_v38 }
  0x96   : >> { %3118 = vmatprep.mubr.msk.bf16.mxu0 %vm309_vm2, %v3363_v44  ;;  %3124 = vmatprep.mubr.msk.bf16.mxu1 %vm309_vm2, %v3400_v11 }
  0x97   : >> { %3128 = vmatprep.subr.bf16.mxu0 %v3489_v53  ;;  %3134 = vmatprep.subr.bf16.mxu1 %v3489_v53 }
  0x9c   : >> { %3119 = vmatmul.mubr.msk.bf16.vlgmr.msra.gmra.mxu0 %vm309_vm2, %v3377_v51  ;;  %3125 = vmatmul.mubr.msk.bf16.vlgmr.msra.gmra.mxu1 %vm309_vm2, %v2303_v14 }
  0x9d   : >> { %3129 = vmatpush3.bf16.msra.mxu0 %v3489_v53  ;;  %3135 = vmatpush3.bf16.msra.mxu1 %v3489_v53 }
  0x9e   : >> { %3130 = vmatprep.mubr.msk.bf16.mxu0 %vm309_vm2, %v3400_v11  ;;  %3136 = vmatprep.mubr.msk.bf16.mxu1 %vm309_vm2, %v3407_v17 }
  0xa4   : >> { %3131 = vmatmul.mubr.msk.bf16.vlgmr.msra.gmra.mxu0 %vm309_vm2, %v2303_v14  ;;  %3137 = vmatmul.mubr.msk.bf16.vlgmr.msra.gmra.mxu1 %vm309_vm2, %v2428_v35 }
  0xdc   : >> { %v2928_v37 = vpop.f32.mrf.mxu0  ;;  %v2934_v39 = vpop.f32.mrf.mxu1 }
  0xdd   : >> { %v434_v40 = vadd.f32 %v2934_v39, %v2928_v37 }
  0xde   : >> { %v357_v43 = vpop.f32.mrf.mxu0  ;;  %v425_v44 = vpop.f32.mrf.mxu1 }
  0xdf   : >> { %v426_v47 = vadd.f32 %v425_v44, %v357_v43 }
  0xe0   : >> { %v2929_v48 = vpop.f32.mrf.mxu0  ;;  %v2935_v51 = vpop.f32.mrf.mxu1 }
  0xe1   : >> { %v437_v57 = vadd.f32 %v2935_v51, %v2929_v48 }
  0xe2   : >> { %v360_v16 = vpop.f32.mrf.mxu0  ;;  %v428_v11 = vpop.f32.mrf.mxu1 }
  0xe3   : >> { %v429_v18 = vadd.f32 %v428_v11, %v360_v16 }
  0xe4   : >> { %v2940_v19 = vpop.f32.mrf.mxu0  ;;  %v2946_v17 = vpop.f32.mrf.mxu1 }
  0xe5   : >> { %v552_v20 = vadd.f32 %v2946_v17, %v2940_v19 }
  0xe6   : >> { %v494_v62 = vpop.f32.mrf.mxu0  ;;  %v543_v22 = vpop.f32.mrf.mxu1 }
  0xe7   : >> { %v544_v23 = vadd.f32 %v543_v22, %v494_v62 }
  0xe8   : >> { %v2941_v24 = vpop.f32.mrf.mxu0  ;;  %v2947_v25 = vpop.f32.mrf.mxu1 }
  0xe9   : >> { %v555_v26 = vadd.f32 %v2947_v25, %v2941_v24 }
  0xea   : >> { %v497_v27 = vpop.f32.mrf.mxu0  ;;  %v546_v28 = vpop.f32.mrf.mxu1 }
  0xeb   : >> { %v547_v29 = vadd.f32 %v546_v28, %v497_v27 }
  0xec   : >> { %v2952_v30 = vpop.f32.mrf.mxu0  ;;  %v2958_v32 = vpop.f32.mrf.mxu1 }
  0xed   : >> { %v612_v31 = vadd.f32 %v2952_v30, %v434_v40  ;;  %v684_v33 = vadd.f32 %v2958_v32, %v552_v20 }
  0xee   : >> { %v595_v34 = vpop.f32.mrf.mxu0  ;;  %v667_v38 = vpop.f32.mrf.mxu1 }
  0xef   : >> { %v610_v36 = vadd.f32 %v595_v34, %v426_v47  ;;  %v682_v41 = vadd.f32 %v667_v38, %v544_v23 }
  0xf0   : >> { %v2953_v42 = vpop.f32.mrf.mxu0  ;;  %v2959_v46 = vpop.f32.mrf.mxu1 }
  0xf1   : >> { %v613_v45 = vadd.f32 %v2953_v42, %v437_v57  ;;  %v685_v49 = vadd.f32 %v2959_v46, %v555_v26 }
  0xf2   : >> { %v598_v50 = vpop.f32.mrf.mxu0  ;;  %v670_v53 = vpop.f32.mrf.mxu1 }
  0xf3   : >> { %v611_v52 = vadd.f32 %v598_v50, %v429_v18  ;;  %v683_v54 = vadd.f32 %v670_v53, %v547_v29 }
  0xf4   : >> { %v2964_v55 = vpop.f32.mrf.mxu0  ;;  %v2970_v58 = vpop.f32.mrf.mxu1 }
  0xf5   : >> { %v756_v56 = vadd.f32 %v2964_v55, %v612_v31  ;;  %v825_v59 = vadd.f32 %v2970_v58, %v684_v33 }
  0xf6   : >> { %v739_v12 = vpop.f32.mrf.mxu0  ;;  %v808_v61 = vpop.f32.mrf.mxu1 }
  0xf7   : >> { %v754_v60 = vadd.f32 %v739_v12, %v610_v36  ;;  %v823_v63 = vadd.f32 %v808_v61, %v682_v41 }
  0xf8   : >> { %v2965_v10 = vpop.f32.mrf.mxu0  ;;  %v2971_v13 = vpop.f32.mrf.mxu1 }
  0xf9   : >> { %v757_v15 = vadd.f32 %v2965_v10, %v613_v45  ;;  %v826_v14 = vadd.f32 %v2971_v13, %v685_v49 }
  0xfa   : >> { %v742_v21 = vpop.f32.mrf.mxu0  ;;  %v811_v37 = vpop.f32.mrf.mxu1 }
  0xfb   : >> { %v755_v35 = vadd.f32 %v742_v21, %v611_v52  ;;  %v824_v39 = vadd.f32 %v811_v37, %v683_v54 }
  0xfc   : >> { %v2976_v40 = vpop.f32.mrf.mxu0  ;;  %v2982_v44 = vpop.f32.mrf.mxu1 }
  0xfd   : >> { %v881_v43 = vadd.f32 %v2976_v40, %v756_v56  ;;  %v953_v47 = vadd.f32 %v2982_v44, %v825_v59 }
  0xfe   : >> { %v864_v48 = vpop.f32.mrf.mxu0  ;;  %v936_v57 = vpop.f32.mrf.mxu1 }
  0xff   : >> { %v879_v51 = vadd.f32 %v864_v48, %v754_v60  ;;  %v951_v16 = vadd.f32 %v936_v57, %v823_v63 }
 0x100   : >> { %v2977_v11 = vpop.f32.mrf.mxu0  ;;  %v2983_v19 = vpop.f32.mrf.mxu1 }
 0x101   : >> { %v882_v18 = vadd.f32 %v2977_v11, %v757_v15  ;;  %v954_v17 = vadd.f32 %v2983_v19, %v826_v14 }
 0x102   : >> { %v867_v20 = vpop.f32.mrf.mxu0  ;;  %v939_v22 = vpop.f32.mrf.mxu1 }
 0x103   : >> { %v880_v62 = vadd.f32 %v867_v20, %v755_v35  ;;  %v952_v23 = vadd.f32 %v939_v22, %v824_v39 }
 0x104   : >> { %v2988_v24 = vpop.f32.mrf.mxu0  ;;  %v2994_v26 = vpop.f32.mrf.mxu1 }
 0x105   : >> { %v1009_v25 = vadd.f32 %v2988_v24, %v881_v43  ;;  %v1081_v27 = vadd.f32 %v2994_v26, %v953_v47 }
 0x106   : >> { %v992_v28 = vpop.f32.mrf.mxu0  ;;  %v1064_v30 = vpop.f32.mrf.mxu1 }
 0x107   : >> { %v1007_v29 = vadd.f32 %v992_v28, %v879_v51  ;;  %v1079_v31 = vadd.f32 %v1064_v30, %v951_v16 }
 0x108   : >> { %v2989_v32 = vpop.f32.mrf.mxu0  ;;  %v2995_v34 = vpop.f32.mrf.mxu1 }
 0x109   : >> { %v1010_v33 = vadd.f32 %v2989_v32, %v882_v18  ;;  %v1082_v36 = vadd.f32 %v2995_v34, %v954_v17 }
 0x10a   : >> { %v995_v38 = vpop.f32.mrf.mxu0  ;;  %v1067_v42 = vpop.f32.mrf.mxu1 }
 0x10b   : >> { %v1008_v41 = vadd.f32 %v995_v38, %v880_v62  ;;  %v1080_v45 = vadd.f32 %v1067_v42, %v952_v23 }
 0x10c   : >> { %v3000_v46 = vpop.f32.mrf.mxu0  ;;  %v3006_v50 = vpop.f32.mrf.mxu1 }
 0x10d   : >> { %v1153_v49 = vadd.f32 %v3000_v46, %v1009_v25  ;;  %v1222_v52 = vadd.f32 %v3006_v50, %v1081_v27 }
 0x10e   : >> { %v1136_v53 = vpop.f32.mrf.mxu0  ;;  %v1205_v55 = vpop.f32.mrf.mxu1 }
 0x10f   : >> { %v1151_v54 = vadd.f32 %v1136_v53, %v1007_v29  ;;  %v1220_v56 = vadd.f32 %v1205_v55, %v1079_v31 }
 0x110   : >> { %v3001_v58 = vpop.f32.mrf.mxu0  ;;  %v3007_v12 = vpop.f32.mrf.mxu1 }
 0x111   : >> { %v1154_v59 = vadd.f32 %v3001_v58, %v1010_v33  ;;  %v1223_v60 = vadd.f32 %v3007_v12, %v1082_v36 }
 0x112   : >> { %v1139_v61 = vpop.f32.mrf.mxu0  ;;  %v1208_v10 = vpop.f32.mrf.mxu1 }
 0x113   : >> { %v1152_v63 = vadd.f32 %v1139_v61, %v1008_v41  ;;  %v1221_v15 = vadd.f32 %v1208_v10, %v1080_v45 }
 0x114   : >> { %v3012_v13 = vpop.f32.mrf.mxu0  ;;  %v3018_v21 = vpop.f32.mrf.mxu1 }
 0x115   : >> { %v1278_v14 = vadd.f32 %v3012_v13, %v1153_v49  ;;  %v1350_v35 = vadd.f32 %v3018_v21, %v1222_v52 }
 0x116   : >> { %v1261_v37 = vpop.f32.mrf.mxu0  ;;  %v1333_v40 = vpop.f32.mrf.mxu1 }
 0x117   : >> { %v1276_v39 = vadd.f32 %v1261_v37, %v1151_v54  ;;  %v1348_v43 = vadd.f32 %v1333_v40, %v1220_v56 }
 0x118   : >> { %v3013_v44 = vpop.f32.mrf.mxu0  ;;  %v3019_v48 = vpop.f32.mrf.mxu1 }
 0x119   : >> { %v1279_v47 = vadd.f32 %v3013_v44, %v1154_v59  ;;  %v1351_v51 = vadd.f32 %v3019_v48, %v1223_v60 }
 0x11a   : >> { %v1264_v57 = vpop.f32.mrf.mxu0  ;;  %v1336_v11 = vpop.f32.mrf.mxu1 }
 0x11b   : >> { %v1277_v16 = vadd.f32 %v1264_v57, %v1152_v63  ;;  %v1349_v18 = vadd.f32 %v1336_v11, %v1221_v15 }
 0x11c   : >> { %v3024_v19 = vpop.f32.mrf.mxu0  ;;  %v3030_v20 = vpop.f32.mrf.mxu1 }
 0x11d   : >> { %v3626_v17 = vadd.f32 %v3024_v19, %v1278_v14  ;;  %v3628_v62 = vadd.f32 %v3030_v20, %v1350_v35 }
 0x11e   : >> { %v1389_v22 = vpop.f32.mrf.mxu0  ;;  %v1461_v24 = vpop.f32.mrf.mxu1 }
 0x11f   : >> { %3726 = vst [vmem:[#allocation12_spill] sm:$0xff] %v3626_v17  ;;  %3727 = vst [vmem:[#allocation13_spill] sm:$0xff] %v3628_v62  ;;  %v3630_v23 = vadd.f32 %v1389_v22, %v1276_v39  ;;  %v3634_v26 = vadd.f32 %v1461_v24, %v1348_v43 }
 0x120   : >> { %v3025_v27 = vpop.f32.mrf.mxu0  ;;  %v3031_v29 = vpop.f32.mrf.mxu1 }
 0x121   : >> { %3728 = vst [vmem:[#allocation14_spill] sm:$0xff] %v3630_v23  ;;  %3729 = vst [vmem:[#allocation15_spill] sm:$0xff] %v3634_v26  ;;  %v3636_v28 = vadd.f32 %v3025_v27, %v1279_v47  ;;  %v3640_v31 = vadd.f32 %v3031_v29, %v1351_v51 }
 0x122   : >> { %v1392_v32 = vpop.f32.mrf.mxu0  ;;  %v1464_v34 = vpop.f32.mrf.mxu1 }
 0x123   : >> { %3730 = vst [vmem:[#allocation16_spill] sm:$0xff] %v3636_v28  ;;  %3731 = vst [vmem:[#allocation17_spill] sm:$0xff] %v3640_v31  ;;  %v3642_v33 = vadd.f32 %v1392_v32, %v1277_v16  ;;  %v3646_v38 = vadd.f32 %v1464_v34, %v1349_v18 }
 0x124   : >> { %v3036_v41 = vpop.f32.mrf.mxu0  ;;  %v3042_v42 = vpop.f32.mrf.mxu1 }
 0x125   : >> { %3732 = vst [vmem:[#allocation18_spill] sm:$0xff] %v3642_v33  ;;  %3733 = vst [vmem:[#allocation19_spill] sm:$0xff] %v3646_v38  ;;  %v1572_v6 = vadd.f32 %v3042_v42, %v3036_v41 }
 0x126   : >> { %v1514_v46 = vpop.f32.mrf.mxu0  ;;  %v1563_v49 = vpop.f32.mrf.mxu1 }
 0x127   : >> { %v1564_v38 = vadd.f32 %v1563_v49, %v1514_v46 }
 0x128   : >> { %v3037_v50 = vpop.f32.mrf.mxu0  ;;  %v3043_v52 = vpop.f32.mrf.mxu1 }
 0x129   : >> { %v1575_v0 = vadd.f32 %v3043_v52, %v3037_v50 }
 0x12a   : >> { %v3650_v53 = vpop.f32.mrf.mxu0  ;;  %v1566_v54 = vpop.f32.mrf.mxu1 }
 0x12b   : >> { %3734 = vst [vmem:[#allocation20_spill] sm:$0xff] %v3650_v53 }
 0x12c   : >> { %v3048_v55 = vpop.f32.mrf.mxu0  ;;  %v3054_v56 = vpop.f32.mrf.mxu1 }
 0x12d   : >> { %v1670_v8 = vadd.f32 %v3054_v56, %v3048_v55 }
 0x12e   : >> { %v1612_v58 = vpop.f32.mrf.mxu0  ;;  %v1661_v59 = vpop.f32.mrf.mxu1 }
 0x12f   : >> { %v1662_v28 = vadd.f32 %v1661_v59, %v1612_v58 }
 0x130   : >> { %v3049_v12 = vpop.f32.mrf.mxu0  ;;  %v3055_v60 = vpop.f32.mrf.mxu1 }
 0x132   : >> { %v1615_v61 = vpop.f32.mrf.mxu0  ;;  %v1664_v63 = vpop.f32.mrf.mxu1  ;;  %v3739_v41 = vld [vmem:[#allocation20_spill] sm:$0xff] }
 0x133   : >> { %v1567_v42 = vadd.f32 %v1566_v54, %v3739_v41 }
 0x134   : >> { %v3060_v10 = vpop.f32.mrf.mxu0  ;;  %v3066_v15 = vpop.f32.mrf.mxu1 }
 0x135   : >> { %v1727_v33 = vadd.f32 %v3060_v10, %v1572_v6  ;;  %v1780_v26 = vadd.f32 %v3066_v15, %v1670_v8  ;;  %v1665_v6 = vadd.f32 %v1664_v63, %v1615_v61 }
 0x136   : >> { %v1710_v13 = vpop.f32.mrf.mxu0  ;;  %v1763_v14 = vpop.f32.mrf.mxu1 }
 0x137   : >> { %v1725_v62 = vadd.f32 %v1710_v13, %v1564_v38 }
 0x138   : >> { %v3061_v21 = vpop.f32.mrf.mxu0  ;;  %v3067_v35 = vpop.f32.mrf.mxu1 }
 0x139   : >> { %v1728_v55 = vadd.f32 %v3061_v21, %v1575_v0 }
 0x13a   : >> { %v1713_v37 = vpop.f32.mrf.mxu0  ;;  %v1766_v39 = vpop.f32.mrf.mxu1 }
 0x13b   : >> { %v1726_v15 = vadd.f32 %v1713_v37, %v1567_v42 }
 0x13c   : >> { %v3072_v40 = vpop.f32.mrf.mxu0  ;;  %v3078_v43 = vpop.f32.mrf.mxu1 }
 0x13d   : >> { %v1833_v17 = vadd.f32 %v3072_v40, %v1727_v33 }
 0x13e   : >> { %v1816_v44 = vpop.f32.mrf.mxu0  ;;  %v1869_v47 = vpop.f32.mrf.mxu1 }
 0x13f   : >> { %v1831_v56 = vadd.f32 %v1816_v44, %v1725_v62 }
 0x140   : >> { %v3073_v48 = vpop.f32.mrf.mxu0  ;;  %v3079_v51 = vpop.f32.mrf.mxu1 }
 0x141   : >> { %v1834_v50 = vadd.f32 %v3073_v48, %v1728_v55 }
 0x142   : >> { %v1819_v57 = vpop.f32.mrf.mxu0  ;;  %v3652_v16 = vpop.f32.mrf.mxu1 }
 0x143   : >> { %3735 = vst [vmem:[#allocation21_spill] sm:$0xff] %v3652_v16  ;;  %v1778_v16 = vadd.f32 %v1763_v14, %v1662_v28  ;;  %v1832_v54 = vadd.f32 %v1819_v57, %v1726_v15 }
 0x144   : >> { %v3084_v11 = vpop.f32.mrf.mxu0  ;;  %v3090_v18 = vpop.f32.mrf.mxu1 }
 0x145   : >> { %v1939_v46 = vadd.f32 %v3084_v11, %v1833_v17  ;;  %v1884_v58 = vadd.f32 %v1869_v47, %v1778_v16 }
 0x146   : >> { %v1922_v19 = vpop.f32.mrf.mxu0  ;;  %v1975_v20 = vpop.f32.mrf.mxu1 }
 0x147   : >> { %v1937_v38 = vadd.f32 %v1922_v19, %v1831_v56 }
 0x148   : >> { %v3085_v22 = vpop.f32.mrf.mxu0  ;;  %v3091_v24 = vpop.f32.mrf.mxu1 }
 0x149   : >> { %v1940_v0 = vadd.f32 %v3085_v22, %v1834_v50 }
 0x14a   : >> { %v1925_v27 = vpop.f32.mrf.mxu0  ;;  %v3654_v29 = vpop.f32.mrf.mxu1  ;;  %v3740_v61 = vld [vmem:[#allocation21_spill] sm:$0xff] }
 0x14b   : >> { %3736 = vst [vmem:[#allocation22_spill] sm:$0xff] %v3654_v29  ;;  %v1938_v37 = vadd.f32 %v1925_v27, %v1832_v54 }
 0x14c   : >> { %v3096_v32 = vpop.f32.mrf.mxu0  ;;  %v3102_v34 = vpop.f32.mrf.mxu1 }
 0x14d   : >> { %v2045_v33 = vadd.f32 %v3096_v32, %v1939_v46 }
 0x14e   : >> { %v2028_v45 = vpop.f32.mrf.mxu0  ;;  %v2081_v36 = vpop.f32.mrf.mxu1 }
 0x14f   : >> { %v2043_v62 = vadd.f32 %v2028_v45, %v1937_v38 }
 0x150   : >> { %v3097_v30 = vpop.f32.mrf.mxu0  ;;  %v3103_v25 = vpop.f32.mrf.mxu1 }
 0x151   : >> { %v2046_v40 = vadd.f32 %v3097_v30, %v1940_v0 }
 0x152   : >> { %v3656_v1 = vpop.f32.mrf.mxu0  ;;  %v3658_v2 = vpop.f32.mrf.mxu1  ;;  %v3741_v47 = vld [vmem:[#allocation22_spill] sm:$0xff] }
 0x153   : >> { %3737 = vst [vmem:[#allocation23_spill] sm:$0xff] %v3656_v1  ;;  %3738 = vst [vmem:[#allocation24_spill] sm:$0xff] %v3658_v2  ;;  %v1673_v1 = vadd.f32 %v3055_v60, %v3049_v12  ;;  %v1886_v2 = vadd.f32 %v3078_v43, %v1780_v26  ;;  %v1779_v12 = vadd.f32 %v1766_v39, %v1665_v6 }
 0x154   : >> { %v3108_v3 = vpop.f32.mrf.mxu0  ;;  %v3114_v4 = vpop.f32.mrf.mxu1  ;;  %v1990_v26 = vadd.f32 %v1975_v20, %v1884_v58  ;;  %v3745_v58 = vld [vmem:[#allocation13_spill] sm:$0xff] }
 0x155   : >> { %v1781_v10 = vadd.f32 %v3067_v35, %v1673_v1  ;;  %v1992_v59 = vadd.f32 %v3090_v18, %v1886_v2  ;;  %v2167_v17 = vadd.f32 %v3108_v3, %v2045_v33  ;;  %v1885_v1 = vadd.f32 %v3740_v61, %v1779_v12  ;;  %v3749_v12 = vld [vmem:[#allocation15_spill] sm:$0xff] }
 0x156   : >> { %v2150_v5 = vpop.f32.mrf.mxu0  ;;  %v2219_v7 = vpop.f32.mrf.mxu1  ;;  %v2096_v2 = vadd.f32 %v2081_v36, %v1990_v26 }
 0x157   : >> { %v1887_v28 = vadd.f32 %v3079_v51, %v1781_v10  ;;  %v2098_v60 = vadd.f32 %v3102_v34, %v1992_v59  ;;  %v2165_v43 = vadd.f32 %v2150_v5, %v2043_v62  ;;  %v1991_v48 = vadd.f32 %v3741_v47, %v1885_v1  ;;  %v3744_v10 = vld [vmem:[#allocation12_spill] sm:$0xff] }
 0x158   : >> { %v3109_v9 = vpop.f32.mrf.mxu0  ;;  %v3115_v31 = vpop.f32.mrf.mxu1  ;;  %v2234_v16 = vadd.f32 %v2219_v7, %v2096_v2  ;;  %v3751_v62 = vld [vmem:[#allocation16_spill] sm:$0xff] }
 0x159   : >> { %v1993_v63 = vadd.f32 %v3091_v24, %v1887_v28  ;;  %v2236_v21 = vadd.f32 %v3114_v4, %v2098_v60  ;;  %v2168_v18 = vadd.f32 %v3109_v9, %v2046_v40 }
 0x15a   : >> { %v2153_v23 = vpop.f32.mrf.mxu0  ;;  %v2222_v29 = vpop.f32.mrf.mxu1  ;;  %v3742_v45 = vld [vmem:[#allocation23_spill] sm:$0xff]  ;;  %v3743_v36 = vld [vmem:[#allocation24_spill] sm:$0xff] }
 0x15b   : >> { %v2099_v51 = vadd.f32 %v3103_v25, %v1993_v63  ;;  %v2044_v3 = vadd.f32 %v3742_v45, %v1938_v37  ;;  %v2097_v4 = vadd.f32 %v3743_v36, %v1991_v48  ;;  %v3755_v37 = vld [vmem:[#allocation19_spill] sm:$0xff] }
 0x15c   : >> { %v3120_v53 = vpop.f32.mrf.mxu0  ;;  %v3126_v49 = vpop.f32.mrf.mxu1  ;;  %v2540_v48 = vld [vmem:[%s2532_s28 + $0xc] sm:$0xf] }
 0x15d   : >> { %v2289_v44 = vadd.f32 %v3120_v53, %v2167_v17  ;;  %v2361_v57 = vadd.f32 %v3126_v49, %v2236_v21  ;;  %v2237_v24 = vadd.f32 %v3115_v31, %v2099_v51  ;;  %v2166_v53 = vadd.f32 %v2153_v23, %v2044_v3  ;;  %v3752_v17 = vld [vmem:[#allocation17_spill] sm:$0xff] }
 0x15e   : >> { %v2272_v8 = vpop.f32.mrf.mxu0  ;;  %v2344_v52 = vpop.f32.mrf.mxu1  ;;  %v2235_v25 = vadd.f32 %v2222_v29, %v2097_v4  ;;  %v3746_v31 = vmax.f32 %v3744_v10, %v3745_v58  ;;  %v3747_v29 = vld [vmem:[#allocation2_spill] sm:$0xff] }
 0x15f   : >> { %v2287_v19 = vadd.f32 %v2272_v8, %v2165_v43  ;;  %v2359_v27 = vadd.f32 %v2344_v52, %v2234_v16  ;;  %v3748_v52 = vld [vmem:[#allocation14_spill] sm:$0xff] }
 0x160   : >> { %v3121_v13 = vpop.f32.mrf.mxu0  ;;  %v3127_v14 = vpop.f32.mrf.mxu1  ;;  %v3750_v28 = vmax.f32 %v3748_v52, %v3749_v12 }
 0x161   : >> { %v2290_v32 = vadd.f32 %v3121_v13, %v2168_v18  ;;  %v2362_v7 = vadd.f32 %v3127_v14, %v2237_v24  ;;  %v3753_v14 = vmax.f32 %v3751_v62, %v3752_v17 }
 0x162   : >> { %v2275_v35 = vpop.f32.mrf.mxu0  ;;  %v2347_v39 = vpop.f32.mrf.mxu1 }
 0x163   : >> { %v2288_v9 = vadd.f32 %v2275_v35, %v2166_v53  ;;  %v2360_v6 = vadd.f32 %v2347_v39, %v2235_v25  ;;  %v3754_v35 = vld [vmem:[#allocation18_spill] sm:$0xff] }
 0x164   : >> { %v3132_v11 = vpop.f32.mrf.mxu0  ;;  %v3138_v22 = vpop.f32.mrf.mxu1  ;;  %v3756_v40 = vmax.f32 %v3754_v35, %v3755_v37 }
 0x165   : >> { %v2414_v20 = vadd.f32 %v3132_v11, %v2289_v44  ;;  %v2486_v30 = vadd.f32 %v3138_v22, %v2361_v57 }
 0x166   : >> { %v2397_v5 = vpop.f32.mrf.mxu0  ;;  %v2469_v41 = vpop.f32.mrf.mxu1 }
 0x167   : >> { %v2412_v34 = vadd.f32 %v2397_v5, %v2287_v19  ;;  %v2494_v42 = vmax.f32 %v2414_v20, %v2486_v30  ;;  %v2484_v55 = vadd.f32 %v2469_v41, %v2359_v27 }
 0x168   : >> { %v3133_v56 = vpop.f32.mrf.mxu0  ;;  %v3139_v49 = vpop.f32.mrf.mxu1 }
 0x169   : >> { %v2415_v46 = vadd.f32 %v3133_v56, %v2290_v32  ;;  %v2498_v59 = vmax.f32 %v3746_v31, %v2494_v42  ;;  %v2492_v8 = vmax.f32 %v2412_v34, %v2484_v55  ;;  %v2487_v23 = vadd.f32 %v3139_v49, %v2362_v7 }
 0x16a   : >> { %v2400_v15 = vpop.f32.mrf.mxu0  ;;  %v2472_v38 = vpop.f32.mrf.mxu1 }
 0x16b   : >> { %v2413_v50 = vadd.f32 %v2400_v15, %v2288_v9  ;;  %v2508_v33 = vadd.f32 %v3747_v29, %v2498_v59  ;;  %v2496_v26 = vmax.f32 %v3750_v28, %v2492_v8  ;;  %v2495_v60 = vmax.f32 %v2415_v46, %v2487_v23 }
 0x16c   : >> { %v2485_v13 = vadd.f32 %v2472_v38, %v2360_v6 }
 0x16d   : >> { %v2512_v54 = vmax.f32 %v2508_v33, 0.0  ;;  %v2506_v0 = vadd.f32 %v3747_v29, %v2496_v26  ;;  %v2499_v61 = vmax.f32 %v3753_v14, %v2495_v60 }
 0x16e   : >> { %v2493_v1 = vmax.f32 %v2413_v50, %v2485_v13 }
 0x16f   : >> { %v2813_v63 = vpack.c.bf16 %v2512_v54, %v2512_v54  ;;  %v2510_v2 = vmax.f32 %v2506_v0, 0.0  ;;  %v2509_v21 = vadd.f32 %v3747_v29, %v2499_v61 }
 0x170   : >> { %v2497_v43 = vmax.f32 %v3756_v40, %v2493_v1 }
 0x171   : >> { %2536 = vst.msk [vmem:[%s2532_s28 + $0x8] sm:$0xf] %vm2533_vm4, %v2813_v63  ;;  %v2811_v44 = vpack.c.bf16 %v2510_v2, %v2510_v2  ;;  %v2513_v39 = vmax.f32 %v2509_v21, 0.0 }
 0x172   : >> { %v2507_v47 = vadd.f32 %v3747_v29, %v2497_v43 }
 0x173   : >> { %2534 = vst.msk [vmem:[%s2532_s28] sm:$0xf] %vm2533_vm4, %v2811_v44  ;;  %v2814_v51 = vpack.c.bf16 %v2513_v39, %v2513_v39 }
 0x174   : >> { %v2511_v16 = vmax.f32 %v2507_v47, 0.0  ;;  %241 = sbr.rel (!%p239_p4) target bundleno = 19 (0x13), region = 93 }
 0x175   : >> { %v2541_v57 = vsel %vm2539_vm6, %v2814_v51, %v2540_v48 }
 0x176   : >> { %v2812_v11 = vpack.c.bf16 %v2511_v16, %v2511_v16  ;;  %2542 = vst [vmem:[%s2532_s28 + $0xc] sm:$0xf] %v2541_v57 }
 0x178   : >> { %2535 = vst.msk [vmem:[%s2532_s28 + $0x4] sm:$0xf] %vm2533_vm4, %v2812_v11 }
 0x179 PF: > { %s14_s15 = sadd.s32 1, %s3184_s15  }
 0x17a   : > { %p11_p5 = scmp.ge.s32.totalorder %s14_s15, 4  }
 0x17c   :  { %13 = sbr.rel (!%p11_p5) target bundleno = 1 (0x1), region = 104 }

// kernel: mycnn_forward.7
= control target key start
LH: loop header
LB: loop body
LE: loop exit
PB: predicated region body
PF: predicated region fallthrough
CT: control target
= control target key end

     0   :  { %s2723_s15 = smov 0   ;;  %s3341_s0 = inlined_call_operand.vmem [shape: bf16[2,14,7,32], index: 0, kind: input, shape index: {}]   ;;  %s3342_s1 = inlined_call_operand.vmem [shape: bf16[2,14,7,32], index: 1, kind: input, shape index: {}]   ;;  %s3343_s2 = inlined_call_operand.vmem [shape: bf16[9,32,64], index: 2, kind: input, shape index: {}]   ;;  %s3344_s3 = inlined_call_operand.vmem [shape: f32[1,64], index: 3, kind: input, shape index: {}]   ;;  %s3345_s4 = inlined_call_operand.vmem [shape: bf16[2,6,6,64], index: 4, kind: output, shape index: {}]  }
   0x1 LB: > { %s2121_s16 = sadd.s32 4294967295, %s2690_s15   ;;  %p2125_p0 = scmp.ge.s32.totalorder %s2690_s15, 1  ;;  %s2690_s15 = sphi %s2723_s15, %s14_s15  }
   0x2   : > { %p172_p1 = scmp.lt.s32.totalorder %s2690_s15, 3 }
   0x4   : > { %p173_p2 = pnand %p2125_p0, %p172_p1 }
   0x5   : > { %p203_p3 = scmp.lt.s32.totalorder (!%p173_p2), %s2121_s16, 1  ;;  %s2931_s6 = smov (!%p173_p2), 0  }
   0x6   : > { %176 = sbr.rel (%p173_p2) target bundleno = 379 (0x17b), region = 36 }
   0xb   : > { %v2734_v0 = vld [vmem:[%s3344_s3] ss:$0 sm:$0xff]  ;;  %v2744_v2 = vld [vmem:[%s3343_s2 + $0x4] sm:$0xf]  ;;  %v2749_v3 = vld [vmem:[%s3343_s2 + $0x8] sm:$0xf] }
   0xc   : > { %v2739_v1 = vld [vmem:[%s3343_s2] sm:$0xf]  ;;  %3347 = vst [vmem:[#allocation3_spill] sm:$0xff] %v2744_v2  ;;  %3348 = vst [vmem:[#allocation4_spill] sm:$0xff] %v2749_v3  ;;  %v2754_v4 = vld [vmem:[%s3343_s2 + $0xc] sm:$0xf] }
   0xd   : > { %3346 = vst [vmem:[#allocation2_spill] sm:$0xff] %v2739_v1  ;;  %3349 = vst [vmem:[#allocation5_spill] sm:$0xff] %v2754_v4  ;;  %s3366_s16 = smov (!%p203_p3, %s2121_s16), 1  ;;  %v2759_v5 = vld [vmem:[%s3343_s2 + $0x10] sm:$0xf] }
   0xe   : > { %3350 = vst [vmem:[#allocation6_spill] sm:$0xff] %v2759_v5  ;;  %v2764_v6 = vld [vmem:[%s3343_s2 + $0x14] sm:$0xf]  ;;  %v2769_v7 = vld [vmem:[%s3343_s2 + $0x18] sm:$0xf]  ;;  %s2652_s11 = smul.u32 56, %s3366_s16 }
   0xf   : > { %3351 = vst [vmem:[#allocation7_spill] sm:$0xff] %v2764_v6  ;;  %3352 = vst [vmem:[#allocation8_spill] sm:$0xff] %v2769_v7  ;;  %v2774_v8 = vld [vmem:[%s3343_s2 + $0x1c] sm:$0xf]  ;;  %v2779_v9 = vld [vmem:[%s3343_s2 + $0x20] sm:$0xf] }
  0x10   : > { %3353 = vst [vmem:[#allocation9_spill] sm:$0xff] %v2774_v8  ;;  %3354 = vst [vmem:[#allocation10_spill] sm:$0xff] %v2779_v9  ;;  %v2784_v10 = vld [vmem:[%s3343_s2 + $0x24] sm:$0xf]  ;;  %v2789_v11 = vld [vmem:[%s3343_s2 + $0x28] sm:$0xf]  ;;  %s2804_s25 = scalar_lea.vmem %s3341_s0, %s2652_s11  ;;  %s2809_s28 = scalar_lea.vmem %s3342_s1, %s2652_s11 }
  0x11   : > { %s2653_s18 = smul.u32 24, %s3366_s16  ;;  %v2794_v12 = vld [vmem:[%s3343_s2 + $0x2c] sm:$0xf]  ;;  %v2799_v13 = vld [vmem:[%s3343_s2 + $0x30] sm:$0xf] }
  0x12   : > { %v2814_v14 = vld [vmem:[%s3343_s2 + $0x34] sm:$0xf]  ;;  %v2819_v15 = vld [vmem:[%s3343_s2 + $0x38] sm:$0xf]  ;;  %v2824_v16 = vld [vmem:[%s3343_s2 + $0x3c] sm:$0xf] }
  0x13   : > { %s2829_s10 = scalar_lea.vmem %s3345_s4, %s2653_s18  ;;  %v2834_v17 = vld [vmem:[%s3343_s2 + $0x40] sm:$0xf]  ;;  %v2839_v18 = vld [vmem:[%s3343_s2 + $0x44] sm:$0xf]  ;;  %v2844_v19 = vld [vmem:[%s3343_s2 + $0x48] sm:$0xf] }
  0x14   : > { %v2849_v20 = vld [vmem:[%s3343_s2 + $0x4c] sm:$0xf]  ;;  %v2854_v21 = vld [vmem:[%s3343_s2 + $0x50] sm:$0xf]  ;;  %v2859_v22 = vld [vmem:[%s3343_s2 + $0x54] sm:$0xf] }
  0x15   : > { %v2864_v23 = vld [vmem:[%s3343_s2 + $0x58] sm:$0xf]  ;;  %v2869_v24 = vld [vmem:[%s3343_s2 + $0x5c] sm:$0xf]  ;;  %v2874_v25 = vld [vmem:[%s3343_s2 + $0x60] sm:$0xf] }
  0x16   : > { %v2879_v26 = vld [vmem:[%s3343_s2 + $0x64] sm:$0xf]  ;;  %v2884_v27 = vld [vmem:[%s3343_s2 + $0x68] sm:$0xf]  ;;  %v2889_v28 = vld [vmem:[%s3343_s2 + $0x6c] sm:$0xf] }
  0x17   : > { %v2894_v29 = vld [vmem:[%s3343_s2 + $0x70] sm:$0xf]  ;;  %v2899_v30 = vld [vmem:[%s3343_s2 + $0x74] sm:$0xf]  ;;  %v2904_v31 = vld [vmem:[%s3343_s2 + $0x78] sm:$0xf] }
  0x18   : > { %v2909_v32 = vld [vmem:[%s3343_s2 + $0x7c] sm:$0xf]  ;;  %v2914_v33 = vld [vmem:[%s3343_s2 + $0x80] sm:$0xf]  ;;  %v2919_v34 = vld [vmem:[%s3343_s2 + $0x84] sm:$0xf] }
  0x19   : > { %v2924_v35 = vld [vmem:[%s3343_s2 + $0x88] sm:$0xf]  ;;  %v2929_v36 = vld [vmem:[%s3343_s2 + $0x8c] sm:$0xf] }
  0x1a LB: >> { %v3355_v8 = vld [vmem:[#allocation9_spill] sm:$0xff]  ;;  %v3356_v7 = vld [vmem:[#allocation8_spill] sm:$0xff]  ;;  %v2696_v39 = vmov 0.0   ;;  %v3359_v6 = vld [vmem:[#allocation7_spill] sm:$0xff]  ;;  %s2248_s7 = sshll.u32 %s2694_s6, 3  ;;  %vm2697_vm0 = vmmov 0   ;;  %v2989_v51 = vcombine.low %v2789_v11, %v2794_v12  ;;  %v3011_v56 = vcombine.low %v2819_v15, %v2824_v16  ;;  %s2694_s6 = sphi %s2931_s6, %s269_s6  }
  0x1b   : >> { %v2938_v37 = vcombine.low %v3356_v7, %v3355_v8  ;;  %v3357_v4 = vld [vmem:[#allocation5_spill] sm:$0xff]  ;;  %v3358_v3 = vld [vmem:[#allocation4_spill] sm:$0xff]  ;;  %2364 = vmatprep.subr.bf16.mxu0 %v2696_v39  ;;  %2372 = vmatprep.subr.bf16.mxu1 %v2696_v39  ;;  %v3360_v5 = vld [vmem:[#allocation6_spill] sm:$0xff]  ;;  %s2960_s8 = scalar_lea.vmem %s2809_s28, %s2248_s7  ;;  %s2967_s9 = scalar_lea.vmem %s2804_s25, %s2248_s7  ;;  %vm310_vm1 = vcmask 261120   ;;  %v3026_v59 = vcombine.low %v2799_v13, %v2814_v14  ;;  %v3041_v62 = vcombine.low %v2844_v19, %v2849_v20 }
  0x1c   : >> { %v2942_v38 = vcombine.low %v3358_v3, %v3357_v4  ;;  %v2950_v40 = vcombine.low %v3360_v5, %v3359_v6  ;;  %v3361_v2 = vld [vmem:[#allocation3_spill] sm:$0xff]  ;;  %v3362_v1 = vld [vmem:[#allocation2_spill] sm:$0xff]  ;;  %2368 = vmatprep.mubr.msk.bf16.mxu0 %vm2697_vm0, %v2696_v39  ;;  %2376 = vmatprep.mubr.msk.bf16.mxu1 %vm2697_vm0, %v2696_v39  ;;  %v3167_v3 = vcombine.low %v2914_v33, %v2919_v34  ;;  %s2245_s11 = sshll.u32 %s2694_s6, 2  ;;  %vm2017_vm2 = vcmask 518144   ;;  %s269_s6 = sadd.s32 1, %s2694_s6  }
  0x1d   : >> { %2365 = vmatpush3.bf16.msra.mxu0 %v2938_v37  ;;  %v2954_v41 = vcombine.low %v3362_v1, %v3361_v2  ;;  %v273_v42 = vld [vmem:[%s2967_s9] sm:$0xf]  ;;  %v3014_v57 = vld [vmem:[%s2967_s9 + $0x4] sm:$0xf]  ;;  %v3141_v1 = vcombine.low %v2894_v29, %v2899_v30  ;;  %v3155_v2 = vcombine.low %v2924_v35, %v2929_v36  ;;  %s2016_s12 = scalar_lea.vmem %s2829_s10, %s2245_s11  ;;  %p266_p4 = scmp.ge.s32.totalorder %s269_s6, 6  }
  0x1e   : >> { %2373 = vmatpush3.bf16.msra.mxu1 %v2942_v38  ;;  %2366 = vmatprep.subr.bf16.mxu0 %v2696_v39  ;;  %v288_v43 = vld [vmem:[%s2960_s8] sm:$0xf]  ;;  %v2188_v44 = vcombine.low %v273_v42, %v273_v42  ;;  %v2203_v58 = vcombine.low %v3014_v57, %v3014_v57  ;;  %v3037_v61 = vld [vmem:[%s2960_s8 + $0x4] sm:$0xf] }
  0x1f   : >> { %2374 = vmatprep.subr.bf16.mxu1 %v2696_v39  ;;  %v2194_v46 = vcombine.low %v288_v43, %v288_v43  ;;  %v3363_v9 = vld [vmem:[#allocation10_spill] sm:$0xff] }
  0x20   : >> { %v415_v45 = vshll.u32 %v2188_v44, 16  ;;  %v413_v47 = vshrl.u32 %v2188_v44, 16  ;;  %v2999_v54 = vcombine.low %v3363_v9, %v2784_v10  ;;  %v768_v60 = vshll.u32 %v2203_v58, 16 }
  0x21   : >> { %2367 = vmatpush3.bf16.msra.mxu0 %v2950_v40  ;;  %v561_v49 = vshll.u32 %v2194_v46, 16  ;;  %v559_v52 = vshrl.u32 %v2194_v46, 16  ;;  %v766_v63 = vshrl.u32 %v2203_v58, 16  ;;  %v3055_v44 = vcombine.low %v2834_v17, %v2839_v18 }
  0x22   : >> { %2375 = vmatpush3.bf16.msra.mxu1 %v2954_v41  ;;  %2380 = vmatprep.subr.bf16.mxu0 %v2696_v39  ;;  %v417_v48 = vrot.slane %v415_v45, 1 }
  0x23   : >> { %2388 = vmatprep.subr.bf16.mxu1 %v2696_v39  ;;  %v563_v53 = vrot.slane %v561_v49, 1 }
  0x24   : >> { %2369 = vmatmul.mubr.msk.bf16.vlgmr.msra.gmra.mxu0 %vm310_vm1, %v288_v43  ;;  %v418_v50 = vor.u32 %v417_v48, %v413_v47  ;;  %v3069_v47 = vcombine.low %v2864_v23, %v2869_v24 }
  0x25   : >> { %2377 = vmatmul.mubr.msk.bf16.vlgmr.msra.gmra.mxu1 %vm310_vm1, %v273_v42  ;;  %2381 = vmatpush3.bf16.msra.mxu0 %v2938_v37  ;;  %v564_v55 = vor.u32 %v563_v53, %v559_v52  ;;  %v770_v42 = vrot.slane %v768_v60, 1  ;;  %v3095_v53 = vcombine.low %v2884_v27, %v2889_v28  ;;  %v3112_v60 = vcombine.low %v2874_v25, %v2879_v26 }
  0x26   : >> { %2389 = vmatpush3.bf16.msra.mxu1 %v2942_v38  ;;  %2382 = vmatprep.subr.bf16.mxu0 %v2696_v39 }
  0x27   : >> { %2390 = vmatprep.subr.bf16.mxu1 %v2696_v39  ;;  %2384 = vmatprep.mubr.msk.bf16.mxu0 %vm2697_vm0, %v2696_v39  ;;  %v3063_v46 = vor.u32 %v770_v42, %v766_v63  ;;  %v3123_v42 = vld [vmem:[%s2960_s8 + $0x8] sm:$0xf] }
  0x28   : >> { %2392 = vmatprep.mubr.msk.bf16.mxu1 %vm2697_vm0, %v2696_v39 }
  0x29   : >> { %2383 = vmatpush3.bf16.msra.mxu0 %v2950_v40 }
  0x2a   : >> { %2391 = vmatpush3.bf16.msra.mxu1 %v2954_v41  ;;  %2396 = vmatprep.subr.bf16.mxu0 %v2696_v39 }
  0x2b   : >> { %2404 = vmatprep.subr.bf16.mxu1 %v2696_v39 }
  0x2c   : >> { %2385 = vmatmul.mubr.msk.bf16.vlgmr.msra.gmra.mxu0 %vm310_vm1, %v418_v50 }
  0x2d   : >> { %2393 = vmatmul.mubr.msk.bf16.vlgmr.msra.gmra.mxu1 %vm310_vm1, %v288_v43  ;;  %2397 = vmatpush3.bf16.msra.mxu0 %v2989_v51  ;;  %v2208_v43 = vcombine.low %v3037_v61, %v3037_v61 }
  0x2e   : >> { %2405 = vmatpush3.bf16.msra.mxu1 %v2989_v51  ;;  %2398 = vmatprep.subr.bf16.mxu0 %v2696_v39 }
  0x2f   : >> { %2406 = vmatprep.subr.bf16.mxu1 %v2696_v39  ;;  %2400 = vmatprep.mubr.msk.bf16.mxu0 %vm2697_vm0, %v2696_v39  ;;  %v875_v45 = vshll.u32 %v2208_v43, 16  ;;  %v873_v48 = vshrl.u32 %v2208_v43, 16  ;;  %v3127_v43 = vcombine.low %v2904_v31, %v2909_v32 }
  0x30   : >> { %2408 = vmatprep.mubr.msk.bf16.mxu1 %vm2697_vm0, %v2696_v39 }
  0x31   : >> { %2399 = vmatpush3.bf16.msra.mxu0 %v2999_v54  ;;  %v877_v49 = vrot.slane %v875_v45, 1 }
  0x32   : >> { %2407 = vmatpush3.bf16.msra.mxu1 %v2999_v54  ;;  %2412 = vmatprep.subr.bf16.mxu0 %v2696_v39 }
  0x33   : >> { %2420 = vmatprep.subr.bf16.mxu1 %v2696_v39  ;;  %v3089_v52 = vor.u32 %v877_v49, %v873_v48  ;;  %v2222_v49 = vcombine.low %v3123_v42, %v3123_v42 }
  0x34   : >> { %2401 = vmatmul.mubr.msk.bf16.vlgmr.msra.gmra.mxu0 %vm310_vm1, %v418_v50  ;;  %v3081_v50 = vcombine.low %v2854_v21, %v2859_v22 }
  0x35   : >> { %2409 = vmatmul.mubr.msk.bf16.vlgmr.msra.gmra.mxu1 %vm310_vm1, %v564_v55  ;;  %2413 = vmatpush3.bf16.msra.mxu0 %v3011_v56  ;;  %v3098_v55 = vld [vmem:[%s2967_s9 + $0x8] sm:$0xf] }
  0x36   : >> { %2421 = vmatpush3.bf16.msra.mxu1 %v3011_v56  ;;  %2414 = vmatprep.subr.bf16.mxu0 %v2696_v39  ;;  %v2217_v58 = vcombine.low %v3098_v55, %v3098_v55 }
  0x37   : >> { %2422 = vmatprep.subr.bf16.mxu1 %v2696_v39  ;;  %2416 = vmatprep.mubr.msk.bf16.mxu0 %vm2697_vm0, %v2696_v39 }
  0x38   : >> { %2424 = vmatprep.mubr.msk.bf16.mxu1 %vm2697_vm0, %v2696_v39  ;;  %v1082_v63 = vshll.u32 %v2217_v58, 16  ;;  %v1080_v45 = vshrl.u32 %v2217_v58, 16  ;;  %v1189_v58 = vshll.u32 %v2222_v49, 16 }
  0x39   : >> { %2415 = vmatpush3.bf16.msra.mxu0 %v3026_v59 }
  0x3a   : >> { %2423 = vmatpush3.bf16.msra.mxu1 %v3026_v59  ;;  %2428 = vmatprep.subr.bf16.mxu0 %v2696_v39  ;;  %v1084_v48 = vrot.slane %v1082_v63, 1 }
  0x3b   : >> { %2436 = vmatprep.subr.bf16.mxu1 %v2696_v39 }
  0x3c   : >> { %2417 = vmatmul.mubr.msk.bf16.vlgmr.msra.gmra.mxu0 %vm310_vm1, %v3014_v57  ;;  %v3149_v63 = vor.u32 %v1084_v48, %v1080_v45  ;;  %v1187_v45 = vshrl.u32 %v2222_v49, 16  ;;  %v1191_v48 = vrot.slane %v1189_v58, 1 }
  0x3d   : >> { %2425 = vmatmul.mubr.msk.bf16.vlgmr.msra.gmra.mxu1 %vm310_vm1, %v3037_v61  ;;  %2429 = vmatpush3.bf16.msra.mxu0 %v3041_v62 }
  0x3e   : >> { %2437 = vmatpush3.bf16.msra.mxu1 %v3041_v62  ;;  %2430 = vmatprep.subr.bf16.mxu0 %v2696_v39  ;;  %v3175_v49 = vor.u32 %v1191_v48, %v1187_v45 }
  0x3f   : >> { %2438 = vmatprep.subr.bf16.mxu1 %v2696_v39  ;;  %2432 = vmatprep.mubr.msk.bf16.mxu0 %vm2697_vm0, %v2696_v39 }
  0x40   : >> { %2440 = vmatprep.mubr.msk.bf16.mxu1 %vm2697_vm0, %v2696_v39 }
  0x41   : >> { %2431 = vmatpush3.bf16.msra.mxu0 %v3055_v44 }
  0x42   : >> { %2439 = vmatpush3.bf16.msra.mxu1 %v3055_v44  ;;  %2444 = vmatprep.subr.bf16.mxu0 %v2696_v39 }
  0x43   : >> { %2452 = vmatprep.subr.bf16.mxu1 %v2696_v39 }
  0x44   : >> { %2433 = vmatmul.mubr.msk.bf16.vlgmr.msra.gmra.mxu0 %vm310_vm1, %v3037_v61 }
  0x45   : >> { %2441 = vmatmul.mubr.msk.bf16.vlgmr.msra.gmra.mxu1 %vm310_vm1, %v3063_v46  ;;  %2445 = vmatpush3.bf16.msra.mxu0 %v3069_v47 }
  0x46   : >> { %2453 = vmatpush3.bf16.msra.mxu1 %v3069_v47  ;;  %2446 = vmatprep.subr.bf16.mxu0 %v2696_v39 }
  0x47   : >> { %2454 = vmatprep.subr.bf16.mxu1 %v2696_v39  ;;  %2448 = vmatprep.mubr.msk.bf16.mxu0 %vm2697_vm0, %v2696_v39 }
  0x48   : >> { %2456 = vmatprep.mubr.msk.bf16.mxu1 %vm2697_vm0, %v2696_v39 }
  0x49   : >> { %2447 = vmatpush3.bf16.msra.mxu0 %v3081_v50 }
  0x4a   : >> { %2455 = vmatpush3.bf16.msra.mxu1 %v3081_v50  ;;  %2460 = vmatprep.subr.bf16.mxu0 %v2696_v39 }
  0x4b   : >> { %2468 = vmatprep.subr.bf16.mxu1 %v2696_v39 }
  0x4c   : >> { %2449 = vmatmul.mubr.msk.bf16.vlgmr.msra.gmra.mxu0 %vm310_vm1, %v3063_v46 }
  0x4d   : >> { %2457 = vmatmul.mubr.msk.bf16.vlgmr.msra.gmra.mxu1 %vm310_vm1, %v3089_v52  ;;  %2461 = vmatpush3.bf16.msra.mxu0 %v3095_v53 }
  0x4e   : >> { %2469 = vmatpush3.bf16.msra.mxu1 %v3095_v53  ;;  %2462 = vmatprep.subr.bf16.mxu0 %v2696_v39 }
  0x4f   : >> { %2470 = vmatprep.subr.bf16.mxu1 %v2696_v39  ;;  %2464 = vmatprep.mubr.msk.bf16.mxu0 %vm2697_vm0, %v2696_v39 }
  0x50   : >> { %2472 = vmatprep.mubr.msk.bf16.mxu1 %vm2697_vm0, %v2696_v39 }
  0x51   : >> { %2463 = vmatpush3.bf16.msra.mxu0 %v3112_v60 }
  0x52   : >> { %2471 = vmatpush3.bf16.msra.mxu1 %v3112_v60  ;;  %2476 = vmatprep.subr.bf16.mxu0 %v2696_v39 }
  0x53   : >> { %2484 = vmatprep.subr.bf16.mxu1 %v2696_v39 }
  0x54   : >> { %2465 = vmatmul.mubr.msk.bf16.vlgmr.msra.gmra.mxu0 %vm310_vm1, %v3098_v55 }
  0x55   : >> { %2473 = vmatmul.mubr.msk.bf16.vlgmr.msra.gmra.mxu1 %vm310_vm1, %v3123_v42  ;;  %2477 = vmatpush3.bf16.msra.mxu0 %v3127_v43 }
  0x56   : >> { %2485 = vmatpush3.bf16.msra.mxu1 %v3127_v43  ;;  %2478 = vmatprep.subr.bf16.mxu0 %v2696_v39 }
  0x57   : >> { %2486 = vmatprep.subr.bf16.mxu1 %v2696_v39  ;;  %2480 = vmatprep.mubr.msk.bf16.mxu0 %vm2697_vm0, %v2696_v39 }
  0x58   : >> { %2488 = vmatprep.mubr.msk.bf16.mxu1 %vm2697_vm0, %v2696_v39 }
  0x59   : >> { %2479 = vmatpush3.bf16.msra.mxu0 %v3141_v1 }
  0x5a   : >> { %2487 = vmatpush3.bf16.msra.mxu1 %v3141_v1  ;;  %2492 = vmatprep.subr.bf16.mxu0 %v2696_v39 }
  0x5b   : >> { %2500 = vmatprep.subr.bf16.mxu1 %v2696_v39 }
  0x5c   : >> { %2481 = vmatmul.mubr.msk.bf16.vlgmr.msra.gmra.mxu0 %vm310_vm1, %v3123_v42 }
  0x5d   : >> { %2489 = vmatmul.mubr.msk.bf16.vlgmr.msra.gmra.mxu1 %vm310_vm1, %v3149_v63  ;;  %2493 = vmatpush3.bf16.msra.mxu0 %v3155_v2 }
  0x5e   : >> { %2501 = vmatpush3.bf16.msra.mxu1 %v3155_v2  ;;  %2494 = vmatprep.subr.bf16.mxu0 %v2696_v39 }
  0x5f   : >> { %2502 = vmatprep.subr.bf16.mxu1 %v2696_v39  ;;  %2496 = vmatprep.mubr.msk.bf16.mxu0 %vm2697_vm0, %v2696_v39 }
  0x60   : >> { %2504 = vmatprep.mubr.msk.bf16.mxu1 %vm2697_vm0, %v2696_v39 }
  0x61   : >> { %2495 = vmatpush3.bf16.msra.mxu0 %v3167_v3 }
  0x62   : >> { %2503 = vmatpush3.bf16.msra.mxu1 %v3167_v3  ;;  %2508 = vmatprep.subr.bf16.mxu0 %v2696_v39 }
  0x63   : >> { %2516 = vmatprep.subr.bf16.mxu1 %v2696_v39 }
  0x64   : >> { %2497 = vmatmul.mubr.msk.bf16.vlgmr.msra.gmra.mxu0 %vm310_vm1, %v3149_v63 }
  0x65   : >> { %2505 = vmatmul.mubr.msk.bf16.vlgmr.msra.gmra.mxu1 %vm310_vm1, %v3175_v49  ;;  %2509 = vmatpush3.bf16.msra.mxu0 %v2938_v37 }
  0x66   : >> { %2517 = vmatpush3.bf16.msra.mxu1 %v2942_v38  ;;  %2510 = vmatprep.subr.bf16.mxu0 %v2696_v39 }
  0x67   : >> { %2518 = vmatprep.subr.bf16.mxu1 %v2696_v39  ;;  %2512 = vmatprep.mubr.msk.bf16.mxu0 %vm2697_vm0, %v2696_v39 }
  0x68   : >> { %2520 = vmatprep.mubr.msk.bf16.mxu1 %vm2697_vm0, %v2696_v39 }
  0x69   : >> { %2511 = vmatpush3.bf16.msra.mxu0 %v2950_v40 }
  0x6a   : >> { %2519 = vmatpush3.bf16.msra.mxu1 %v2954_v41  ;;  %2524 = vmatprep.subr.bf16.mxu0 %v2696_v39 }
  0x6b   : >> { %2532 = vmatprep.subr.bf16.mxu1 %v2696_v39 }
  0x6c   : >> { %2513 = vmatmul.mubr.msk.bf16.vlgmr.msra.gmra.mxu0 %vm310_vm1, %v3037_v61 }
  0x6d   : >> { %2521 = vmatmul.mubr.msk.bf16.vlgmr.msra.gmra.mxu1 %vm310_vm1, %v3014_v57  ;;  %2525 = vmatpush3.bf16.msra.mxu0 %v2938_v37  ;;  %v2171_v37 = vld [vmem:[%s2967_s9 + $0xc] sm:$0xf] }
  0x6e   : >> { %2533 = vmatpush3.bf16.msra.mxu1 %v2942_v38  ;;  %2526 = vmatprep.subr.bf16.mxu0 %v2696_v39  ;;  %v2239_v38 = vcombine.low %v2171_v37, %v2171_v37 }
  0x6f   : >> { %2534 = vmatprep.subr.bf16.mxu1 %v2696_v39  ;;  %2528 = vmatprep.mubr.msk.bf16.mxu0 %vm2697_vm0, %v2696_v39 }
  0x70   : >> { %2536 = vmatprep.mubr.msk.bf16.mxu1 %vm2697_vm0, %v2696_v39 }
  0x71   : >> { %2527 = vmatpush3.bf16.msra.mxu0 %v2950_v40  ;;  %v1860_v40 = vshll.u32 %v2239_v38, 16 }
  0x72   : >> { %2535 = vmatpush3.bf16.msra.mxu1 %v2954_v41  ;;  %2540 = vmatprep.subr.bf16.mxu0 %v2696_v39  ;;  %v2181_v41 = vld [vmem:[%s2960_s8 + $0xc] sm:$0xf] }
  0x73   : >> { %2548 = vmatprep.subr.bf16.mxu1 %v2696_v39 }
  0x74   : >> { %2529 = vmatmul.mubr.msk.bf16.vlgmr.msra.gmra.mxu0 %vm310_vm1, %v3063_v46 }
  0x75   : >> { %2537 = vmatmul.mubr.msk.bf16.vlgmr.msra.gmra.mxu1 %vm310_vm1, %v3037_v61  ;;  %2541 = vmatpush3.bf16.msra.mxu0 %v2989_v51 }
  0x76   : >> { %2549 = vmatpush3.bf16.msra.mxu1 %v2989_v51  ;;  %2542 = vmatprep.subr.bf16.mxu0 %v2696_v39  ;;  %v1858_v51 = vshrl.u32 %v2239_v38, 16 }
  0x77   : >> { %2550 = vmatprep.subr.bf16.mxu1 %v2696_v39  ;;  %2544 = vmatprep.mubr.msk.bf16.mxu0 %vm2697_vm0, %v2696_v39 }
  0x78   : >> { %2552 = vmatprep.mubr.msk.bf16.mxu1 %vm2697_vm0, %v2696_v39 }
  0x79   : >> { %2543 = vmatpush3.bf16.msra.mxu0 %v2999_v54 }
  0x7a   : >> { %2551 = vmatpush3.bf16.msra.mxu1 %v2999_v54  ;;  %2556 = vmatprep.subr.bf16.mxu0 %v2696_v39  ;;  %v1862_v54 = vrot.slane %v1860_v40, 1 }
  0x7b   : >> { %2564 = vmatprep.subr.bf16.mxu1 %v2696_v39 }
  0x7c   : >> { %2545 = vmatmul.mubr.msk.bf16.vlgmr.msra.gmra.mxu0 %vm310_vm1, %v3063_v46  ;;  %v1863_v57 = vor.u32 %v1862_v54, %v1858_v51 }
  0x7d   : >> { %2553 = vmatmul.mubr.msk.bf16.vlgmr.msra.gmra.mxu1 %vm310_vm1, %v3089_v52  ;;  %2557 = vmatpush3.bf16.msra.mxu0 %v3011_v56 }
  0x7e   : >> { %2565 = vmatpush3.bf16.msra.mxu1 %v3011_v56  ;;  %2558 = vmatprep.subr.bf16.mxu0 %v2696_v39  ;;  %v2242_v56 = vcombine.low %v2181_v41, %v2181_v41 }
  0x7f   : >> { %2566 = vmatprep.subr.bf16.mxu1 %v2696_v39  ;;  %2560 = vmatprep.mubr.msk.bf16.mxu0 %vm2697_vm0, %v2696_v39 }
  0x80   : >> { %2568 = vmatprep.mubr.msk.bf16.mxu1 %vm2697_vm0, %v2696_v39  ;;  %v1953_v61 = vshrl.u32 %v2242_v56, 16 }
  0x81   : >> { %2559 = vmatpush3.bf16.msra.mxu0 %v3026_v59 }
  0x82   : >> { %2567 = vmatpush3.bf16.msra.mxu1 %v3026_v59  ;;  %2572 = vmatprep.subr.bf16.mxu0 %v2696_v39  ;;  %v1955_v59 = vshll.u32 %v2242_v56, 16 }
  0x83   : >> { %2580 = vmatprep.subr.bf16.mxu1 %v2696_v39 }
  0x84   : >> { %2561 = vmatmul.mubr.msk.bf16.vlgmr.msra.gmra.mxu0 %vm310_vm1, %v3098_v55 }
  0x85   : >> { %2569 = vmatmul.mubr.msk.bf16.vlgmr.msra.gmra.mxu1 %vm310_vm1, %v3123_v42  ;;  %2573 = vmatpush3.bf16.msra.mxu0 %v3041_v62 }
  0x86   : >> { %2581 = vmatpush3.bf16.msra.mxu1 %v3041_v62  ;;  %2574 = vmatprep.subr.bf16.mxu0 %v2696_v39  ;;  %v1957_v62 = vrot.slane %v1955_v59, 1 }
  0x87   : >> { %2582 = vmatprep.subr.bf16.mxu1 %v2696_v39  ;;  %2576 = vmatprep.mubr.msk.bf16.mxu0 %vm2697_vm0, %v2696_v39 }
  0x88   : >> { %2584 = vmatprep.mubr.msk.bf16.mxu1 %vm2697_vm0, %v2696_v39 }
  0x89   : >> { %2575 = vmatpush3.bf16.msra.mxu0 %v3055_v44 }
  0x8a   : >> { %2583 = vmatpush3.bf16.msra.mxu1 %v3055_v44  ;;  %2588 = vmatprep.subr.bf16.mxu0 %v2696_v39 }
  0x8b   : >> { %2596 = vmatprep.subr.bf16.mxu1 %v2696_v39 }
  0x8c   : >> { %2577 = vmatmul.mubr.msk.bf16.vlgmr.msra.gmra.mxu0 %vm310_vm1, %v3123_v42 }
  0x8d   : >> { %2585 = vmatmul.mubr.msk.bf16.vlgmr.msra.gmra.mxu1 %vm310_vm1, %v3149_v63  ;;  %2589 = vmatpush3.bf16.msra.mxu0 %v3069_v47 }
  0x8e   : >> { %2597 = vmatpush3.bf16.msra.mxu1 %v3069_v47  ;;  %2590 = vmatprep.subr.bf16.mxu0 %v2696_v39 }
  0x8f   : >> { %2598 = vmatprep.subr.bf16.mxu1 %v2696_v39  ;;  %2592 = vmatprep.mubr.msk.bf16.mxu0 %vm2697_vm0, %v2696_v39 }
  0x90   : >> { %2600 = vmatprep.mubr.msk.bf16.mxu1 %vm2697_vm0, %v2696_v39 }
  0x91   : >> { %2591 = vmatpush3.bf16.msra.mxu0 %v3081_v50 }
  0x92   : >> { %2599 = vmatpush3.bf16.msra.mxu1 %v3081_v50  ;;  %2604 = vmatprep.subr.bf16.mxu0 %v2696_v39 }
  0x93   : >> { %2612 = vmatprep.subr.bf16.mxu1 %v2696_v39 }
  0x94   : >> { %2593 = vmatmul.mubr.msk.bf16.vlgmr.msra.gmra.mxu0 %vm310_vm1, %v3149_v63 }
  0x95   : >> { %2601 = vmatmul.mubr.msk.bf16.vlgmr.msra.gmra.mxu1 %vm310_vm1, %v3175_v49  ;;  %2605 = vmatpush3.bf16.msra.mxu0 %v3095_v53 }
  0x96   : >> { %2613 = vmatpush3.bf16.msra.mxu1 %v3095_v53  ;;  %2606 = vmatprep.subr.bf16.mxu0 %v2696_v39 }
  0x97   : >> { %2614 = vmatprep.subr.bf16.mxu1 %v2696_v39  ;;  %2608 = vmatprep.mubr.msk.bf16.mxu0 %vm2697_vm0, %v2696_v39 }
  0x98   : >> { %2616 = vmatprep.mubr.msk.bf16.mxu1 %vm2697_vm0, %v2696_v39 }
  0x99   : >> { %2607 = vmatpush3.bf16.msra.mxu0 %v3112_v60 }
  0x9a   : >> { %2615 = vmatpush3.bf16.msra.mxu1 %v3112_v60  ;;  %2620 = vmatprep.subr.bf16.mxu0 %v2696_v39 }
  0x9b   : >> { %2628 = vmatprep.subr.bf16.mxu1 %v2696_v39 }
  0x9c   : >> { %2609 = vmatmul.mubr.msk.bf16.vlgmr.msra.gmra.mxu0 %vm310_vm1, %v2171_v37 }
  0x9d   : >> { %2617 = vmatmul.mubr.msk.bf16.vlgmr.msra.gmra.mxu1 %vm310_vm1, %v2181_v41  ;;  %2621 = vmatpush3.bf16.msra.mxu0 %v3127_v43 }
  0x9e   : >> { %2629 = vmatpush3.bf16.msra.mxu1 %v3127_v43  ;;  %2622 = vmatprep.subr.bf16.mxu0 %v2696_v39 }
  0x9f   : >> { %2630 = vmatprep.subr.bf16.mxu1 %v2696_v39  ;;  %2624 = vmatprep.mubr.msk.bf16.mxu0 %vm2697_vm0, %v2696_v39 }
  0xa0   : >> { %2632 = vmatprep.mubr.msk.bf16.mxu1 %vm2697_vm0, %v2696_v39 }
  0xa1   : >> { %2623 = vmatpush3.bf16.msra.mxu0 %v3141_v1 }
  0xa2   : >> { %2631 = vmatpush3.bf16.msra.mxu1 %v3141_v1  ;;  %2636 = vmatprep.subr.bf16.mxu0 %v2696_v39  ;;  %v1958_v1 = vor.u32 %v1957_v62, %v1953_v61 }
  0xa3   : >> { %2644 = vmatprep.subr.bf16.mxu1 %v2696_v39 }
  0xa4   : >> { %2625 = vmatmul.mubr.msk.bf16.vlgmr.msra.gmra.mxu0 %vm310_vm1, %v2181_v41 }
  0xa5   : >> { %2633 = vmatmul.mubr.msk.bf16.vlgmr.msra.gmra.mxu1 %vm310_vm1, %v1863_v57  ;;  %2637 = vmatpush3.bf16.msra.mxu0 %v3155_v2 }
  0xa6   : >> { %2645 = vmatpush3.bf16.msra.mxu1 %v3155_v2  ;;  %2638 = vmatprep.subr.bf16.mxu0 %v2696_v39 }
  0xa7   : >> { %2646 = vmatprep.subr.bf16.mxu1 %v2696_v39  ;;  %2640 = vmatprep.mubr.msk.bf16.mxu0 %vm2697_vm0, %v2696_v39 }
  0xa8   : >> { %2648 = vmatprep.mubr.msk.bf16.mxu1 %vm2697_vm0, %v2696_v39 }
  0xa9   : >> { %2639 = vmatpush3.bf16.msra.mxu0 %v3167_v3 }
  0xaa   : >> { %2647 = vmatpush3.bf16.msra.mxu1 %v3167_v3 }
  0xac   : >> { %2641 = vmatmul.mubr.msk.bf16.vlgmr.msra.gmra.mxu0 %vm310_vm1, %v1863_v57 }
  0xad   : >> { %2649 = vmatmul.mubr.msk.bf16.vlgmr.msra.gmra.mxu1 %vm310_vm1, %v1958_v1 }
  0xe4   : >> { %v348_v2 = vpop.f32.mrf.mxu0 }
  0xe5   : >> { %v403_v44 = vpop.f32.mrf.mxu1 }
  0xe6   : >> { %v404_v46 = vadd.f32 %v403_v44, %v348_v2  ;;  %v2370_v47 = vpop.f32.mrf.mxu0 }
  0xe7   : >> { %v2378_v50 = vpop.f32.mrf.mxu1 }
  0xe8   : >> { %v351_v52 = vpop.f32.mrf.mxu0 }
  0xe9   : >> { %v406_v53 = vpop.f32.mrf.mxu1 }
  0xea   : >> { %v2371_v55 = vpop.f32.mrf.mxu0 }
  0xeb   : >> { %v2379_v60 = vpop.f32.mrf.mxu1 }
  0xec   : >> { %v456_v42 = vpop.f32.mrf.mxu0 }
  0xed   : >> { %v496_v39 = vpop.f32.mrf.mxu1 }
  0xee   : >> { %v497_v43 = vadd.f32 %v496_v39, %v456_v42  ;;  %v2386_v58 = vpop.f32.mrf.mxu0 }
  0xef   : >> { %v2394_v63 = vpop.f32.mrf.mxu1 }
  0xf0   : >> { %v459_v45 = vpop.f32.mrf.mxu0 }
  0xf1   : >> { %v499_v3 = vpop.f32.mrf.mxu1 }
  0xf2   : >> { %v2387_v48 = vpop.f32.mrf.mxu0 }
  0xf3   : >> { %v2395_v49 = vpop.f32.mrf.mxu1 }
  0xf4   : >> { %v548_v37 = vpop.f32.mrf.mxu0 }
  0xf5   : >> { %v602_v38 = vpop.f32.mrf.mxu1  ;;  %v554_v40 = vadd.f32 %v548_v37, %v404_v46 }
  0xf6   : >> { %v608_v41 = vadd.f32 %v602_v38, %v497_v43  ;;  %v2402_v51 = vpop.f32.mrf.mxu0 }
  0xf7   : >> { %v2410_v54 = vpop.f32.mrf.mxu1 }
  0xf8   : >> { %v551_v56 = vpop.f32.mrf.mxu0 }
  0xf9   : >> { %v605_v57 = vpop.f32.mrf.mxu1 }
  0xfa   : >> { %v2403_v59 = vpop.f32.mrf.mxu0 }
  0xfb   : >> { %v2411_v61 = vpop.f32.mrf.mxu1 }
  0xfc   : >> { %v658_v62 = vpop.f32.mrf.mxu0 }
  0xfd   : >> { %v702_v1 = vpop.f32.mrf.mxu1  ;;  %v664_v2 = vadd.f32 %v658_v62, %v554_v40 }
  0xfe   : >> { %v708_v44 = vadd.f32 %v702_v1, %v608_v41  ;;  %v2418_v47 = vpop.f32.mrf.mxu0 }
  0xff   : >> { %v2426_v50 = vpop.f32.mrf.mxu1 }
 0x100   : >> { %v661_v52 = vpop.f32.mrf.mxu0 }
 0x101   : >> { %v705_v53 = vpop.f32.mrf.mxu1 }
 0x102   : >> { %v2419_v55 = vpop.f32.mrf.mxu0 }
 0x103   : >> { %v2427_v60 = vpop.f32.mrf.mxu1 }
 0x104   : >> { %v755_v42 = vpop.f32.mrf.mxu0 }
 0x105   : >> { %v809_v39 = vpop.f32.mrf.mxu1  ;;  %v761_v46 = vadd.f32 %v755_v42, %v664_v2 }
 0x106   : >> { %v815_v43 = vadd.f32 %v809_v39, %v708_v44  ;;  %v2434_v58 = vpop.f32.mrf.mxu0 }
 0x107   : >> { %v2442_v63 = vpop.f32.mrf.mxu1 }
 0x108   : >> { %v758_v45 = vpop.f32.mrf.mxu0 }
 0x109   : >> { %v812_v3 = vpop.f32.mrf.mxu1 }
 0x10a   : >> { %v2435_v48 = vpop.f32.mrf.mxu0 }
 0x10b   : >> { %v2443_v49 = vpop.f32.mrf.mxu1 }
 0x10c   : >> { %v862_v37 = vpop.f32.mrf.mxu0 }
 0x10d   : >> { %v916_v38 = vpop.f32.mrf.mxu1  ;;  %v868_v40 = vadd.f32 %v862_v37, %v761_v46 }
 0x10e   : >> { %v922_v41 = vadd.f32 %v916_v38, %v815_v43  ;;  %v2450_v51 = vpop.f32.mrf.mxu0 }
 0x10f   : >> { %v2458_v54 = vpop.f32.mrf.mxu1 }
 0x110   : >> { %v865_v56 = vpop.f32.mrf.mxu0 }
 0x111   : >> { %v919_v57 = vpop.f32.mrf.mxu1 }
 0x112   : >> { %v2451_v59 = vpop.f32.mrf.mxu0 }
 0x113   : >> { %v2459_v61 = vpop.f32.mrf.mxu1 }
 0x114   : >> { %v972_v62 = vpop.f32.mrf.mxu0 }
 0x115   : >> { %v1016_v1 = vpop.f32.mrf.mxu1  ;;  %v978_v2 = vadd.f32 %v972_v62, %v868_v40 }
 0x116   : >> { %v1022_v44 = vadd.f32 %v1016_v1, %v922_v41  ;;  %v2466_v47 = vpop.f32.mrf.mxu0 }
 0x117   : >> { %v2474_v50 = vpop.f32.mrf.mxu1 }
 0x118   : >> { %v975_v52 = vpop.f32.mrf.mxu0 }
 0x119   : >> { %v1019_v53 = vpop.f32.mrf.mxu1 }
 0x11a   : >> { %v2467_v55 = vpop.f32.mrf.mxu0 }
 0x11b   : >> { %v2475_v60 = vpop.f32.mrf.mxu1 }
 0x11c   : >> { %v1069_v42 = vpop.f32.mrf.mxu0 }
 0x11d   : >> { %v1123_v39 = vpop.f32.mrf.mxu1  ;;  %v1075_v46 = vadd.f32 %v1069_v42, %v978_v2 }
 0x11e   : >> { %v1129_v43 = vadd.f32 %v1123_v39, %v1022_v44  ;;  %v2482_v58 = vpop.f32.mrf.mxu0 }
 0x11f   : >> { %v2490_v63 = vpop.f32.mrf.mxu1 }
 0x120   : >> { %v1072_v45 = vpop.f32.mrf.mxu0 }
 0x121   : >> { %v1126_v3 = vpop.f32.mrf.mxu1 }
 0x122   : >> { %v2483_v48 = vpop.f32.mrf.mxu0 }
 0x123   : >> { %v2491_v49 = vpop.f32.mrf.mxu1 }
 0x124   : >> { %v1176_v37 = vpop.f32.mrf.mxu0 }
 0x125   : >> { %v1230_v38 = vpop.f32.mrf.mxu1  ;;  %v3323_v40 = vadd.f32 %v1176_v37, %v1075_v46 }
 0x126   : >> { %v3325_v41 = vadd.f32 %v1230_v38, %v1129_v43  ;;  %v2498_v51 = vpop.f32.mrf.mxu0 }
 0x127   : >> { %v2506_v54 = vpop.f32.mrf.mxu1 }
 0x128   : >> { %v1179_v57 = vpop.f32.mrf.mxu0 }
 0x129   : >> { %v1233_v59 = vpop.f32.mrf.mxu1 }
 0x12a   : >> { %v2499_v61 = vpop.f32.mrf.mxu0 }
 0x12b   : >> { %v2507_v62 = vpop.f32.mrf.mxu1 }
 0x12c   : >> { %v1271_v1 = vpop.f32.mrf.mxu0 }
 0x12d   : >> { %v1311_v2 = vpop.f32.mrf.mxu1 }
 0x12e   : >> { %v2514_v44 = vpop.f32.mrf.mxu0  ;;  %v1312_v4 = vadd.f32 %v1311_v2, %v1271_v1 }
 0x12f   : >> { %v2522_v47 = vpop.f32.mrf.mxu1 }
 0x130   : >> { %v1274_v50 = vpop.f32.mrf.mxu0 }
 0x131   : >> { %v1314_v52 = vpop.f32.mrf.mxu1 }
 0x132   : >> { %v2515_v53 = vpop.f32.mrf.mxu0 }
 0x133   : >> { %v2523_v55 = vpop.f32.mrf.mxu1 }
 0x134   : >> { %v1351_v60 = vpop.f32.mrf.mxu0 }
 0x135   : >> { %v1391_v42 = vpop.f32.mrf.mxu1 }
 0x136   : >> { %v2530_v39 = vpop.f32.mrf.mxu0  ;;  %v1392_v5 = vadd.f32 %v1391_v42, %v1351_v60 }
 0x137   : >> { %v2538_v46 = vpop.f32.mrf.mxu1 }
 0x138   : >> { %v1354_v43 = vpop.f32.mrf.mxu0 }
 0x139   : >> { %v1394_v58 = vpop.f32.mrf.mxu1 }
 0x13a   : >> { %v2531_v63 = vpop.f32.mrf.mxu0 }
 0x13b   : >> { %v2539_v45 = vpop.f32.mrf.mxu1 }
 0x13c   : >> { %v1431_v3 = vpop.f32.mrf.mxu0 }
 0x13d   : >> { %v1472_v48 = vpop.f32.mrf.mxu1 }
 0x13e   : >> { %v2546_v49 = vpop.f32.mrf.mxu0 }
 0x13f   : >> { %v2554_v37 = vpop.f32.mrf.mxu1 }
 0x140   : >> { %v1434_v38 = vpop.f32.mrf.mxu0 }
 0x141   : >> { %v1475_v51 = vpop.f32.mrf.mxu1 }
 0x142   : >> { %v2547_v54 = vpop.f32.mrf.mxu0 }
 0x143   : >> { %v2555_v57 = vpop.f32.mrf.mxu1 }
 0x144   : >> { %v1513_v59 = vpop.f32.mrf.mxu0 }
 0x145   : >> { %v1554_v61 = vpop.f32.mrf.mxu1 }
 0x146   : >> { %v2562_v62 = vpop.f32.mrf.mxu0 }
 0x147   : >> { %v2570_v44 = vpop.f32.mrf.mxu1 }
 0x148   : >> { %v1516_v47 = vpop.f32.mrf.mxu0 }
 0x149   : >> { %v1557_v50 = vpop.f32.mrf.mxu1 }
 0x14a   : >> { %v2563_v52 = vpop.f32.mrf.mxu0 }
 0x14b   : >> { %v2571_v53 = vpop.f32.mrf.mxu1 }
 0x14c   : >> { %v1595_v55 = vpop.f32.mrf.mxu0 }
 0x14d   : >> { %v1636_v39 = vpop.f32.mrf.mxu1 }
 0x14e   : >> { %v2578_v46 = vpop.f32.mrf.mxu0 }
 0x14f   : >> { %v2586_v43 = vpop.f32.mrf.mxu1 }
 0x150   : >> { %v1598_v58 = vpop.f32.mrf.mxu0 }
 0x151   : >> { %v1639_v63 = vpop.f32.mrf.mxu1  ;;  %v1437_v58 = vadd.f32 %v1431_v3, %v1312_v4 }
 0x152   : >> { %v2579_v45 = vpop.f32.mrf.mxu0  ;;  %v1478_v63 = vadd.f32 %v1472_v48, %v1392_v5 }
 0x153   : >> { %v2587_v49 = vpop.f32.mrf.mxu1  ;;  %v1519_v6 = vadd.f32 %v1513_v59, %v1437_v58 }
 0x154   : >> { %v1677_v37 = vpop.f32.mrf.mxu0  ;;  %v1560_v7 = vadd.f32 %v1554_v61, %v1478_v63 }
 0x155   : >> { %v1718_v38 = vpop.f32.mrf.mxu1 }
 0x156   : >> { %v2594_v51 = vpop.f32.mrf.mxu0 }
 0x157   : >> { %v2602_v54 = vpop.f32.mrf.mxu1 }
 0x158   : >> { %v1680_v57 = vpop.f32.mrf.mxu0 }
 0x159   : >> { %v1721_v56 = vpop.f32.mrf.mxu1  ;;  %v1601_v57 = vadd.f32 %v1595_v55, %v1519_v6 }
 0x15a   : >> { %v2595_v62 = vpop.f32.mrf.mxu0  ;;  %v1642_v56 = vadd.f32 %v1636_v39, %v1560_v7 }
 0x15b   : >> { %v2603_v44 = vpop.f32.mrf.mxu1  ;;  %v1683_v8 = vadd.f32 %v1677_v37, %v1601_v57 }
 0x15c   : >> { %v1762_v47 = vpop.f32.mrf.mxu0  ;;  %v1724_v9 = vadd.f32 %v1718_v38, %v1642_v56  ;;  %v3364_v38 = vmax.f32 %v3323_v40, %v3325_v41 }
 0x15d   : >> { %v1806_v50 = vpop.f32.mrf.mxu1  ;;  %v1768_v1 = vadd.f32 %v1762_v47, %v1683_v8 }
 0x15e   : >> { %v2610_v52 = vpop.f32.mrf.mxu0  ;;  %v1812_v2 = vadd.f32 %v1806_v50, %v1724_v9 }
 0x15f   : >> { %v2618_v53 = vpop.f32.mrf.mxu1 }
 0x160   : >> { %v1765_v46 = vpop.f32.mrf.mxu0 }
 0x161   : >> { %v1809_v43 = vpop.f32.mrf.mxu1 }
 0x162   : >> { %v2611_v45 = vpop.f32.mrf.mxu0 }
 0x163   : >> { %v2619_v49 = vpop.f32.mrf.mxu1 }
 0x164   : >> { %v1847_v51 = vpop.f32.mrf.mxu0 }
 0x165   : >> { %v1901_v54 = vpop.f32.mrf.mxu1  ;;  %v1853_v5 = vadd.f32 %v1847_v51, %v1768_v1 }
 0x166   : >> { %v2626_v62 = vpop.f32.mrf.mxu0  ;;  %v1907_v42 = vadd.f32 %v1901_v54, %v1812_v2 }
 0x167   : >> { %v2634_v44 = vpop.f32.mrf.mxu1 }
 0x168   : >> { %v1850_v52 = vpop.f32.mrf.mxu0 }
 0x169   : >> { %v1904_v53 = vpop.f32.mrf.mxu1 }
 0x16a   : >> { %v2627_v60 = vpop.f32.mrf.mxu0 }
 0x16b   : >> { %v2635_v4 = vpop.f32.mrf.mxu1 }
 0x16c   : >> { %v1942_v3 = vpop.f32.mrf.mxu0 }
 0x16d   : >> { %v1996_v48 = vpop.f32.mrf.mxu1  ;;  %v1948_v59 = vadd.f32 %v1942_v3, %v1853_v5 }
 0x16e   : >> { %v2002_v61 = vadd.f32 %v1996_v48, %v1907_v42  ;;  %v2642_v6 = vpop.f32.mrf.mxu0 }
 0x16f   : >> { %v2650_v7 = vpop.f32.mrf.mxu1 }
 0x170   : >> { %v2004_v55 = vmax.f32 %v1948_v59, %v2002_v61  ;;  %v1945_v39 = vpop.f32.mrf.mxu0 }
 0x171   : >> { %v1999_v37 = vpop.f32.mrf.mxu1 }
 0x172   : >> { %v2005_v8 = vmax.f32 %v3364_v38, %v2004_v55  ;;  %v2643_v9 = vpop.f32.mrf.mxu0 }
 0x173   : >> { %v2651_v47 = vpop.f32.mrf.mxu1 }
 0x174   : >> { %v2012_v50 = vadd.f32 %v2734_v0, %v2005_v8 }
 0x176   : >> { %v2013_v46 = vmax.f32 %v2012_v50, 0.0  ;;  %268 = sbr.rel (!%p266_p4) target bundleno = 26 (0x1a), region = 93 }
 0x178   : >> { %v2014_v43 = vpack.c.bf16 %v2013_v46, %v2013_v46 }
 0x17a   : >> { %2018 = vst.msk [vmem:[%s2016_s12] sm:$0x7] %vm2017_vm2, %v2014_v43 }
 0x17b PF: > { %s14_s15 = sadd.s32 1, %s2690_s15  }
 0x17c   : > { %p11_p5 = scmp.ge.s32.totalorder %s14_s15, 4  }
 0x17e   :  { %13 = sbr.rel (!%p11_p5) target bundleno = 1 (0x1), region = 104 }

// kernel: mycnn_forward.9
= control target key start
LH: loop header
LB: loop body
LE: loop exit
PB: predicated region body
PF: predicated region fallthrough
CT: control target
= control target key end

     0   :  { %v106_v30 = vlaneseq  ;;  %v706_v34 = vmov 1966171168   ;;  %v707_v37 = vmov 0.0   ;;  %s872_s0 = inlined_call_operand.vmem [shape: bf16[2,512], index: 0, kind: input, shape index: {}]   ;;  %s873_s1 = inlined_call_operand.vmem [shape: bf16[512,128], index: 1, kind: input, shape index: {}]   ;;  %s874_s2 = inlined_call_operand.vmem [shape: f32[1,128], index: 2, kind: input, shape index: {}]   ;;  %s875_s3 = inlined_call_operand.vmem [shape: bf16[128,10], index: 3, kind: input, shape index: {}]   ;;  %s876_s4 = inlined_call_operand.vmem [shape: f32[1,10], index: 4, kind: input, shape index: {}]   ;;  %s877_s5 = inlined_call_operand.hbm [shape: f32[2,10], index: 5, kind: output, shape index: {}]  }
   0x1   :  { %v644_v0 = vld [vmem:[%s873_s1 + $0x78] sm:$0xff]   ;;  %v648_v4 = vld [vmem:[%s873_s1 + $0x70] sm:$0xff]   ;;  %v652_v8 = vld [vmem:[%s873_s1 + $0x68] sm:$0xff]   ;;  %v104_v35 = vunpack.c.l.s4 %v706_v34 }
   0x2   :  { %v645_v1 = vld [vmem:[%s873_s1 + $0xf8] sm:$0xff]   ;;  %567 = vmatprep.subr.bf16.mxu0 %v644_v0  ;;  %v649_v5 = vld [vmem:[%s873_s1 + $0xf0] sm:$0xff]   ;;  %v653_v9 = vld [vmem:[%s873_s1 + $0xe8] sm:$0xff]   ;;  %v107_v36 = vshrl.u32 %v106_v30, 7 }
   0x3   :  { %v646_v2 = vld [vmem:[%s873_s1 + $0x38] sm:$0xff]   ;;  %589 = vmatprep.subr.bf16.mxu1 %v645_v1  ;;  %v650_v6 = vld [vmem:[%s873_s1 + $0x30] sm:$0xff]   ;;  %v654_v10 = vld [vmem:[%s873_s1 + $0x28] sm:$0xff]   ;;  %v105_v39 = vunpack.c.0.s8 %v104_v35 }
   0x4   :  { %v647_v3 = vld [vmem:[%s873_s1 + $0xb8] sm:$0xff]   ;;  %568 = vmatpush3.bf16.msra.mxu0 %v646_v2  ;;  %v651_v7 = vld [vmem:[%s873_s1 + $0xb0] sm:$0xff]   ;;  %v655_v11 = vld [vmem:[%s873_s1 + $0xa8] sm:$0xff]  }
   0x5   :  { %590 = vmatpush3.bf16.msra.mxu1 %v647_v3  ;;  %569 = vmatprep.subr.bf16.mxu0 %v648_v4  ;;  %v656_v12 = vld [vmem:[%s873_s1 + $0x60] sm:$0xff]   ;;  %v660_v16 = vld [vmem:[%s873_s1 + $0x58] sm:$0xff]   ;;  %v664_v20 = vld [vmem:[%s873_s1 + $0x50] sm:$0xff]   ;;  %v108_v40 = vsub.s32 %v105_v39, %v107_v36 }
   0x6   :  { %591 = vmatprep.subr.bf16.mxu1 %v649_v5  ;;  %v657_v13 = vld [vmem:[%s873_s1 + $0xe0] sm:$0xff]   ;;  %v661_v17 = vld [vmem:[%s873_s1 + $0xd8] sm:$0xff]   ;;  %v665_v21 = vld [vmem:[%s873_s1 + $0xd0] sm:$0xff]  }
   0x7   :  { %v658_v14 = vld [vmem:[%s873_s1 + $0x20] sm:$0xff]   ;;  %v662_v18 = vld [vmem:[%s873_s1 + $0x18] sm:$0xff]   ;;  %v666_v22 = vld [vmem:[%s873_s1 + $0x10] sm:$0xff]  }
   0x8   :  { %570 = vmatpush3.bf16.msra.mxu0 %v650_v6  ;;  %v659_v15 = vld [vmem:[%s873_s1 + $0xa0] sm:$0xff]   ;;  %v663_v19 = vld [vmem:[%s873_s1 + $0x98] sm:$0xff]   ;;  %v667_v23 = vld [vmem:[%s873_s1 + $0x90] sm:$0xff]  }
   0x9   :  { %592 = vmatpush3.bf16.msra.mxu1 %v651_v7  ;;  %571 = vmatprep.subr.bf16.mxu0 %v652_v8  ;;  %v668_v24 = vld [vmem:[%s873_s1 + $0x48] sm:$0xff]   ;;  %v672_v28 = vld [vmem:[%s873_s1 + $0x40] sm:$0xff]   ;;  %v676_v41 = vld [vmem:[%s875_s3 + $0x38] sm:$0xff]  }
   0xa   :  { %593 = vmatprep.subr.bf16.mxu1 %v653_v9  ;;  %v669_v25 = vld [vmem:[%s873_s1 + $0xc8] sm:$0xff]   ;;  %v673_v29 = vld [vmem:[%s873_s1 + $0xc0] sm:$0xff]  }
   0xb   :  { %v670_v26 = vld [vmem:[%s873_s1 + $0x8] sm:$0xff]   ;;  %v674_v31 = vld [vmem:[%s873_s1] sm:$0xff]  }
   0xc   :  { %572 = vmatpush3.bf16.msra.mxu0 %v654_v10  ;;  %v671_v27 = vld [vmem:[%s873_s1 + $0x88] sm:$0xff]   ;;  %v675_v32 = vld [vmem:[%s873_s1 + $0x80] sm:$0xff]  }
   0xd   :  { %594 = vmatpush3.bf16.msra.mxu1 %v655_v11  ;;  %573 = vmatprep.subr.bf16.mxu0 %v656_v12  ;;  %v525_v33 = vld.sshfl [vmem:[%s872_s0] sm:$0x33 pattern:$0x75316420] }
   0xe   :  { %595 = vmatprep.subr.bf16.mxu1 %v657_v13  ;;  %v102_v38 = vcombine.high %v525_v33, %v525_v33  ;;  %v109_v43 = vrot.slane %v525_v33, %v108_v40 }
  0x10   :  { %574 = vmatpush3.bf16.msra.mxu0 %v658_v14  ;;  %v116_v42 = vrot.slane %v102_v38, %v108_v40 }
  0x11   :  { %596 = vmatpush3.bf16.msra.mxu1 %v659_v15  ;;  %575 = vmatprep.subr.bf16.mxu0 %v660_v16 }
  0x12   :  { %597 = vmatprep.subr.bf16.mxu1 %v661_v17 }
  0x14   :  { %576 = vmatpush3.bf16.msra.mxu0 %v662_v18 }
  0x15   :  { %598 = vmatpush3.bf16.msra.mxu1 %v663_v19  ;;  %577 = vmatprep.subr.bf16.mxu0 %v664_v20 }
  0x16   :  { %599 = vmatprep.subr.bf16.mxu1 %v665_v21 }
  0x18   :  { %578 = vmatpush3.bf16.msra.mxu0 %v666_v22 }
  0x19   :  { %600 = vmatpush3.bf16.msra.mxu1 %v667_v23  ;;  %579 = vmatprep.subr.bf16.mxu0 %v668_v24 }
  0x1a   :  { %601 = vmatprep.subr.bf16.mxu1 %v669_v25 }
  0x1c   :  { %580 = vmatpush3.bf16.msra.mxu0 %v670_v26 }
  0x1d   :  { %602 = vmatpush3.bf16.msra.mxu1 %v671_v27  ;;  %581 = vmatprep.subr.bf16.mxu0 %v672_v28 }
  0x1e   :  { %603 = vmatprep.subr.bf16.mxu1 %v673_v29 }
  0x20   :  { %582 = vmatpush3.bf16.msra.mxu0 %v674_v31 }
  0x21   :  { %604 = vmatpush3.bf16.msra.mxu1 %v675_v32  ;;  %620 = vmatprep.subr.bf16.mxu0 %v707_v37 }
  0x22   :  { %10 = vsyncpa [#allocation3], 0  ;;  %347 = vmatprep.mubr.bf16.mxu0 %v116_v42  ;;  %v118_v44 = vcombine.high %v116_v42, %v116_v42  ;;  %v117_v45 = vcombine.high %v109_v43, %v109_v43  ;;  %v677_v46 = vld [vmem:[%s875_s3 + $0x30] sm:$0xff]   ;;  %v678_v47 = vld [vmem:[%s875_s3 + $0x28] sm:$0xff]   ;;  %vm708_vm0 = vmmov 0   ;;  %s709_s26 = smov [#allocation2]  }
  0x23   :  { %348 = vmatmul.mubr.bf16.vlgmr.msra.gmra.mxu0 %v109_v43  ;;  %v679_v48 = vld [vmem:[%s875_s3 + $0x20] sm:$0xff]   ;;  %v680_v49 = vld [vmem:[%s875_s3 + $0x18] sm:$0xff]   ;;  %v681_v50 = vld [vmem:[%s875_s3 + $0x10] sm:$0xff]   ;;  %s516_s27 = sshll.u32 %s709_s26, 4  ;;  %vm508_vm1 = vcmask 74752   ;;  %s517_s27 = int_to_ptr.vmem [resolvable:$true] %s516_s27 }
  0x24   :  { %387 = vmatprep.mubr.bf16.mxu1 %v118_v44  ;;  %621 = vmatpush3.bf16.msra.mxu0 %v676_v41  ;;  %v682_v51 = vld [vmem:[%s875_s3 + $0x8] sm:$0xff]   ;;  %v683_v52 = vld [vmem:[%s875_s3] sm:$0xff]   ;;  %p689_p1 = scmp.lt.s32.totalorder %s517_s27, %s517_s27 }
  0x25   :  { %388 = vmatmul.mubr.bf16.vlgmr.msra.gmra.mxu1 %v117_v45  ;;  %622 = vmatprep.subr.bf16.mxu0 %v707_v37  ;;  %v524_v55 = vld [vmem:[%s874_s2] ss:$0 sm:$0xff]  ;;  %s684_s2 = scalar_lea.vmem %s517_s27, 32 }
  0x26   :  { %636 = vmatprep.mubr.msk.bf16.mxu0 %vm708_vm0, %v707_v37  ;;  %v558_v4 = vld [vmem:[%s876_s4] ss:$0 sm:$0xff]  ;;  %p685_p0 = scmp.ne.s32.totalorder %s517_s27, %s684_s2  ;;  %p690_p2 = scmp.lt.s32.totalorder %s684_s2, %s684_s2 }
  0x28   :  { %623 = vmatpush3.bf16.msra.mxu0 %v677_v46  ;;  %p691_p3 = por %p690_p2, %p689_p1 }
  0x29   :  { %624 = vmatprep.subr.bf16.mxu0 %v707_v37 }
  0x2a   :  { %p692_p4 = pnand %p691_p3, %p685_p0 }
  0x2c   :  { %625 = vmatpush3.bf16.msra.mxu0 %v678_v47 }
  0x2d   :  { %626 = vmatprep.subr.bf16.mxu0 %v707_v37 }
  0x30   :  { %627 = vmatpush3.bf16.msra.mxu0 %v679_v48 }
  0x31   :  { %628 = vmatprep.subr.bf16.mxu0 %v707_v37 }
  0x34   :  { %629 = vmatpush3.bf16.msra.mxu0 %v680_v49 }
  0x35   :  { %630 = vmatprep.subr.bf16.mxu0 %v707_v37 }
  0x38   :  { %631 = vmatpush3.bf16.msra.mxu0 %v681_v50 }
  0x39   :  { %632 = vmatprep.subr.bf16.mxu0 %v707_v37 }
  0x3c   :  { %633 = vmatpush3.bf16.msra.mxu0 %v682_v51 }
  0x3d   :  { %634 = vmatprep.subr.bf16.mxu0 %v707_v37 }
  0x40   :  { %635 = vmatpush3.bf16.msra.mxu0 %v683_v52 }
  0xe3   :  { %v583_v53 = vpop.f32.mrf.mxu0 }
  0xe5   :  { %v605_v54 = vpop.f32.mrf.mxu1  ;;  %v584_v56 = vpop.f32.mrf.mxu0 }
  0xe6   :  { %v585_v57 = vadd.f32 %v584_v56, %v583_v53 }
  0xe7   :  { %v606_v58 = vpop.f32.mrf.mxu1  ;;  %v586_v59 = vpop.f32.mrf.mxu0 }
  0xe8   :  { %v350_v60 = vadd.f32 %v585_v57, %v524_v55  ;;  %v607_v61 = vadd.f32 %v606_v58, %v605_v54 }
  0xe9   :  { %v608_v62 = vpop.f32.mrf.mxu1  ;;  %v587_v63 = vpop.f32.mrf.mxu0 }
  0xea   :  { %v390_v0 = vadd.f32 %v607_v61, %v350_v60 }
  0xeb   :  { %v609_v1 = vpop.f32.mrf.mxu1 }
  0xec   :  { %v395_v2 = vmax.f32 %v390_v0, 0.0 }
  0xee   :  { %v396_v3 = vpack.c.bf16 %v395_v2, %v395_v2 }
  0xf0   :  { %637 = vmatmul.mubr.bf16.vlgmr.msra.gmra.mxu0 %v396_v3 }
 0x1b0   :  { %v502_v5 = vpop.f32.mrf.mxu0 }
 0x1b1   :  { %v503_v6 = vadd.f32 %v558_v4, %v502_v5 }
 0x1b2   :  { %v638_v7 = vpop.f32.mrf.mxu0 }
 0x1b3   :  { %509 = vst.msk [vmem:[#allocation2] sm:$0x3] %vm508_vm1, %v503_v6 }
 0x1b4   :  { %v505_v8 = vpop.f32.mrf.mxu0 }
 0x1b5   :  { %695 = shalt.err (!%p692_p4)
}
 0x1b6   :  { %519 = dma.vmem_to_hbm [thread:$0]  %s517_s27, 32, %s877_s5, [#allocation3]   ;;  %v639_v9 = vpop.f32.mrf.mxu0 }
 0x1b7   :  { %704 = dma.done.wait [#allocation3], 32  }
 0x1b8   :  { %705 = vsyncadd [#allocation3], 4294967264 }
 0x1b9   :  { %523 = vsyncpa [#allocation3], 1 }

// kernel: mycnn_forward.8
= control target key start
LH: loop header
LB: loop body
LE: loop exit
PB: predicated region body
PF: predicated region fallthrough
CT: control target
= control target key end

     0   :  { %s3150_s15 = smov 0   ;;  %s4170_s0 = inlined_call_operand.vmem [shape: bf16[2,6,3,64], index: 0, kind: input, shape index: {}]   ;;  %s4171_s1 = inlined_call_operand.vmem [shape: bf16[2,6,3,64], index: 1, kind: input, shape index: {}]   ;;  %s4172_s2 = inlined_call_operand.vmem [shape: bf16[9,64,128], index: 2, kind: input, shape index: {}]   ;;  %s4173_s3 = inlined_call_operand.vmem [shape: f32[1,128], index: 3, kind: input, shape index: {}]   ;;  %s4174_s4 = inlined_call_operand.vmem [shape: bf16[2,2,2,128], index: 4, kind: output, shape index: {}]  }
   0x1 LB: > { %s2298_s16 = sadd.s32 4294967295, %s3116_s15   ;;  %p2302_p0 = scmp.ge.s32.totalorder %s3116_s15, 1  ;;  %s3116_s15 = sphi %s3150_s15, %s14_s15  }
   0x2   : > { %p172_p1 = scmp.lt.s32.totalorder %s3116_s15, 3 }
   0x4   : > { %p173_p2 = pnand %p2302_p0, %p172_p1 }
   0x5   : > { %p202_p3 = scmp.lt.s32.totalorder (!%p173_p2), %s2298_s16, 1  ;;  %s3538_s14 = smov (!%p173_p2), 0  }
   0x6   : > { %176 = sbr.rel (%p173_p2) target bundleno = 544 (0x220), region = 36 }
   0xb   : > { %v3161_v0 = vld [vmem:[%s4173_s3] ss:$0 sm:$0xff]  ;;  %v3171_v2 = vld [vmem:[%s4172_s2 + $0x4] sm:$0xf]  ;;  %v3176_v3 = vld [vmem:[%s4172_s2 + $0x8] sm:$0xf] }
   0xc   : > { %4175 = vst [vmem:[#allocation2_spill] sm:$0xff] %v3161_v0  ;;  %v3166_v1 = vld [vmem:[%s4172_s2] sm:$0xf]  ;;  %4177 = vst [vmem:[#allocation4_spill] sm:$0xff] %v3171_v2  ;;  %v3181_v4 = vld [vmem:[%s4172_s2 + $0xc] sm:$0xf] }
   0xd   : > { %4176 = vst [vmem:[#allocation3_spill] sm:$0xff] %v3166_v1  ;;  %4178 = vst [vmem:[#allocation5_spill] sm:$0xff] %v3176_v3  ;;  %s4300_s16 = smov (!%p202_p3, %s2298_s16), 1  ;;  %v3186_v5 = vld [vmem:[%s4172_s2 + $0x10] sm:$0xf] }
   0xe   : > { %4179 = vst [vmem:[#allocation6_spill] sm:$0xff] %v3181_v4  ;;  %4180 = vst [vmem:[#allocation7_spill] sm:$0xff] %v3186_v5  ;;  %v3191_v6 = vld [vmem:[%s4172_s2 + $0x14] sm:$0xf]  ;;  %v3196_v7 = vld [vmem:[%s4172_s2 + $0x18] sm:$0xf] }
   0xf   : > { %4181 = vst [vmem:[#allocation8_spill] sm:$0xff] %v3191_v6  ;;  %4182 = vst [vmem:[#allocation9_spill] sm:$0xff] %v3196_v7  ;;  %v3201_v8 = vld [vmem:[%s4172_s2 + $0x1c] sm:$0xf]  ;;  %v3206_v9 = vld [vmem:[%s4172_s2 + $0x20] sm:$0xf] }
  0x10   : > { %4183 = vst [vmem:[#allocation10_spill] sm:$0xff] %v3201_v8  ;;  %4184 = vst [vmem:[#allocation11_spill] sm:$0xff] %v3206_v9  ;;  %s3086_s11 = smul.u32 12, %s4300_s16  ;;  %s2305_s12 = sshll.u32 %s4300_s16, 1  ;;  %v3211_v10 = vld [vmem:[%s4172_s2 + $0x24] sm:$0xf] }
  0x11   : > { %4185 = vst [vmem:[#allocation12_spill] sm:$0xff] %v3211_v10  ;;  %v3216_v11 = vld [vmem:[%s4172_s2 + $0x28] sm:$0xf]  ;;  %s3221_s21 = scalar_lea.vmem %s4174_s4, %s2305_s12  ;;  %v3226_v12 = vld [vmem:[%s4172_s2 + $0x2c] sm:$0xf] }
  0x12   : > { %4186 = vst [vmem:[#allocation13_spill] sm:$0xff] %v3216_v11  ;;  %4187 = vst [vmem:[#allocation14_spill] sm:$0xff] %v3226_v12  ;;  %v3231_v13 = vld [vmem:[%s4172_s2 + $0x30] sm:$0xf]  ;;  %v3236_v14 = vld [vmem:[%s4172_s2 + $0x34] sm:$0xf]  ;;  %s3241_s29 = scalar_lea.vmem %s4170_s0, %s3086_s11  ;;  %s3246_s6 = scalar_lea.vmem %s4171_s1, %s3086_s11 }
  0x13   : > { %4188 = vst [vmem:[#allocation15_spill] sm:$0xff] %v3231_v13  ;;  %4189 = vst [vmem:[#allocation16_spill] sm:$0xff] %v3236_v14  ;;  %v3251_v15 = vld [vmem:[%s4172_s2 + $0x38] sm:$0xf]  ;;  %v3256_v16 = vld [vmem:[%s4172_s2 + $0x3c] sm:$0xf] }
  0x14   : > { %4190 = vst [vmem:[#allocation17_spill] sm:$0xff] %v3251_v15  ;;  %4191 = vst [vmem:[#allocation18_spill] sm:$0xff] %v3256_v16  ;;  %v3261_v17 = vld [vmem:[%s4172_s2 + $0x40] sm:$0xf]  ;;  %v3266_v18 = vld [vmem:[%s4172_s2 + $0x44] sm:$0xf] }
  0x15   : > { %4192 = vst [vmem:[#allocation19_spill] sm:$0xff] %v3261_v17  ;;  %4193 = vst [vmem:[#allocation20_spill] sm:$0xff] %v3266_v18  ;;  %v3271_v19 = vld [vmem:[%s4172_s2 + $0x48] sm:$0xf]  ;;  %v3276_v20 = vld [vmem:[%s4172_s2 + $0x4c] sm:$0xf] }
  0x16   : > { %4194 = vst [vmem:[#allocation21_spill] sm:$0xff] %v3271_v19  ;;  %4195 = vst [vmem:[#allocation22_spill] sm:$0xff] %v3276_v20  ;;  %v3281_v21 = vld [vmem:[%s4172_s2 + $0x50] sm:$0xf]  ;;  %v3286_v22 = vld [vmem:[%s4172_s2 + $0x54] sm:$0xf] }
  0x17   : > { %4196 = vst [vmem:[#allocation23_spill] sm:$0xff] %v3281_v21  ;;  %4197 = vst [vmem:[#allocation24_spill] sm:$0xff] %v3286_v22  ;;  %v3291_v23 = vld [vmem:[%s4172_s2 + $0x58] sm:$0xf]  ;;  %v3296_v24 = vld [vmem:[%s4172_s2 + $0x5c] sm:$0xf] }
  0x18   : > { %4198 = vst [vmem:[#allocation25_spill] sm:$0xff] %v3291_v23  ;;  %4199 = vst [vmem:[#allocation26_spill] sm:$0xff] %v3296_v24  ;;  %v3301_v25 = vld [vmem:[%s4172_s2 + $0x60] sm:$0xf]  ;;  %v3306_v26 = vld [vmem:[%s4172_s2 + $0x64] sm:$0xf] }
  0x19   : > { %4200 = vst [vmem:[#allocation27_spill] sm:$0xff] %v3301_v25  ;;  %4201 = vst [vmem:[#allocation28_spill] sm:$0xff] %v3306_v26  ;;  %v3311_v27 = vld [vmem:[%s4172_s2 + $0x68] sm:$0xf]  ;;  %v3316_v28 = vld [vmem:[%s4172_s2 + $0x6c] sm:$0xf] }
  0x1a   : > { %4202 = vst [vmem:[#allocation29_spill] sm:$0xff] %v3311_v27  ;;  %4203 = vst [vmem:[#allocation30_spill] sm:$0xff] %v3316_v28  ;;  %v3321_v29 = vld [vmem:[%s4172_s2 + $0x70] sm:$0xf]  ;;  %v3326_v30 = vld [vmem:[%s4172_s2 + $0x74] sm:$0xf] }
  0x1b   : > { %4204 = vst [vmem:[#allocation31_spill] sm:$0xff] %v3321_v29  ;;  %4205 = vst [vmem:[#allocation32_spill] sm:$0xff] %v3326_v30  ;;  %v3331_v31 = vld [vmem:[%s4172_s2 + $0x78] sm:$0xf]  ;;  %v3336_v32 = vld [vmem:[%s4172_s2 + $0x7c] sm:$0xf] }
  0x1c   : > { %4206 = vst [vmem:[#allocation33_spill] sm:$0xff] %v3331_v31  ;;  %4207 = vst [vmem:[#allocation34_spill] sm:$0xff] %v3336_v32  ;;  %v3341_v33 = vld [vmem:[%s4172_s2 + $0x80] sm:$0xf]  ;;  %v3346_v34 = vld [vmem:[%s4172_s2 + $0x84] sm:$0xf] }
  0x1d   : > { %4208 = vst [vmem:[#allocation35_spill] sm:$0xff] %v3341_v33  ;;  %4209 = vst [vmem:[#allocation36_spill] sm:$0xff] %v3346_v34  ;;  %v3351_v35 = vld [vmem:[%s4172_s2 + $0x88] sm:$0xf]  ;;  %v3356_v36 = vld [vmem:[%s4172_s2 + $0x8c] sm:$0xf] }
  0x1e   : > { %4210 = vst [vmem:[#allocation37_spill] sm:$0xff] %v3351_v35  ;;  %4211 = vst [vmem:[#allocation38_spill] sm:$0xff] %v3356_v36  ;;  %v3361_v37 = vld [vmem:[%s4172_s2 + $0x90] sm:$0xf]  ;;  %v3366_v38 = vld [vmem:[%s4172_s2 + $0x94] sm:$0xf] }
  0x1f   : > { %4212 = vst [vmem:[#allocation39_spill] sm:$0xff] %v3361_v37  ;;  %4213 = vst [vmem:[#allocation40_spill] sm:$0xff] %v3366_v38  ;;  %v3371_v39 = vld [vmem:[%s4172_s2 + $0x98] sm:$0xf]  ;;  %v3376_v40 = vld [vmem:[%s4172_s2 + $0x9c] sm:$0xf] }
  0x20   : > { %4214 = vst [vmem:[#allocation41_spill] sm:$0xff] %v3371_v39  ;;  %4215 = vst [vmem:[#allocation42_spill] sm:$0xff] %v3376_v40  ;;  %v3381_v41 = vld [vmem:[%s4172_s2 + $0xa0] sm:$0xf]  ;;  %v3386_v42 = vld [vmem:[%s4172_s2 + $0xa4] sm:$0xf] }
  0x21   : > { %4216 = vst [vmem:[#allocation43_spill] sm:$0xff] %v3381_v41  ;;  %4217 = vst [vmem:[#allocation44_spill] sm:$0xff] %v3386_v42  ;;  %v3391_v43 = vld [vmem:[%s4172_s2 + $0xa8] sm:$0xf]  ;;  %v3396_v44 = vld [vmem:[%s4172_s2 + $0xac] sm:$0xf] }
  0x22   : > { %4218 = vst [vmem:[#allocation45_spill] sm:$0xff] %v3391_v43  ;;  %4219 = vst [vmem:[#allocation46_spill] sm:$0xff] %v3396_v44  ;;  %v3401_v45 = vld [vmem:[%s4172_s2 + $0xb0] sm:$0xf]  ;;  %v3406_v46 = vld [vmem:[%s4172_s2 + $0xb4] sm:$0xf] }
  0x23   : > { %4220 = vst [vmem:[#allocation47_spill] sm:$0xff] %v3401_v45  ;;  %4221 = vst [vmem:[#allocation48_spill] sm:$0xff] %v3406_v46  ;;  %v3411_v47 = vld [vmem:[%s4172_s2 + $0xb8] sm:$0xf]  ;;  %v3416_v48 = vld [vmem:[%s4172_s2 + $0xbc] sm:$0xf] }
  0x24   : > { %4222 = vst [vmem:[#allocation49_spill] sm:$0xff] %v3411_v47  ;;  %4223 = vst [vmem:[#allocation50_spill] sm:$0xff] %v3416_v48  ;;  %v3421_v49 = vld [vmem:[%s4172_s2 + $0xc0] sm:$0xf]  ;;  %v3426_v50 = vld [vmem:[%s4172_s2 + $0xc4] sm:$0xf] }
  0x25   : > { %v3431_v51 = vld [vmem:[%s4172_s2 + $0xc8] sm:$0xf]  ;;  %v3436_v52 = vld [vmem:[%s4172_s2 + $0xcc] sm:$0xf]  ;;  %v3441_v53 = vld [vmem:[%s4172_s2 + $0xd0] sm:$0xf] }
  0x26   : > { %v3446_v54 = vld [vmem:[%s4172_s2 + $0xd4] sm:$0xf]  ;;  %v3451_v55 = vld [vmem:[%s4172_s2 + $0xd8] sm:$0xf]  ;;  %v3456_v56 = vld [vmem:[%s4172_s2 + $0xdc] sm:$0xf] }
  0x27   : > { %v3461_v57 = vld [vmem:[%s4172_s2 + $0xe0] sm:$0xf]  ;;  %v3466_v58 = vld [vmem:[%s4172_s2 + $0xe4] sm:$0xf]  ;;  %v3471_v59 = vld [vmem:[%s4172_s2 + $0xe8] sm:$0xf] }
  0x28   : > { %4224 = vst [vmem:[#allocation51_spill] sm:$0xff] %v3461_v57  ;;  %4225 = vst [vmem:[#allocation52_spill] sm:$0xff] %v3466_v58  ;;  %v3476_v60 = vld [vmem:[%s4172_s2 + $0xec] sm:$0xf]  ;;  %v3481_v61 = vld [vmem:[%s4172_s2 + $0xf0] sm:$0xf] }
  0x29   : > { %4226 = vst [vmem:[#allocation53_spill] sm:$0xff] %v3471_v59  ;;  %4227 = vst [vmem:[#allocation54_spill] sm:$0xff] %v3476_v60  ;;  %v3486_v62 = vld [vmem:[%s4172_s2 + $0xf4] sm:$0xf]  ;;  %v3491_v63 = vld [vmem:[%s4172_s2 + $0xf8] sm:$0xf] }
  0x2a   : > { %4228 = vst [vmem:[#allocation55_spill] sm:$0xff] %v3481_v61  ;;  %v3496_v0 = vld [vmem:[%s4172_s2 + $0xfc] sm:$0xf]  ;;  %v3501_v57 = vld [vmem:[%s4172_s2 + $0x100] sm:$0xf] }
  0x2b   : > { %4229 = vst [vmem:[#allocation56_spill] sm:$0xff] %v3496_v0  ;;  %4230 = vst [vmem:[#allocation57_spill] sm:$0xff] %v3501_v57  ;;  %v3506_v58 = vld [vmem:[%s4172_s2 + $0x104] sm:$0xf]  ;;  %v3511_v59 = vld [vmem:[%s4172_s2 + $0x108] sm:$0xf] }
  0x2c   : > { %4231 = vst [vmem:[#allocation58_spill] sm:$0xff] %v3506_v58  ;;  %4232 = vst [vmem:[#allocation59_spill] sm:$0xff] %v3511_v59  ;;  %v3516_v60 = vld [vmem:[%s4172_s2 + $0x10c] sm:$0xf]  ;;  %v3521_v61 = vld [vmem:[%s4172_s2 + $0x110] sm:$0xf] }
  0x2d   : > { %4233 = vst [vmem:[#allocation60_spill] sm:$0xff] %v3516_v60  ;;  %4234 = vst [vmem:[#allocation61_spill] sm:$0xff] %v3521_v61  ;;  %v3526_v57 = vld [vmem:[%s4172_s2 + $0x114] sm:$0xf]  ;;  %v3531_v58 = vld [vmem:[%s4172_s2 + $0x118] sm:$0xf] }
  0x2e   : > { %4235 = vst [vmem:[#allocation62_spill] sm:$0xff] %v3526_v57  ;;  %4236 = vst [vmem:[#allocation63_spill] sm:$0xff] %v3531_v58  ;;  %v3536_v59 = vld [vmem:[%s4172_s2 + $0x11c] sm:$0xf] }
  0x2f LB: >> { %v4237_v16 = vld [vmem:[#allocation18_spill] sm:$0xff]  ;;  %v4238_v15 = vld [vmem:[#allocation17_spill] sm:$0xff]  ;;  %v3122_v57 = vmov 0.0   ;;  %v4241_v14 = vld [vmem:[#allocation16_spill] sm:$0xff]  ;;  %vm3123_vm0 = vmmov 0   ;;  %s2466_s17 = sshll.u32 %s3120_s14, 2  ;;  %s2197_s19 = scalar_lea.vmem %s3221_s21, %s3120_s14  ;;  %s3120_s14 = sphi %s3538_s14, %s303_s14  }
  0x30   : >> { %v3545_v60 = vcombine.low %v4238_v15, %v4237_v16  ;;  %v4239_v8 = vld [vmem:[#allocation10_spill] sm:$0xff]  ;;  %v4240_v7 = vld [vmem:[#allocation9_spill] sm:$0xff]  ;;  %2654 = vmatprep.subr.bf16.mxu0 %v3122_v57  ;;  %2666 = vmatprep.subr.bf16.mxu1 %v3122_v57  ;;  %v4242_v13 = vld [vmem:[#allocation15_spill] sm:$0xff]  ;;  %s3595_s11 = scalar_lea.vmem %s3246_s6, %s2466_s17  ;;  %s3598_s18 = scalar_lea.vmem %s3241_s29, %s2466_s17  ;;  %vm356_vm1 = vcmask 523264  }
  0x31   : >> { %v3549_v61 = vcombine.low %v4240_v7, %v4239_v8  ;;  %v3557_v58 = vcombine.low %v4242_v13, %v4241_v14  ;;  %v4243_v6 = vld [vmem:[#allocation8_spill] sm:$0xff]  ;;  %v4244_v5 = vld [vmem:[#allocation7_spill] sm:$0xff]  ;;  %2662 = vmatprep.mubr.msk.bf16.mxu0 %vm3123_vm0, %v3122_v57  ;;  %2674 = vmatprep.mubr.msk.bf16.mxu1 %vm3123_vm0, %v3122_v57  ;;  %v3124_v7 = vmov 1983009808   ;;  %v471_v13 = vlaneseq  ;;  %v4245_v12 = vld [vmem:[#allocation14_spill] sm:$0xff]  ;;  %s303_s14 = sadd.s32 1, %s3120_s14  }
  0x32   : >> { %2655 = vmatpush3.bf16.msra.mxu0 %v3545_v60  ;;  %v3561_v15 = vcombine.low %v4244_v5, %v4243_v6  ;;  %v469_v8 = vunpack.c.l.s4 %v3124_v7  ;;  %v4246_v11 = vld [vmem:[#allocation13_spill] sm:$0xff]  ;;  %v4247_v4 = vld [vmem:[#allocation6_spill] sm:$0xff]  ;;  %v4249_v10 = vld [vmem:[#allocation12_spill] sm:$0xff]  ;;  %p300_p4 = scmp.ge.s32.totalorder %s303_s14, 2  }
  0x33   : >> { %2667 = vmatpush3.bf16.msra.mxu1 %v3549_v61  ;;  %2656 = vmatprep.subr.bf16.mxu0 %v3122_v57  ;;  %v3573_v5 = vcombine.low %v4246_v11, %v4245_v12  ;;  %v4248_v3 = vld [vmem:[#allocation5_spill] sm:$0xff]  ;;  %v472_v14 = vshrl.u32 %v471_v13, 7  ;;  %v4250_v9 = vld [vmem:[#allocation11_spill] sm:$0xff]  ;;  %v4251_v2 = vld [vmem:[#allocation4_spill] sm:$0xff] }
  0x34   : >> { %2668 = vmatprep.subr.bf16.mxu1 %v3122_v57  ;;  %v3577_v6 = vcombine.low %v4248_v3, %v4247_v4  ;;  %v470_v7 = vunpack.c.0.s8 %v469_v8  ;;  %v3586_v16 = vcombine.low %v4250_v9, %v4249_v10  ;;  %v4252_v1 = vld [vmem:[#allocation3_spill] sm:$0xff]  ;;  %v322_v13 = vld [vmem:[%s3595_s11] sm:$0x3]  ;;  %v4254_v23 = vld [vmem:[#allocation25_spill] sm:$0xff] }
  0x35   : >> { %v3590_v11 = vcombine.low %v4252_v1, %v4251_v2  ;;  %v307_v1 = vld [vmem:[%s3598_s18] sm:$0x3]  ;;  %v4255_v22 = vld [vmem:[#allocation24_spill] sm:$0xff]  ;;  %v4256_v21 = vld [vmem:[#allocation23_spill] sm:$0xff] }
  0x36   : >> { %2657 = vmatpush3.bf16.msra.mxu0 %v3557_v58  ;;  %v3600_v8 = vsub.s32 %v470_v7, %v472_v14  ;;  %v4253_v24 = vld [vmem:[#allocation26_spill] sm:$0xff]  ;;  %v4258_v19 = vld [vmem:[#allocation21_spill] sm:$0xff]  ;;  %v4259_v18 = vld [vmem:[#allocation20_spill] sm:$0xff] }
  0x37   : >> { %2669 = vmatpush3.bf16.msra.mxu1 %v3561_v15  ;;  %2658 = vmatprep.subr.bf16.mxu0 %v3122_v57  ;;  %v3631_v4 = vcombine.low %v4254_v23, %v4253_v24  ;;  %v4257_v20 = vld [vmem:[#allocation22_spill] sm:$0xff]  ;;  %v4260_v17 = vld [vmem:[#allocation19_spill] sm:$0xff]  ;;  %v4262_v31 = vld [vmem:[#allocation33_spill] sm:$0xff] }
  0x38   : >> { %2670 = vmatprep.subr.bf16.mxu1 %v3122_v57  ;;  %v474_v2 = vrot.slane %v307_v1, %v3600_v8  ;;  %v3662_v10 = vcombine.low %v4260_v17, %v4259_v18  ;;  %v4261_v32 = vld [vmem:[#allocation34_spill] sm:$0xff]  ;;  %v4263_v30 = vld [vmem:[#allocation32_spill] sm:$0xff]  ;;  %v4264_v29 = vld [vmem:[#allocation31_spill] sm:$0xff] }
  0x39   : >> { %v4265_v28 = vld [vmem:[#allocation30_spill] sm:$0xff]  ;;  %v4266_v27 = vld [vmem:[#allocation29_spill] sm:$0xff]  ;;  %v4267_v26 = vld [vmem:[#allocation28_spill] sm:$0xff] }
  0x3a   : >> { %2659 = vmatpush3.bf16.msra.mxu0 %v3573_v5  ;;  %v478_v14 = vshll.u32 %v474_v2, 16  ;;  %v4268_v25 = vld [vmem:[#allocation27_spill] sm:$0xff]  ;;  %v4269_v40 = vld [vmem:[#allocation42_spill] sm:$0xff]  ;;  %v4270_v39 = vld [vmem:[#allocation41_spill] sm:$0xff] }
  0x3b   : >> { %2671 = vmatpush3.bf16.msra.mxu1 %v3577_v6  ;;  %2660 = vmatprep.subr.bf16.mxu0 %v3122_v57  ;;  %v3714_v17 = vcombine.low %v4270_v39, %v4269_v40  ;;  %v4271_v38 = vld [vmem:[#allocation40_spill] sm:$0xff]  ;;  %v4272_v37 = vld [vmem:[#allocation39_spill] sm:$0xff]  ;;  %v4273_v36 = vld [vmem:[#allocation38_spill] sm:$0xff] }
  0x3c   : >> { %2672 = vmatprep.subr.bf16.mxu1 %v3122_v57  ;;  %v480_v7 = vrot.slane %v478_v14, 1  ;;  %v3642_v14 = vcombine.low %v4256_v21, %v4255_v22  ;;  %v4274_v35 = vld [vmem:[#allocation37_spill] sm:$0xff]  ;;  %v4275_v34 = vld [vmem:[#allocation36_spill] sm:$0xff]  ;;  %v4276_v33 = vld [vmem:[#allocation35_spill] sm:$0xff] }
  0x3d   : >> { %v3740_v21 = vcombine.low %v4274_v35, %v4273_v36  ;;  %v3748_v24 = vcombine.low %v4276_v33, %v4275_v34  ;;  %v4277_v48 = vld [vmem:[#allocation50_spill] sm:$0xff]  ;;  %v4278_v47 = vld [vmem:[#allocation49_spill] sm:$0xff]  ;;  %v4279_v46 = vld [vmem:[#allocation48_spill] sm:$0xff] }
  0x3e   : >> { %2661 = vmatpush3.bf16.msra.mxu0 %v3586_v16  ;;  %v4280_v45 = vld [vmem:[#allocation47_spill] sm:$0xff]  ;;  %v4281_v44 = vld [vmem:[#allocation46_spill] sm:$0xff]  ;;  %v4282_v43 = vld [vmem:[#allocation45_spill] sm:$0xff] }
  0x3f   : >> { %2673 = vmatpush3.bf16.msra.mxu1 %v3590_v11  ;;  %2678 = vmatprep.subr.bf16.mxu0 %v3122_v57  ;;  %v4283_v42 = vld [vmem:[#allocation44_spill] sm:$0xff]  ;;  %v4284_v41 = vld [vmem:[#allocation43_spill] sm:$0xff] }
  0x40   : >> { %2690 = vmatprep.subr.bf16.mxu1 %v3122_v57  ;;  %v4285_v0 = vld [vmem:[#allocation56_spill] sm:$0xff] }
  0x41   : >> { %2663 = vmatmul.mubr.msk.bf16.vlgmr.msra.gmra.mxu0 %vm356_vm1, %v322_v13  ;;  %v3848_v33 = vcombine.low %v3491_v63, %v4285_v0  ;;  %v4286_v0 = vld [vmem:[#allocation55_spill] sm:$0xff] }
  0x42   : >> { %2675 = vmatmul.mubr.msk.bf16.vlgmr.msra.gmra.mxu1 %vm356_vm1, %v307_v1  ;;  %2679 = vmatpush3.bf16.msra.mxu0 %v3545_v60  ;;  %v476_v1 = vshrl.u32 %v474_v2, 16  ;;  %v637_v2 = vrot.slane %v322_v13, %v3600_v8  ;;  %v3862_v35 = vcombine.low %v4286_v0, %v3486_v62 }
  0x43   : >> { %2691 = vmatpush3.bf16.msra.mxu1 %v3549_v61  ;;  %2680 = vmatprep.subr.bf16.mxu0 %v3122_v57 }
  0x44   : >> { %2692 = vmatprep.subr.bf16.mxu1 %v3122_v57  ;;  %2686 = vmatprep.mubr.msk.bf16.mxu0 %vm3123_vm0, %v3122_v57  ;;  %v481_v3 = vor.u32 %v480_v7, %v476_v1  ;;  %v641_v1 = vshll.u32 %v637_v2, 16  ;;  %v639_v7 = vshrl.u32 %v637_v2, 16  ;;  %v3670_v2 = vcombine.low %v4262_v31, %v4261_v32  ;;  %v3841_v31 = vld [vmem:[%s3598_s18 + $0x4] sm:$0x3] }
  0x45   : >> { %2698 = vmatprep.mubr.msk.bf16.mxu1 %vm3123_vm0, %v3122_v57  ;;  %v3844_v32 = vld [vmem:[%s3595_s11 + $0x4] sm:$0x3]  ;;  %v1233_v34 = vrot.slane %v3841_v31, %v3600_v8 }
  0x46   : >> { %2681 = vmatpush3.bf16.msra.mxu0 %v3557_v58  ;;  %v643_v9 = vrot.slane %v641_v1, 1  ;;  %v3707_v1 = vld [vmem:[%s3598_s18 + $0x2] sm:$0x3] }
  0x47   : >> { %2693 = vmatpush3.bf16.msra.mxu1 %v3561_v15  ;;  %2682 = vmatprep.subr.bf16.mxu0 %v3122_v57  ;;  %v873_v18 = vrot.slane %v3707_v1, %v3600_v8  ;;  %v1237_v36 = vshll.u32 %v1233_v34, 16  ;;  %v1235_v0 = vshrl.u32 %v1233_v34, 16  ;;  %v4291_v34 = vld [vmem:[#allocation63_spill] sm:$0xff] }
  0x48   : >> { %2694 = vmatprep.subr.bf16.mxu1 %v3122_v57  ;;  %v644_v12 = vor.u32 %v643_v9, %v639_v7  ;;  %v3680_v9 = vcombine.low %v4264_v29, %v4263_v30  ;;  %v3710_v7 = vld [vmem:[%s3595_s11 + $0x2] sm:$0x3]  ;;  %v3792_v29 = vcombine.low %v4284_v41, %v4283_v42  ;;  %v4289_v41 = vld [vmem:[#allocation52_spill] sm:$0xff]  ;;  %v4290_v42 = vld [vmem:[#allocation51_spill] sm:$0xff] }
  0x49   : >> { %v875_v22 = vshrl.u32 %v873_v18, 16  ;;  %v1239_v40 = vrot.slane %v1237_v36, 1  ;;  %v3892_v36 = vcombine.low %v4291_v34, %v3536_v59  ;;  %v4294_v34 = vld [vmem:[#allocation60_spill] sm:$0xff] }
  0x4a   : >> { %2683 = vmatpush3.bf16.msra.mxu0 %v3573_v5 }
  0x4b   : >> { %2695 = vmatpush3.bf16.msra.mxu1 %v3577_v6  ;;  %2684 = vmatprep.subr.bf16.mxu0 %v3122_v57 }
  0x4c   : >> { %2696 = vmatprep.subr.bf16.mxu1 %v3122_v57 }
  0x4e   : >> { %2685 = vmatpush3.bf16.msra.mxu0 %v3586_v16 }
  0x4f   : >> { %2697 = vmatpush3.bf16.msra.mxu1 %v3590_v11  ;;  %2702 = vmatprep.subr.bf16.mxu0 %v3122_v57 }
  0x50   : >> { %2714 = vmatprep.subr.bf16.mxu1 %v3122_v57 }
  0x51   : >> { %2687 = vmatmul.mubr.msk.bf16.vlgmr.msra.gmra.mxu0 %vm356_vm1, %v481_v3 }
  0x52   : >> { %2699 = vmatmul.mubr.msk.bf16.vlgmr.msra.gmra.mxu1 %vm356_vm1, %v322_v13  ;;  %2703 = vmatpush3.bf16.msra.mxu0 %v3631_v4  ;;  %v3654_v13 = vcombine.low %v4258_v19, %v4257_v20  ;;  %v3728_v19 = vcombine.low %v4272_v37, %v4271_v38  ;;  %v877_v20 = vshll.u32 %v873_v18, 16  ;;  %v3758_v18 = vcombine.low %v4278_v47, %v4277_v48  ;;  %v4287_v37 = vld [vmem:[#allocation54_spill] sm:$0xff]  ;;  %v4288_v38 = vld [vmem:[#allocation53_spill] sm:$0xff] }
  0x53   : >> { %2715 = vmatpush3.bf16.msra.mxu1 %v3631_v4  ;;  %2704 = vmatprep.subr.bf16.mxu0 %v3122_v57  ;;  %v3874_v39 = vcombine.low %v4288_v38, %v4287_v37  ;;  %v3886_v37 = vor.u32 %v1239_v40, %v1235_v0  ;;  %v1357_v38 = vrot.slane %v3844_v32, %v3600_v8  ;;  %v4292_v40 = vld [vmem:[#allocation62_spill] sm:$0xff]  ;;  %v4297_v47 = vld [vmem:[#allocation57_spill] sm:$0xff] }
  0x54   : >> { %2716 = vmatprep.subr.bf16.mxu1 %v3122_v57  ;;  %2710 = vmatprep.mubr.msk.bf16.mxu0 %vm3123_vm0, %v3122_v57  ;;  %v879_v23 = vrot.slane %v877_v20, 1  ;;  %v997_v20 = vrot.slane %v3710_v7, %v3600_v8 }
  0x55   : >> { %2722 = vmatprep.mubr.msk.bf16.mxu1 %vm3123_vm0, %v3122_v57  ;;  %v1361_v0 = vshll.u32 %v1357_v38, 16 }
  0x56   : >> { %2705 = vmatpush3.bf16.msra.mxu0 %v3642_v14 }
  0x57   : >> { %2717 = vmatpush3.bf16.msra.mxu1 %v3642_v14  ;;  %2706 = vmatprep.subr.bf16.mxu0 %v3122_v57 }
  0x58   : >> { %2718 = vmatprep.subr.bf16.mxu1 %v3122_v57 }
  0x5a   : >> { %2707 = vmatpush3.bf16.msra.mxu0 %v3654_v13 }
  0x5b   : >> { %2719 = vmatpush3.bf16.msra.mxu1 %v3654_v13  ;;  %2708 = vmatprep.subr.bf16.mxu0 %v3122_v57 }
  0x5c   : >> { %2720 = vmatprep.subr.bf16.mxu1 %v3122_v57 }
  0x5e   : >> { %2709 = vmatpush3.bf16.msra.mxu0 %v3662_v10 }
  0x5f   : >> { %2721 = vmatpush3.bf16.msra.mxu1 %v3662_v10  ;;  %2726 = vmatprep.subr.bf16.mxu0 %v3122_v57 }
  0x60   : >> { %2738 = vmatprep.subr.bf16.mxu1 %v3122_v57 }
  0x61   : >> { %2711 = vmatmul.mubr.msk.bf16.vlgmr.msra.gmra.mxu0 %vm356_vm1, %v481_v3  ;;  %v3692_v3 = vcombine.low %v4266_v27, %v4265_v28  ;;  %v999_v27 = vshrl.u32 %v997_v20, 16 }
  0x62   : >> { %2723 = vmatmul.mubr.msk.bf16.vlgmr.msra.gmra.mxu1 %vm356_vm1, %v644_v12  ;;  %2727 = vmatpush3.bf16.msra.mxu0 %v3670_v2  ;;  %v3700_v12 = vcombine.low %v4268_v25, %v4267_v26  ;;  %v3752_v25 = vor.u32 %v879_v23, %v875_v22  ;;  %v3772_v22 = vcombine.low %v4280_v45, %v4279_v46  ;;  %v1001_v23 = vshll.u32 %v997_v20, 16  ;;  %v4296_v46 = vld [vmem:[#allocation58_spill] sm:$0xff] }
  0x63   : >> { %2739 = vmatpush3.bf16.msra.mxu1 %v3670_v2  ;;  %2728 = vmatprep.subr.bf16.mxu0 %v3122_v57  ;;  %v3784_v26 = vcombine.low %v4282_v43, %v4281_v44  ;;  %v3802_v20 = vcombine.low %v3451_v55, %v3456_v56  ;;  %v3882_v43 = vcombine.low %v4290_v42, %v4289_v41  ;;  %v4293_v41 = vld [vmem:[#allocation61_spill] sm:$0xff]  ;;  %v4295_v44 = vld [vmem:[#allocation59_spill] sm:$0xff] }
  0x64   : >> { %2740 = vmatprep.subr.bf16.mxu1 %v3122_v57  ;;  %2734 = vmatprep.mubr.msk.bf16.mxu0 %vm3123_vm0, %v3122_v57  ;;  %v1003_v28 = vrot.slane %v1001_v23, 1  ;;  %v3834_v23 = vcombine.low %v3421_v49, %v3426_v50  ;;  %v3906_v42 = vcombine.low %v4293_v41, %v4292_v40  ;;  %v3918_v45 = vcombine.low %v4295_v44, %v4294_v34 }
  0x65   : >> { %2746 = vmatprep.mubr.msk.bf16.mxu1 %vm3123_vm0, %v3122_v57  ;;  %v1359_v40 = vshrl.u32 %v1357_v38, 16  ;;  %v1363_v41 = vrot.slane %v1361_v0, 1  ;;  %v3926_v48 = vcombine.low %v4297_v47, %v4296_v46 }
  0x66   : >> { %2729 = vmatpush3.bf16.msra.mxu0 %v3680_v9  ;;  %v3796_v30 = vor.u32 %v1003_v28, %v999_v27  ;;  %v3814_v27 = vcombine.low %v3441_v53, %v3446_v54  ;;  %v3826_v28 = vcombine.low %v3431_v51, %v3436_v52 }
  0x67   : >> { %2741 = vmatpush3.bf16.msra.mxu1 %v3680_v9  ;;  %2730 = vmatprep.subr.bf16.mxu0 %v3122_v57  ;;  %v3930_v44 = vor.u32 %v1363_v41, %v1359_v40 }
  0x68   : >> { %2742 = vmatprep.subr.bf16.mxu1 %v3122_v57 }
  0x6a   : >> { %2731 = vmatpush3.bf16.msra.mxu0 %v3692_v3 }
  0x6b   : >> { %2743 = vmatpush3.bf16.msra.mxu1 %v3692_v3  ;;  %2732 = vmatprep.subr.bf16.mxu0 %v3122_v57 }
  0x6c   : >> { %2744 = vmatprep.subr.bf16.mxu1 %v3122_v57 }
  0x6e   : >> { %2733 = vmatpush3.bf16.msra.mxu0 %v3700_v12 }
  0x6f   : >> { %2745 = vmatpush3.bf16.msra.mxu1 %v3700_v12  ;;  %2750 = vmatprep.subr.bf16.mxu0 %v3122_v57 }
  0x70   : >> { %2762 = vmatprep.subr.bf16.mxu1 %v3122_v57 }
  0x71   : >> { %2735 = vmatmul.mubr.msk.bf16.vlgmr.msra.gmra.mxu0 %vm356_vm1, %v3707_v1 }
  0x72   : >> { %2747 = vmatmul.mubr.msk.bf16.vlgmr.msra.gmra.mxu1 %vm356_vm1, %v3710_v7  ;;  %2751 = vmatpush3.bf16.msra.mxu0 %v3714_v17 }
  0x73   : >> { %2763 = vmatpush3.bf16.msra.mxu1 %v3714_v17  ;;  %2752 = vmatprep.subr.bf16.mxu0 %v3122_v57 }
  0x74   : >> { %2764 = vmatprep.subr.bf16.mxu1 %v3122_v57  ;;  %2758 = vmatprep.mubr.msk.bf16.mxu0 %vm3123_vm0, %v3122_v57 }
  0x75   : >> { %2770 = vmatprep.mubr.msk.bf16.mxu1 %vm3123_vm0, %v3122_v57 }
  0x76   : >> { %2753 = vmatpush3.bf16.msra.mxu0 %v3728_v19 }
  0x77   : >> { %2765 = vmatpush3.bf16.msra.mxu1 %v3728_v19  ;;  %2754 = vmatprep.subr.bf16.mxu0 %v3122_v57 }
  0x78   : >> { %2766 = vmatprep.subr.bf16.mxu1 %v3122_v57 }
  0x7a   : >> { %2755 = vmatpush3.bf16.msra.mxu0 %v3740_v21 }
  0x7b   : >> { %2767 = vmatpush3.bf16.msra.mxu1 %v3740_v21  ;;  %2756 = vmatprep.subr.bf16.mxu0 %v3122_v57 }
  0x7c   : >> { %2768 = vmatprep.subr.bf16.mxu1 %v3122_v57 }
  0x7e   : >> { %2757 = vmatpush3.bf16.msra.mxu0 %v3748_v24 }
  0x7f   : >> { %2769 = vmatpush3.bf16.msra.mxu1 %v3748_v24  ;;  %2774 = vmatprep.subr.bf16.mxu0 %v3122_v57 }
  0x80   : >> { %2786 = vmatprep.subr.bf16.mxu1 %v3122_v57 }
  0x81   : >> { %2759 = vmatmul.mubr.msk.bf16.vlgmr.msra.gmra.mxu0 %vm356_vm1, %v3710_v7 }
  0x82   : >> { %2771 = vmatmul.mubr.msk.bf16.vlgmr.msra.gmra.mxu1 %vm356_vm1, %v3752_v25  ;;  %2775 = vmatpush3.bf16.msra.mxu0 %v3758_v18 }
  0x83   : >> { %2787 = vmatpush3.bf16.msra.mxu1 %v3758_v18  ;;  %2776 = vmatprep.subr.bf16.mxu0 %v3122_v57 }
  0x84   : >> { %2788 = vmatprep.subr.bf16.mxu1 %v3122_v57  ;;  %2782 = vmatprep.mubr.msk.bf16.mxu0 %vm3123_vm0, %v3122_v57 }
  0x85   : >> { %2794 = vmatprep.mubr.msk.bf16.mxu1 %vm3123_vm0, %v3122_v57 }
  0x86   : >> { %2777 = vmatpush3.bf16.msra.mxu0 %v3772_v22 }
  0x87   : >> { %2789 = vmatpush3.bf16.msra.mxu1 %v3772_v22  ;;  %2778 = vmatprep.subr.bf16.mxu0 %v3122_v57 }
  0x88   : >> { %2790 = vmatprep.subr.bf16.mxu1 %v3122_v57 }
  0x8a   : >> { %2779 = vmatpush3.bf16.msra.mxu0 %v3784_v26 }
  0x8b   : >> { %2791 = vmatpush3.bf16.msra.mxu1 %v3784_v26  ;;  %2780 = vmatprep.subr.bf16.mxu0 %v3122_v57 }
  0x8c   : >> { %2792 = vmatprep.subr.bf16.mxu1 %v3122_v57 }
  0x8e   : >> { %2781 = vmatpush3.bf16.msra.mxu0 %v3792_v29 }
  0x8f   : >> { %2793 = vmatpush3.bf16.msra.mxu1 %v3792_v29  ;;  %2798 = vmatprep.subr.bf16.mxu0 %v3122_v57 }
  0x90   : >> { %2810 = vmatprep.subr.bf16.mxu1 %v3122_v57 }
  0x91   : >> { %2783 = vmatmul.mubr.msk.bf16.vlgmr.msra.gmra.mxu0 %vm356_vm1, %v3752_v25 }
  0x92   : >> { %2795 = vmatmul.mubr.msk.bf16.vlgmr.msra.gmra.mxu1 %vm356_vm1, %v3796_v30  ;;  %2799 = vmatpush3.bf16.msra.mxu0 %v3802_v20 }
  0x93   : >> { %2811 = vmatpush3.bf16.msra.mxu1 %v3802_v20  ;;  %2800 = vmatprep.subr.bf16.mxu0 %v3122_v57 }
  0x94   : >> { %2812 = vmatprep.subr.bf16.mxu1 %v3122_v57  ;;  %2806 = vmatprep.mubr.msk.bf16.mxu0 %vm3123_vm0, %v3122_v57 }
  0x95   : >> { %2818 = vmatprep.mubr.msk.bf16.mxu1 %vm3123_vm0, %v3122_v57 }
  0x96   : >> { %2801 = vmatpush3.bf16.msra.mxu0 %v3814_v27 }
  0x97   : >> { %2813 = vmatpush3.bf16.msra.mxu1 %v3814_v27  ;;  %2802 = vmatprep.subr.bf16.mxu0 %v3122_v57 }
  0x98   : >> { %2814 = vmatprep.subr.bf16.mxu1 %v3122_v57 }
  0x9a   : >> { %2803 = vmatpush3.bf16.msra.mxu0 %v3826_v28 }
  0x9b   : >> { %2815 = vmatpush3.bf16.msra.mxu1 %v3826_v28  ;;  %2804 = vmatprep.subr.bf16.mxu0 %v3122_v57 }
  0x9c   : >> { %2816 = vmatprep.subr.bf16.mxu1 %v3122_v57 }
  0x9e   : >> { %2805 = vmatpush3.bf16.msra.mxu0 %v3834_v23 }
  0x9f   : >> { %2817 = vmatpush3.bf16.msra.mxu1 %v3834_v23  ;;  %2822 = vmatprep.subr.bf16.mxu0 %v3122_v57 }
  0xa0   : >> { %2834 = vmatprep.subr.bf16.mxu1 %v3122_v57 }
  0xa1   : >> { %2807 = vmatmul.mubr.msk.bf16.vlgmr.msra.gmra.mxu0 %vm356_vm1, %v3841_v31 }
  0xa2   : >> { %2819 = vmatmul.mubr.msk.bf16.vlgmr.msra.gmra.mxu1 %vm356_vm1, %v3844_v32  ;;  %2823 = vmatpush3.bf16.msra.mxu0 %v3848_v33 }
  0xa3   : >> { %2835 = vmatpush3.bf16.msra.mxu1 %v3848_v33  ;;  %2824 = vmatprep.subr.bf16.mxu0 %v3122_v57 }
  0xa4   : >> { %2836 = vmatprep.subr.bf16.mxu1 %v3122_v57  ;;  %2830 = vmatprep.mubr.msk.bf16.mxu0 %vm3123_vm0, %v3122_v57 }
  0xa5   : >> { %2842 = vmatprep.mubr.msk.bf16.mxu1 %vm3123_vm0, %v3122_v57 }
  0xa6   : >> { %2825 = vmatpush3.bf16.msra.mxu0 %v3862_v35 }
  0xa7   : >> { %2837 = vmatpush3.bf16.msra.mxu1 %v3862_v35  ;;  %2826 = vmatprep.subr.bf16.mxu0 %v3122_v57 }
  0xa8   : >> { %2838 = vmatprep.subr.bf16.mxu1 %v3122_v57 }
  0xaa   : >> { %2827 = vmatpush3.bf16.msra.mxu0 %v3874_v39 }
  0xab   : >> { %2839 = vmatpush3.bf16.msra.mxu1 %v3874_v39  ;;  %2828 = vmatprep.subr.bf16.mxu0 %v3122_v57 }
  0xac   : >> { %2840 = vmatprep.subr.bf16.mxu1 %v3122_v57 }
  0xae   : >> { %2829 = vmatpush3.bf16.msra.mxu0 %v3882_v43 }
  0xaf   : >> { %2841 = vmatpush3.bf16.msra.mxu1 %v3882_v43  ;;  %2846 = vmatprep.subr.bf16.mxu0 %v3122_v57 }
  0xb0   : >> { %2858 = vmatprep.subr.bf16.mxu1 %v3122_v57 }
  0xb1   : >> { %2831 = vmatmul.mubr.msk.bf16.vlgmr.msra.gmra.mxu0 %vm356_vm1, %v3844_v32 }
  0xb2   : >> { %2843 = vmatmul.mubr.msk.bf16.vlgmr.msra.gmra.mxu1 %vm356_vm1, %v3886_v37  ;;  %2847 = vmatpush3.bf16.msra.mxu0 %v3892_v36 }
  0xb3   : >> { %2859 = vmatpush3.bf16.msra.mxu1 %v3892_v36  ;;  %2848 = vmatprep.subr.bf16.mxu0 %v3122_v57 }
  0xb4   : >> { %2860 = vmatprep.subr.bf16.mxu1 %v3122_v57  ;;  %2854 = vmatprep.mubr.msk.bf16.mxu0 %vm3123_vm0, %v3122_v57 }
  0xb5   : >> { %2866 = vmatprep.mubr.msk.bf16.mxu1 %vm3123_vm0, %v3122_v57 }
  0xb6   : >> { %2849 = vmatpush3.bf16.msra.mxu0 %v3906_v42 }
  0xb7   : >> { %2861 = vmatpush3.bf16.msra.mxu1 %v3906_v42  ;;  %2850 = vmatprep.subr.bf16.mxu0 %v3122_v57 }
  0xb8   : >> { %2862 = vmatprep.subr.bf16.mxu1 %v3122_v57 }
  0xba   : >> { %2851 = vmatpush3.bf16.msra.mxu0 %v3918_v45 }
  0xbb   : >> { %2863 = vmatpush3.bf16.msra.mxu1 %v3918_v45  ;;  %2852 = vmatprep.subr.bf16.mxu0 %v3122_v57 }
  0xbc   : >> { %2864 = vmatprep.subr.bf16.mxu1 %v3122_v57 }
  0xbe   : >> { %2853 = vmatpush3.bf16.msra.mxu0 %v3926_v48 }
  0xbf   : >> { %2865 = vmatpush3.bf16.msra.mxu1 %v3926_v48  ;;  %2870 = vmatprep.subr.bf16.mxu0 %v3122_v57 }
  0xc0   : >> { %2882 = vmatprep.subr.bf16.mxu1 %v3122_v57 }
  0xc1   : >> { %2855 = vmatmul.mubr.msk.bf16.vlgmr.msra.gmra.mxu0 %vm356_vm1, %v3886_v37 }
  0xc2   : >> { %2867 = vmatmul.mubr.msk.bf16.vlgmr.msra.gmra.mxu1 %vm356_vm1, %v3930_v44  ;;  %2871 = vmatpush3.bf16.msra.mxu0 %v3545_v60 }
  0xc3   : >> { %2883 = vmatpush3.bf16.msra.mxu1 %v3549_v61  ;;  %2872 = vmatprep.subr.bf16.mxu0 %v3122_v57 }
  0xc4   : >> { %2884 = vmatprep.subr.bf16.mxu1 %v3122_v57  ;;  %2878 = vmatprep.mubr.msk.bf16.mxu0 %vm3123_vm0, %v3122_v57 }
  0xc5   : >> { %2890 = vmatprep.mubr.msk.bf16.mxu1 %vm3123_vm0, %v3122_v57 }
  0xc6   : >> { %2873 = vmatpush3.bf16.msra.mxu0 %v3557_v58 }
  0xc7   : >> { %2885 = vmatpush3.bf16.msra.mxu1 %v3561_v15  ;;  %2874 = vmatprep.subr.bf16.mxu0 %v3122_v57 }
  0xc8   : >> { %2886 = vmatprep.subr.bf16.mxu1 %v3122_v57 }
  0xca   : >> { %2875 = vmatpush3.bf16.msra.mxu0 %v3573_v5 }
  0xcb   : >> { %2887 = vmatpush3.bf16.msra.mxu1 %v3577_v6  ;;  %2876 = vmatprep.subr.bf16.mxu0 %v3122_v57 }
  0xcc   : >> { %2888 = vmatprep.subr.bf16.mxu1 %v3122_v57 }
  0xce   : >> { %2877 = vmatpush3.bf16.msra.mxu0 %v3586_v16 }
  0xcf   : >> { %2889 = vmatpush3.bf16.msra.mxu1 %v3590_v11  ;;  %2894 = vmatprep.subr.bf16.mxu0 %v3122_v57 }
  0xd0   : >> { %2906 = vmatprep.subr.bf16.mxu1 %v3122_v57 }
  0xd1   : >> { %2879 = vmatmul.mubr.msk.bf16.vlgmr.msra.gmra.mxu0 %vm356_vm1, %v3710_v7 }
  0xd2   : >> { %2891 = vmatmul.mubr.msk.bf16.vlgmr.msra.gmra.mxu1 %vm356_vm1, %v3707_v1  ;;  %2895 = vmatpush3.bf16.msra.mxu0 %v3545_v60  ;;  %v2380_v1 = vld [vmem:[%s3598_s18 + $0x6] sm:$0x3] }
  0xd3   : >> { %2907 = vmatpush3.bf16.msra.mxu1 %v3549_v61  ;;  %2896 = vmatprep.subr.bf16.mxu0 %v3122_v57 }
  0xd4   : >> { %2908 = vmatprep.subr.bf16.mxu1 %v3122_v57  ;;  %2902 = vmatprep.mubr.msk.bf16.mxu0 %vm3123_vm0, %v3122_v57 }
  0xd5   : >> { %2914 = vmatprep.mubr.msk.bf16.mxu1 %vm3123_vm0, %v3122_v57 }
  0xd6   : >> { %2897 = vmatpush3.bf16.msra.mxu0 %v3557_v58 }
  0xd7   : >> { %2909 = vmatpush3.bf16.msra.mxu1 %v3561_v15  ;;  %2898 = vmatprep.subr.bf16.mxu0 %v3122_v57 }
  0xd8   : >> { %2910 = vmatprep.subr.bf16.mxu1 %v3122_v57 }
  0xda   : >> { %2899 = vmatpush3.bf16.msra.mxu0 %v3573_v5 }
  0xdb   : >> { %2911 = vmatpush3.bf16.msra.mxu1 %v3577_v6  ;;  %2900 = vmatprep.subr.bf16.mxu0 %v3122_v57 }
  0xdc   : >> { %2912 = vmatprep.subr.bf16.mxu1 %v3122_v57 }
  0xde   : >> { %2901 = vmatpush3.bf16.msra.mxu0 %v3586_v16 }
  0xdf   : >> { %2913 = vmatpush3.bf16.msra.mxu1 %v3590_v11  ;;  %2918 = vmatprep.subr.bf16.mxu0 %v3122_v57 }
  0xe0   : >> { %2930 = vmatprep.subr.bf16.mxu1 %v3122_v57 }
  0xe1   : >> { %2903 = vmatmul.mubr.msk.bf16.vlgmr.msra.gmra.mxu0 %vm356_vm1, %v3752_v25 }
  0xe2   : >> { %2915 = vmatmul.mubr.msk.bf16.vlgmr.msra.gmra.mxu1 %vm356_vm1, %v3710_v7  ;;  %2919 = vmatpush3.bf16.msra.mxu0 %v3631_v4  ;;  %v2390_v7 = vld [vmem:[%s3595_s11 + $0x6] sm:$0x3] }
  0xe3   : >> { %2931 = vmatpush3.bf16.msra.mxu1 %v3631_v4  ;;  %2920 = vmatprep.subr.bf16.mxu0 %v3122_v57 }
  0xe4   : >> { %2932 = vmatprep.subr.bf16.mxu1 %v3122_v57  ;;  %2926 = vmatprep.mubr.msk.bf16.mxu0 %vm3123_vm0, %v3122_v57 }
  0xe5   : >> { %2938 = vmatprep.mubr.msk.bf16.mxu1 %vm3123_vm0, %v3122_v57 }
  0xe6   : >> { %2921 = vmatpush3.bf16.msra.mxu0 %v3642_v14 }
  0xe7   : >> { %2933 = vmatpush3.bf16.msra.mxu1 %v3642_v14  ;;  %2922 = vmatprep.subr.bf16.mxu0 %v3122_v57 }
  0xe8   : >> { %2934 = vmatprep.subr.bf16.mxu1 %v3122_v57 }
  0xea   : >> { %2923 = vmatpush3.bf16.msra.mxu0 %v3654_v13 }
  0xeb   : >> { %2935 = vmatpush3.bf16.msra.mxu1 %v3654_v13  ;;  %2924 = vmatprep.subr.bf16.mxu0 %v3122_v57 }
  0xec   : >> { %2936 = vmatprep.subr.bf16.mxu1 %v3122_v57 }
  0xee   : >> { %2925 = vmatpush3.bf16.msra.mxu0 %v3662_v10 }
  0xef   : >> { %2937 = vmatpush3.bf16.msra.mxu1 %v3662_v10  ;;  %2942 = vmatprep.subr.bf16.mxu0 %v3122_v57 }
  0xf0   : >> { %2954 = vmatprep.subr.bf16.mxu1 %v3122_v57 }
  0xf1   : >> { %2927 = vmatmul.mubr.msk.bf16.vlgmr.msra.gmra.mxu0 %vm356_vm1, %v3752_v25 }
  0xf2   : >> { %2939 = vmatmul.mubr.msk.bf16.vlgmr.msra.gmra.mxu1 %vm356_vm1, %v3796_v30  ;;  %2943 = vmatpush3.bf16.msra.mxu0 %v3670_v2 }
  0xf3   : >> { %2955 = vmatpush3.bf16.msra.mxu1 %v3670_v2  ;;  %2944 = vmatprep.subr.bf16.mxu0 %v3122_v57 }
  0xf4   : >> { %2956 = vmatprep.subr.bf16.mxu1 %v3122_v57  ;;  %2950 = vmatprep.mubr.msk.bf16.mxu0 %vm3123_vm0, %v3122_v57 }
  0xf5   : >> { %2962 = vmatprep.mubr.msk.bf16.mxu1 %vm3123_vm0, %v3122_v57 }
  0xf6   : >> { %2945 = vmatpush3.bf16.msra.mxu0 %v3680_v9 }
  0xf7   : >> { %2957 = vmatpush3.bf16.msra.mxu1 %v3680_v9  ;;  %2946 = vmatprep.subr.bf16.mxu0 %v3122_v57 }
  0xf8   : >> { %2958 = vmatprep.subr.bf16.mxu1 %v3122_v57 }
  0xfa   : >> { %2947 = vmatpush3.bf16.msra.mxu0 %v3692_v3 }
  0xfb   : >> { %2959 = vmatpush3.bf16.msra.mxu1 %v3692_v3  ;;  %2948 = vmatprep.subr.bf16.mxu0 %v3122_v57 }
  0xfc   : >> { %2960 = vmatprep.subr.bf16.mxu1 %v3122_v57 }
  0xfe   : >> { %2949 = vmatpush3.bf16.msra.mxu0 %v3700_v12 }
  0xff   : >> { %2961 = vmatpush3.bf16.msra.mxu1 %v3700_v12  ;;  %2966 = vmatprep.subr.bf16.mxu0 %v3122_v57 }
 0x100   : >> { %2978 = vmatprep.subr.bf16.mxu1 %v3122_v57 }
 0x101   : >> { %v394_v4 = vpop.f32.mrf.mxu0  ;;  %2951 = vmatmul.mubr.msk.bf16.vlgmr.msra.gmra.mxu0 %vm356_vm1, %v3841_v31 }
 0x102   : >> { %v461_v5 = vpop.f32.mrf.mxu1  ;;  %2963 = vmatmul.mubr.msk.bf16.vlgmr.msra.gmra.mxu1 %vm356_vm1, %v3844_v32  ;;  %2967 = vmatpush3.bf16.msra.mxu0 %v3714_v17 }
 0x103   : >> { %v462_v6 = vadd.f32 %v461_v5, %v394_v4  ;;  %2979 = vmatpush3.bf16.msra.mxu1 %v3714_v17  ;;  %v2664_v10 = vpop.f32.mrf.mxu0  ;;  %2968 = vmatprep.subr.bf16.mxu0 %v3122_v57 }
 0x104   : >> { %v2676_v11 = vpop.f32.mrf.mxu1  ;;  %2980 = vmatprep.subr.bf16.mxu1 %v3122_v57  ;;  %2974 = vmatprep.mubr.msk.bf16.mxu0 %vm3123_vm0, %v3122_v57 }
 0x105   : >> { %2986 = vmatprep.mubr.msk.bf16.mxu1 %vm3123_vm0, %v3122_v57  ;;  %v397_v15 = vpop.f32.mrf.mxu0 }
 0x106   : >> { %v464_v16 = vpop.f32.mrf.mxu1  ;;  %2969 = vmatpush3.bf16.msra.mxu0 %v3728_v19 }
 0x107   : >> { %2981 = vmatpush3.bf16.msra.mxu1 %v3728_v19  ;;  %v2665_v25 = vpop.f32.mrf.mxu0  ;;  %2970 = vmatprep.subr.bf16.mxu0 %v3122_v57 }
 0x108   : >> { %v2677_v17 = vpop.f32.mrf.mxu1  ;;  %2982 = vmatprep.subr.bf16.mxu1 %v3122_v57 }
 0x10a   : >> { %2971 = vmatpush3.bf16.msra.mxu0 %v3740_v21 }
 0x10b   : >> { %2983 = vmatpush3.bf16.msra.mxu1 %v3740_v21  ;;  %2972 = vmatprep.subr.bf16.mxu0 %v3122_v57 }
 0x10c   : >> { %2984 = vmatprep.subr.bf16.mxu1 %v3122_v57 }
 0x10e   : >> { %2973 = vmatpush3.bf16.msra.mxu0 %v3748_v24 }
 0x10f   : >> { %2985 = vmatpush3.bf16.msra.mxu1 %v3748_v24  ;;  %2990 = vmatprep.subr.bf16.mxu0 %v3122_v57 }
 0x110   : >> { %3002 = vmatprep.subr.bf16.mxu1 %v3122_v57 }
 0x111   : >> { %v519_v19 = vpop.f32.mrf.mxu0  ;;  %2975 = vmatmul.mubr.msk.bf16.vlgmr.msra.gmra.mxu0 %vm356_vm1, %v3844_v32 }
 0x112   : >> { %v559_v30 = vpop.f32.mrf.mxu1  ;;  %2987 = vmatmul.mubr.msk.bf16.vlgmr.msra.gmra.mxu1 %vm356_vm1, %v3886_v37  ;;  %2991 = vmatpush3.bf16.msra.mxu0 %v3758_v18 }
 0x113   : >> { %v560_v21 = vadd.f32 %v559_v30, %v519_v19  ;;  %3003 = vmatpush3.bf16.msra.mxu1 %v3758_v18  ;;  %v2688_v31 = vpop.f32.mrf.mxu0  ;;  %2992 = vmatprep.subr.bf16.mxu0 %v3122_v57 }
 0x114   : >> { %v2700_v46 = vpop.f32.mrf.mxu1  ;;  %3004 = vmatprep.subr.bf16.mxu1 %v3122_v57  ;;  %2998 = vmatprep.mubr.msk.bf16.mxu0 %vm3123_vm0, %v3122_v57 }
 0x115   : >> { %3010 = vmatprep.mubr.msk.bf16.mxu1 %vm3123_vm0, %v3122_v57  ;;  %v522_v24 = vpop.f32.mrf.mxu0 }
 0x116   : >> { %v562_v32 = vpop.f32.mrf.mxu1  ;;  %2993 = vmatpush3.bf16.msra.mxu0 %v3772_v22 }
 0x117   : >> { %3005 = vmatpush3.bf16.msra.mxu1 %v3772_v22  ;;  %v2689_v47 = vpop.f32.mrf.mxu0  ;;  %2994 = vmatprep.subr.bf16.mxu0 %v3122_v57 }
 0x118   : >> { %v2701_v58 = vpop.f32.mrf.mxu1  ;;  %3006 = vmatprep.subr.bf16.mxu1 %v3122_v57 }
 0x11a   : >> { %2995 = vmatpush3.bf16.msra.mxu0 %v3784_v26 }
 0x11b   : >> { %3007 = vmatpush3.bf16.msra.mxu1 %v3784_v26  ;;  %2996 = vmatprep.subr.bf16.mxu0 %v3122_v57 }
 0x11c   : >> { %3008 = vmatprep.subr.bf16.mxu1 %v3122_v57 }
 0x11e   : >> { %2997 = vmatpush3.bf16.msra.mxu0 %v3792_v29 }
 0x11f   : >> { %3009 = vmatpush3.bf16.msra.mxu1 %v3792_v29  ;;  %3014 = vmatprep.subr.bf16.mxu0 %v3122_v57 }
 0x120   : >> { %3026 = vmatprep.subr.bf16.mxu1 %v3122_v57 }
 0x121   : >> { %v623_v60 = vpop.f32.mrf.mxu0  ;;  %2999 = vmatmul.mubr.msk.bf16.vlgmr.msra.gmra.mxu0 %vm356_vm1, %v3886_v37 }
 0x122   : >> { %v682_v61 = vpop.f32.mrf.mxu1  ;;  %3011 = vmatmul.mubr.msk.bf16.vlgmr.msra.gmra.mxu1 %vm356_vm1, %v3930_v44  ;;  %v629_v26 = vadd.f32 %v623_v60, %v462_v6  ;;  %3015 = vmatpush3.bf16.msra.mxu0 %v3802_v20 }
 0x123   : >> { %v688_v14 = vadd.f32 %v682_v61, %v560_v21  ;;  %3027 = vmatpush3.bf16.msra.mxu1 %v3802_v20  ;;  %v2712_v13 = vpop.f32.mrf.mxu0  ;;  %3016 = vmatprep.subr.bf16.mxu0 %v3122_v57  ;;  %v2033_v20 = vrot.slane %v2380_v1, %v3600_v8 }
 0x124   : >> { %v2724_v29 = vpop.f32.mrf.mxu1  ;;  %3028 = vmatprep.subr.bf16.mxu1 %v3122_v57  ;;  %3022 = vmatprep.mubr.msk.bf16.mxu0 %vm3123_vm0, %v3122_v57 }
 0x125   : >> { %3034 = vmatprep.mubr.msk.bf16.mxu1 %vm3123_vm0, %v3122_v57  ;;  %v626_v2 = vpop.f32.mrf.mxu0  ;;  %v2037_v38 = vshll.u32 %v2033_v20, 16  ;;  %v2035_v41 = vshrl.u32 %v2033_v20, 16 }
 0x126   : >> { %v685_v9 = vpop.f32.mrf.mxu1  ;;  %3017 = vmatpush3.bf16.msra.mxu0 %v3814_v27 }
 0x127   : >> { %3029 = vmatpush3.bf16.msra.mxu1 %v3814_v27  ;;  %v2713_v3 = vpop.f32.mrf.mxu0  ;;  %3018 = vmatprep.subr.bf16.mxu0 %v3122_v57  ;;  %v2039_v44 = vrot.slane %v2037_v38, 1 }
 0x128   : >> { %v2725_v12 = vpop.f32.mrf.mxu1  ;;  %3030 = vmatprep.subr.bf16.mxu1 %v3122_v57 }
 0x129   : >> { %v2040_v4 = vor.u32 %v2039_v44, %v2035_v41 }
 0x12a   : >> { %3019 = vmatpush3.bf16.msra.mxu0 %v3826_v28 }
 0x12b   : >> { %3031 = vmatpush3.bf16.msra.mxu1 %v3826_v28  ;;  %3020 = vmatprep.subr.bf16.mxu0 %v3122_v57 }
 0x12c   : >> { %3032 = vmatprep.subr.bf16.mxu1 %v3122_v57 }
 0x12e   : >> { %3021 = vmatpush3.bf16.msra.mxu0 %v3834_v23 }
 0x12f   : >> { %3033 = vmatpush3.bf16.msra.mxu1 %v3834_v23  ;;  %3038 = vmatprep.subr.bf16.mxu0 %v3122_v57 }
 0x130   : >> { %3050 = vmatprep.subr.bf16.mxu1 %v3122_v57 }
 0x131   : >> { %v750_v18 = vpop.f32.mrf.mxu0  ;;  %3023 = vmatmul.mubr.msk.bf16.vlgmr.msra.gmra.mxu0 %vm356_vm1, %v2380_v1 }
 0x132   : >> { %v794_v22 = vpop.f32.mrf.mxu1  ;;  %3035 = vmatmul.mubr.msk.bf16.vlgmr.msra.gmra.mxu1 %vm356_vm1, %v2390_v7  ;;  %v756_v27 = vadd.f32 %v750_v18, %v629_v26  ;;  %3039 = vmatpush3.bf16.msra.mxu0 %v3848_v33 }
 0x133   : >> { %v800_v28 = vadd.f32 %v794_v22, %v688_v14  ;;  %3051 = vmatpush3.bf16.msra.mxu1 %v3848_v33  ;;  %v2736_v23 = vpop.f32.mrf.mxu0  ;;  %3040 = vmatprep.subr.bf16.mxu0 %v3122_v57 }
 0x134   : >> { %v2748_v37 = vpop.f32.mrf.mxu1  ;;  %3052 = vmatprep.subr.bf16.mxu1 %v3122_v57  ;;  %3046 = vmatprep.mubr.msk.bf16.mxu0 %vm3123_vm0, %v3122_v57 }
 0x135   : >> { %3058 = vmatprep.mubr.msk.bf16.mxu1 %vm3123_vm0, %v3122_v57  ;;  %v753_v0 = vpop.f32.mrf.mxu0 }
 0x136   : >> { %v797_v34 = vpop.f32.mrf.mxu1  ;;  %3041 = vmatpush3.bf16.msra.mxu0 %v3862_v35 }
 0x137   : >> { %3053 = vmatpush3.bf16.msra.mxu1 %v3862_v35  ;;  %v2737_v33 = vpop.f32.mrf.mxu0  ;;  %3042 = vmatprep.subr.bf16.mxu0 %v3122_v57  ;;  %v2133_v35 = vrot.slane %v2390_v7, %v3600_v8 }
 0x138   : >> { %v2749_v40 = vpop.f32.mrf.mxu1  ;;  %3054 = vmatprep.subr.bf16.mxu1 %v3122_v57 }
 0x139   : >> { %v2137_v8 = vshll.u32 %v2133_v35, 16  ;;  %v2135_v17 = vshrl.u32 %v2133_v35, 16 }
 0x13a   : >> { %3043 = vmatpush3.bf16.msra.mxu0 %v3874_v39 }
 0x13b   : >> { %3055 = vmatpush3.bf16.msra.mxu1 %v3874_v39  ;;  %3044 = vmatprep.subr.bf16.mxu0 %v3122_v57  ;;  %v2139_v19 = vrot.slane %v2137_v8, 1 }
 0x13c   : >> { %3056 = vmatprep.subr.bf16.mxu1 %v3122_v57 }
 0x13d   : >> { %v2140_v30 = vor.u32 %v2139_v19, %v2135_v17 }
 0x13e   : >> { %3045 = vmatpush3.bf16.msra.mxu0 %v3882_v43 }
 0x13f   : >> { %3057 = vmatpush3.bf16.msra.mxu1 %v3882_v43  ;;  %3062 = vmatprep.subr.bf16.mxu0 %v3122_v57 }
 0x140   : >> { %3074 = vmatprep.subr.bf16.mxu1 %v3122_v57 }
 0x141   : >> { %v859_v5 = vpop.f32.mrf.mxu0  ;;  %3047 = vmatmul.mubr.msk.bf16.vlgmr.msra.gmra.mxu0 %vm356_vm1, %v2390_v7 }
 0x142   : >> { %v918_v6 = vpop.f32.mrf.mxu1  ;;  %3059 = vmatmul.mubr.msk.bf16.vlgmr.msra.gmra.mxu1 %vm356_vm1, %v2040_v4  ;;  %v865_v39 = vadd.f32 %v859_v5, %v756_v27  ;;  %3063 = vmatpush3.bf16.msra.mxu0 %v3892_v36 }
 0x143   : >> { %v924_v10 = vadd.f32 %v918_v6, %v800_v28  ;;  %3075 = vmatpush3.bf16.msra.mxu1 %v3892_v36  ;;  %v2760_v11 = vpop.f32.mrf.mxu0  ;;  %3064 = vmatprep.subr.bf16.mxu0 %v3122_v57 }
 0x144   : >> { %v2772_v43 = vpop.f32.mrf.mxu1  ;;  %3076 = vmatprep.subr.bf16.mxu1 %v3122_v57  ;;  %3070 = vmatprep.mubr.msk.bf16.mxu0 %vm3123_vm0, %v3122_v57 }
 0x145   : >> { %3082 = vmatprep.mubr.msk.bf16.mxu1 %vm3123_vm0, %v3122_v57  ;;  %v862_v15 = vpop.f32.mrf.mxu0 }
 0x146   : >> { %v921_v16 = vpop.f32.mrf.mxu1  ;;  %3065 = vmatpush3.bf16.msra.mxu0 %v3906_v42 }
 0x147   : >> { %3077 = vmatpush3.bf16.msra.mxu1 %v3906_v42  ;;  %v2761_v36 = vpop.f32.mrf.mxu0  ;;  %3066 = vmatprep.subr.bf16.mxu0 %v3122_v57 }
 0x148   : >> { %v2773_v25 = vpop.f32.mrf.mxu1  ;;  %3078 = vmatprep.subr.bf16.mxu1 %v3122_v57 }
 0x14a   : >> { %3067 = vmatpush3.bf16.msra.mxu0 %v3918_v45 }
 0x14b   : >> { %3079 = vmatpush3.bf16.msra.mxu1 %v3918_v45  ;;  %3068 = vmatprep.subr.bf16.mxu0 %v3122_v57 }
 0x14c   : >> { %3080 = vmatprep.subr.bf16.mxu1 %v3122_v57 }
 0x14e   : >> { %3069 = vmatpush3.bf16.msra.mxu0 %v3926_v48 }
 0x14f   : >> { %3081 = vmatpush3.bf16.msra.mxu1 %v3926_v48 }
 0x151   : >> { %v983_v42 = vpop.f32.mrf.mxu0  ;;  %3071 = vmatmul.mubr.msk.bf16.vlgmr.msra.gmra.mxu0 %vm356_vm1, %v2040_v4 }
 0x152   : >> { %v1042_v21 = vpop.f32.mrf.mxu1  ;;  %3083 = vmatmul.mubr.msk.bf16.vlgmr.msra.gmra.mxu1 %vm356_vm1, %v2140_v30  ;;  %v989_v31 = vadd.f32 %v983_v42, %v865_v39 }
 0x153   : >> { %v1048_v46 = vadd.f32 %v1042_v21, %v924_v10  ;;  %v2784_v24 = vpop.f32.mrf.mxu0 }
 0x154   : >> { %v2796_v32 = vpop.f32.mrf.mxu1 }
 0x155   : >> { %v986_v45 = vpop.f32.mrf.mxu0 }
 0x156   : >> { %v1045_v47 = vpop.f32.mrf.mxu1 }
 0x157   : >> { %v2785_v58 = vpop.f32.mrf.mxu0 }
 0x158   : >> { %v2797_v60 = vpop.f32.mrf.mxu1 }
 0x161   : >> { %v1110_v57 = vpop.f32.mrf.mxu0 }
 0x162   : >> { %v1154_v61 = vpop.f32.mrf.mxu1  ;;  %v1116_v26 = vadd.f32 %v1110_v57, %v989_v31 }
 0x163   : >> { %v1160_v14 = vadd.f32 %v1154_v61, %v1048_v46  ;;  %v2808_v13 = vpop.f32.mrf.mxu0 }
 0x164   : >> { %v2820_v48 = vpop.f32.mrf.mxu1 }
 0x165   : >> { %v1113_v29 = vpop.f32.mrf.mxu0 }
 0x166   : >> { %v1157_v2 = vpop.f32.mrf.mxu1 }
 0x167   : >> { %v2809_v9 = vpop.f32.mrf.mxu0 }
 0x168   : >> { %v2821_v3 = vpop.f32.mrf.mxu1 }
 0x171   : >> { %v1219_v12 = vpop.f32.mrf.mxu0 }
 0x172   : >> { %v1278_v1 = vpop.f32.mrf.mxu1  ;;  %v1225_v7 = vadd.f32 %v1219_v12, %v1116_v26 }
 0x173   : >> { %v1284_v18 = vadd.f32 %v1278_v1, %v1160_v14  ;;  %v2832_v22 = vpop.f32.mrf.mxu0 }
 0x174   : >> { %v2844_v20 = vpop.f32.mrf.mxu1 }
 0x175   : >> { %v1222_v27 = vpop.f32.mrf.mxu0 }
 0x176   : >> { %v1281_v28 = vpop.f32.mrf.mxu1 }
 0x177   : >> { %v2833_v23 = vpop.f32.mrf.mxu0 }
 0x178   : >> { %v2845_v37 = vpop.f32.mrf.mxu1 }
 0x181   : >> { %v1343_v38 = vpop.f32.mrf.mxu0 }
 0x182   : >> { %v1402_v0 = vpop.f32.mrf.mxu1  ;;  %v4152_v34 = vadd.f32 %v1343_v38, %v1225_v7 }
 0x183   : >> { %v4154_v33 = vadd.f32 %v1402_v0, %v1284_v18  ;;  %v2856_v40 = vpop.f32.mrf.mxu0 }
 0x184   : >> { %v2868_v41 = vpop.f32.mrf.mxu1 }
 0x185   : >> { %v2185_v44 = vmax.f32 %v4152_v34, %v4154_v33  ;;  %v1346_v4 = vpop.f32.mrf.mxu0 }
 0x186   : >> { %v1405_v35 = vpop.f32.mrf.mxu1 }
 0x187   : >> { %v2857_v5 = vpop.f32.mrf.mxu0 }
 0x188   : >> { %v2869_v6 = vpop.f32.mrf.mxu1 }
 0x191   : >> { %v1443_v39 = vpop.f32.mrf.mxu0 }
 0x192   : >> { %v1483_v10 = vpop.f32.mrf.mxu1 }
 0x193   : >> { %v1484_v11 = vadd.f32 %v1483_v10, %v1443_v39  ;;  %v2880_v43 = vpop.f32.mrf.mxu0 }
 0x194   : >> { %v2892_v8 = vpop.f32.mrf.mxu1 }
 0x195   : >> { %v1446_v15 = vpop.f32.mrf.mxu0 }
 0x196   : >> { %v1486_v16 = vpop.f32.mrf.mxu1 }
 0x197   : >> { %v2881_v36 = vpop.f32.mrf.mxu0 }
 0x198   : >> { %v2893_v25 = vpop.f32.mrf.mxu1 }
 0x1a1   : >> { %v1523_v17 = vpop.f32.mrf.mxu0 }
 0x1a2   : >> { %v1563_v19 = vpop.f32.mrf.mxu1 }
 0x1a3   : >> { %v1564_v30 = vadd.f32 %v1563_v19, %v1523_v17  ;;  %v2904_v42 = vpop.f32.mrf.mxu0 }
 0x1a4   : >> { %v2916_v21 = vpop.f32.mrf.mxu1 }
 0x1a5   : >> { %v1526_v31 = vpop.f32.mrf.mxu0 }
 0x1a6   : >> { %v1566_v46 = vpop.f32.mrf.mxu1 }
 0x1a7   : >> { %v2905_v24 = vpop.f32.mrf.mxu0 }
 0x1a8   : >> { %v2917_v32 = vpop.f32.mrf.mxu1 }
 0x1b1   : >> { %v1603_v45 = vpop.f32.mrf.mxu0 }
 0x1b2   : >> { %v1644_v47 = vpop.f32.mrf.mxu1  ;;  %v1609_v58 = vadd.f32 %v1603_v45, %v1484_v11 }
 0x1b3   : >> { %v1650_v60 = vadd.f32 %v1644_v47, %v1564_v30  ;;  %v2928_v57 = vpop.f32.mrf.mxu0 }
 0x1b4   : >> { %v2940_v61 = vpop.f32.mrf.mxu1 }
 0x1b5   : >> { %v1606_v26 = vpop.f32.mrf.mxu0 }
 0x1b6   : >> { %v1647_v14 = vpop.f32.mrf.mxu1 }
 0x1b7   : >> { %v2929_v13 = vpop.f32.mrf.mxu0 }
 0x1b8   : >> { %v2941_v48 = vpop.f32.mrf.mxu1 }
 0x1c1   : >> { %v1685_v29 = vpop.f32.mrf.mxu0 }
 0x1c2   : >> { %v1726_v2 = vpop.f32.mrf.mxu1  ;;  %v1691_v9 = vadd.f32 %v1685_v29, %v1609_v58 }
 0x1c3   : >> { %v1732_v3 = vadd.f32 %v1726_v2, %v1650_v60  ;;  %v2952_v12 = vpop.f32.mrf.mxu0 }
 0x1c4   : >> { %v2964_v1 = vpop.f32.mrf.mxu1 }
 0x1c5   : >> { %v1688_v7 = vpop.f32.mrf.mxu0 }
 0x1c6   : >> { %v1729_v18 = vpop.f32.mrf.mxu1 }
 0x1c7   : >> { %v2953_v22 = vpop.f32.mrf.mxu0 }
 0x1c8   : >> { %v2965_v20 = vpop.f32.mrf.mxu1 }
 0x1d1   : >> { %v1767_v27 = vpop.f32.mrf.mxu0 }
 0x1d2   : >> { %v1808_v28 = vpop.f32.mrf.mxu1  ;;  %v1773_v58 = vadd.f32 %v1767_v27, %v1691_v9 }
 0x1d3   : >> { %v2976_v23 = vpop.f32.mrf.mxu0  ;;  %v1814_v60 = vadd.f32 %v1808_v28, %v1732_v3  ;;  %v4298_v28 = vld [vmem:[#allocation2_spill] sm:$0xff] }
 0x1d4   : >> { %v2988_v37 = vpop.f32.mrf.mxu1 }
 0x1d5   : >> { %v1770_v38 = vpop.f32.mrf.mxu0 }
 0x1d6   : >> { %v1811_v0 = vpop.f32.mrf.mxu1 }
 0x1d7   : >> { %v2977_v40 = vpop.f32.mrf.mxu0 }
 0x1d8   : >> { %v2989_v41 = vpop.f32.mrf.mxu1 }
 0x1e1   : >> { %v1849_v4 = vpop.f32.mrf.mxu0 }
 0x1e2   : >> { %v1890_v35 = vpop.f32.mrf.mxu1  ;;  %v1855_v57 = vadd.f32 %v1849_v4, %v1773_v58 }
 0x1e3   : >> { %v3000_v5 = vpop.f32.mrf.mxu0  ;;  %v1896_v61 = vadd.f32 %v1890_v35, %v1814_v60 }
 0x1e4   : >> { %v3012_v6 = vpop.f32.mrf.mxu1 }
 0x1e5   : >> { %v1852_v39 = vpop.f32.mrf.mxu0 }
 0x1e6   : >> { %v1893_v10 = vpop.f32.mrf.mxu1 }
 0x1e7   : >> { %v3001_v11 = vpop.f32.mrf.mxu0 }
 0x1e8   : >> { %v3013_v43 = vpop.f32.mrf.mxu1 }
 0x1f1   : >> { %v1934_v8 = vpop.f32.mrf.mxu0 }
 0x1f2   : >> { %v1978_v15 = vpop.f32.mrf.mxu1  ;;  %v1940_v26 = vadd.f32 %v1934_v8, %v1855_v57 }
 0x1f3   : >> { %v3024_v16 = vpop.f32.mrf.mxu0  ;;  %v1984_v14 = vadd.f32 %v1978_v15, %v1896_v61 }
 0x1f4   : >> { %v3036_v36 = vpop.f32.mrf.mxu1 }
 0x1f5   : >> { %v1937_v25 = vpop.f32.mrf.mxu0 }
 0x1f6   : >> { %v1981_v17 = vpop.f32.mrf.mxu1 }
 0x1f7   : >> { %v3025_v19 = vpop.f32.mrf.mxu0 }
 0x1f8   : >> { %v3037_v30 = vpop.f32.mrf.mxu1 }
 0x201   : >> { %v2019_v42 = vpop.f32.mrf.mxu0 }
 0x202   : >> { %v2078_v21 = vpop.f32.mrf.mxu1  ;;  %v2025_v13 = vadd.f32 %v2019_v42, %v1940_v26 }
 0x203   : >> { %v3048_v31 = vpop.f32.mrf.mxu0  ;;  %v2084_v48 = vadd.f32 %v2078_v21, %v1984_v14 }
 0x204   : >> { %v3060_v46 = vpop.f32.mrf.mxu1 }
 0x205   : >> { %v2022_v24 = vpop.f32.mrf.mxu0 }
 0x206   : >> { %v2081_v32 = vpop.f32.mrf.mxu1 }
 0x207   : >> { %v3049_v45 = vpop.f32.mrf.mxu0 }
 0x208   : >> { %v3061_v47 = vpop.f32.mrf.mxu1 }
 0x211   : >> { %v2119_v29 = vpop.f32.mrf.mxu0 }
 0x212   : >> { %v2178_v2 = vpop.f32.mrf.mxu1  ;;  %v2125_v12 = vadd.f32 %v2119_v29, %v2025_v13 }
 0x213   : >> { %v2184_v1 = vadd.f32 %v2178_v2, %v2084_v48  ;;  %v3072_v7 = vpop.f32.mrf.mxu0 }
 0x214   : >> { %v3084_v18 = vpop.f32.mrf.mxu1 }
 0x215   : >> { %v2186_v22 = vmax.f32 %v2125_v12, %v2184_v1  ;;  %v2122_v20 = vpop.f32.mrf.mxu0 }
 0x216   : >> { %v2181_v23 = vpop.f32.mrf.mxu1 }
 0x217   : >> { %v2187_v9 = vmax.f32 %v2185_v44, %v2186_v22  ;;  %v3073_v3 = vpop.f32.mrf.mxu0 }
 0x218   : >> { %v3085_v27 = vpop.f32.mrf.mxu1 }
 0x219   : >> { %v2194_v37 = vadd.f32 %v4298_v28, %v2187_v9 }
 0x21b   : >> { %v2195_v38 = vmax.f32 %v2194_v37, 0.0  ;;  %302 = sbr.rel (!%p300_p4) target bundleno = 47 (0x2f), region = 93 }
 0x21d   : >> { %v2196_v0 = vpack.c.bf16 %v2195_v38, %v2195_v38 }
 0x21f   : >> { %2198 = vst [vmem:[%s2197_s19] sm:$0x1] %v2196_v0 }
 0x220 PF: > { %s14_s15 = sadd.s32 1, %s3116_s15  }
 0x221   : > { %p11_p5 = scmp.ge.s32.totalorder %s14_s15, 4  }
 0x223   :  { %13 = sbr.rel (!%p11_p5) target bundleno = 1 (0x1), region = 104 }

</bundles_post_ra>
